<compile_context>
chip_gen: v6e
topology: v6e:2x2x1
jax: 0.10.0
libtpu: 0.0.40
codegen_flags: <defaults>
</compile_context>

<pallas_src>
import functools
import random

import numpy as np
import jax
import jax.numpy as jnp
from jax.experimental import pallas as pl
from jax.experimental.pallas import tpu as pltpu


CP = 128        # every channel dim padded to one full 128-lane width
CIN_PAD = 32    # raw RGB input padded to 32 so space-to-depth gives 4*32 = 128 lanes
_VMEM_LIMIT = 32 * 1024 * 1024   # explicit scoped VMEM budget; safe on v5e/v6e/v7x (<=64MiB)

_COMPILER_PARAMS = pltpu.CompilerParams(
    dimension_semantics=("parallel",),   # batch grid axis -> megacore parallel on v7x
    vmem_limit_bytes=_VMEM_LIMIT,
)


# ==========================================================================
# In-kernel helpers
# ==========================================================================
def _tap_matmul(x_ref, w_ref, taps, oh, ow, cin_eff, cout):
    """Conv as a sum of shifted-tap matmuls; f32 accumulation on the MXU."""
    acc = jnp.zeros((oh * ow, cout), jnp.float32)
    for t, (di, dj) in enumerate(taps):
        xs = x_ref[0, di:di + oh, dj:dj + ow, :].reshape(oh * ow, cin_eff)
        acc = acc + jnp.dot(xs, w_ref[t], preferred_element_type=jnp.float32)
    return acc


# ==========================================================================
# Pallas kernels
# ==========================================================================
def _conv_bn_kernel(x_ref, w_ref, s_ref, b_ref, o_ref, *,
                    oh, ow, cin_eff, cout, taps, relu):
    """Single conv + folded-BN affine (+ReLU) for one image (stem)."""
    acc = _tap_matmul(x_ref, w_ref, taps, oh, ow, cin_eff, cout)
    y = acc * s_ref[...] + b_ref[...]
    if relu:
        y = jnp.maximum(y, 0.0)
    o_ref[0] = y.reshape(oh, ow, cout).astype(o_ref.dtype)


def _block_kernel(xp_ref, w1_ref, s1_ref, b1_ref, w2_ref, s2_ref, b2_ref, *rest,
                  oh, ow, c, cin_eff, taps1, taps2, tapsd, has_down):
    """Fused BasicBlock: conv1+bn+relu -> conv2+bn -> (+residual) -> relu.

    The conv1 output stays in a VMEM scratch (zero border == conv2's spatial
    padding); for stride-1 blocks the identity is read straight from the
    padded input tile, for stride-2 blocks the 1x1 downsample conv+bn is
    computed from the same space-to-depth'd input tile.
    """
    if has_down:
        wd_ref, sd_ref, bd_ref, o_ref, mid_ref = rest
    else:
        o_ref, mid_ref = rest

    # conv1 + bn1 + relu
    acc1 = _tap_matmul(xp_ref, w1_ref, taps1, oh, ow, cin_eff, c)
    y1 = jnp.maximum(acc1 * s1_ref[...] + b1_ref[...], 0.0)

    # stash into zero-padded scratch (border zeros implement conv2's pad=1)
    mid_ref[...] = jnp.zeros_like(mid_ref)
    mid_ref[0, 1:1 + oh, 1:1 + ow, :] = y1.reshape(oh, ow, c).astype(mid_ref.dtype)

    # conv2 + bn2
    acc2 = _tap_matmul(mid_ref, w2_ref, taps2, oh, ow, c, c)
    y2 = acc2 * s2_ref[...] + b2_ref[...]

    # residual path
    if has_down:
        accd = _tap_matmul(xp_ref, wd_ref, tapsd, oh, ow, cin_eff, c)
        ident = accd * sd_ref[...] + bd_ref[...]
    else:
        ident = xp_ref[0, 1:1 + oh, 1:1 + ow, :].reshape(oh * ow, c).astype(jnp.float32)

    out = jnp.maximum(y2 + ident, 0.0)
    o_ref[0] = out.reshape(oh, ow, c).astype(o_ref.dtype)


def _maxpool_kernel(xs_ref, o_ref, *, oh, ow, c):
    """3x3/s2/p1 maxpool on a space-to-depth (phase) input; 9 static slices."""
    m = None
    for i in range(3):
        for j in range(3):
            a, di = i % 2, i // 2
            b, dj = j % 2, j // 2
            ph = a * 2 + b
            v = xs_ref[0, di:di + oh, dj:dj + ow, ph * c:(ph + 1) * c]
            m = v if m is None else jnp.maximum(m, v)
    o_ref[0] = m.astype(o_ref.dtype)


def _mixup_kernel(perm_ref, lam_ref, xa_ref, xb_ref, o_ref):
    """mixed = lam * x[i] + (1-lam) * x[perm[i]] ; perm drives xb's index_map."""
    del perm_ref  # only used by the index_maps (scalar prefetch)
    lam = lam_ref[0]
    xa = xa_ref[...].astype(jnp.float32)
    xb = xb_ref[...].astype(jnp.float32)
    o_ref[...] = (lam * xa + (1.0 - lam) * xb).astype(o_ref.dtype)


def _gap_kernel(x_ref, o_ref):
    """Global average pool: (N, H*W, C) -> (N, C) in f32."""
    o_ref[...] = jnp.mean(x_ref[...].astype(jnp.float32), axis=1)


def _fc_kernel(x_ref, w_ref, b_ref, o_ref):
    y = jnp.dot(x_ref[...], w_ref[...], preferred_element_type=jnp.float32)
    o_ref[...] = y + b_ref[...]


# ==========================================================================
# Wrapper-side glue (XLA): padding / space-to-depth / layout only
# ==========================================================================
def _space_to_depth(x, pad_value=0.0):
    n, hp, wp, c = x.shape
    eh, ew = hp % 2, wp % 2
    if eh or ew:
        x = jnp.pad(x, ((0, 0), (0, eh), (0, ew), (0, 0)),
                    constant_values=jnp.asarray(pad_value, x.dtype))
        hp, wp = hp + eh, wp + ew
    x = (x.reshape(n, hp // 2, 2, wp // 2, 2, c)
          .transpose(0, 1, 3, 2, 4, 5)
          .reshape(n, hp // 2, wp // 2, 4 * c))
    return x


def _prep_input(x, *, cin_pad, spatial_pad, s2d, dtype=jnp.bfloat16):
    n, h, w, c = x.shape
    if c < cin_pad:
        x = jnp.pad(x, ((0, 0), (0, 0), (0, 0), (0, cin_pad - c)))
    if spatial_pad:
        x = jnp.pad(x, ((0, 0), (spatial_pad, spatial_pad),
                        (spatial_pad, spatial_pad), (0, 0)))
    if s2d:
        x = _space_to_depth(x)
    return x.astype(dtype)


def _conv_bn_call(x, p, relu=True):
    n, h, w, _ = x.shape
    kh, kw = p["ksize"]
    s, cpad = p["stride"], p["conv_pad"]
    oh = (h + 2 * cpad - kh) // s + 1
    ow = (w + 2 * cpad - kw) // s + 1
    xp = _prep_input(x, cin_pad=p["cin_pad"], spatial_pad=p["input_pad"], s2d=(s == 2))
    cin_eff = xp.shape[-1]
    kern = functools.partial(_conv_bn_kernel, oh=oh, ow=ow, cin_eff=cin_eff,
                             cout=CP, taps=p["taps"], relu=relu)
    return pl.pallas_call(
        kern,
        out_shape=jax.ShapeDtypeStruct((n, oh, ow, CP), jnp.bfloat16),
        grid=(n,),
        in_specs=[
            pl.BlockSpec((1,) + xp.shape[1:], lambda i: (i, 0, 0, 0)),
            pl.BlockSpec(p["w_eff"].shape, lambda i: (0, 0, 0)),
            pl.BlockSpec((1, CP), lambda i: (0, 0)),
            pl.BlockSpec((1, CP), lambda i: (0, 0)),
        ],
        out_specs=pl.BlockSpec((1, oh, ow, CP), lambda i: (i, 0, 0, 0)),
        compiler_params=_COMPILER_PARAMS,
    )(xp, p["w_eff"], p["scale"], p["shift"])


def _basic_block_call(x, bp):
    n, h, w, _ = x.shape
    s = bp["stride"]
    oh = (h + 2 - 3) // s + 1
    ow = (w + 2 - 3) // s + 1
    xp = _prep_input(x, cin_pad=CP, spatial_pad=1, s2d=(s == 2))
    cin_eff = xp.shape[-1]
    c1, c2, dn = bp["conv1"], bp["conv2"], bp["down"]
    has_down = dn is not None

    kern = functools.partial(
        _block_kernel, oh=oh, ow=ow, c=CP, cin_eff=cin_eff,
        taps1=c1["taps"], taps2=c2["taps"],
        tapsd=(dn["taps"] if has_down else None), has_down=has_down)

    in_specs = [
        pl.BlockSpec((1,) + xp.shape[1:], lambda i: (i, 0, 0, 0)),
        pl.BlockSpec(c1["w_eff"].shape, lambda i: (0, 0, 0)),
        pl.BlockSpec((1, CP), lambda i: (0, 0)),
        pl.BlockSpec((1, CP), lambda i: (0, 0)),
        pl.BlockSpec(c2["w_eff"].shape, lambda i: (0, 0, 0)),
        pl.BlockSpec((1, CP), lambda i: (0, 0)),
        pl.BlockSpec((1, CP), lambda i: (0, 0)),
    ]
    args = [xp, c1["w_eff"], c1["scale"], c1["shift"],
            c2["w_eff"], c2["scale"], c2["shift"]]
    if has_down:
        in_specs += [
            pl.BlockSpec(dn["w_eff"].shape, lambda i: (0, 0, 0)),
            pl.BlockSpec((1, CP), lambda i: (0, 0)),
            pl.BlockSpec((1, CP), lambda i: (0, 0)),
        ]
        args += [dn["w_eff"], dn["scale"], dn["shift"]]

    return pl.pallas_call(
        kern,
        out_shape=jax.ShapeDtypeStruct((n, oh, ow, CP), jnp.bfloat16),
        grid=(n,),
        in_specs=in_specs,
        out_specs=pl.BlockSpec((1, oh, ow, CP), lambda i: (i, 0, 0, 0)),
        scratch_shapes=[pltpu.VMEM((1, oh + 2, ow + 2, CP), jnp.bfloat16)],
        compiler_params=_COMPILER_PARAMS,
    )(*args)


def _maxpool_3x3_s2_p1(x):
    n, h, w, c = x.shape
    oh = (h + 2 - 3) // 2 + 1
    ow = (w + 2 - 3) // 2 + 1
    neg = jnp.asarray(-jnp.inf, x.dtype)
    xp = jnp.pad(x, ((0, 0), (1, 1), (1, 1), (0, 0)), constant_values=neg)
    xs = _space_to_depth(xp, pad_value=-jnp.inf)   # (N, ceil(Hp/2), ceil(Wp/2), 4C)
    kern = functools.partial(_maxpool_kernel, oh=oh, ow=ow, c=c)
    return pl.pallas_call(
        kern,
        out_shape=jax.ShapeDtypeStruct((n, oh, ow, c), x.dtype),
        grid=(n,),
        in_specs=[pl.BlockSpec((1,) + xs.shape[1:], lambda i: (i, 0, 0, 0))],
        out_specs=pl.BlockSpec((1, oh, ow, c), lambda i: (i, 0, 0, 0)),
        compiler_params=_COMPILER_PARAMS,
    )(xs)


def _global_mean(x):
    n, h, w, c = x.shape
    xr = x.reshape(n, h * w, c)
    return pl.pallas_call(
        _gap_kernel,
        out_shape=jax.ShapeDtypeStruct((n, c), jnp.float32),
        in_specs=[pl.BlockSpec(memory_space=pltpu.MemorySpace.VMEM)],
        out_specs=pl.BlockSpec(memory_space=pltpu.MemorySpace.VMEM),
    )(xr)


def _fc_head(feats, params):
    x = feats.astype(jnp.bfloat16)
    logits = pl.pallas_call(
        _fc_kernel,
        out_shape=jax.ShapeDtypeStruct((x.shape[0], CP), jnp.float32),
        in_specs=[pl.BlockSpec(memory_space=pltpu.MemorySpace.VMEM)] * 3,
        out_specs=pl.BlockSpec(memory_space=pltpu.MemorySpace.VMEM),
    )(x, params["fc_w"], params["fc_b"])
    return logits[:, :params["num_classes"]]


def _mixup_data(x, y, lam, perm):
    """mixup_data(): permuted gather fused via scalar-prefetch index_map."""
    n, h, w, c = x.shape
    lam_arr = jnp.asarray(lam, jnp.float32).reshape((1,))
    grid_spec = pltpu.PrefetchScalarGridSpec(
        num_scalar_prefetch=1,       # perm -> SMEM, drives xb's index_map
        grid=(n,),
        in_specs=[
            pl.BlockSpec(memory_space=pltpu.MemorySpace.SMEM),            # lam scalar
            pl.BlockSpec((1, h, w, c), lambda i, perm_ref: (i, 0, 0, 0)),
            pl.BlockSpec((1, h, w, c), lambda i, perm_ref: (perm_ref[i], 0, 0, 0)),
        ],
        out_specs=pl.BlockSpec((1, h, w, c), lambda i, perm_ref: (i, 0, 0, 0)),
    )
    mixed = pl.pallas_call(
        _mixup_kernel,
        grid_spec=grid_spec,
        out_shape=jax.ShapeDtypeStruct(x.shape, x.dtype),
        compiler_params=_COMPILER_PARAMS,
    )(perm, lam_arr, x, x)
    return mixed, y, y[perm], lam


# ==========================================================================
# Parameter construction (eval-mode BN folded into per-channel scale/shift,
# effective tap weights prebuilt at init for stride-1 / space-to-depth form)
# ==========================================================================
def _make_eff_weights(w_hwio, stride, delta, cin_pad, cout_pad):
    kh, kw, cin, cout = w_hwio.shape
    wp = np.zeros((kh, kw, cin_pad, cout_pad), np.float32)
    wp[:, :, :cin, :cout] = np.asarray(w_hwio, np.float32)
    if stride == 1:
        taps = tuple((i + delta, j + delta) for i in range(kh) for j in range(kw))
        w_eff = wp.reshape(kh * kw, cin_pad, cout_pad)
        return jnp.asarray(w_eff, jnp.bfloat16), taps, cin_pad
    # stride 2: conv runs on the space-to-depth'd input (4*cin_pad channels)
    keh = (kh - 1 + delta) // 2 + 1
    kew = (kw - 1 + delta) // 2 + 1
    w_eff = np.zeros((keh, kew, 4 * cin_pad, cout_pad), np.float32)
    for i in range(kh):
        for j in range(kw):
            ip, jp = i + delta, j + delta
            a, di = ip % 2, ip // 2
            b, dj = jp % 2, jp // 2
            ph = a * 2 + b
            w_eff[di, dj, ph * cin_pad:(ph + 1) * cin_pad, :] += wp[i, j]
    taps = tuple((di, dj) for di in range(keh) for dj in range(kew))
    w_eff = w_eff.reshape(keh * kew, 4 * cin_pad, cout_pad)
    return jnp.asarray(w_eff, jnp.bfloat16), taps, 4 * cin_pad


def _fold_bn(key, cout, cout_pad):
    kg, kb, km, kv = jax.random.split(key, 4)
    gamma = 1.0 + 0.1 * jax.random.normal(kg, (cout,), jnp.float32)
    beta = 0.1 * jax.random.normal(kb, (cout,), jnp.float32)
    mean = 0.1 * jax.random.normal(km, (cout,), jnp.float32)
    var = 1.0 + 0.1 * jax.random.uniform(kv, (cout,), jnp.float32)
    scale = gamma / jnp.sqrt(var + 1e-5)
    shift = beta - mean * scale
    scale_p = jnp.ones((cout_pad,), jnp.float32).at[:cout].set(scale)
    shift_p = jnp.zeros((cout_pad,), jnp.float32).at[:cout].set(shift)
    return scale_p.reshape(1, cout_pad), shift_p.reshape(1, cout_pad)


def _init_conv_bn(key, kh, kw, cin, cout, *, stride, conv_pad, input_pad, cin_pad):
    kconv, kbn = jax.random.split(key)
    fan_in = kh * kw * cin
    w = jax.random.normal(kconv, (kh, kw, cin, cout), jnp.float32) / jnp.sqrt(fan_in)
    scale, shift = _fold_bn(kbn, cout, CP)
    delta = input_pad - conv_pad
    w_eff, taps, kin_eff = _make_eff_weights(w, stride, delta, cin_pad, CP)
    return {"w_eff": w_eff, "taps": taps, "kin_eff": kin_eff,
            "scale": scale, "shift": shift,
            "ksize": (kh, kw), "stride": stride, "conv_pad": conv_pad,
            "input_pad": input_pad, "cin_pad": cin_pad}


def init_resnet_params(key, in_ch=3, widths=(8, 16, 32, 64),
                       blocks=(2, 2, 2, 2), num_classes=10):
    keys = jax.random.split(key, 64)
    ki = iter(keys)
    params = {"conv1": _init_conv_bn(next(ki), 7, 7, in_ch, widths[0],
                                     stride=2, conv_pad=3, input_pad=3,
                                     cin_pad=CIN_PAD)}
    cin = widths[0]
    for li, (w_, nb) in enumerate(zip(widths, blocks)):
        layer = []
        for b in range(nb):
            stride = 1 if (li == 0 or b > 0) else 2
            down = None
            if stride != 1 or cin != w_:
                down = _init_conv_bn(next(ki), 1, 1, cin, w_, stride=stride,
                                     conv_pad=0, input_pad=1, cin_pad=CP)
            layer.append({
                "conv1": _init_conv_bn(next(ki), 3, 3, cin, w_, stride=stride,
                                       conv_pad=1, input_pad=1, cin_pad=CP),
                "conv2": _init_conv_bn(next(ki), 3, 3, w_, w_, stride=1,
                                       conv_pad=1, input_pad=1, cin_pad=CP),
                "down": down,
                "stride": stride,
            })
            cin = w_
        params[f"layer{li + 1}"] = layer
    kfw, kfb = jax.random.split(next(ki))
    fc_w = jax.random.normal(kfw, (cin, num_classes), jnp.float32) / jnp.sqrt(cin)
    fc_b = 0.01 * jax.random.normal(kfb, (num_classes,), jnp.float32)
    params["fc_w"] = (jnp.zeros((CP, CP), jnp.float32)
                      .at[:cin, :num_classes].set(fc_w)).astype(jnp.bfloat16)
    params["fc_b"] = jnp.zeros((1, CP), jnp.float32).at[0, :num_classes].set(fc_b)
    params["widths"] = tuple(widths)
    params["num_classes"] = num_classes
    return params


# ==========================================================================
# ResNet pieces
# ==========================================================================
def _stem(x, params):
    out = _conv_bn_call(x, params["conv1"], relu=True)   # conv1 + bn1 + relu
    out = _maxpool_3x3_s2_p1(out)                         # maxpool 3x3/s2/p1
    return out


def _run_layer(x, layer_params):
    for bp in layer_params:
        x = _basic_block_call(x, bp)
    return x


# ==========================================================================
# ResNetMixup.forward
# ==========================================================================
def resnet_mixup_forward(params, x_nchw, target=None, mixup=False,
                         mixup_hidden=True, lam=0.4, emb_out_layer=-1,
                         rng_key=None):
    # NCHW (PyTorch) -> NHWC so channels ride the 128-lane axis.
    x = jnp.transpose(x_nchw, (0, 2, 3, 1)).astype(jnp.float32)
    widths = params["widths"]
    layers = [params["layer1"], params["layer2"], params["layer3"], params["layer4"]]

    if target is not None:
        if mixup_hidden:
            # host-side Python RNG, exactly like random.randint(0, 4) in the module
            layer_mix = random.randint(0, 4)
        elif mixup:
            layer_mix = 0
        else:
            layer_mix = None
        if rng_key is None:
            rng_key = jax.random.PRNGKey(0)
        perm = jax.random.permutation(rng_key, x.shape[0])   # torch.randperm

        out = x
        target_a = target_b = target
        if layer_mix == 0:
            out, target_a, target_b, lam = _mixup_data(out, target, lam, perm)
        out = _stem(out, params)
        out = _run_layer(out, layers[0])
        if layer_mix == 1:
            out, target_a, target_b, lam = _mixup_data(out, target, lam, perm)
        out = _run_layer(out, layers[1])
        if layer_mix == 2:
            out, target_a, target_b, lam = _mixup_data(out, target, lam, perm)
        out = _run_layer(out, layers[2])
        if layer_mix == 3:
            out, target_a, target_b, lam = _mixup_data(out, target, lam, perm)
        out = _run_layer(out, layers[3])
        if layer_mix == 4:
            out, target_a, target_b, lam = _mixup_data(out, target, lam, perm)
        feats = _global_mean(out)[:, :widths[-1]]            # avgpool + flatten
        return feats, target_a, target_b

    elif emb_out_layer == -1:
        # self.model(x): full ResNet including the final fc.
        out = _stem(x, params)
        for lp in layers:
            out = _run_layer(out, lp)
        feats = _global_mean(out)
        return _fc_head(feats, params)

    else:
        result = []
        out = _stem(x, params)
        out = _run_layer(out, layers[0])
        if emb_out_layer == 0:
            return _global_mean(out)[:, :widths[0]]
        if emb_out_layer == -2:
            result.append(_global_mean(out)[:, :widths[0]])
        out = _run_layer(out, layers[1])
        if emb_out_layer == 1:
            return _global_mean(out)[:, :widths[1]]
        if emb_out_layer == -2:
            result.append(_global_mean(out)[:, :widths[1]])
        out = _run_layer(out, layers[2])
        if emb_out_layer == 2:
            return _global_mean(out)[:, :widths[2]]
        if emb_out_layer == -2:
            result.append(_global_mean(out)[:, :widths[2]])
        out = _run_layer(out, layers[3])
        feats = _global_mean(out)[:, :widths[3]]
        if emb_out_layer == -2:
            result.append(feats)
            return result
        return feats


if __name__ == "__main__":
    random.seed(0)
    key = jax.random.PRNGKey(0)
    kp, kx, ky, kf = jax.random.split(key, 4)

    params = init_resnet_params(kp)                          # small ResNet-18-like
    x = jax.random.normal(kx, (2, 3, 32, 32), jnp.float32)   # NCHW like PyTorch
    target = jax.random.randint(ky, (2,), 0, 10)

    out, t_a, t_b = resnet_mixup_forward(
        params, x, target=target, mixup_hidden=True, lam=0.4, rng_key=kf)
    jax.block_until_ready(out)
    jax.block_until_ready(t_a)
    jax.block_until_ready(t_b)
    assert out.shape == (2, 64) and t_a.shape == (2,) and t_b.shape == (2,)

    # Also exercise the target=None full-model path (with fc) once.
    logits = resnet_mixup_forward(params, x, target=None, emb_out_layer=-1)
    jax.block_until_ready(logits)
    assert logits.shape == (2, 10)

    print("KERNEL_OK")
</pallas_src>

<mosaic_0001>
module attributes {stable_mosaic.version = 11 : i64} {
  func.func @_conv_bn_kernel(%arg0: i32, %arg1: memref<1x19x19x128xbf16, #tpu.memory_space<vmem>>, %arg2: memref<16x128x128xbf16, #tpu.memory_space<vmem>>, %arg3: memref<1x128xf32, #tpu.memory_space<vmem>>, %arg4: memref<1x128xf32, #tpu.memory_space<vmem>>, %arg5: memref<1x16x16x128xbf16, #tpu.memory_space<vmem>>) attributes {dimension_semantics = [#tpu.dimension_semantics<parallel>], iteration_bounds = array<i64: 2>, scalar_prefetch = 0 : i64, scratch_operands = 0 : i64, tpu.core_type = #tpu.core_type<tc>, window_params = [{transform_indices = @transform_0, window_bounds = array<i64: 1, 19, 19, 128>}, {pipeline_mode = #tpu.pipeline_mode<synchronous>, transform_indices = @transform_1, window_bounds = array<i64: 16, 128, 128>}, {pipeline_mode = #tpu.pipeline_mode<synchronous>, transform_indices = @transform_2, window_bounds = array<i64: 1, 128>}, {pipeline_mode = #tpu.pipeline_mode<synchronous>, transform_indices = @transform_3, window_bounds = array<i64: 1, 128>}, {transform_indices = @transform_4, window_bounds = array<i64: 1, 16, 16, 128>}]} {
    %cst = arith.constant 0.000000e+00 : f32
    %0 = vector.broadcast %cst : f32 to vector<256x128xf32>
    %c0 = arith.constant 0 : index
    %c0_0 = arith.constant 0 : index
    %c0_1 = arith.constant 0 : index
    %c0_2 = arith.constant 0 : index
    %1 = vector.load %arg1[%c0, %c0_0, %c0_1, %c0_2] : memref<1x19x19x128xbf16, #tpu.memory_space<vmem>>, vector<1x16x16x128xbf16>
    %2 = vector.shape_cast %1 : vector<1x16x16x128xbf16> to vector<16x16x128xbf16>
    %3 = vector.shape_cast %2 : vector<16x16x128xbf16> to vector<256x128xbf16>
    %c0_3 = arith.constant 0 : index
    %c0_4 = arith.constant 0 : index
    %c0_5 = arith.constant 0 : index
    %4 = vector.load %arg2[%c0_3, %c0_4, %c0_5] : memref<16x128x128xbf16, #tpu.memory_space<vmem>>, vector<1x128x128xbf16>
    %5 = vector.shape_cast %4 : vector<1x128x128xbf16> to vector<128x128xbf16>
    %cst_6 = arith.constant dense<0.000000e+00> : vector<256x128xf32>
    %6 = tpu.matmul %3, %5, %cst_6 {dimension_numbers = #tpu.dot_dimension_numbers<[1], [0], [0], [1], [0, 0, 1, 1], [], []>} : vector<256x128xbf16>, vector<128x128xbf16>, vector<256x128xf32> -> vector<256x128xf32>
    %7 = arith.addf %0, %6 : vector<256x128xf32>
    %c0_7 = arith.constant 0 : index
    %c0_8 = arith.constant 0 : index
    %c1 = arith.constant 1 : index
    %c0_9 = arith.constant 0 : index
    %8 = vector.load %arg1[%c0_7, %c0_8, %c1, %c0_9] : memref<1x19x19x128xbf16, #tpu.memory_space<vmem>>, vector<1x16x16x128xbf16>
    %9 = vector.shape_cast %8 : vector<1x16x16x128xbf16> to vector<16x16x128xbf16>
    %10 = vector.shape_cast %9 : vector<16x16x128xbf16> to vector<256x128xbf16>
    %c1_10 = arith.constant 1 : index
    %c0_11 = arith.constant 0 : index
    %c0_12 = arith.constant 0 : index
    %11 = vector.load %arg2[%c1_10, %c0_11, %c0_12] : memref<16x128x128xbf16, #tpu.memory_space<vmem>>, vector<1x128x128xbf16>
    %12 = vector.shape_cast %11 : vector<1x128x128xbf16> to vector<128x128xbf16>
    %cst_13 = arith.constant dense<0.000000e+00> : vector<256x128xf32>
    %13 = tpu.matmul %10, %12, %cst_13 {dimension_numbers = #tpu.dot_dimension_numbers<[1], [0], [0], [1], [0, 0, 1, 1], [], []>} : vector<256x128xbf16>, vector<128x128xbf16>, vector<256x128xf32> -> vector<256x128xf32>
    %14 = arith.addf %7, %13 : vector<256x128xf32>
    %c0_14 = arith.constant 0 : index
    %c0_15 = arith.constant 0 : index
    %c2 = arith.constant 2 : index
    %c0_16 = arith.constant 0 : index
    %15 = vector.load %arg1[%c0_14, %c0_15, %c2, %c0_16] : memref<1x19x19x128xbf16, #tpu.memory_space<vmem>>, vector<1x16x16x128xbf16>
    %16 = vector.shape_cast %15 : vector<1x16x16x128xbf16> to vector<16x16x128xbf16>
    %17 = vector.shape_cast %16 : vector<16x16x128xbf16> to vector<256x128xbf16>
    %c2_17 = arith.constant 2 : index
    %c0_18 = arith.constant 0 : index
    %c0_19 = arith.constant 0 : index
    %18 = vector.load %arg2[%c2_17, %c0_18, %c0_19] : memref<16x128x128xbf16, #tpu.memory_space<vmem>>, vector<1x128x128xbf16>
    %19 = vector.shape_cast %18 : vector<1x128x128xbf16> to vector<128x128xbf16>
    %cst_20 = arith.constant dense<0.000000e+00> : vector<256x128xf32>
    %20 = tpu.matmul %17, %19, %cst_20 {dimension_numbers = #tpu.dot_dimension_numbers<[1], [0], [0], [1], [0, 0, 1, 1], [], []>} : vector<256x128xbf16>, vector<128x128xbf16>, vector<256x128xf32> -> vector<256x128xf32>
    %21 = arith.addf %14, %20 : vector<256x128xf32>
    %c0_21 = arith.constant 0 : index
    %c0_22 = arith.constant 0 : index
    %c3 = arith.constant 3 : index
    %c0_23 = arith.constant 0 : index
    %22 = vector.load %arg1[%c0_21, %c0_22, %c3, %c0_23] : memref<1x19x19x128xbf16, #tpu.memory_space<vmem>>, vector<1x16x16x128xbf16>
    %23 = vector.shape_cast %22 : vector<1x16x16x128xbf16> to vector<16x16x128xbf16>
    %24 = vector.shape_cast %23 : vector<16x16x128xbf16> to vector<256x128xbf16>
    %c3_24 = arith.constant 3 : index
    %c0_25 = arith.constant 0 : index
    %c0_26 = arith.constant 0 : index
    %25 = vector.load %arg2[%c3_24, %c0_25, %c0_26] : memref<16x128x128xbf16, #tpu.memory_space<vmem>>, vector<1x128x128xbf16>
    %26 = vector.shape_cast %25 : vector<1x128x128xbf16> to vector<128x128xbf16>
    %cst_27 = arith.constant dense<0.000000e+00> : vector<256x128xf32>
    %27 = tpu.matmul %24, %26, %cst_27 {dimension_numbers = #tpu.dot_dimension_numbers<[1], [0], [0], [1], [0, 0, 1, 1], [], []>} : vector<256x128xbf16>, vector<128x128xbf16>, vector<256x128xf32> -> vector<256x128xf32>
    %28 = arith.addf %21, %27 : vector<256x128xf32>
    %c0_28 = arith.constant 0 : index
    %c1_29 = arith.constant 1 : index
    %c0_30 = arith.constant 0 : index
    %c0_31 = arith.constant 0 : index
    %29 = vector.load %arg1[%c0_28, %c1_29, %c0_30, %c0_31] : memref<1x19x19x128xbf16, #tpu.memory_space<vmem>>, vector<1x16x16x128xbf16>
    %30 = vector.shape_cast %29 : vector<1x16x16x128xbf16> to vector<16x16x128xbf16>
    %31 = vector.shape_cast %30 : vector<16x16x128xbf16> to vector<256x128xbf16>
    %c4 = arith.constant 4 : index
    %c0_32 = arith.constant 0 : index
    %c0_33 = arith.constant 0 : index
    %32 = vector.load %arg2[%c4, %c0_32, %c0_33] : memref<16x128x128xbf16, #tpu.memory_space<vmem>>, vector<1x128x128xbf16>
    %33 = vector.shape_cast %32 : vector<1x128x128xbf16> to vector<128x128xbf16>
    %cst_34 = arith.constant dense<0.000000e+00> : vector<256x128xf32>
    %34 = tpu.matmul %31, %33, %cst_34 {dimension_numbers = #tpu.dot_dimension_numbers<[1], [0], [0], [1], [0, 0, 1, 1], [], []>} : vector<256x128xbf16>, vector<128x128xbf16>, vector<256x128xf32> -> vector<256x128xf32>
    %35 = arith.addf %28, %34 : vector<256x128xf32>
    %c0_35 = arith.constant 0 : index
    %c1_36 = arith.constant 1 : index
    %c1_37 = arith.constant 1 : index
    %c0_38 = arith.constant 0 : index
    %36 = vector.load %arg1[%c0_35, %c1_36, %c1_37, %c0_38] : memref<1x19x19x128xbf16, #tpu.memory_space<vmem>>, vector<1x16x16x128xbf16>
    %37 = vector.shape_cast %36 : vector<1x16x16x128xbf16> to vector<16x16x128xbf16>
    %38 = vector.shape_cast %37 : vector<16x16x128xbf16> to vector<256x128xbf16>
    %c5 = arith.constant 5 : index
    %c0_39 = arith.constant 0 : index
    %c0_40 = arith.constant 0 : index
    %39 = vector.load %arg2[%c5, %c0_39, %c0_40] : memref<16x128x128xbf16, #tpu.memory_space<vmem>>, vector<1x128x128xbf16>
    %40 = vector.shape_cast %39 : vector<1x128x128xbf16> to vector<128x128xbf16>
    %cst_41 = arith.constant dense<0.000000e+00> : vector<256x128xf32>
    %41 = tpu.matmul %38, %40, %cst_41 {dimension_numbers = #tpu.dot_dimension_numbers<[1], [0], [0], [1], [0, 0, 1, 1], [], []>} : vector<256x128xbf16>, vector<128x128xbf16>, vector<256x128xf32> -> vector<256x128xf32>
    %42 = arith.addf %35, %41 : vector<256x128xf32>
    %c0_42 = arith.constant 0 : index
    %c1_43 = arith.constant 1 : index
    %c2_44 = arith.constant 2 : index
    %c0_45 = arith.constant 0 : index
    %43 = vector.load %arg1[%c0_42, %c1_43, %c2_44, %c0_45] : memref<1x19x19x128xbf16, #tpu.memory_space<vmem>>, vector<1x16x16x128xbf16>
    %44 = vector.shape_cast %43 : vector<1x16x16x128xbf16> to vector<16x16x128xbf16>
    %45 = vector.shape_cast %44 : vector<16x16x128xbf16> to vector<256x128xbf16>
    %c6 = arith.constant 6 : index
    %c0_46 = arith.constant 0 : index
    %c0_47 = arith.constant 0 : index
    %46 = vector.load %arg2[%c6, %c0_46, %c0_47] : memref<16x128x128xbf16, #tpu.memory_space<vmem>>, vector<1x128x128xbf16>
    %47 = vector.shape_cast %46 : vector<1x128x128xbf16> to vector<128x128xbf16>
    %cst_48 = arith.constant dense<0.000000e+00> : vector<256x128xf32>
    %48 = tpu.matmul %45, %47, %cst_48 {dimension_numbers = #tpu.dot_dimension_numbers<[1], [0], [0], [1], [0, 0, 1, 1], [], []>} : vector<256x128xbf16>, vector<128x128xbf16>, vector<256x128xf32> -> vector<256x128xf32>
    %49 = arith.addf %42, %48 : vector<256x128xf32>
    %c0_49 = arith.constant 0 : index
    %c1_50 = arith.constant 1 : index
    %c3_51 = arith.constant 3 : index
    %c0_52 = arith.constant 0 : index
    %50 = vector.load %arg1[%c0_49, %c1_50, %c3_51, %c0_52] : memref<1x19x19x128xbf16, #tpu.memory_space<vmem>>, vector<1x16x16x128xbf16>
    %51 = vector.shape_cast %50 : vector<1x16x16x128xbf16> to vector<16x16x128xbf16>
    %52 = vector.shape_cast %51 : vector<16x16x128xbf16> to vector<256x128xbf16>
    %c7 = arith.constant 7 : index
    %c0_53 = arith.constant 0 : index
    %c0_54 = arith.constant 0 : index
    %53 = vector.load %arg2[%c7, %c0_53, %c0_54] : memref<16x128x128xbf16, #tpu.memory_space<vmem>>, vector<1x128x128xbf16>
    %54 = vector.shape_cast %53 : vector<1x128x128xbf16> to vector<128x128xbf16>
    %cst_55 = arith.constant dense<0.000000e+00> : vector<256x128xf32>
    %55 = tpu.matmul %52, %54, %cst_55 {dimension_numbers = #tpu.dot_dimension_numbers<[1], [0], [0], [1], [0, 0, 1, 1], [], []>} : vector<256x128xbf16>, vector<128x128xbf16>, vector<256x128xf32> -> vector<256x128xf32>
    %56 = arith.addf %49, %55 : vector<256x128xf32>
    %c0_56 = arith.constant 0 : index
    %c2_57 = arith.constant 2 : index
    %c0_58 = arith.constant 0 : index
    %c0_59 = arith.constant 0 : index
    %57 = vector.load %arg1[%c0_56, %c2_57, %c0_58, %c0_59] : memref<1x19x19x128xbf16, #tpu.memory_space<vmem>>, vector<1x16x16x128xbf16>
    %58 = vector.shape_cast %57 : vector<1x16x16x128xbf16> to vector<16x16x128xbf16>
    %59 = vector.shape_cast %58 : vector<16x16x128xbf16> to vector<256x128xbf16>
    %c8 = arith.constant 8 : index
    %c0_60 = arith.constant 0 : index
    %c0_61 = arith.constant 0 : index
    %60 = vector.load %arg2[%c8, %c0_60, %c0_61] : memref<16x128x128xbf16, #tpu.memory_space<vmem>>, vector<1x128x128xbf16>
    %61 = vector.shape_cast %60 : vector<1x128x128xbf16> to vector<128x128xbf16>
    %cst_62 = arith.constant dense<0.000000e+00> : vector<256x128xf32>
    %62 = tpu.matmul %59, %61, %cst_62 {dimension_numbers = #tpu.dot_dimension_numbers<[1], [0], [0], [1], [0, 0, 1, 1], [], []>} : vector<256x128xbf16>, vector<128x128xbf16>, vector<256x128xf32> -> vector<256x128xf32>
    %63 = arith.addf %56, %62 : vector<256x128xf32>
    %c0_63 = arith.constant 0 : index
    %c2_64 = arith.constant 2 : index
    %c1_65 = arith.constant 1 : index
    %c0_66 = arith.constant 0 : index
    %64 = vector.load %arg1[%c0_63, %c2_64, %c1_65, %c0_66] : memref<1x19x19x128xbf16, #tpu.memory_space<vmem>>, vector<1x16x16x128xbf16>
    %65 = vector.shape_cast %64 : vector<1x16x16x128xbf16> to vector<16x16x128xbf16>
    %66 = vector.shape_cast %65 : vector<16x16x128xbf16> to vector<256x128xbf16>
    %c9 = arith.constant 9 : index
    %c0_67 = arith.constant 0 : index
    %c0_68 = arith.constant 0 : index
    %67 = vector.load %arg2[%c9, %c0_67, %c0_68] : memref<16x128x128xbf16, #tpu.memory_space<vmem>>, vector<1x128x128xbf16>
    %68 = vector.shape_cast %67 : vector<1x128x128xbf16> to vector<128x128xbf16>
    %cst_69 = arith.constant dense<0.000000e+00> : vector<256x128xf32>
    %69 = tpu.matmul %66, %68, %cst_69 {dimension_numbers = #tpu.dot_dimension_numbers<[1], [0], [0], [1], [0, 0, 1, 1], [], []>} : vector<256x128xbf16>, vector<128x128xbf16>, vector<256x128xf32> -> vector<256x128xf32>
    %70 = arith.addf %63, %69 : vector<256x128xf32>
    %c0_70 = arith.constant 0 : index
    %c2_71 = arith.constant 2 : index
    %c2_72 = arith.constant 2 : index
    %c0_73 = arith.constant 0 : index
    %71 = vector.load %arg1[%c0_70, %c2_71, %c2_72, %c0_73] : memref<1x19x19x128xbf16, #tpu.memory_space<vmem>>, vector<1x16x16x128xbf16>
    %72 = vector.shape_cast %71 : vector<1x16x16x128xbf16> to vector<16x16x128xbf16>
    %73 = vector.shape_cast %72 : vector<16x16x128xbf16> to vector<256x128xbf16>
    %c10 = arith.constant 10 : index
    %c0_74 = arith.constant 0 : index
    %c0_75 = arith.constant 0 : index
    %74 = vector.load %arg2[%c10, %c0_74, %c0_75] : memref<16x128x128xbf16, #tpu.memory_space<vmem>>, vector<1x128x128xbf16>
    %75 = vector.shape_cast %74 : vector<1x128x128xbf16> to vector<128x128xbf16>
    %cst_76 = arith.constant dense<0.000000e+00> : vector<256x128xf32>
    %76 = tpu.matmul %73, %75, %cst_76 {dimension_numbers = #tpu.dot_dimension_numbers<[1], [0], [0], [1], [0, 0, 1, 1], [], []>} : vector<256x128xbf16>, vector<128x128xbf16>, vector<256x128xf32> -> vector<256x128xf32>
    %77 = arith.addf %70, %76 : vector<256x128xf32>
    %c0_77 = arith.constant 0 : index
    %c2_78 = arith.constant 2 : index
    %c3_79 = arith.constant 3 : index
    %c0_80 = arith.constant 0 : index
    %78 = vector.load %arg1[%c0_77, %c2_78, %c3_79, %c0_80] : memref<1x19x19x128xbf16, #tpu.memory_space<vmem>>, vector<1x16x16x128xbf16>
    %79 = vector.shape_cast %78 : vector<1x16x16x128xbf16> to vector<16x16x128xbf16>
    %80 = vector.shape_cast %79 : vector<16x16x128xbf16> to vector<256x128xbf16>
    %c11 = arith.constant 11 : index
    %c0_81 = arith.constant 0 : index
    %c0_82 = arith.constant 0 : index
    %81 = vector.load %arg2[%c11, %c0_81, %c0_82] : memref<16x128x128xbf16, #tpu.memory_space<vmem>>, vector<1x128x128xbf16>
    %82 = vector.shape_cast %81 : vector<1x128x128xbf16> to vector<128x128xbf16>
    %cst_83 = arith.constant dense<0.000000e+00> : vector<256x128xf32>
    %83 = tpu.matmul %80, %82, %cst_83 {dimension_numbers = #tpu.dot_dimension_numbers<[1], [0], [0], [1], [0, 0, 1, 1], [], []>} : vector<256x128xbf16>, vector<128x128xbf16>, vector<256x128xf32> -> vector<256x128xf32>
    %84 = arith.addf %77, %83 : vector<256x128xf32>
    %c0_84 = arith.constant 0 : index
    %c3_85 = arith.constant 3 : index
    %c0_86 = arith.constant 0 : index
    %c0_87 = arith.constant 0 : index
    %85 = vector.load %arg1[%c0_84, %c3_85, %c0_86, %c0_87] : memref<1x19x19x128xbf16, #tpu.memory_space<vmem>>, vector<1x16x16x128xbf16>
    %86 = vector.shape_cast %85 : vector<1x16x16x128xbf16> to vector<16x16x128xbf16>
    %87 = vector.shape_cast %86 : vector<16x16x128xbf16> to vector<256x128xbf16>
    %c12 = arith.constant 12 : index
    %c0_88 = arith.constant 0 : index
    %c0_89 = arith.constant 0 : index
    %88 = vector.load %arg2[%c12, %c0_88, %c0_89] : memref<16x128x128xbf16, #tpu.memory_space<vmem>>, vector<1x128x128xbf16>
    %89 = vector.shape_cast %88 : vector<1x128x128xbf16> to vector<128x128xbf16>
    %cst_90 = arith.constant dense<0.000000e+00> : vector<256x128xf32>
    %90 = tpu.matmul %87, %89, %cst_90 {dimension_numbers = #tpu.dot_dimension_numbers<[1], [0], [0], [1], [0, 0, 1, 1], [], []>} : vector<256x128xbf16>, vector<128x128xbf16>, vector<256x128xf32> -> vector<256x128xf32>
    %91 = arith.addf %84, %90 : vector<256x128xf32>
    %c0_91 = arith.constant 0 : index
    %c3_92 = arith.constant 3 : index
    %c1_93 = arith.constant 1 : index
    %c0_94 = arith.constant 0 : index
    %92 = vector.load %arg1[%c0_91, %c3_92, %c1_93, %c0_94] : memref<1x19x19x128xbf16, #tpu.memory_space<vmem>>, vector<1x16x16x128xbf16>
    %93 = vector.shape_cast %92 : vector<1x16x16x128xbf16> to vector<16x16x128xbf16>
    %94 = vector.shape_cast %93 : vector<16x16x128xbf16> to vector<256x128xbf16>
    %c13 = arith.constant 13 : index
    %c0_95 = arith.constant 0 : index
    %c0_96 = arith.constant 0 : index
    %95 = vector.load %arg2[%c13, %c0_95, %c0_96] : memref<16x128x128xbf16, #tpu.memory_space<vmem>>, vector<1x128x128xbf16>
    %96 = vector.shape_cast %95 : vector<1x128x128xbf16> to vector<128x128xbf16>
    %cst_97 = arith.constant dense<0.000000e+00> : vector<256x128xf32>
    %97 = tpu.matmul %94, %96, %cst_97 {dimension_numbers = #tpu.dot_dimension_numbers<[1], [0], [0], [1], [0, 0, 1, 1], [], []>} : vector<256x128xbf16>, vector<128x128xbf16>, vector<256x128xf32> -> vector<256x128xf32>
    %98 = arith.addf %91, %97 : vector<256x128xf32>
    %c0_98 = arith.constant 0 : index
    %c3_99 = arith.constant 3 : index
    %c2_100 = arith.constant 2 : index
    %c0_101 = arith.constant 0 : index
    %99 = vector.load %arg1[%c0_98, %c3_99, %c2_100, %c0_101] : memref<1x19x19x128xbf16, #tpu.memory_space<vmem>>, vector<1x16x16x128xbf16>
    %100 = vector.shape_cast %99 : vector<1x16x16x128xbf16> to vector<16x16x128xbf16>
    %101 = vector.shape_cast %100 : vector<16x16x128xbf16> to vector<256x128xbf16>
    %c14 = arith.constant 14 : index
    %c0_102 = arith.constant 0 : index
    %c0_103 = arith.constant 0 : index
    %102 = vector.load %arg2[%c14, %c0_102, %c0_103] : memref<16x128x128xbf16, #tpu.memory_space<vmem>>, vector<1x128x128xbf16>
    %103 = vector.shape_cast %102 : vector<1x128x128xbf16> to vector<128x128xbf16>
    %cst_104 = arith.constant dense<0.000000e+00> : vector<256x128xf32>
    %104 = tpu.matmul %101, %103, %cst_104 {dimension_numbers = #tpu.dot_dimension_numbers<[1], [0], [0], [1], [0, 0, 1, 1], [], []>} : vector<256x128xbf16>, vector<128x128xbf16>, vector<256x128xf32> -> vector<256x128xf32>
    %105 = arith.addf %98, %104 : vector<256x128xf32>
    %c0_105 = arith.constant 0 : index
    %c3_106 = arith.constant 3 : index
    %c3_107 = arith.constant 3 : index
    %c0_108 = arith.constant 0 : index
    %106 = vector.load %arg1[%c0_105, %c3_106, %c3_107, %c0_108] : memref<1x19x19x128xbf16, #tpu.memory_space<vmem>>, vector<1x16x16x128xbf16>
    %107 = vector.shape_cast %106 : vector<1x16x16x128xbf16> to vector<16x16x128xbf16>
    %108 = vector.shape_cast %107 : vector<16x16x128xbf16> to vector<256x128xbf16>
    %c15 = arith.constant 15 : index
    %c0_109 = arith.constant 0 : index
    %c0_110 = arith.constant 0 : index
    %109 = vector.load %arg2[%c15, %c0_109, %c0_110] : memref<16x128x128xbf16, #tpu.memory_space<vmem>>, vector<1x128x128xbf16>
    %110 = vector.shape_cast %109 : vector<1x128x128xbf16> to vector<128x128xbf16>
    %cst_111 = arith.constant dense<0.000000e+00> : vector<256x128xf32>
    %111 = tpu.matmul %108, %110, %cst_111 {dimension_numbers = #tpu.dot_dimension_numbers<[1], [0], [0], [1], [0, 0, 1, 1], [], []>} : vector<256x128xbf16>, vector<128x128xbf16>, vector<256x128xf32> -> vector<256x128xf32>
    %112 = arith.addf %105, %111 : vector<256x128xf32>
    %c0_112 = arith.constant 0 : index
    %c0_113 = arith.constant 0 : index
    %113 = vector.load %arg3[%c0_112, %c0_113] : memref<1x128xf32, #tpu.memory_space<vmem>>, vector<1x128xf32>
    %114 = vector.broadcast %113 : vector<1x128xf32> to vector<256x128xf32>
    %115 = arith.mulf %112, %114 : vector<256x128xf32>
    %c0_114 = arith.constant 0 : index
    %c0_115 = arith.constant 0 : index
    %116 = vector.load %arg4[%c0_114, %c0_115] : memref<1x128xf32, #tpu.memory_space<vmem>>, vector<1x128xf32>
    %117 = vector.broadcast %116 : vector<1x128xf32> to vector<256x128xf32>
    %118 = arith.addf %115, %117 : vector<256x128xf32>
    %cst_116 = arith.constant 0.000000e+00 : f32
    %119 = vector.broadcast %cst_116 : f32 to vector<256x128xf32>
    %120 = arith.maximumf %118, %119 : vector<256x128xf32>
    %121 = vector.shape_cast %120 : vector<256x128xf32> to vector<16x16x128xf32>
    %122 = arith.truncf %121 : vector<16x16x128xf32> to vector<16x16x128xbf16>
    %c0_117 = arith.constant 0 : index
    %c0_118 = arith.constant 0 : index
    %c0_119 = arith.constant 0 : index
    %c0_120 = arith.constant 0 : index
    %123 = vector.load %arg5[%c0_117, %c0_118, %c0_119, %c0_120] : memref<1x16x16x128xbf16, #tpu.memory_space<vmem>>, vector<1x16x16x128xbf16>
    %124 = vector.shape_cast %123 : vector<1x16x16x128xbf16> to vector<16x16x128xbf16>
    %125 = vector.shape_cast %122 : vector<16x16x128xbf16> to vector<1x16x16x128xbf16>
    tpu.vector_store %arg5[%c0_117, %c0_118, %c0_119, %c0_120], %125 {strides = array<i32>} : memref<1x16x16x128xbf16, #tpu.memory_space<vmem>>, vector<1x16x16x128xbf16>,
    return
  }
  func.func @transform_0(%arg0: i32) -> (i32, i32, i32, i32) {
    %c0_i32 = arith.constant 0 : i32
    %c0_i32_0 = arith.constant 0 : i32
    %c0_i32_1 = arith.constant 0 : i32
    %c0_i32_2 = arith.constant 0 : i32
    return %arg0, %c0_i32, %c0_i32_0, %c0_i32_1 : i32, i32, i32, i32
  }
  func.func @transform_1(%arg0: i32) -> (i32, i32, i32) {
    %c0_i32 = arith.constant 0 : i32
    %c0_i32_0 = arith.constant 0 : i32
    %c0_i32_1 = arith.constant 0 : i32
    %c0_i32_2 = arith.constant 0 : i32
    return %c0_i32, %c0_i32_0, %c0_i32_1 : i32, i32, i32
  }
  func.func @transform_2(%arg0: i32) -> (i32, i32) {
    %c0_i32 = arith.constant 0 : i32
    %c0_i32_0 = arith.constant 0 : i32
    %c0_i32_1 = arith.constant 0 : i32
    return %c0_i32, %c0_i32_0 : i32, i32
  }
  func.func @transform_3(%arg0: i32) -> (i32, i32) {
    %c0_i32 = arith.constant 0 : i32
    %c0_i32_0 = arith.constant 0 : i32
    %c0_i32_1 = arith.constant 0 : i32
    return %c0_i32, %c0_i32_0 : i32, i32
  }
  func.func @transform_4(%arg0: i32) -> (i32, i32, i32, i32) {
    %c0_i32 = arith.constant 0 : i32
    %c0_i32_0 = arith.constant 0 : i32
    %c0_i32_1 = arith.constant 0 : i32
    %c0_i32_2 = arith.constant 0 : i32
    return %arg0, %c0_i32, %c0_i32_0, %c0_i32_1 : i32, i32, i32, i32
  }
}

</mosaic_0001>

<bundles_post_ra>
// kernel: tpu_custom_call.1
= control target key start
LH: loop header
LB: loop body
LE: loop exit
PB: predicated region body
PF: predicated region fallthrough
CT: control target
= control target key end

     0   :  { %9 = vsyncpa [#allocation3], 0  ;;  %s16728_s0 = inlined_call_operand.vmem [shape: bf16[2,19,19,128], index: 0, kind: input, shape index: {}]   ;;  %s16729_s1 = inlined_call_operand.hbm [shape: bf16[16,128,128], index: 1, kind: input, shape index: {}]   ;;  %s16730_s2 = inlined_call_operand.vmem [shape: f32[1,128], index: 2, kind: input, shape index: {}]   ;;  %s16731_s3 = inlined_call_operand.vmem [shape: f32[1,128], index: 3, kind: input, shape index: {}]   ;;  %s16732_s4 = inlined_call_operand.hbm [shape: bf16[2,16,16,128], index: 4, kind: output, shape index: {}]  }
   0x1   :  { %10 = vsyncpa [#allocation4], 0 }
   0x2   :  { %12 = vsyncpa [#allocation4 + $0x1], 0  ;;  %s12444_s15 = smov 0   ;;  %s12446_s16 = smov 0  }
   0x3   :  { %s12448_s17 = smov 0   ;;  %s12450_s18 = smov 0  }
   0x4 LB: > { %s12465_s19 = sadd.s32 4294967295, %s12411_s18   ;;  %s9845_s20 = sadd.s32 4294967294, %s12411_s18   ;;  %s12411_s18 = sphi %s12450_s18, %s17706_s18   ;;  %s12407_s17 = sphi %s12448_s17, %s17705_s17   ;;  %s12403_s16 = sphi %s12446_s16, %s17704_s16   ;;  %s12399_s15 = sphi %s12444_s15, %s17703_s15  }
   0x5   : > { %s12469_s21 = sadd.s32 1, %s12411_s18   ;;  %s114_s22 = sadd.s32 1, %s12407_s17 }
   0x6   : > { %s111_s23 = ssub.s32 %s12411_s18, %s12469_s21  ;;  %p124_p0 = scmp.ne.s32.totalorder %s12407_s17, %s12403_s16 }
   0x7   : > { %p112_p1 = scmp.eq.s32.totalorder %s111_s23, 0  ;;  %p125_p2 = scmp.eq.s32.totalorder %s12465_s19, 1 }
   0x8   : > { %p130_p3 = scmp.ne.s32.totalorder %s12403_s16, %s12399_s15  ;;  %p131_p4 = scmp.eq.s32.totalorder %s9845_s20, 1 }
   0x9   : > { %s12480_s24 = scalar_select %p112_p1, %s12407_s17, %s114_s22  }
   0xa   : > { %p12482_p5 = por %p125_p2, %p124_p0  ;;  %p12486_p6 = por %p131_p4, %p130_p3 }
   0xb   : > { %p9846_p7 = scmp.ge.s32.totalorder %s12411_s18, 1  ;;  %p138_p8 = scmp.lt.s32.totalorder %s12411_s18, 3 }
   0xc   : > { %s16885_s26 = scalar_select %p12486_p6, 1, 0 }
   0xd   : > { %p11971_p9 = scmp.eq.s32.totalorder %s12465_s19, 0  ;;  %p12493_p10 = pnand %p9846_p7, %p138_p8 }
   0xe   : > { %s12413_s28 = smov [#allocation2]  }
   0xf   : > { %s150_s29 = sshll.u32 %s12413_s28, 4  ;;  %p11963_p11 = pneg %p12493_p10  ;;  %s151_s29 = int_to_ptr.vmem [resolvable:$true] %s150_s29 }
  0x10   : > { %s12332_s30 = scalar_lea.vmem %s151_s29, 16384  ;;  %p12340_p3 = scmp.lt.s32.totalorder %s151_s29, %s151_s29 }
  0x11   : > { %p11964_p12 = pnand %p11971_p9, %p11963_p11  ;;  %p12333_p0 = scmp.ne.s32.totalorder %s151_s29, %s12332_s30 }
  0x12   : > { %p12341_p4 = scmp.lt.s32.totalorder %s12332_s30, %s12332_s30 }
  0x13   : > { %p12323_p13 = pneg %p11964_p12 }
  0x14   : > { %p12342_p6 = por %p12341_p4, %p12340_p3 }
  0x15   : > { %p12335_p1 = pnand %p12333_p0, %p12323_p13 }
  0x17   : > { %p12336_p2 = pneg %p12335_p1 }
  0x19   : > { %p12343_p7 = pnand %p12342_p6, %p12336_p2 }
  0x1b   : > { %12346 = shalt.err (!%p12343_p7)
}
  0x1c   : > { %s12414_s5 = smov 64   ;;  %s12415_s6 = smov 4  }
  0x1d   : > { %11966 = dma.hbm_to_vmem [thread:$0]  (!%p11964_p12), %s16729_s1, 16384, %s151_s29, [#allocation3], %s12414_s5, %s12414_s5, %s12415_s6  }
  0x1e   : > { %180 = sbr.rel (%p12493_p10) target bundleno = 1052 (0x41c), region = 36 }
  0x23   : > { %12390 = dma.done.wait (%p11971_p9), [#allocation3], 16384  }
  0x24   : > { %12392 = vsyncadd (%p11971_p9), [#allocation3], 4294950912  ;;  %v12011_v0 = vld [vmem:[#allocation2 + $0x78] sm:$0xff]   ;;  %p206_p6 = scmp.lt.s32.totalorder %s12465_s19, 1  ;;  %v12013_v2 = vld [vmem:[#allocation2 + $0x70] sm:$0xff]   ;;  %v16887_v39 = vmov 0 }
  0x25   : > { %v12012_v1 = vld [vmem:[#allocation2 + $0x38] sm:$0xff]   ;;  %11188 = vmatprep.subr.bf16.mxu0 %v12011_v0  ;;  %v12014_v3 = vld [vmem:[#allocation2 + $0x30] sm:$0xff]   ;;  %v12015_v4 = vld [vmem:[#allocation2 + $0x68] sm:$0xff]   ;;  %vm276_vm0 = vsmask.f32 3328  ;;  %vm1306_vm3 = vcmask 1042432  }
  0x26   : > { %11236 = vmatprep.subr.bf16.mxu1 %v12012_v1  ;;  %11189 = vmatpush3.bf16.msra.mxu0 %v12011_v0  ;;  %v12016_v5 = vld [vmem:[#allocation2 + $0x28] sm:$0xff]   ;;  %s207_s9 = scalar_select %p206_p6, %s12465_s19, 1  ;;  %v12017_v6 = vld [vmem:[#allocation2 + $0x60] sm:$0xff]   ;;  %vm277_vm1 = vsmask.f32 7440  ;;  %v12019_v8 = vld [vmem:[#allocation2 + $0x58] sm:$0xff]  }
  0x27   : > { %11237 = vmatpush3.bf16.msra.mxu1 %v12012_v1  ;;  %11190 = vmatprep.subr.bf16.mxu0 %v12013_v2  ;;  %v12018_v7 = vld [vmem:[#allocation2 + $0x20] sm:$0xff]   ;;  %v12020_v9 = vld [vmem:[#allocation2 + $0x18] sm:$0xff]   ;;  %v12021_v10 = vld [vmem:[#allocation2 + $0x50] sm:$0xff]   ;;  %vm1307_vm4 = vcmask 1046532   ;;  %vm1759_vm5 = vsmask.f32 2304 }
  0x28   : > { %11238 = vmatprep.subr.bf16.mxu1 %v12014_v3  ;;  %s11956_s10 = smul.u32 228, %s207_s9  ;;  %v12022_v11 = vld [vmem:[#allocation2 + $0x10] sm:$0xff]   ;;  %v12023_v20 = vld [vmem:[#allocation2 + $0x48] sm:$0xff]   ;;  %vm12548_vm2 = vmor %vm276_vm0, %vm277_vm1  ;;  %vm1760_vm6 = vsmask.f32 6416  ;;  %s203_s27 = sand.u32 1, %s12403_s16  }
  0x29   : > { %v12024_v34 = vld [vmem:[#allocation2 + $0x8] sm:$0xff]   ;;  %v16888_v39 = vsel %vm12548_vm2, 4294967295, %v16887_v39  ;;  %v12025_v49 = vld [vmem:[#allocation2 + $0x40] sm:$0xff]   ;;  %v12029_v1 = vld [vmem:[#allocation2 + $0xb8] sm:$0xff]   ;;  %s9851_s28 = sshll.u32 %s203_s27, 7  ;;  %s10708_s30 = sshll.u32 %s12465_s19, 11 }
  0x2a   : > { %11191 = vmatpush3.bf16.msra.mxu0 %v12013_v2  ;;  %s12515_s13 = scalar_lea.vmem %s16728_s0, %s11956_s10  ;;  %16889 = vst [vmem:[#allocation8_spill] sm:$0xff] %v16888_v39  ;;  %v12026_v55 = vld [vmem:[#allocation2] sm:$0xff]   ;;  %vm12864_vm7 = vmor %vm1306_vm3, %vm1307_vm4  ;;  %s16577_s29 = scalar_lea.vmem [#allocation5], %s9851_s28 }
  0x2b   : > { %11239 = vmatpush3.bf16.msra.mxu1 %v12014_v3  ;;  %11192 = vmatprep.subr.bf16.mxu0 %v12015_v4  ;;  %v212_v12 = vld [vmem:[%s12515_s13] sm:$0xf]  ;;  %v12519_v13 = vld [vmem:[%s12515_s13 + $0x4] sm:$0xf]  ;;  %v12522_v14 = vld [vmem:[%s12515_s13 + $0x8] sm:$0x1]  ;;  %s16680_s8 = scalar_lea.hbm %s16732_s4, %s10708_s30 }
  0x2c   : > { %11240 = vmatprep.subr.bf16.mxu1 %v12016_v5  ;;  %v280_v15 = vshrl.u32 %v212_v12, 16  ;;  %v283_v16 = vshll.u32 %v212_v12, 16  ;;  %v289_v17 = vshll.u32 %v12519_v13, 16  ;;  %v293_v18 = vshrl.u32 %v12519_v13, 16  ;;  %v12527_v19 = vld [vmem:[%s12515_s13 + $0xc] sm:$0xf]  ;;  %vm12886_vm8 = vmor %vm1759_vm5, %vm1760_vm6 }
  0x2d   : > { %v299_v21 = vshll.u32 %v12522_v14, 16  ;;  %v1314_v22 = vrot.slane %v12522_v14, 5  ;;  %v9877_v23 = vcombine.low %v212_v12, %v12519_v13  ;;  %v12533_v24 = vld [vmem:[%s12515_s13 + $0x10] sm:$0xf]  ;;  %v12536_v25 = vld [vmem:[%s12515_s13 + $0x14] sm:$0x1] }
  0x2e   : > { %11193 = vmatpush3.bf16.msra.mxu0 %v12015_v4  ;;  %v282_v26 = vrot.slane %v280_v15, 4  ;;  %v285_v27 = vrot.slane %v283_v16, 5  ;;  %v291_v28 = vrot.slane %v289_v17, 5  ;;  %v295_v29 = vrot.slane %v293_v18, 4  ;;  %v12555_v48 = vld [vmem:[%s12515_s13 + $0x18] sm:$0xf] }
  0x2f   : > { %11241 = vmatpush3.bf16.msra.mxu1 %v12016_v5  ;;  %11194 = vmatprep.subr.bf16.mxu0 %v12017_v6  ;;  %v301_v30 = vrot.slane %v299_v21, 5  ;;  %v12540_v31 = vrot.slane %v289_v17, 6  ;;  %v304_v32 = vshrl.u32 %v12527_v19, 16  ;;  %v307_v33 = vshll.u32 %v12527_v19, 16  ;;  %v12558_v54 = vld [vmem:[%s12515_s13 + $0x1c] sm:$0xf] }
  0x30   : > { %11242 = vmatprep.subr.bf16.mxu1 %v12018_v7  ;;  %v286_v35 = vor.u32 %v285_v27, %v282_v26  ;;  %v296_v36 = vor.u32 %v295_v29, %v291_v28  ;;  %11252 = vmatprep.mubr.bf16.mxu1 %v9877_v23  ;;  %v313_v37 = vshll.u32 %v12533_v24, 16  ;;  %v317_v38 = vshrl.u32 %v12533_v24, 16  ;;  %v12567_v60 = vld [vmem:[%s12515_s13 + $0x20] sm:$0x1]  ;;  %v12570_v61 = vld [vmem:[%s12515_s13 + $0x24] sm:$0xf] }
  0x31   : > { %v306_v40 = vrot.slane %v304_v32, 4  ;;  %v309_v41 = vrot.slane %v307_v33, 5  ;;  %v323_v42 = vshll.u32 %v12536_v25, 16  ;;  %v1321_v43 = vrot.slane %v12536_v25, 5  ;;  %v12576_v3 = vld [vmem:[%s12515_s13 + $0x28] sm:$0xf] }
  0x32   : > { %11195 = vmatpush3.bf16.msra.mxu0 %v12017_v6  ;;  %v287_v44 = vrot.slane %v286_v35, 4  ;;  %v297_v45 = vrot.slane %v296_v36, 4  ;;  %v315_v46 = vrot.slane %v313_v37, 5  ;;  %v319_v47 = vrot.slane %v317_v38, 4  ;;  %v12030_v15 = vld [vmem:[#allocation2 + $0xf8] sm:$0xff]   ;;  %v12033_v33 = vld [vmem:[#allocation2 + $0xb0] sm:$0xff]  }
  0x33   : > { %11243 = vmatpush3.bf16.msra.mxu1 %v12018_v7  ;;  %11196 = vmatprep.subr.bf16.mxu0 %v12019_v8  ;;  %v310_v50 = vor.u32 %v309_v41, %v306_v40  ;;  %v325_v51 = vrot.slane %v323_v42, 5  ;;  %v1794_v52 = vrot.slane %v317_v38, 5  ;;  %v1795_v53 = vrot.slane %v313_v37, 6  ;;  %v12603_v35 = vld [vmem:[%s12515_s13 + $0x34] sm:$0xf]  ;;  %s9771_s5 = sshll.u32 %s16577_s29, 4  ;;  %s16682_s5 = int_to_ptr.vmem [resolvable:$true] %s9771_s5 }
  0x34   : > { %11244 = vmatprep.subr.bf16.mxu1 %v12020_v9  ;;  %v292_v56 = vsel %vm12548_vm2, %v287_v44, %v291_v28  ;;  %v302_v57 = vsel %vm12548_vm2, %v297_v45, %v301_v30  ;;  %v320_v58 = vor.u32 %v319_v47, %v315_v46  ;;  %v9878_v59 = vcombine.low %v12527_v19, %v12533_v24  ;;  %v12034_v41 = vld [vmem:[#allocation2 + $0xf0] sm:$0xff]   ;;  %v264_v42 = vld [vmem:[%s12515_s13 + $0x38] sm:$0x1]  ;;  %s16688_s9 = scalar_lea.sflag [#allocation4], %s203_s27  ;;  %s12347_s19 = scalar_lea.vmem %s16682_s5, 2048 }
  0x35   : > { %v9853_v62 = vcombine.low %v292_v56, %v302_v57  ;;  %v311_v63 = vrot.slane %v310_v50, 4  ;;  %v12572_v0 = vor.u32 %v1795_v53, %v1794_v52  ;;  %v328_v2 = vshrl.u32 %v12555_v48, 16  ;;  %p12348_p8 = scmp.ne.s32.totalorder %s16682_s5, %s12347_s19  ;;  %s12416_s10 = smov [#allocation5]  }
  0x36   : > { %11197 = vmatpush3.bf16.msra.mxu0 %v12019_v8  ;;  %v321_v4 = vrot.slane %v320_v58, 4  ;;  %v331_v5 = vshll.u32 %v12555_v48, 16  ;;  %v337_v6 = vshll.u32 %v12558_v54, 16  ;;  %v341_v7 = vshrl.u32 %v12558_v54, 16  ;;  %v12624_v58 = vld [vmem:[%s12515_s13 + $0x40] sm:$0xf] }
  0x37   : > { %11245 = vmatpush3.bf16.msra.mxu1 %v12020_v9  ;;  %11198 = vmatprep.subr.bf16.mxu0 %v12021_v10  ;;  %v316_v8 = vsel %vm12548_vm2, %v311_v63, %v315_v46  ;;  %v330_v9 = vrot.slane %v328_v2, 4  ;;  %v352_v26 = vshrl.u32 %v12570_v61, 16  ;;  %v355_v27 = vshll.u32 %v12570_v61, 16  ;;  %p12349_p9 = pnand %p12348_p8, %p12482_p5  ;;  %s12351_s11 = sshll.u32 %s12416_s10, 4  ;;  %s12352_s11 = int_to_ptr.vmem [resolvable:$false] %s12351_s11 }
  0x38   : > { %11246 = vmatprep.subr.bf16.mxu1 %v12022_v11  ;;  %11204 = vmatprep.mubr.bf16.mxu0 %v9853_v62  ;;  %v326_v12 = vsel %vm12548_vm2, %v321_v4, %v325_v51  ;;  %v333_v16 = vrot.slane %v331_v5, 5  ;;  %v339_v17 = vrot.slane %v337_v6, 5  ;;  %v343_v19 = vrot.slane %v341_v7, 4  ;;  %s12353_s12 = scalar_lea.vmem %s12352_s11, 4096  ;;  %p12354_p11 = scmp.lt.s32.totalorder %s16682_s5, %s12352_s11 }
  0x39   : > { %v9854_v21 = vcombine.low %v316_v8, %v326_v12  ;;  %v361_v30 = vshll.u32 %v12576_v3, 16  ;;  %v365_v32 = vshrl.u32 %v12576_v3, 16  ;;  %v354_v36 = vrot.slane %v352_v26, 4  ;;  %p12350_p10 = pneg %p12349_p9  ;;  %p12355_p12 = scmp.lt.s32.totalorder %s12353_s12, %s12347_s19 }
  0x3a   : > { %11199 = vmatpush3.bf16.msra.mxu0 %v12021_v10  ;;  %v347_v10 = vshll.u32 %v12567_v60, 16  ;;  %v334_v28 = vor.u32 %v333_v16, %v330_v9  ;;  %v344_v29 = vor.u32 %v343_v19, %v339_v17  ;;  %v357_v37 = vrot.slane %v355_v27, 5  ;;  %v265_v16 = vld [vmem:[%s12515_s13 + $0x44] sm:$0x1]  ;;  %v12641_v27 = vld [vmem:[%s12515_s13 + $0x48] sm:$0xf] }
  0x3b   : > { %11247 = vmatpush3.bf16.msra.mxu1 %v12022_v11  ;;  %11200 = vmatprep.subr.bf16.mxu0 %v12023_v20  ;;  %v9879_v11 = vcombine.low %v12555_v48, %v12558_v54  ;;  %v9880_v40 = vcombine.low %v12570_v61, %v12576_v3  ;;  %v363_v46 = vrot.slane %v361_v30, 5  ;;  %v367_v47 = vrot.slane %v365_v32, 4  ;;  %v12614_v48 = vld [vmem:[%s12515_s13 + $0x3c] sm:$0xf]  ;;  %p12356_p13 = por %p12355_p12, %p12354_p11 }
  0x3c   : > { %11248 = vmatprep.subr.bf16.mxu1 %v12024_v34  ;;  %v349_v23 = vrot.slane %v347_v10, 5  ;;  %v335_v44 = vrot.slane %v334_v28, 4  ;;  %v345_v45 = vrot.slane %v344_v29, 4  ;;  %v385_v57 = vshll.u32 %v12603_v35, 16  ;;  %v12038_v10 = vld [vmem:[#allocation2 + $0xe8] sm:$0xff]  }
  0x3d   : > { %v368_v56 = vor.u32 %v367_v47, %v363_v46  ;;  %v389_v8 = vshrl.u32 %v12603_v35, 16  ;;  %v395_v9 = vshll.u32 %v264_v42, 16  ;;  %v403_v26 = vshll.u32 %v12614_v48, 16  ;;  %v12042_v47 = vld [vmem:[#allocation2 + $0xe0] sm:$0xff]   ;;  %p12357_p0 = pnand %p12356_p13, %p12350_p10 }
  0x3e   : > { %11201 = vmatpush3.bf16.msra.mxu0 %v12023_v20  ;;  %v12593_v20 = vld [vmem:[%s12515_s13 + $0x2c] sm:$0x1]  ;;  %v340_v53 = vsel %vm12548_vm2, %v335_v44, %v339_v17  ;;  %v387_v5 = vrot.slane %v385_v57, 5  ;;  %v400_v17 = vshrl.u32 %v12614_v48, 16  ;;  %v413_v44 = vshrl.u32 %v12624_v58, 16 }
  0x3f   : > { %11249 = vmatpush3.bf16.msra.mxu1 %v12024_v34  ;;  %11202 = vmatprep.subr.bf16.mxu0 %v12025_v49  ;;  %v12600_v34 = vld [vmem:[%s12515_s13 + $0x30] sm:$0xf]  ;;  %v371_v38 = vshll.u32 %v12593_v20, 16  ;;  %v405_v42 = vrot.slane %v403_v26, 5  ;;  %v1318_v14 = vrot.slane %v12533_v24, 5 }
  0x40   : > { %11250 = vmatprep.subr.bf16.mxu1 %v12026_v55  ;;  %v376_v51 = vshrl.u32 %v12600_v34, 16  ;;  %v379_v52 = vshll.u32 %v12600_v34, 16 }
  0x41   : > { %v373_v50 = vrot.slane %v371_v38, 5  ;;  %v12041_v38 = vld [vmem:[#allocation2 + $0xa0] sm:$0xff]  }
  0x42   : > { %11203 = vmatpush3.bf16.msra.mxu0 %v12025_v49  ;;  %v358_v49 = vor.u32 %v357_v37, %v354_v36  ;;  %v378_v2 = vrot.slane %v376_v51, 4  ;;  %v381_v4 = vrot.slane %v379_v52, 5  ;;  %v409_v36 = vshll.u32 %v12624_v58, 16  ;;  %v12645_v37 = vld [vmem:[%s12515_s13 + $0x4c] sm:$0xf] }
  0x43   : > { %11251 = vmatpush3.bf16.msra.mxu1 %v12026_v55  ;;  %11284 = vmatprep.subr.bf16.mxu0 %v12029_v1  ;;  %v350_v55 = vsel %vm12548_vm2, %v345_v45, %v349_v23  ;;  %v397_v23 = vrot.slane %v395_v9, 5  ;;  %v419_v45 = vshll.u32 %v265_v16, 16  ;;  %v424_v51 = vshrl.u32 %v12641_v27, 16 }
  0x44   : > { %11332 = vmatprep.subr.bf16.mxu1 %v12030_v15  ;;  %v9855_v62 = vcombine.low %v340_v53, %v350_v55  ;;  %v359_v63 = vrot.slane %v358_v49, 4  ;;  %v382_v12 = vor.u32 %v381_v4, %v378_v2  ;;  %v411_v49 = vrot.slane %v409_v36, 5 }
  0x45   : > { %11205 = vmatmul.mubr.bf16.vlgmr.msra.gmra.mxu0 %v9854_v21  ;;  %v391_v21 = vrot.slane %v389_v8, 4  ;;  %v415_v55 = vrot.slane %v413_v44, 4  ;;  %v427_v2 = vshll.u32 %v12641_v27, 16  ;;  %v433_v61 = vshll.u32 %v12645_v37, 16 }
  0x46   : > { %11253 = vmatmul.mubr.bf16.vlgmr.msra.gmra.mxu1 %v9878_v59  ;;  %11285 = vmatpush3.bf16.msra.mxu0 %v12029_v1  ;;  %v12037_v59 = vld [vmem:[#allocation2 + $0xa8] sm:$0xff]   ;;  %v369_v1 = vrot.slane %v368_v56, 4  ;;  %v383_v29 = vrot.slane %v382_v12, 4  ;;  %v421_v56 = vrot.slane %v419_v45, 5  ;;  %v9883_v26 = vcombine.low %v12641_v27, %v12645_v37  ;;  %v12693_v27 = vld [vmem:[%s12515_s13 + $0x64] sm:$0xf] }
  0x47   : > { %11333 = vmatpush3.bf16.msra.mxu1 %v12030_v15  ;;  %11256 = vmatprep.mubr.bf16.mxu1 %v9879_v11  ;;  %v364_v11 = vsel %vm12548_vm2, %v359_v63, %v363_v46  ;;  %v9881_v15 = vcombine.low %v12600_v34, %v12603_v35  ;;  %v402_v34 = vrot.slane %v400_v17, 4  ;;  %v266_v46 = vld [vmem:[%s12515_s13 + $0x50] sm:$0x1]  ;;  %v12661_v63 = vld [vmem:[#allocation2 + $0xd8] sm:$0xff]   ;;  %v429_v12 = vrot.slane %v427_v2, 5 }
  0x48   : > { %11286 = vmatprep.subr.bf16.mxu0 %v12033_v33  ;;  %11334 = vmatprep.subr.bf16.mxu1 %v12034_v41  ;;  %v374_v19 = vsel %vm12548_vm2, %v369_v1, %v373_v50  ;;  %v9882_v50 = vcombine.low %v12614_v48, %v12624_v58  ;;  %v426_v48 = vrot.slane %v424_v51, 4  ;;  %v443_v9 = vshll.u32 %v266_v46, 16  ;;  %v267_v17 = vld [vmem:[%s12515_s13 + $0x5c] sm:$0x1]  ;;  %v12049_v51 = vld [vmem:[#allocation2 + $0x90] sm:$0xff]  }
  0x49   : > { %11208 = vmatprep.mubr.bf16.mxu0 %v9855_v62  ;;  %v9856_v28 = vcombine.low %v364_v11, %v374_v19  ;;  %v406_v53 = vor.u32 %v405_v42, %v402_v34  ;;  %v12045_v62 = vld [vmem:[#allocation2 + $0x98] sm:$0xff]   ;;  %v12686_v42 = vld [vmem:[%s12515_s13 + $0x60] sm:$0xf] }
  0x4a   : > { %11287 = vmatpush3.bf16.msra.mxu0 %v12033_v33  ;;  %v392_v33 = vor.u32 %v391_v21, %v387_v5  ;;  %v12672_v11 = vld [vmem:[%s12515_s13 + $0x58] sm:$0xf] }
  0x4b   : > { %11335 = vmatpush3.bf16.msra.mxu1 %v12034_v41  ;;  %11288 = vmatprep.subr.bf16.mxu0 %v12037_v59  ;;  %v388_v41 = vsel %vm12548_vm2, %v383_v29, %v387_v5  ;;  %v407_v1 = vrot.slane %v406_v53, 4  ;;  %v416_v5 = vor.u32 %v415_v55, %v411_v49  ;;  %v16744_v46 = vshll.u32 %v12672_v11, 16 }
  0x4c   : > { %11336 = vmatprep.subr.bf16.mxu1 %v12038_v10  ;;  %v393_v52 = vrot.slane %v392_v33, 4 }
  0x4d   : > { %11209 = vmatmul.mubr.bf16.gmra.mxu0 %v9856_v28  ;;  %v412_v19 = vsel %vm12548_vm2, %v407_v1, %v411_v49  ;;  %v417_v21 = vrot.slane %v416_v5, 4  ;;  %v430_v28 = vor.u32 %v429_v12, %v426_v48  ;;  %v467_v49 = vshll.u32 %v267_v17, 16  ;;  %v12050_v48 = vld [vmem:[#allocation2 + $0xd0] sm:$0xff]   ;;  %v12053_v12 = vld [vmem:[#allocation2 + $0x88] sm:$0xff]  }
  0x4e   : > { %11257 = vmatmul.mubr.bf16.gmra.mxu1 %v9880_v40  ;;  %11289 = vmatpush3.bf16.msra.mxu0 %v12037_v59  ;;  %v437_v40 = vshrl.u32 %v12645_v37, 16  ;;  %v398_v4 = vsel %vm12548_vm2, %v393_v52, %v397_v23  ;;  %v12669_v59 = vld [vmem:[%s12515_s13 + $0x54] sm:$0xf]  ;;  %v445_v23 = vrot.slane %v443_v9, 5 }
  0x4f   : > { %11260 = vmatprep.mubr.bf16.mxu1 %v9881_v15  ;;  %11337 = vmatpush3.bf16.msra.mxu1 %v12038_v10  ;;  %v9857_v10 = vcombine.low %v388_v41, %v398_v4  ;;  %v435_v15 = vrot.slane %v433_v61, 5  ;;  %v448_v34 = vshrl.u32 %v12669_v59, 16  ;;  %v451_v33 = vshll.u32 %v12669_v59, 16 }
  0x50   : > { %11290 = vmatprep.subr.bf16.mxu0 %v12041_v38  ;;  %11338 = vmatprep.subr.bf16.mxu1 %v12042_v47  ;;  %v439_v16 = vrot.slane %v437_v40, 4  ;;  %v422_v45 = vsel %vm12548_vm2, %v417_v21, %v421_v56  ;;  %v16746_v41 = vshrl.u32 %v12672_v11, 16  ;;  %v431_v53 = vrot.slane %v430_v28, 4  ;;  %v12710_v21 = vld [vmem:[%s12515_s13 + $0x6c] sm:$0xf] }
  0x51   : > { %11212 = vmatprep.mubr.bf16.mxu0 %v9857_v10  ;;  %v9858_v52 = vcombine.low %v412_v19, %v422_v45  ;;  %v450_v55 = vrot.slane %v448_v34, 4  ;;  %v453_v2 = vrot.slane %v451_v33, 5  ;;  %v459_v56 = vrot.slane %v16744_v46, 5  ;;  %v269_v34 = vld [vmem:[%s12515_s13 + $0x74] sm:$0x1] }
  0x52   : > { %11291 = vmatpush3.bf16.msra.mxu0 %v12041_v38  ;;  %v440_v29 = vor.u32 %v439_v16, %v435_v15  ;;  %v268_v38 = vld [vmem:[%s12515_s13 + $0x68] sm:$0x1]  ;;  %v463_v4 = vrot.slane %v16746_v41, 4  ;;  %v469_v1 = vrot.slane %v467_v49, 5  ;;  %v436_v5 = vsel %vm12548_vm2, %v431_v53, %v435_v15  ;;  %v12713_v15 = vld [vmem:[%s12515_s13 + $0x70] sm:$0xf] }
  0x53   : > { %11339 = vmatpush3.bf16.msra.mxu1 %v12042_v47  ;;  %11292 = vmatprep.subr.bf16.mxu0 %v12045_v62  ;;  %v472_v10 = vshrl.u32 %v12686_v42, 16  ;;  %v454_v17 = vor.u32 %v453_v2, %v450_v55  ;;  %v16743_v28 = vshrl.u32 %v12693_v27, 16  ;;  %v12722_v53 = vld [vmem:[%s12515_s13 + $0x78] sm:$0xf] }
  0x54   : > { %11340 = vmatprep.subr.bf16.mxu1 %v12661_v63  ;;  %v441_v47 = vrot.slane %v440_v29, 4  ;;  %v464_v19 = vor.u32 %v463_v4, %v459_v56  ;;  %v491_v29 = vshll.u32 %v268_v38, 16  ;;  %v496_v38 = vshrl.u32 %v12710_v21, 16  ;;  %v12837_v46 = vld [vmem:[%s12515_s13 + $0xb8] sm:$0xf] }
  0x55   : > { %11213 = vmatmul.mubr.bf16.gmra.mxu0 %v9858_v52  ;;  %v455_v33 = vrot.slane %v454_v17, 4  ;;  %v9885_v52 = vcombine.low %v12686_v42, %v12693_v27  ;;  %v16735_v17 = vshll.u32 %v12713_v15, 16 }
  0x56   : > { %11261 = vmatmul.mubr.bf16.gmra.mxu1 %v9882_v50  ;;  %11293 = vmatpush3.bf16.msra.mxu0 %v12045_v62  ;;  %v446_v9 = vsel %vm12548_vm2, %v441_v47, %v445_v23  ;;  %v9884_v50 = vcombine.low %v12669_v59, %v12672_v11  ;;  %v475_v62 = vshll.u32 %v12686_v42, 16  ;;  %v12054_v23 = vld [vmem:[#allocation2 + $0xc8] sm:$0xff]   ;;  %v16739_v59 = vshll.u32 %v12693_v27, 16 }
  0x57   : > { %11264 = vmatprep.mubr.bf16.mxu1 %v9883_v26  ;;  %v9859_v16 = vcombine.low %v436_v5, %v446_v9  ;;  %11341 = vmatpush3.bf16.msra.mxu1 %v12661_v63  ;;  %v474_v26 = vrot.slane %v472_v10, 4  ;;  %v465_v45 = vrot.slane %v464_v19, 4  ;;  %v487_v47 = vrot.slane %v16743_v28, 4  ;;  %v12057_v5 = vld [vmem:[#allocation2 + $0x80] sm:$0xff]  }
  0x58   : > { %11294 = vmatprep.subr.bf16.mxu0 %v12049_v51  ;;  %11342 = vmatprep.subr.bf16.mxu1 %v12050_v48  ;;  %v477_v49 = vrot.slane %v475_v62, 5  ;;  %v483_v63 = vrot.slane %v16739_v59, 5  ;;  %v493_v55 = vrot.slane %v491_v29, 5  ;;  %v460_v2 = vsel %vm12548_vm2, %v455_v33, %v459_v56  ;;  %v12058_v19 = vld [vmem:[#allocation2 + $0xc0] sm:$0xff]  }
  0x59   : > { %11216 = vmatprep.mubr.bf16.mxu0 %v9859_v16  ;;  %v470_v4 = vsel %vm12548_vm2, %v465_v45, %v469_v1  ;;  %v498_v16 = vrot.slane %v496_v38, 4  ;;  %v16738_v56 = vshrl.u32 %v12713_v15, 16  ;;  %v515_v1 = vshll.u32 %v269_v34, 16  ;;  %v12804_v59 = vld [vmem:[%s12515_s13 + $0xa0] sm:$0xf] }
  0x5a   : > { %11295 = vmatpush3.bf16.msra.mxu0 %v12049_v51  ;;  %v478_v42 = vor.u32 %v477_v49, %v474_v26  ;;  %v499_v51 = vshll.u32 %v12710_v21, 16  ;;  %v9860_v9 = vcombine.low %v460_v2, %v470_v4  ;;  %v488_v10 = vor.u32 %v487_v47, %v483_v63  ;;  %v12737_v26 = vld [vmem:[%s12515_s13 + $0x7c] sm:$0xf]  ;;  %v12752_v2 = vld [vmem:[%s12515_s13 + $0x84] sm:$0xf] }
  0x5b   : > { %11296 = vmatprep.subr.bf16.mxu0 %v12053_v12  ;;  %11343 = vmatpush3.bf16.msra.mxu1 %v12050_v48  ;;  %v507_v33 = vrot.slane %v16735_v17, 5  ;;  %v520_v45 = vshrl.u32 %v12722_v53, 16  ;;  %v12744_v49 = vld [vmem:[#allocation2 + $0x138] sm:$0xff]   ;;  %v517_v38 = vrot.slane %v515_v1, 5 }
  0x5c   : > { %11344 = vmatprep.subr.bf16.mxu1 %v12054_v23  ;;  %v479_v62 = vrot.slane %v478_v42, 4  ;;  %v501_v29 = vrot.slane %v499_v51, 5  ;;  %v489_v48 = vrot.slane %v488_v10, 4  ;;  %v523_v42 = vshll.u32 %v12722_v53, 16 }
  0x5d   : > { %11217 = vmatmul.mubr.bf16.gmra.mxu0 %v9860_v9  ;;  %v522_v4 = vrot.slane %v520_v45, 4  ;;  %v16733_v51 = vshll.u32 %v12737_v26, 16  ;;  %v12759_v9 = vld [vmem:[%s12515_s13 + $0x88] sm:$0xf] }
  0x5e   : > { %11265 = vmatmul.mubr.bf16.gmra.mxu1 %v9884_v50  ;;  %11297 = vmatpush3.bf16.msra.mxu0 %v12053_v12  ;;  %v9886_v50 = vcombine.low %v12710_v21, %v12713_v15  ;;  %v484_v34 = vsel %vm12548_vm2, %v479_v62, %v483_v63  ;;  %v502_v47 = vor.u32 %v501_v29, %v498_v16  ;;  %v511_v12 = vrot.slane %v16738_v56, 4  ;;  %v12761_v63 = vld [vmem:[#allocation2 + $0x178] sm:$0xff]  }
  0x5f   : > { %11268 = vmatprep.mubr.bf16.mxu1 %v9885_v52  ;;  %v270_v52 = vld [vmem:[%s12515_s13 + $0x80] sm:$0x1]  ;;  %11345 = vmatpush3.bf16.msra.mxu1 %v12054_v23  ;;  %v494_v21 = vsel %vm12548_vm2, %v489_v48, %v493_v55  ;;  %v16734_v23 = vshrl.u32 %v12737_v26, 16  ;;  %v525_v29 = vrot.slane %v523_v42, 5  ;;  %v531_v55 = vrot.slane %v16733_v51, 5 }
  0x60   : > { %11298 = vmatprep.subr.bf16.mxu0 %v12057_v5  ;;  %11346 = vmatprep.subr.bf16.mxu1 %v12058_v19  ;;  %v9861_v10 = vcombine.low %v484_v34, %v494_v21  ;;  %v503_v16 = vrot.slane %v502_v47, 4  ;;  %v512_v62 = vor.u32 %v511_v12, %v507_v33  ;;  %v539_v1 = vshll.u32 %v270_v52, 16  ;;  %v271_v52 = vld [vmem:[%s12515_s13 + $0x8c] sm:$0x1] }
  0x61   : > { %v9887_v48 = vcombine.low %v12722_v53, %v12737_v26  ;;  %v535_v47 = vrot.slane %v16734_v23, 4  ;;  %v526_v12 = vor.u32 %v525_v29, %v522_v4  ;;  %v547_v53 = vshll.u32 %v12752_v2, 16  ;;  %v12785_v23 = vld [vmem:[%s12515_s13 + $0x94] sm:$0xf] }
  0x62   : > { %11299 = vmatpush3.bf16.msra.mxu0 %v12057_v5  ;;  %11220 = vmatprep.mubr.bf16.mxu0 %v9861_v10  ;;  %v508_v45 = vsel %vm12548_vm2, %v503_v16, %v507_v33  ;;  %v513_v34 = vrot.slane %v512_v62, 4  ;;  %v544_v5 = vshrl.u32 %v12752_v2, 16  ;;  %v541_v21 = vrot.slane %v539_v1, 5 }
  0x63   : > { %11380 = vmatprep.subr.bf16.mxu0 %v12744_v49  ;;  %11347 = vmatpush3.bf16.msra.mxu1 %v12058_v19  ;;  %v16736_v42 = vshll.u32 %v12759_v9, 16  ;;  %v536_v10 = vor.u32 %v535_v47, %v531_v55  ;;  %v16737_v62 = vshrl.u32 %v12759_v9, 16  ;;  %v236_v19 = vld [vmem:[%s12515_s13 + $0x90] sm:$0xf]  ;;  %v527_v29 = vrot.slane %v526_v12, 4 }
  0x64   : > { %11428 = vmatprep.subr.bf16.mxu1 %v12761_v63  ;;  %v518_v33 = vsel %vm12548_vm2, %v513_v34, %v517_v38  ;;  %v546_v16 = vrot.slane %v544_v5, 4  ;;  %v549_v1 = vrot.slane %v547_v53, 5  ;;  %v9888_v34 = vcombine.low %v12752_v2, %v12759_v9  ;;  %v272_v47 = vld [vmem:[%s12515_s13 + $0x98] sm:$0x1]  ;;  %v12795_v53 = vld [vmem:[%s12515_s13 + $0x9c] sm:$0xf] }
  0x65   : > { %v9862_v4 = vcombine.low %v508_v45, %v518_v33  ;;  %v555_v51 = vrot.slane %v16736_v42, 5  ;;  %v537_v17 = vrot.slane %v536_v10, 4  ;;  %v559_v38 = vrot.slane %v16737_v62, 4 }
  0x66   : > { %11269 = vmatmul.mubr.bf16.gmra.mxu1 %v9886_v50  ;;  %v563_v50 = vshll.u32 %v271_v52, 16  ;;  %v532_v45 = vsel %vm12548_vm2, %v527_v29, %v531_v55  ;;  %v568_v5 = vshrl.u32 %v236_v19, 16  ;;  %v571_v12 = vshll.u32 %v236_v19, 16 }
  0x67   : > { %11272 = vmatprep.mubr.bf16.mxu1 %v9887_v48  ;;  %11221 = vmatmul.mubr.bf16.gmra.mxu0 %v9862_v4  ;;  %v550_v48 = vor.u32 %v549_v1, %v546_v16  ;;  %v542_v33 = vsel %vm12548_vm2, %v537_v17, %v541_v21  ;;  %v560_v10 = vor.u32 %v559_v38, %v555_v51  ;;  %v16740_v42 = vshll.u32 %v12785_v23, 16 }
  0x68   : > { %v565_v52 = vrot.slane %v563_v50, 5  ;;  %v9863_v2 = vcombine.low %v532_v45, %v542_v33  ;;  %v570_v62 = vrot.slane %v568_v5, 4  ;;  %v573_v56 = vrot.slane %v571_v12, 5  ;;  %v273_v50 = vld [vmem:[%s12515_s13 + $0xa4] sm:$0x1] }
  0x69   : > { %v551_v4 = vrot.slane %v550_v48, 4  ;;  %v561_v55 = vrot.slane %v560_v10, 4  ;;  %v579_v16 = vrot.slane %v16740_v42, 5  ;;  %v16742_v29 = vshrl.u32 %v12785_v23, 16  ;;  %v240_v48 = vld [vmem:[%s12515_s13 + $0xa8] sm:$0xf] }
  0x6a   : > { %v587_v1 = vshll.u32 %v272_v47, 16  ;;  %11224 = vmatprep.mubr.bf16.mxu0 %v9863_v2  ;;  %v574_v21 = vor.u32 %v573_v56, %v570_v62  ;;  %v9889_v38 = vcombine.low %v236_v19, %v12785_v23  ;;  %v592_v45 = vshrl.u32 %v12795_v53, 16  ;;  %v12818_v10 = vld [vmem:[%s12515_s13 + $0xac] sm:$0xf]  ;;  %v274_v2 = vld [vmem:[%s12515_s13 + $0xb0] sm:$0x1] }
  0x6b   : > { %v556_v17 = vsel %vm12548_vm2, %v551_v4, %v555_v51  ;;  %v566_v5 = vsel %vm12548_vm2, %v561_v55, %v565_v52  ;;  %v583_v47 = vrot.slane %v16742_v29, 4  ;;  %v595_v33 = vshll.u32 %v12795_v53, 16 }
  0x6c   : > { %v589_v12 = vrot.slane %v587_v1, 5  ;;  %v9864_v56 = vcombine.low %v556_v17, %v566_v5  ;;  %v575_v51 = vrot.slane %v574_v21, 4  ;;  %v594_v62 = vrot.slane %v592_v45, 4 }
  0x6d   : > { %v16741_v19 = vshll.u32 %v12804_v59, 16  ;;  %v584_v4 = vor.u32 %v583_v47, %v579_v16  ;;  %v597_v42 = vrot.slane %v595_v33, 5  ;;  %v16745_v52 = vshrl.u32 %v12804_v59, 16 }
  0x6e   : > { %11273 = vmatmul.mubr.bf16.gmra.mxu1 %v9888_v34  ;;  %v611_v34 = vshll.u32 %v273_v50, 16  ;;  %v580_v55 = vsel %vm12548_vm2, %v575_v51, %v579_v16  ;;  %v9890_v17 = vcombine.low %v12795_v53, %v12804_v59  ;;  %v616_v21 = vshrl.u32 %v240_v48, 16  ;;  %v242_v51 = vld [vmem:[%s12515_s13 + $0xb4] sm:$0xf] }
  0x6f   : > { %11276 = vmatprep.mubr.bf16.mxu1 %v9889_v38  ;;  %11225 = vmatmul.mubr.bf16.gmra.mxu0 %v9864_v56  ;;  %v603_v1 = vrot.slane %v16741_v19, 5  ;;  %v585_v38 = vrot.slane %v584_v4, 4  ;;  %v598_v45 = vor.u32 %v597_v42, %v594_v62  ;;  %v607_v50 = vrot.slane %v16745_v52, 4  ;;  %v275_v42 = vld [vmem:[%s12515_s13 + $0xbc] sm:$0x1] }
  0x70   : > { %v613_v5 = vrot.slane %v611_v34, 5  ;;  %v618_v47 = vrot.slane %v616_v21, 4  ;;  %v619_v33 = vshll.u32 %v240_v48, 16  ;;  %v16747_v56 = vshll.u32 %v12818_v10, 16 }
  0x71   : > { %v629_v16 = vshrl.u32 %v12818_v10, 16  ;;  %v590_v19 = vsel %vm12548_vm2, %v585_v38, %v589_v12  ;;  %v599_v29 = vrot.slane %v598_v45, 4  ;;  %v608_v53 = vor.u32 %v607_v50, %v603_v1 }
  0x72   : > { %v635_v28 = vshll.u32 %v274_v2, 16  ;;  %v9865_v62 = vcombine.low %v580_v55, %v590_v19  ;;  %v621_v4 = vrot.slane %v619_v33, 5  ;;  %v627_v34 = vrot.slane %v16747_v56, 5 }
  0x73   : > { %v631_v21 = vrot.slane %v629_v16, 4  ;;  %v604_v52 = vsel %vm12548_vm2, %v599_v29, %v603_v1  ;;  %v609_v41 = vrot.slane %v608_v53, 4  ;;  %v9891_v38 = vcombine.low %v240_v48, %v12818_v10 }
  0x74   : > { %v637_v12 = vrot.slane %v635_v28, 5  ;;  %11228 = vmatprep.mubr.bf16.mxu0 %v9865_v62  ;;  %v622_v2 = vor.u32 %v621_v4, %v618_v47  ;;  %v640_v19 = vshrl.u32 %v242_v51, 16  ;;  %v643_v55 = vshll.u32 %v242_v51, 16  ;;  %v1258_v47 = vld [vmem:[%s12515_s13] sm:$0xe] }
  0x75   : > { %v632_v45 = vor.u32 %v631_v21, %v627_v34  ;;  %v614_v50 = vsel %vm12548_vm2, %v609_v41, %v613_v5  ;;  %v16748_v29 = vshll.u32 %v12837_v46, 16  ;;  %v653_v1 = vshrl.u32 %v12837_v46, 16  ;;  %v1743_v41 = vld [vmem:[%s12515_s13 + $0x8] sm:$0x3] }
  0x76   : > { %11277 = vmatmul.mubr.bf16.gmra.mxu1 %v9890_v17  ;;  %v659_v28 = vshll.u32 %v275_v42, 16  ;;  %v9866_v17 = vcombine.low %v604_v52, %v614_v50  ;;  %v623_v48 = vrot.slane %v622_v2, 4  ;;  %v642_v53 = vrot.slane %v640_v19, 4 }
  0x77   : > { %11280 = vmatprep.mubr.bf16.mxu1 %v9891_v38  ;;  %v633_v33 = vrot.slane %v632_v45, 4  ;;  %v645_v62 = vrot.slane %v643_v55, 5  ;;  %v651_v4 = vrot.slane %v16748_v29, 5  ;;  %v655_v21 = vrot.slane %v653_v1, 4  ;;  %v1259_v29 = vld [vmem:[%s12515_s13 + $0xc] sm:$0xe] }
  0x78   : > { %v661_v56 = vrot.slane %v659_v28, 5  ;;  %11229 = vmatmul.mubr.bf16.gmra.mxu0 %v9866_v17  ;;  %v628_v5 = vsel %vm12548_vm2, %v623_v48, %v627_v34  ;;  %v9892_v42 = vcombine.low %v242_v51, %v12837_v46  ;;  %v16890_v38 = vmov 0 }
  0x79   : > { %v638_v52 = vsel %vm12548_vm2, %v633_v33, %v637_v12  ;;  %v16891_v38 = vsel %vm12864_vm7, 4294967295, %v16890_v38  ;;  %v9901_v2 = vrot.slane %v1258_v47, 9  ;;  %v646_v19 = vor.u32 %v645_v62, %v642_v53 }
  0x7a   : > { %16892 = vst [vmem:[#allocation9_spill] sm:$0xff] %v16891_v38  ;;  %v9867_v45 = vcombine.low %v628_v5, %v638_v52  ;;  %v656_v55 = vor.u32 %v655_v21, %v651_v4  ;;  %v1311_v50 = vrot.slane %v12519_v13, 5  ;;  %v1763_v28 = vshrl.u32 %v1258_v47, 16 }
  0x7b   : > { %v1766_v34 = vshll.u32 %v1258_v47, 16  ;;  %v1771_v12 = vrot.slane %v293_v18, 5  ;;  %v1777_v17 = vshrl.u32 %v1743_v41, 16  ;;  %v647_v51 = vrot.slane %v646_v19, 4 }
  0x7c   : > { %11232 = vmatprep.mubr.bf16.mxu0 %v9867_v45  ;;  %v657_v48 = vrot.slane %v656_v55, 4  ;;  %v1312_v33 = vsel %vm12864_vm7, %v9901_v2, %v1311_v50  ;;  %v1313_v5 = vrot.slane %v1311_v50, 4  ;;  %v1765_v53 = vrot.slane %v1763_v28, 5  ;;  %v1744_v2 = vld [vmem:[%s12515_s13 + $0x14] sm:$0x3] }
  0x7d   : > { %v1768_v62 = vrot.slane %v1766_v34, 6  ;;  %v1773_v21 = vor.u32 %v12540_v31, %v1771_v12  ;;  %v1779_v52 = vrot.slane %v1777_v17, 5  ;;  %v652_v13 = vsel %vm12548_vm2, %v647_v51, %v651_v4 }
  0x7e   : > { %11281 = vmatmul.mubr.bf16.gmra.mxu1 %v9892_v42  ;;  %v662_v18 = vsel %vm12548_vm2, %v657_v48, %v661_v56  ;;  %v1315_v47 = vsel %vm12864_vm7, %v1313_v5, %v1314_v22  ;;  %v1780_v42 = vshll.u32 %v1743_v41, 16  ;;  %v16893_v31 = vmov 0  ;;  %v1260_v5 = vld [vmem:[%s12515_s13 + $0x18] sm:$0xe] }
  0x7f   : > { %v9868_v45 = vcombine.low %v652_v13, %v662_v18  ;;  %v9917_v19 = vcombine.low %v1312_v33, %v1315_v47  ;;  %v1769_v55 = vor.u32 %v1768_v62, %v1765_v53  ;;  %v1775_v50 = vrot.slane %v1773_v21, 4  ;;  %v1745_v18 = vld [vmem:[%s12515_s13 + $0x20] sm:$0x3] }
  0x80   : > { %v16894_v31 = vsel %vm12886_vm8, 4294967295, %v16893_v31  ;;  %v1782_v4 = vrot.slane %v1780_v42, 6  ;;  %v9902_v56 = vrot.slane %v1259_v29, 9  ;;  %v1786_v28 = vshrl.u32 %v1259_v29, 16 }
  0x81   : > { %16895 = vst [vmem:[#allocation10_spill] sm:$0xff] %v16894_v31  ;;  %11233 = vmatmul.mubr.bf16.gmra.mxu0 %v9868_v45  ;;  %v1770_v22 = vrot.slane %v1769_v55, 4  ;;  %v1789_v41 = vshll.u32 %v1259_v29, 16  ;;  %v1798_v34 = vrot.slane %v12572_v0, 4  ;;  %v1800_v12 = vshrl.u32 %v1744_v2, 16 }
  0x82   : > { %11300 = vmatprep.mubr.bf16.mxu0 %v9917_v19  ;;  %v1783_v17 = vor.u32 %v1782_v4, %v1779_v52  ;;  %v1319_v51 = vsel %vm12864_vm7, %v9902_v56, %v1318_v14  ;;  %v1320_v48 = vrot.slane %v1318_v14, 4  ;;  %v1788_v33 = vrot.slane %v1786_v28, 5 }
  0x83   : > { %v1774_v53 = vsel %vm12886_vm8, %v1770_v22, %v1773_v21  ;;  %v1791_v24 = vrot.slane %v1789_v41, 6  ;;  %v1802_v62 = vrot.slane %v1800_v12, 5  ;;  %v1803_v13 = vshll.u32 %v1744_v2, 16  ;;  %v12061_v22 = vld [vmem:[#allocation2 + $0x130] sm:$0xff]  }
  0x84   : > { %v1784_v29 = vsel %vm12886_vm8, %v1775_v50, %v1783_v17  ;;  %v1322_v52 = vsel %vm12864_vm7, %v1320_v48, %v1321_v43  ;;  %v9903_v47 = vrot.slane %v1260_v5, 9  ;;  %v1325_v42 = vrot.slane %v12558_v54, 5 }
  0x85   : > { %v9941_v45 = vcombine.low %v1774_v53, %v1784_v29  ;;  %v9918_v19 = vcombine.low %v1319_v51, %v1322_v52  ;;  %v1792_v55 = vor.u32 %v1791_v24, %v1788_v33  ;;  %v1805_v4 = vrot.slane %v1803_v13, 6  ;;  %v12062_v53 = vld [vmem:[#allocation2 + $0x170] sm:$0xff]   ;;  %v12203_v52 = vld [vmem:[%s12515_s13 + $0x28] sm:$0xf] }
  0x86   : > { %v1326_v21 = vsel %vm12864_vm7, %v9903_v47, %v1325_v42  ;;  %v1327_v2 = vrot.slane %v1325_v42, 4  ;;  %v1328_v56 = vrot.slane %v12567_v60, 5  ;;  %v1809_v14 = vshrl.u32 %v1260_v5, 16 }
  0x87   : > { %11348 = vmatprep.mubr.bf16.mxu1 %v9941_v45  ;;  %v1793_v25 = vrot.slane %v1792_v55, 4  ;;  %v1806_v50 = vor.u32 %v1805_v4, %v1802_v62  ;;  %v1812_v28 = vshll.u32 %v1260_v5, 16  ;;  %v1817_v43 = vrot.slane %v341_v7, 5  ;;  %v1261_v5 = vld [vmem:[%s12515_s13 + $0x24] sm:$0xe] }
  0x88   : > { %v1329_v41 = vsel %vm12864_vm7, %v1327_v2, %v1328_v56  ;;  %v1811_v12 = vrot.slane %v1809_v14, 5  ;;  %v1818_v17 = vrot.slane %v337_v6, 6  ;;  %v1823_v51 = vshrl.u32 %v1745_v18, 16 }
  0x89   : > { %11301 = vmatmul.mubr.bf16.vlgmr.msra.gmra.mxu0 %v9918_v19  ;;  %v1797_v60 = vsel %vm12886_vm8, %v1793_v25, %v12572_v0  ;;  %v1807_v48 = vsel %vm12886_vm8, %v1798_v34, %v1806_v50  ;;  %v9919_v33 = vcombine.low %v1326_v21, %v1329_v41  ;;  %v1814_v7 = vrot.slane %v1812_v28, 6  ;;  %v12063_v34 = vld [vmem:[#allocation2 + $0x128] sm:$0xff]   ;;  %v12065_v28 = vld [vmem:[#allocation2 + $0x120] sm:$0xff]  }
  0x8a   : > { %v9942_v24 = vcombine.low %v1797_v60, %v1807_v48  ;;  %11381 = vmatpush3.bf16.msra.mxu0 %v12744_v49  ;;  %v1819_v54 = vor.u32 %v1818_v17, %v1817_v43  ;;  %v1825_v6 = vrot.slane %v1823_v51, 5  ;;  %v1826_v62 = vshll.u32 %v1745_v18, 16  ;;  %v1746_v19 = vld [vmem:[%s12515_s13 + $0x2c] sm:$0x3] }
  0x8b   : > { %11304 = vmatprep.mubr.bf16.mxu0 %v9919_v33  ;;  %v1815_v13 = vor.u32 %v1814_v7, %v1811_v12  ;;  %v9904_v29 = vrot.slane %v1261_v5, 9  ;;  %v1332_v47 = vrot.slane %v12203_v52, 5  ;;  %v1335_v0 = vrot.slane %v12593_v20, 5  ;;  %11382 = vmatprep.subr.bf16.mxu0 %v12061_v22  ;;  %v12064_v50 = vld [vmem:[#allocation2 + $0x168] sm:$0xff]   ;;  %v12066_v7 = vld [vmem:[#allocation2 + $0x160] sm:$0xff]  }
  0x8c   : > { %11349 = vmatmul.mubr.bf16.vlgmr.msra.gmra.mxu1 %v9942_v24  ;;  %v1821_v42 = vrot.slane %v1819_v54, 4  ;;  %v1828_v45 = vrot.slane %v1826_v62, 6  ;;  %v1832_v55 = vshrl.u32 %v1261_v5, 16  ;;  %v1835_v4 = vshll.u32 %v1261_v5, 16  ;;  %v12205_v62 = vld [vmem:[%s12515_s13 + $0x38] sm:$0x1] }
  0x8d   : > { %11429 = vmatpush3.bf16.msra.mxu1 %v12761_v63  ;;  %v1816_v49 = vrot.slane %v1815_v13, 4  ;;  %v1333_v18 = vsel %vm12864_vm7, %v9904_v29, %v1332_v47  ;;  %v1334_v21 = vrot.slane %v1332_v47, 4  ;;  %v1840_v2 = vrot.slane %v365_v32, 5  ;;  %v1262_v32 = vld [vmem:[%s12515_s13 + $0x30] sm:$0xe] }
  0x8e   : > { %v1829_v20 = vor.u32 %v1828_v45, %v1825_v6  ;;  %v1834_v56 = vrot.slane %v1832_v55, 5  ;;  %v1837_v14 = vrot.slane %v1835_v4, 6  ;;  %v1841_v25 = vrot.slane %v361_v30, 6  ;;  %11383 = vmatpush3.bf16.msra.mxu0 %v12061_v22  ;;  %11430 = vmatprep.subr.bf16.mxu1 %v12062_v53  ;;  %v1747_v29 = vld [vmem:[%s12515_s13 + $0x38] sm:$0x3] }
  0x8f   : > { %v1820_v63 = vsel %vm12886_vm8, %v1816_v49, %v1819_v54  ;;  %v1336_v43 = vsel %vm12864_vm7, %v1334_v21, %v1335_v0  ;;  %v1846_v41 = vshrl.u32 %v1746_v19, 16  ;;  %v1849_v12 = vshll.u32 %v1746_v19, 16  ;;  %11384 = vmatprep.subr.bf16.mxu0 %v12063_v34  ;;  %v12204_v54 = vld [vmem:[%s12515_s13 + $0x34] sm:$0xf]  ;;  %v1263_v49 = vld [vmem:[%s12515_s13 + $0x3c] sm:$0xe] }
  0x90   : > { %v1830_v3 = vsel %vm12886_vm8, %v1821_v42, %v1829_v20  ;;  %v9920_v30 = vcombine.low %v1333_v18, %v1336_v43  ;;  %v1838_v22 = vor.u32 %v1837_v14, %v1834_v56  ;;  %v1842_v17 = vor.u32 %v1841_v25, %v1840_v2 }
  0x91   : > { %v9943_v51 = vcombine.low %v1820_v63, %v1830_v3  ;;  %v1848_v60 = vrot.slane %v1846_v41, 5  ;;  %v1851_v48 = vrot.slane %v1849_v12, 6  ;;  %11431 = vmatpush3.bf16.msra.mxu1 %v12062_v53  ;;  %v9905_v33 = vrot.slane %v1262_v32, 9  ;;  %v12067_v53 = vld [vmem:[#allocation2 + $0x118] sm:$0xff]  }
  0x92   : > { %11305 = vmatmul.mubr.bf16.gmra.mxu0 %v9920_v30  ;;  %v1839_v5 = vrot.slane %v1838_v22, 4  ;;  %v1844_v24 = vrot.slane %v1842_v17, 4  ;;  %v1339_v6 = vrot.slane %v12204_v54, 5  ;;  %v1342_v13 = vrot.slane %v12205_v62, 5  ;;  %11432 = vmatprep.subr.bf16.mxu1 %v12064_v50  ;;  %v12207_v30 = vld [vmem:[%s12515_s13 + $0x44] sm:$0x1] }
  0x93   : > { %11352 = vmatprep.mubr.bf16.mxu1 %v9943_v51  ;;  %v1852_v52 = vor.u32 %v1851_v48, %v1848_v60  ;;  %v1855_v47 = vshrl.u32 %v1262_v32, 16  ;;  %v1858_v0 = vshll.u32 %v1262_v32, 16  ;;  %v1863_v42 = vrot.slane %v389_v8, 5  ;;  %11385 = vmatpush3.bf16.msra.mxu0 %v12063_v34  ;;  %v12068_v34 = vld [vmem:[#allocation2 + $0x158] sm:$0xff]   ;;  %v12206_v32 = vld [vmem:[%s12515_s13 + $0x40] sm:$0xf] }
  0x94   : > { %v1843_v45 = vsel %vm12886_vm8, %v1839_v5, %v1842_v17  ;;  %v1340_v19 = vsel %vm12864_vm7, %v9905_v33, %v1339_v6  ;;  %v1341_v55 = vrot.slane %v1339_v6, 4  ;;  %v1864_v4 = vrot.slane %v385_v57, 6  ;;  %11386 = vmatprep.subr.bf16.mxu0 %v12065_v28  ;;  %v12069_v57 = vld [vmem:[#allocation2 + $0x110] sm:$0xff]   ;;  %v1748_v17 = vld [vmem:[%s12515_s13 + $0x44] sm:$0x3] }
  0x95   : > { %v1853_v18 = vsel %vm12886_vm8, %v1844_v24, %v1852_v52  ;;  %v1857_v21 = vrot.slane %v1855_v47, 5  ;;  %v1860_v2 = vrot.slane %v1858_v0, 6  ;;  %v1869_v8 = vshrl.u32 %v1747_v29, 16  ;;  %11433 = vmatpush3.bf16.msra.mxu1 %v12064_v50  ;;  %v12070_v6 = vld [vmem:[#allocation2 + $0x150] sm:$0xff]   ;;  %v12071_v0 = vld [vmem:[#allocation2 + $0x108] sm:$0xff]  }
  0x96   : > { %v9944_v20 = vcombine.low %v1843_v45, %v1853_v18  ;;  %v1343_v56 = vsel %vm12864_vm7, %v1341_v55, %v1342_v13  ;;  %v1865_v14 = vor.u32 %v1864_v4, %v1863_v42  ;;  %v1872_v35 = vshll.u32 %v1747_v29, 16  ;;  %11434 = vmatprep.subr.bf16.mxu1 %v12066_v7  ;;  %v1749_v4 = vld [vmem:[%s12515_s13 + $0x50] sm:$0x3] }
  0x97   : > { %v9921_v25 = vcombine.low %v1340_v19, %v1343_v56  ;;  %v1861_v63 = vor.u32 %v1860_v2, %v1857_v21  ;;  %v1871_v43 = vrot.slane %v1869_v8, 5  ;;  %v9906_v41 = vrot.slane %v1263_v49, 9  ;;  %11387 = vmatpush3.bf16.msra.mxu0 %v12065_v28  ;;  %v12208_v2 = vld [vmem:[%s12515_s13 + $0x4c] sm:$0xf]  ;;  %v12209_v56 = vld [vmem:[%s12515_s13 + $0x50] sm:$0x1] }
  0x98   : > { %11353 = vmatmul.mubr.bf16.gmra.mxu1 %v9944_v20  ;;  %v1867_v12 = vrot.slane %v1865_v14, 4  ;;  %v1874_v50 = vrot.slane %v1872_v35, 6  ;;  %v1346_v3 = vrot.slane %v12206_v32, 5  ;;  %v1349_v22 = vrot.slane %v12207_v30, 5  ;;  %11388 = vmatprep.subr.bf16.mxu0 %v12067_v53 }
  0x99   : > { %11308 = vmatprep.mubr.bf16.mxu0 %v9921_v25  ;;  %v1862_v51 = vrot.slane %v1861_v63, 4  ;;  %v1878_v60 = vshrl.u32 %v1263_v49, 16  ;;  %v1881_v48 = vshll.u32 %v1263_v49, 16  ;;  %v1886_v33 = vrot.slane %v413_v44, 5  ;;  %11435 = vmatpush3.bf16.msra.mxu1 %v12066_v7 }
  0x9a   : > { %v1875_v5 = vor.u32 %v1874_v50, %v1871_v43  ;;  %v1347_v28 = vsel %vm12864_vm7, %v9906_v41, %v1346_v3  ;;  %v1348_v24 = vrot.slane %v1346_v3, 4  ;;  %v1887_v54 = vrot.slane %v409_v36, 6  ;;  %11436 = vmatprep.subr.bf16.mxu1 %v12068_v34  ;;  %v1264_v36 = vld [vmem:[%s12515_s13 + $0x48] sm:$0xe] }
  0x9b   : > { %v1866_v62 = vsel %vm12886_vm8, %v1862_v51, %v1865_v14  ;;  %v1880_v13 = vrot.slane %v1878_v60, 5  ;;  %v1883_v29 = vrot.slane %v1881_v48, 6  ;;  %v1892_v52 = vshrl.u32 %v1748_v17, 16  ;;  %11389 = vmatpush3.bf16.msra.mxu0 %v12067_v53  ;;  %v12072_v53 = vld [vmem:[#allocation2 + $0x148] sm:$0xff]   ;;  %v12073_v51 = vld [vmem:[#allocation2 + $0x100] sm:$0xff]  }
  0x9c   : > { %v1876_v44 = vsel %vm12886_vm8, %v1867_v12, %v1875_v5  ;;  %v1350_v7 = vsel %vm12864_vm7, %v1348_v24, %v1349_v22  ;;  %v1888_v47 = vor.u32 %v1887_v54, %v1886_v33  ;;  %v1895_v58 = vshll.u32 %v1748_v17, 16  ;;  %11390 = vmatprep.subr.bf16.mxu0 %v12069_v57  ;;  %v12210_v54 = vld [vmem:[%s12515_s13 + $0x58] sm:$0xf] }
  0x9d   : > { %v9945_v42 = vcombine.low %v1866_v62, %v1876_v44  ;;  %v9922_v45 = vcombine.low %v1347_v28, %v1350_v7  ;;  %v1884_v19 = vor.u32 %v1883_v29, %v1880_v13  ;;  %v1894_v55 = vrot.slane %v1892_v52, 5  ;;  %11437 = vmatpush3.bf16.msra.mxu1 %v12068_v34  ;;  %v12987_v62 = vld [vmem:[#allocation2 + $0x1b8] sm:$0xff]  }
  0x9e   : > { %v1890_v49 = vrot.slane %v1888_v47, 4  ;;  %v1897_v18 = vrot.slane %v1895_v58, 6  ;;  %v9907_v21 = vrot.slane %v1264_v36, 9  ;;  %v1353_v8 = vrot.slane %v12208_v2, 5  ;;  %11438 = vmatprep.subr.bf16.mxu1 %v12070_v6  ;;  %v12211_v52 = vld [vmem:[%s12515_s13 + $0x5c] sm:$0x1] }
  0x9f   : > { %11356 = vmatprep.mubr.bf16.mxu1 %v9945_v42  ;;  %11309 = vmatmul.mubr.bf16.gmra.mxu0 %v9922_v45  ;;  %v1885_v20 = vrot.slane %v1884_v19, 4  ;;  %v1356_v14 = vrot.slane %v12209_v56, 5  ;;  %v1901_v35 = vshrl.u32 %v1264_v36, 16  ;;  %v1904_v25 = vshll.u32 %v1264_v36, 16  ;;  %v1750_v7 = vld [vmem:[%s12515_s13 + $0x5c] sm:$0x3] }
  0xa0   : > { %v1898_v63 = vor.u32 %v1897_v18, %v1894_v55  ;;  %v1354_v43 = vsel %vm12864_vm7, %v9907_v21, %v1353_v8  ;;  %v1355_v34 = vrot.slane %v1353_v8, 4  ;;  %v1909_v41 = vrot.slane %v437_v40, 5  ;;  %11391 = vmatpush3.bf16.msra.mxu0 %v12069_v57  ;;  %v1265_v57 = vld [vmem:[%s12515_s13 + $0x54] sm:$0xe]  ;;  %v1266_v19 = vld [vmem:[%s12515_s13 + $0x60] sm:$0xe] }
  0xa1   : > { %v1889_v12 = vsel %vm12886_vm8, %v1885_v20, %v1888_v47  ;;  %v1903_v50 = vrot.slane %v1901_v35, 5  ;;  %v1906_v32 = vrot.slane %v1904_v25, 6  ;;  %v1910_v3 = vrot.slane %v433_v61, 6  ;;  %11439 = vmatpush3.bf16.msra.mxu1 %v12070_v6  ;;  %11392 = vmatprep.subr.bf16.mxu0 %v12071_v0  ;;  %v12074_v61 = vld [vmem:[#allocation2 + $0x140] sm:$0xff]   ;;  %v13000_v2 = vld [vmem:[#allocation2 + $0x1f8] sm:$0xff]  }
  0xa2   : > { %v1899_v30 = vsel %vm12886_vm8, %v1890_v49, %v1898_v63  ;;  %v1357_v22 = vsel %vm12864_vm7, %v1355_v34, %v1356_v14  ;;  %v1915_v17 = vshrl.u32 %v1749_v4, 16  ;;  %v1918_v40 = vshll.u32 %v1749_v4, 16  ;;  %11440 = vmatprep.subr.bf16.mxu1 %v12072_v53 }
  0xa3   : > { %v9946_v60 = vcombine.low %v1889_v12, %v1899_v30  ;;  %v9923_v48 = vcombine.low %v1354_v43, %v1357_v22  ;;  %v1907_v33 = vor.u32 %v1906_v32, %v1903_v50  ;;  %v1911_v37 = vor.u32 %v1910_v3, %v1909_v41  ;;  %v12212_v41 = vld [vmem:[%s12515_s13 + $0x64] sm:$0xf]  ;;  %v12213_v3 = vld [vmem:[%s12515_s13 + $0x68] sm:$0x1] }
  0xa4   : > { %v1917_v5 = vrot.slane %v1915_v17, 5  ;;  %v1920_v28 = vrot.slane %v1918_v40, 6  ;;  %v9908_v24 = vrot.slane %v1265_v57, 9  ;;  %v1360_v6 = vrot.slane %v12210_v54, 5  ;;  %11393 = vmatpush3.bf16.msra.mxu0 %v12071_v0  ;;  %v1751_v22 = vld [vmem:[%s12515_s13 + $0x68] sm:$0x3] }
  0xa5   : > { %11357 = vmatmul.mubr.bf16.gmra.mxu1 %v9946_v60  ;;  %11312 = vmatprep.mubr.bf16.mxu0 %v9923_v48  ;;  %v1908_v13 = vrot.slane %v1907_v33, 4  ;;  %v1913_v29 = vrot.slane %v1911_v37, 4  ;;  %v1363_v44 = vrot.slane %v12211_v52, 5  ;;  %v1924_v47 = vshrl.u32 %v1265_v57, 16 }
  0xa6   : > { %v1921_v58 = vor.u32 %v1920_v28, %v1917_v5  ;;  %v1361_v36 = vsel %vm12864_vm7, %v9908_v24, %v1360_v6  ;;  %v1362_v42 = vrot.slane %v1360_v6, 4  ;;  %v1927_v45 = vshll.u32 %v1265_v57, 16  ;;  %11441 = vmatpush3.bf16.msra.mxu1 %v12072_v53  ;;  %11394 = vmatprep.subr.bf16.mxu0 %v12073_v51 }
  0xa7   : > { %v1912_v0 = vsel %vm12886_vm8, %v1908_v13, %v1911_v37  ;;  %v1926_v55 = vrot.slane %v1924_v47, 5  ;;  %v16896_v4 = vshrl.u32 %v12672_v11, 16  ;;  %v16897_v18 = vshll.u32 %v12672_v11, 16  ;;  %11442 = vmatprep.subr.bf16.mxu1 %v12074_v61  ;;  %v1267_v47 = vld [vmem:[%s12515_s13 + $0x6c] sm:$0xe] }
  0xa8   : > { %v1922_v8 = vsel %vm12886_vm8, %v1913_v29, %v1921_v58  ;;  %v1364_v53 = vsel %vm12864_vm7, %v1362_v42, %v1363_v44  ;;  %v1929_v20 = vrot.slane %v1927_v45, 6  ;;  %v1938_v56 = vshrl.u32 %v1750_v7, 16  ;;  %11395 = vmatpush3.bf16.msra.mxu0 %v12073_v51  ;;  %v1752_v58 = vld [vmem:[%s12515_s13 + $0x74] sm:$0x3] }
  0xa9   : > { %v1932_v49 = vrot.slane %v16896_v4, 5  ;;  %v1933_v21 = vrot.slane %v16897_v18, 6  ;;  %v9947_v14 = vcombine.low %v1912_v0, %v1922_v8  ;;  %v9924_v35 = vcombine.low %v1361_v36, %v1364_v53  ;;  %11476 = vmatprep.subr.bf16.mxu0 %v12987_v62 }
  0xaa   : > { %v1941_v11 = vshll.u32 %v1750_v7, 16  ;;  %v1930_v63 = vor.u32 %v1929_v20, %v1926_v55  ;;  %v1940_v43 = vrot.slane %v1938_v56, 5  ;;  %v9909_v34 = vrot.slane %v1266_v19, 9  ;;  %11443 = vmatpush3.bf16.msra.mxu1 %v12074_v61  ;;  %v12214_v55 = vld [vmem:[%s12515_s13 + $0x70] sm:$0xf] }
  0xab   : > { %v1934_v25 = vor.u32 %v1933_v21, %v1932_v49  ;;  %v1367_v12 = vrot.slane %v12212_v41, 5  ;;  %11360 = vmatprep.mubr.bf16.mxu1 %v9947_v14  ;;  %11313 = vmatmul.mubr.bf16.gmra.mxu0 %v9924_v35  ;;  %v1370_v30 = vrot.slane %v12213_v3, 5  ;;  %v1947_v17 = vshrl.u32 %v1266_v19, 16  ;;  %v12215_v49 = vld [vmem:[%s12515_s13 + $0x74] sm:$0x1] }
  0xac   : > { %v1943_v32 = vrot.slane %v1941_v11, 6  ;;  %v1931_v40 = vrot.slane %v1930_v63, 4  ;;  %v1950_v60 = vshll.u32 %v1266_v19, 16  ;;  %11524 = vmatprep.subr.bf16.mxu1 %v13000_v2  ;;  %v16898_v37 = vshrl.u32 %v12693_v27, 16 }
  0xad   : > { %v1936_v50 = vrot.slane %v1934_v25, 4  ;;  %v1368_v57 = vsel %vm12864_vm7, %v9909_v34, %v1367_v12  ;;  %v1369_v51 = vrot.slane %v1367_v12, 4  ;;  %v1949_v33 = vrot.slane %v1947_v17, 5 }
  0xae   : > { %v1944_v48 = vor.u32 %v1943_v32, %v1940_v43  ;;  %v1955_v61 = vrot.slane %v16898_v37, 5  ;;  %v16899_v5 = vshll.u32 %v12693_v27, 16  ;;  %v1935_v24 = vsel %vm12886_vm8, %v1931_v40, %v1934_v25 }
  0xaf   : > { %v1371_v54 = vsel %vm12864_vm7, %v1369_v51, %v1370_v30  ;;  %v1952_v6 = vrot.slane %v1950_v60, 6  ;;  %v1961_v13 = vshrl.u32 %v1751_v22, 16  ;;  %v1964_v7 = vshll.u32 %v1751_v22, 16  ;;  %v1268_v22 = vld [vmem:[%s12515_s13 + $0x78] sm:$0xe] }
  0xb0   : > { %v1956_v28 = vrot.slane %v16899_v5, 6  ;;  %v1945_v29 = vsel %vm12886_vm8, %v1936_v50, %v1944_v48  ;;  %v9925_v52 = vcombine.low %v1368_v57, %v1371_v54  ;;  %v9910_v45 = vrot.slane %v1267_v47, 9  ;;  %v12217_v5 = vld [vmem:[%s12515_s13 + $0x80] sm:$0x1] }
  0xb1   : > { %v9948_v27 = vcombine.low %v1935_v24, %v1945_v29  ;;  %v1953_v36 = vor.u32 %v1952_v6, %v1949_v33  ;;  %v1963_v42 = vrot.slane %v1961_v13, 5  ;;  %v1966_v0 = vrot.slane %v1964_v7, 6  ;;  %v12216_v33 = vld [vmem:[%s12515_s13 + $0x7c] sm:$0xf]  ;;  %v1753_v24 = vld [vmem:[%s12515_s13 + $0x80] sm:$0x3] }
  0xb2   : > { %v1957_v44 = vor.u32 %v1956_v28, %v1955_v61  ;;  %11316 = vmatprep.mubr.bf16.mxu0 %v9925_v52  ;;  %v1374_v4 = vrot.slane %v12214_v55, 5  ;;  %v1377_v18 = vrot.slane %v12215_v49, 5  ;;  %v1970_v8 = vshrl.u32 %v1267_v47, 16 }
  0xb3   : > { %11361 = vmatmul.mubr.bf16.gmra.mxu1 %v9948_v27  ;;  %v1954_v21 = vrot.slane %v1953_v36, 4  ;;  %v1973_v53 = vshll.u32 %v1267_v47, 16  ;;  %v16900_v20 = vshrl.u32 %v12713_v15, 16  ;;  %v1967_v14 = vor.u32 %v1966_v0, %v1963_v42  ;;  %v1269_v47 = vld [vmem:[%s12515_s13 + $0x84] sm:$0xe] }
  0xb4   : > { %v1959_v19 = vrot.slane %v1957_v44, 4  ;;  %v1375_v35 = vsel %vm12864_vm7, %v9910_v45, %v1374_v4  ;;  %v1376_v25 = vrot.slane %v1374_v4, 4  ;;  %v16901_v11 = vshll.u32 %v12713_v15, 16 }
  0xb5   : > { %v1978_v56 = vrot.slane %v16900_v20, 5  ;;  %v1958_v43 = vsel %vm12886_vm8, %v1954_v21, %v1957_v44  ;;  %v1972_v34 = vrot.slane %v1970_v8, 5  ;;  %v1975_v41 = vrot.slane %v1973_v53, 6 }
  0xb6   : > { %v1979_v63 = vrot.slane %v16901_v11, 6  ;;  %v1984_v12 = vshrl.u32 %v1752_v58, 16  ;;  %v1968_v50 = vsel %vm12886_vm8, %v1959_v19, %v1967_v14  ;;  %v1378_v32 = vsel %vm12864_vm7, %v1376_v25, %v1377_v18  ;;  %v12218_v14 = vld [vmem:[%s12515_s13 + $0x88] sm:$0xf]  ;;  %v12219_v11 = vld [vmem:[%s12515_s13 + $0x8c] sm:$0x1] }
  0xb7   : > { %v1987_v30 = vshll.u32 %v1752_v58, 16  ;;  %v9949_v15 = vcombine.low %v1958_v43, %v1968_v50  ;;  %v9926_v17 = vcombine.low %v1375_v35, %v1378_v32  ;;  %v1976_v40 = vor.u32 %v1975_v41, %v1972_v34  ;;  %v1754_v43 = vld [vmem:[%s12515_s13 + $0x8c] sm:$0x3] }
  0xb8   : > { %v1980_v3 = vor.u32 %v1979_v63, %v1978_v56  ;;  %v1986_v57 = vrot.slane %v1984_v12, 5  ;;  %v9911_v48 = vrot.slane %v1268_v22, 9  ;;  %v1381_v37 = vrot.slane %v12216_v33, 5  ;;  %v1270_v33 = vld [vmem:[%s12515_s13 + $0x90] sm:$0xe] }
  0xb9   : > { %v1989_v60 = vrot.slane %v1987_v30, 6  ;;  %11364 = vmatprep.mubr.bf16.mxu1 %v9949_v15  ;;  %11317 = vmatmul.mubr.bf16.gmra.mxu0 %v9926_v17  ;;  %v1977_v61 = vrot.slane %v1976_v40, 4  ;;  %v1384_v28 = vrot.slane %v12217_v5, 5  ;;  %v1993_v54 = vshrl.u32 %v1268_v22, 16 }
  0xba   : > { %v1982_v51 = vrot.slane %v1980_v3, 4  ;;  %v1996_v6 = vshll.u32 %v1268_v22, 16  ;;  %v1382_v29 = vsel %vm12864_vm7, %v9911_v48, %v1381_v37  ;;  %v1383_v52 = vrot.slane %v1381_v37, 4 }
  0xbb   : > { %v1990_v13 = vor.u32 %v1989_v60, %v1986_v57  ;;  %v16902_v44 = vshrl.u32 %v12737_v26, 16  ;;  %v1981_v58 = vsel %vm12886_vm8, %v1977_v61, %v1980_v3  ;;  %v1995_v27 = vrot.slane %v1993_v54, 5 }
  0xbc   : > { %v1998_v36 = vrot.slane %v1996_v6, 6  ;;  %v16903_v42 = vshll.u32 %v12737_v26, 16  ;;  %v1385_v0 = vsel %vm12864_vm7, %v1383_v52, %v1384_v28  ;;  %v2007_v55 = vshrl.u32 %v1753_v24, 16 }
  0xbd   : > { %v2001_v7 = vrot.slane %v16902_v44, 5  ;;  %v1991_v19 = vsel %vm12886_vm8, %v1982_v51, %v1990_v13  ;;  %v2010_v4 = vshll.u32 %v1753_v24, 16  ;;  %v9927_v18 = vcombine.low %v1382_v29, %v1385_v0  ;;  %v1755_v24 = vld [vmem:[%s12515_s13 + $0x98] sm:$0x3] }
  0xbe   : > { %v2002_v45 = vrot.slane %v16903_v42, 6  ;;  %v9950_v49 = vcombine.low %v1981_v58, %v1991_v19  ;;  %v1999_v21 = vor.u32 %v1998_v36, %v1995_v27  ;;  %v2009_v53 = vrot.slane %v2007_v55, 5 }
  0xbf   : > { %v2012_v20 = vrot.slane %v2010_v4, 6  ;;  %v9912_v56 = vrot.slane %v1269_v47, 9  ;;  %v1388_v26 = vrot.slane %v12218_v14, 5  ;;  %11320 = vmatprep.mubr.bf16.mxu0 %v9927_v18  ;;  %v1391_v63 = vrot.slane %v12219_v11, 5 }
  0xc0   : > { %v2003_v8 = vor.u32 %v2002_v45, %v2001_v7  ;;  %11365 = vmatmul.mubr.bf16.gmra.mxu1 %v9950_v49  ;;  %v2000_v35 = vrot.slane %v1999_v21, 4  ;;  %v2016_v34 = vshrl.u32 %v1269_v47, 16  ;;  %v2019_v32 = vshll.u32 %v1269_v47, 16  ;;  %v12221_v7 = vld [vmem:[%s12515_s13 + $0x98] sm:$0x1] }
  0xc1   : > { %v2013_v41 = vor.u32 %v2012_v20, %v2009_v53  ;;  %v1389_v12 = vsel %vm12864_vm7, %v9912_v56, %v1388_v26  ;;  %v1390_v50 = vrot.slane %v1388_v26, 4  ;;  %v16904_v22 = vshrl.u32 %v12759_v9, 16 }
  0xc2   : > { %v2005_v25 = vrot.slane %v2003_v8, 4  ;;  %v2004_v3 = vsel %vm12886_vm8, %v2000_v35, %v2003_v8  ;;  %v2018_v30 = vrot.slane %v2016_v34, 5  ;;  %v16905_v17 = vshll.u32 %v12759_v9, 16  ;;  %v12220_v9 = vld [vmem:[%s12515_s13 + $0x94] sm:$0xf] }
  0xc3   : > { %v2024_v15 = vrot.slane %v16904_v22, 5  ;;  %v1392_v51 = vsel %vm12864_vm7, %v1390_v50, %v1391_v63  ;;  %v2021_v60 = vrot.slane %v2019_v32, 6  ;;  %v2030_v48 = vshrl.u32 %v1754_v43, 16  ;;  %v12223_v32 = vld [vmem:[%s12515_s13 + $0xa4] sm:$0x1] }
  0xc4   : > { %v2025_v40 = vrot.slane %v16905_v17, 6  ;;  %v2014_v57 = vsel %vm12886_vm8, %v2005_v25, %v2013_v41  ;;  %v9928_v61 = vcombine.low %v1389_v12, %v1392_v51  ;;  %v2033_v28 = vshll.u32 %v1754_v43, 16  ;;  %v1271_v25 = vld [vmem:[%s12515_s13 + $0x9c] sm:$0xe]  ;;  %v12222_v12 = vld [vmem:[%s12515_s13 + $0xa0] sm:$0xf] }
  0xc5   : > { %v9951_v37 = vcombine.low %v2004_v3, %v2014_v57  ;;  %v2022_v54 = vor.u32 %v2021_v60, %v2018_v30  ;;  %v2032_v6 = vrot.slane %v2030_v48, 5  ;;  %v9913_v13 = vrot.slane %v1270_v33, 9  ;;  %v1756_v30 = vld [vmem:[%s12515_s13 + $0xa4] sm:$0x3] }
  0xc6   : > { %v2026_v5 = vor.u32 %v2025_v40, %v2024_v15  ;;  %v1395_v29 = vrot.slane %v12220_v9, 5  ;;  %11321 = vmatmul.mubr.bf16.gmra.mxu0 %v9928_v61  ;;  %v2035_v44 = vrot.slane %v2033_v28, 6  ;;  %v1398_v47 = vrot.slane %v12221_v7, 5  ;;  %v1272_v61 = vld [vmem:[%s12515_s13 + $0xa8] sm:$0xe] }
  0xc7   : > { %11368 = vmatprep.mubr.bf16.mxu1 %v9951_v37  ;;  %v2039_v58 = vshrl.u32 %v1270_v33, 16  ;;  %v2023_v27 = vrot.slane %v2022_v54, 4  ;;  %v2042_v45 = vshll.u32 %v1270_v33, 16  ;;  %v16906_v55 = vshrl.u32 %v12785_v23, 16 }
  0xc8   : > { %v2028_v52 = vrot.slane %v2026_v5, 4  ;;  %v1396_v36 = vsel %vm12864_vm7, %v9913_v13, %v1395_v29  ;;  %v1397_v42 = vrot.slane %v1395_v29, 4  ;;  %v2036_v19 = vor.u32 %v2035_v44, %v2032_v6 }
  0xc9   : > { %v2041_v0 = vrot.slane %v2039_v58, 5  ;;  %v2047_v4 = vrot.slane %v16906_v55, 5  ;;  %v16907_v49 = vshll.u32 %v12785_v23, 16  ;;  %v2027_v21 = vsel %vm12886_vm8, %v2023_v27, %v2026_v5  ;;  %v1757_v55 = vld [vmem:[%s12515_s13 + $0xb0] sm:$0x3] }
  0xca   : > { %v1399_v8 = vsel %vm12864_vm7, %v1397_v42, %v1398_v47  ;;  %v2044_v53 = vrot.slane %v2042_v45, 6  ;;  %v2053_v20 = vshrl.u32 %v1755_v24, 16  ;;  %v2037_v56 = vsel %vm12886_vm8, %v2028_v52, %v2036_v19  ;;  %v12225_v19 = vld [vmem:[%s12515_s13 + $0xb0] sm:$0x1] }
  0xcb   : > { %v2048_v18 = vrot.slane %v16907_v49, 6  ;;  %v9929_v14 = vcombine.low %v1396_v36, %v1399_v8  ;;  %v2056_v35 = vshll.u32 %v1755_v24, 16  ;;  %v9952_v23 = vcombine.low %v2027_v21, %v2037_v56  ;;  %v12224_v36 = vld [vmem:[%s12515_s13 + $0xac] sm:$0xf] }
  0xcc   : > { %v2045_v11 = vor.u32 %v2044_v53, %v2041_v0  ;;  %v2055_v63 = vrot.slane %v2053_v20, 5  ;;  %v9914_v43 = vrot.slane %v1271_v25, 9  ;;  %v1402_v50 = vrot.slane %v12222_v12, 5 }
  0xcd   : > { %v2049_v26 = vor.u32 %v2048_v18, %v2047_v4  ;;  %11324 = vmatprep.mubr.bf16.mxu0 %v9929_v14  ;;  %v2058_v41 = vrot.slane %v2056_v35, 6  ;;  %v1405_v3 = vrot.slane %v12223_v32, 5  ;;  %11369 = vmatmul.mubr.bf16.gmra.mxu1 %v9952_v23  ;;  %v2062_v15 = vshrl.u32 %v1271_v25, 16 }
  0xce   : > { %v2046_v22 = vrot.slane %v2045_v11, 4  ;;  %v2065_v17 = vshll.u32 %v1271_v25, 16  ;;  %v16908_v40 = vshrl.u32 %v12804_v59, 16  ;;  %v1403_v60 = vsel %vm12864_vm7, %v9914_v43, %v1402_v50  ;;  %v1273_v43 = vld [vmem:[%s12515_s13 + $0xb4] sm:$0xe] }
  0xcf   : > { %v2051_v34 = vrot.slane %v2049_v26, 4  ;;  %v2059_v51 = vor.u32 %v2058_v41, %v2055_v63  ;;  %v1404_v48 = vrot.slane %v1402_v50, 4  ;;  %v16909_v33 = vshll.u32 %v12804_v59, 16  ;;  %v1758_v50 = vld [vmem:[%s12515_s13 + $0xbc] sm:$0x3] }
  0xd0   : > { %v2070_v57 = vrot.slane %v16908_v40, 5  ;;  %v2050_v5 = vsel %vm12886_vm8, %v2046_v22, %v2049_v26  ;;  %v2064_v28 = vrot.slane %v2062_v15, 5  ;;  %v2067_v24 = vrot.slane %v2065_v17, 6  ;;  %v12227_v40 = vld [vmem:[%s12515_s13 + $0xbc] sm:$0x1] }
  0xd1   : > { %v2071_v37 = vrot.slane %v16909_v33, 6  ;;  %v2076_v54 = vshrl.u32 %v1756_v30, 16  ;;  %v2060_v6 = vsel %vm12886_vm8, %v2051_v34, %v2059_v51  ;;  %v1406_v13 = vsel %vm12864_vm7, %v1404_v48, %v1405_v3 }
  0xd2   : > { %v2079_v29 = vshll.u32 %v1756_v30, 16  ;;  %v9953_v59 = vcombine.low %v2050_v5, %v2060_v6  ;;  %v9930_v52 = vcombine.low %v1403_v60, %v1406_v13  ;;  %v2068_v44 = vor.u32 %v2067_v24, %v2064_v28  ;;  %v12075_v6 = vld [vmem:[%s12515_s13 + $0xc] sm:$0xff]  }
  0xd3   : > { %v2072_v9 = vor.u32 %v2071_v37, %v2070_v57  ;;  %v2078_v7 = vrot.slane %v2076_v54, 5  ;;  %v9915_v27 = vrot.slane %v1272_v61, 9  ;;  %v1409_v42 = vrot.slane %v12224_v36, 5  ;;  %v10021_v13 = vld [vmem:[%s12515_s13 + $0xc] sm:$0xf] }
  0xd4   : > { %v2081_v58 = vrot.slane %v2079_v29, 6  ;;  %11372 = vmatprep.mubr.bf16.mxu1 %v9953_v59  ;;  %11325 = vmatmul.mubr.bf16.gmra.mxu0 %v9930_v52  ;;  %v2069_v45 = vrot.slane %v2068_v44, 4  ;;  %v1412_v0 = vrot.slane %v12225_v19, 5  ;;  %v2085_v4 = vshrl.u32 %v1272_v61, 16  ;;  %v13138_v44 = vld [vmem:[%s12515_s13 + $0x10] sm:$0xf] }
  0xd5   : > { %v2074_v47 = vrot.slane %v2072_v9, 4  ;;  %v2088_v49 = vshll.u32 %v1272_v61, 16  ;;  %v1410_v21 = vsel %vm12864_vm7, %v9915_v27, %v1409_v42  ;;  %v1411_v8 = vrot.slane %v1409_v42, 4  ;;  %v10024_v19 = vld [vmem:[%s12515_s13 + $0x18] sm:$0xf] }
  0xd6   : > { %v2082_v18 = vor.u32 %v2081_v58, %v2078_v7  ;;  %v2093_v53 = vrot.slane %v629_v16, 5  ;;  %v2073_v20 = vsel %vm12886_vm8, %v2069_v45, %v2072_v9  ;;  %v2087_v56 = vrot.slane %v2085_v4, 5 }
  0xd7   : > { %v2090_v14 = vrot.slane %v2088_v49, 6  ;;  %v16910_v26 = vshll.u32 %v12818_v10, 16  ;;  %v1413_v23 = vsel %vm12864_vm7, %v1411_v8, %v1412_v0  ;;  %v2099_v11 = vshrl.u32 %v1757_v55, 16  ;;  %v12226_v10 = vld [vmem:[%s12515_s13 + $0xb8] sm:$0xf] }
  0xd8   : > { %v2083_v25 = vsel %vm12886_vm8, %v2074_v47, %v2082_v18  ;;  %v2102_v63 = vshll.u32 %v1757_v55, 16  ;;  %v9931_v34 = vcombine.low %v1410_v21, %v1413_v23  ;;  %v9916_v30 = vrot.slane %v1273_v43, 9  ;;  %v13147_v18 = vld [vmem:[%s12515_s13 + $0x1c] sm:$0xf] }
  0xd9   : > { %v2094_v35 = vrot.slane %v16910_v26, 6  ;;  %v9954_v16 = vcombine.low %v2073_v20, %v2083_v25  ;;  %v2091_v41 = vor.u32 %v2090_v14, %v2087_v56  ;;  %v2101_v32 = vrot.slane %v2099_v11, 5  ;;  %v10026_v56 = vld [vmem:[%s12515_s13 + $0x20] sm:$0x1]  ;;  %v10027_v14 = vld [vmem:[%s12515_s13 + $0x24] sm:$0xf] }
  0xda   : > { %v2104_v3 = vrot.slane %v2102_v63, 6  ;;  %v1416_v22 = vrot.slane %v12226_v10, 5  ;;  %11328 = vmatprep.mubr.bf16.mxu0 %v9931_v34  ;;  %v1419_v57 = vrot.slane %v12227_v40, 5  ;;  %v2108_v51 = vshrl.u32 %v1273_v43, 16  ;;  %v10029_v40 = vld [vmem:[%s12515_s13 + $0x2c] sm:$0x1] }
  0xdb   : > { %v2095_v12 = vor.u32 %v2094_v35, %v2093_v53  ;;  %11373 = vmatmul.mubr.bf16.gmra.mxu1 %v9954_v16  ;;  %v2092_v15 = vrot.slane %v2091_v41, 4  ;;  %v2111_v37 = vshll.u32 %v1273_v43, 16  ;;  %v2116_v28 = vrot.slane %v653_v1, 5 }
  0xdc   : > { %v2105_v60 = vor.u32 %v2104_v3, %v2101_v32  ;;  %v1417_v48 = vsel %vm12864_vm7, %v9916_v30, %v1416_v22  ;;  %v1418_v33 = vrot.slane %v1416_v22, 4  ;;  %v2110_v5 = vrot.slane %v2108_v51, 5  ;;  %v12079_v3 = vld [vmem:[%s12515_s13 + $0x24] sm:$0xff]  }
  0xdd   : > { %v2097_v17 = vrot.slane %v2095_v12, 4  ;;  %v2096_v61 = vsel %vm12886_vm8, %v2092_v15, %v2095_v12  ;;  %v16911_v24 = vshll.u32 %v12837_v46, 16  ;;  %v2113_v59 = vrot.slane %v2111_v37, 6  ;;  %v13141_v46 = vld [vmem:[%s12515_s13 + $0x14] sm:$0x1]  ;;  %v12076_v12 = vld [vmem:[%s12515_s13 + $0x18] sm:$0xff]  }
  0xde   : > { %v1420_v29 = vsel %vm12864_vm7, %v1418_v33, %v1419_v57  ;;  %v2122_v52 = vshrl.u32 %v1758_v50, 16  ;;  %v2125_v58 = vshll.u32 %v1758_v50, 16  ;;  %v2888_v42 = vshrl.u32 %v10021_v13, 16  ;;  %v13164_v30 = vld [vmem:[%s12515_s13 + $0x28] sm:$0xf]  ;;  %v12081_v57 = vld [vmem:[#allocation2 + $0x1b0] sm:$0xff]  }
  0xdf   : > { %v2117_v54 = vrot.slane %v16911_v24, 6  ;;  %v2106_v9 = vsel %vm12886_vm8, %v2097_v17, %v2105_v60  ;;  %v9932_v47 = vcombine.low %v1417_v48, %v1420_v29  ;;  %v2114_v27 = vor.u32 %v2113_v59, %v2110_v5  ;;  %v10030_v37 = vld [vmem:[%s12515_s13 + $0x30] sm:$0xf]  ;;  %v13178_v29 = vld [vmem:[#allocation2 + $0x1a8] sm:$0xff]  }
  0xe0   : > { %v9955_v7 = vcombine.low %v2096_v61, %v2106_v9  ;;  %v2124_v36 = vrot.slane %v2122_v52, 5  ;;  %v2891_v45 = vshll.u32 %v10021_v13, 16  ;;  %v2127_v55 = vrot.slane %v2125_v58, 6 }
  0xe1   : > { %v2118_v1 = vor.u32 %v2117_v54, %v2116_v28  ;;  %11329 = vmatmul.mubr.bf16.gmra.mxu0 %v9932_v47  ;;  %v16773_v4 = vshll.u32 %v13138_v44, 16  ;;  %v16774_v49 = vshrl.u32 %v13138_v44, 16  ;;  %v2115_v21 = vrot.slane %v2114_v27, 4 }
  0xe2   : > { %11376 = vmatprep.mubr.bf16.mxu1 %v9955_v7  ;;  %11396 = vmatprep.mubr.bf16.mxu0 %v12075_v6  ;;  %v2890_v8 = vrot.slane %v2888_v42, 4  ;;  %v2893_v53 = vrot.slane %v2891_v45, 5  ;;  %v2907_v20 = vshll.u32 %v13141_v46, 16  ;;  %v2128_v26 = vor.u32 %v2127_v55, %v2124_v36  ;;  %v12080_v42 = vld [vmem:[%s12515_s13 + $0x30] sm:$0xff]   ;;  %v10032_v45 = vld [vmem:[%s12515_s13 + $0x38] sm:$0x1] }
  0xe3   : > { %v2120_v0 = vrot.slane %v2118_v1, 4  ;;  %v2899_v35 = vrot.slane %v16773_v4, 5  ;;  %v2903_v25 = vrot.slane %v16774_v49, 4  ;;  %v2912_v23 = vshrl.u32 %v10024_v19, 16 }
  0xe4   : > { %v2119_v11 = vsel %vm12886_vm8, %v2115_v21, %v2118_v1  ;;  %v2894_v63 = vor.u32 %v2893_v53, %v2890_v8  ;;  %v2909_v43 = vrot.slane %v2907_v20, 5  ;;  %v2915_v16 = vshll.u32 %v10024_v19, 16  ;;  %v13182_v1 = vld [vmem:[%s12515_s13 + $0x34] sm:$0xf]  ;;  %v10033_v8 = vld [vmem:[%s12515_s13 + $0x3c] sm:$0xf] }
  0xe5   : > { %v2129_v34 = vsel %vm12886_vm8, %v2120_v0, %v2128_v26  ;;  %v2904_v41 = vor.u32 %v2903_v25, %v2899_v35  ;;  %v2914_v50 = vrot.slane %v2912_v23, 4  ;;  %v16769_v32 = vshll.u32 %v13147_v18, 16  ;;  %v13193_v53 = vld [vmem:[%s12515_s13 + $0x40] sm:$0xf] }
  0xe6   : > { %v9956_v10 = vcombine.low %v2119_v11, %v2129_v34  ;;  %v2895_v22 = vrot.slane %v2894_v63, 4  ;;  %v2917_v15 = vrot.slane %v2915_v16, 5  ;;  %v16772_v17 = vshrl.u32 %v13147_v18, 16 }
  0xe7   : > { %v2905_v51 = vrot.slane %v2904_v41, 4  ;;  %v2923_v60 = vrot.slane %v16769_v32, 5  ;;  %v2931_v48 = vshll.u32 %v10026_v56, 16  ;;  %v2936_v33 = vshrl.u32 %v10027_v14, 16 }
  0xe8   : > { %11377 = vmatmul.mubr.bf16.gmra.mxu1 %v9956_v10  ;;  %v2900_v61 = vsel %vm12548_vm2, %v2895_v22, %v2899_v35  ;;  %v2918_v5 = vor.u32 %v2917_v15, %v2914_v50  ;;  %v2927_v28 = vrot.slane %v16772_v17, 4  ;;  %v2939_v24 = vshll.u32 %v10027_v14, 16  ;;  %v12082_v35 = vld [vmem:[#allocation2 + $0x1f0] sm:$0xff]   ;;  %v10035_v22 = vld [vmem:[%s12515_s13 + $0x44] sm:$0x1] }
  0xe9   : > { %v2910_v54 = vsel %vm12548_vm2, %v2905_v51, %v2909_v43  ;;  %11397 = vmatmul.mubr.bf16.vlgmr.msra.gmra.mxu0 %v12076_v12  ;;  %v2933_v6 = vrot.slane %v2931_v48, 5  ;;  %v2938_v13 = vrot.slane %v2936_v33, 4  ;;  %v16767_v9 = vshll.u32 %v13164_v30, 16  ;;  %v12083_v43 = vld [vmem:[%s12515_s13 + $0x3c] sm:$0xff]   ;;  %v10036_v33 = vld [vmem:[%s12515_s13 + $0x48] sm:$0xf] }
  0xea   : > { %v10069_v59 = vcombine.low %v2900_v61, %v2910_v54  ;;  %v2919_v52 = vrot.slane %v2918_v5, 4  ;;  %v2928_v7 = vor.u32 %v2927_v28, %v2923_v60  ;;  %11477 = vmatpush3.bf16.msra.mxu0 %v12987_v62  ;;  %11400 = vmatprep.mubr.bf16.mxu0 %v12079_v3  ;;  %v2941_v47 = vrot.slane %v2939_v24, 5  ;;  %v13215_v24 = vld [vmem:[%s12515_s13 + $0x4c] sm:$0xf] }
  0xeb   : > { %v2947_v58 = vrot.slane %v16767_v9, 5  ;;  %v16768_v27 = vshrl.u32 %v13164_v30, 16  ;;  %v2955_v36 = vshll.u32 %v10029_v40, 16  ;;  %v2960_v19 = vshrl.u32 %v10030_v37, 16  ;;  %11478 = vmatprep.subr.bf16.mxu0 %v12081_v57  ;;  %v12089_v40 = vld [vmem:[#allocation2 + $0x1a0] sm:$0xff]   ;;  %v12086_v54 = vld [vmem:[#allocation2 + $0x1e8] sm:$0xff]  }
  0xec   : > { %11444 = vmatprep.mubr.bf16.mxu1 %v10069_v59  ;;  %v2924_v62 = vsel %vm12548_vm2, %v2919_v52, %v2923_v60  ;;  %v2929_v0 = vrot.slane %v2928_v7, 4  ;;  %v2942_v55 = vor.u32 %v2941_v47, %v2938_v13  ;;  %v2963_v21 = vshll.u32 %v10030_v37, 16  ;;  %v10038_v7 = vld [vmem:[%s12515_s13 + $0x50] sm:$0x1]  ;;  %v12093_v47 = vld [vmem:[#allocation2 + $0x198] sm:$0xff]  }
  0xed   : > { %v2951_v20 = vrot.slane %v16768_v27, 4  ;;  %v2957_v56 = vrot.slane %v2955_v36, 5  ;;  %v2962_v14 = vrot.slane %v2960_v19, 4  ;;  %v16765_v26 = vshll.u32 %v13182_v1, 16  ;;  %v12087_v19 = vld [vmem:[%s12515_s13 + $0x54] sm:$0xff]  }
  0xee   : > { %v2934_v25 = vsel %vm12548_vm2, %v2929_v0, %v2933_v6  ;;  %v2943_v23 = vrot.slane %v2942_v55, 4  ;;  %v2965_v11 = vrot.slane %v2963_v21, 5  ;;  %v16766_v63 = vshrl.u32 %v13182_v1, 16  ;;  %11479 = vmatpush3.bf16.msra.mxu0 %v12081_v57  ;;  %v10063_v27 = vld [vmem:[%s12515_s13 + $0xb4] sm:$0xf] }
  0xef   : > { %v10070_v16 = vcombine.low %v2924_v62, %v2934_v25  ;;  %v2952_v34 = vor.u32 %v2951_v20, %v2947_v58  ;;  %v2971_v41 = vrot.slane %v16765_v26, 5  ;;  %v2979_v12 = vshll.u32 %v10032_v45, 16  ;;  %11480 = vmatprep.subr.bf16.mxu0 %v13178_v29  ;;  %v10039_v25 = vld [vmem:[%s12515_s13 + $0x54] sm:$0xf] }
  0xf0   : > { %v2948_v50 = vsel %vm12548_vm2, %v2943_v23, %v2947_v58  ;;  %v2966_v3 = vor.u32 %v2965_v11, %v2962_v14  ;;  %v2975_v10 = vrot.slane %v16766_v63, 4  ;;  %v2984_v15 = vshrl.u32 %v10033_v8, 16  ;;  %v13235_v23 = vld [vmem:[%s12515_s13 + $0x58] sm:$0xf] }
  0xf1   : > { %11445 = vmatmul.mubr.bf16.vlgmr.msra.gmra.mxu1 %v10070_v16  ;;  %v2953_v57 = vrot.slane %v2952_v34, 4  ;;  %11401 = vmatmul.mubr.bf16.gmra.mxu0 %v12080_v42  ;;  %v2981_v51 = vrot.slane %v2979_v12, 5  ;;  %v2987_v60 = vshll.u32 %v10033_v8, 16  ;;  %v16763_v48 = vshll.u32 %v13193_v53, 16  ;;  %v12090_v8 = vld [vmem:[#allocation2 + $0x1e0] sm:$0xff]   ;;  %v12097_v12 = vld [vmem:[#allocation2 + $0x190] sm:$0xff]  }
  0xf2   : > { %11525 = vmatpush3.bf16.msra.mxu1 %v13000_v2  ;;  %v2967_v37 = vrot.slane %v2966_v3, 4  ;;  %v2976_v61 = vor.u32 %v2975_v10, %v2971_v41  ;;  %11404 = vmatprep.mubr.bf16.mxu0 %v12083_v43  ;;  %v2986_v5 = vrot.slane %v2984_v15, 4  ;;  %v16764_v28 = vshrl.u32 %v13193_v53, 16  ;;  %v12084_v2 = vld [vmem:[%s12515_s13 + $0x48] sm:$0xff]   ;;  %v12103_v26 = vld [vmem:[%s12515_s13 + $0xb4] sm:$0xff]  }
  0xf3   : > { %v2958_v6 = vsel %vm12548_vm2, %v2953_v57, %v2957_v56  ;;  %11526 = vmatprep.subr.bf16.mxu1 %v12082_v35  ;;  %v2989_v13 = vrot.slane %v2987_v60, 5  ;;  %v2995_v59 = vrot.slane %v16763_v48, 5  ;;  %v3003_v52 = vshll.u32 %v10035_v22, 16  ;;  %11481 = vmatpush3.bf16.msra.mxu0 %v13178_v29  ;;  %v10042_v22 = vld [vmem:[%s12515_s13 + $0x60] sm:$0xf]  ;;  %v12094_v60 = vld [vmem:[#allocation2 + $0x1d8] sm:$0xff]  }
  0xf4   : > { %v10071_v58 = vcombine.low %v2948_v50, %v2958_v6  ;;  %v2972_v36 = vsel %vm12548_vm2, %v2967_v37, %v2971_v41  ;;  %v2977_v42 = vrot.slane %v2976_v61, 4  ;;  %v2999_v45 = vrot.slane %v16764_v28, 4  ;;  %11482 = vmatprep.subr.bf16.mxu0 %v12089_v40  ;;  %v10041_v41 = vld [vmem:[%s12515_s13 + $0x5c] sm:$0x1]  ;;  %v13386_v28 = vld [vmem:[%s12515_s13 + $0xac] sm:$0xf] }
  0xf5   : > { %v2990_v62 = vor.u32 %v2989_v13, %v2986_v5  ;;  %v3005_v0 = vrot.slane %v3003_v52, 5  ;;  %v3008_v55 = vshrl.u32 %v10036_v33, 16  ;;  %v3011_v21 = vshll.u32 %v10036_v33, 16  ;;  %16918 = vst [vmem:[#allocation17_spill] sm:$0xff] %v13386_v28 }
  0xf6   : > { %11448 = vmatprep.mubr.bf16.mxu1 %v10071_v58  ;;  %v2982_v29 = vsel %vm12548_vm2, %v2977_v42, %v2981_v51  ;;  %11527 = vmatpush3.bf16.msra.mxu1 %v12082_v35  ;;  %v3000_v20 = vor.u32 %v2999_v45, %v2995_v59  ;;  %v16759_v56 = vshll.u32 %v13215_v24, 16  ;;  %v16760_v14 = vshrl.u32 %v13215_v24, 16  ;;  %v12101_v58 = vld [vmem:[#allocation2 + $0x188] sm:$0xff]  }
  0xf7   : > { %v10072_v11 = vcombine.low %v2972_v36, %v2982_v29  ;;  %v2991_v43 = vrot.slane %v2990_v62, 4  ;;  %v3010_v16 = vrot.slane %v3008_v55, 4  ;;  %v3013_v34 = vrot.slane %v3011_v21, 5  ;;  %11528 = vmatprep.subr.bf16.mxu1 %v12086_v54  ;;  %11483 = vmatpush3.bf16.msra.mxu0 %v12089_v40  ;;  %v10045_v29 = vld [vmem:[%s12515_s13 + $0x6c] sm:$0xf] }
  0xf8   : > { %v3001_v50 = vrot.slane %v3000_v20, 4  ;;  %v3019_v35 = vrot.slane %v16759_v56, 5  ;;  %v3023_v3 = vrot.slane %v16760_v14, 4  ;;  %v3027_v10 = vshll.u32 %v10038_v7, 16  ;;  %11484 = vmatprep.subr.bf16.mxu0 %v12093_v47  ;;  %v13250_v7 = vld [vmem:[%s12515_s13 + $0x64] sm:$0xf] }
  0xf9   : > { %11449 = vmatmul.mubr.bf16.gmra.mxu1 %v10072_v11  ;;  %v2996_v15 = vsel %vm12548_vm2, %v2991_v43, %v2995_v59  ;;  %11405 = vmatmul.mubr.bf16.gmra.mxu0 %v12084_v2  ;;  %v3014_v57 = vor.u32 %v3013_v34, %v3010_v16  ;;  %v3032_v40 = vshrl.u32 %v10039_v25, 16  ;;  %v3035_v51 = vshll.u32 %v10039_v25, 16  ;;  %v12088_v2 = vld [vmem:[%s12515_s13 + $0x60] sm:$0xff]   ;;  %v12091_v16 = vld [vmem:[%s12515_s13 + $0x6c] sm:$0xff]  }
  0xfa   : > { %v3006_v33 = vsel %vm12548_vm2, %v3001_v50, %v3005_v0  ;;  %v3024_v37 = vor.u32 %v3023_v3, %v3019_v35  ;;  %v3029_v61 = vrot.slane %v3027_v10, 5  ;;  %11529 = vmatpush3.bf16.msra.mxu1 %v12086_v54  ;;  %11408 = vmatprep.mubr.bf16.mxu0 %v12087_v19  ;;  %v16754_v5 = vshll.u32 %v13235_v23, 16  ;;  %v10044_v19 = vld [vmem:[%s12515_s13 + $0x68] sm:$0x1]  ;;  %v12098_v3 = vld [vmem:[#allocation2 + $0x1d0] sm:$0xff]  }
  0xfb   : > { %v10073_v6 = vcombine.low %v2996_v15, %v3006_v33  ;;  %v3015_v13 = vrot.slane %v3014_v57, 4  ;;  %v3034_v59 = vrot.slane %v3032_v40, 4  ;;  %v3037_v52 = vrot.slane %v3035_v51, 5  ;;  %11530 = vmatprep.subr.bf16.mxu1 %v12090_v8  ;;  %11485 = vmatpush3.bf16.msra.mxu0 %v12093_v47  ;;  %v13260_v47 = vld [vmem:[%s12515_s13 + $0x70] sm:$0xf]  ;;  %v12105_v40 = vld [vmem:[#allocation2 + $0x180] sm:$0xff]  }
  0xfc   : > { %v3025_v36 = vrot.slane %v3024_v37, 4  ;;  %v3043_v54 = vrot.slane %v16754_v5, 5  ;;  %v16757_v42 = vshrl.u32 %v13235_v23, 16  ;;  %v3051_v45 = vshll.u32 %v10041_v41, 16  ;;  %11486 = vmatprep.subr.bf16.mxu0 %v12097_v12  ;;  %v10047_v33 = vld [vmem:[%s12515_s13 + $0x74] sm:$0x1] }
  0xfd   : > { %11452 = vmatprep.mubr.bf16.mxu1 %v10073_v6  ;;  %v3020_v62 = vsel %vm12548_vm2, %v3015_v13, %v3019_v35  ;;  %v3038_v0 = vor.u32 %v3037_v52, %v3034_v59  ;;  %v3056_v55 = vshrl.u32 %v10042_v22, 16  ;;  %v3059_v21 = vshll.u32 %v10042_v22, 16  ;;  %v10057_v5 = vld [vmem:[%s12515_s13 + $0x9c] sm:$0xf]  ;;  %v10059_v56 = vld [vmem:[%s12515_s13 + $0xa4] sm:$0x1] }
  0xfe   : > { %v3030_v20 = vsel %vm12548_vm2, %v3025_v36, %v3029_v61  ;;  %v3047_v25 = vrot.slane %v16757_v42, 4  ;;  %v3053_v11 = vrot.slane %v3051_v45, 5  ;;  %v16752_v43 = vshll.u32 %v13250_v7, 16  ;;  %11531 = vmatpush3.bf16.msra.mxu1 %v12090_v8  ;;  %v12102_v61 = vld [vmem:[#allocation2 + $0x1c8] sm:$0xff]   ;;  %v10048_v36 = vld [vmem:[%s12515_s13 + $0x78] sm:$0xf] }
  0xff   : > { %v10074_v34 = vcombine.low %v3020_v62, %v3030_v20  ;;  %v3039_v41 = vrot.slane %v3038_v0, 4  ;;  %v3058_v50 = vrot.slane %v3056_v55, 4  ;;  %v3061_v35 = vrot.slane %v3059_v21, 5  ;;  %11532 = vmatprep.subr.bf16.mxu1 %v12094_v60  ;;  %11487 = vmatpush3.bf16.msra.mxu0 %v12097_v12  ;;  %v12092_v62 = vld [vmem:[%s12515_s13 + $0x78] sm:$0xff]  }
 0x100   : > { %v3048_v10 = vor.u32 %v3047_v25, %v3043_v54  ;;  %v3067_v22 = vrot.slane %v16752_v43, 5  ;;  %v16753_v15 = vshrl.u32 %v13250_v7, 16  ;;  %v3075_v57 = vshll.u32 %v10044_v19, 16  ;;  %11488 = vmatprep.subr.bf16.mxu0 %v12101_v58  ;;  %v13281_v0 = vld [vmem:[%s12515_s13 + $0x7c] sm:$0xf] }
 0x101   : > { %11453 = vmatmul.mubr.bf16.gmra.mxu1 %v10074_v34  ;;  %v3044_v8 = vsel %vm12548_vm2, %v3039_v41, %v3043_v54  ;;  %11409 = vmatmul.mubr.bf16.gmra.mxu0 %v12088_v2  ;;  %v3062_v51 = vor.u32 %v3061_v35, %v3058_v50  ;;  %v3080_v12 = vshrl.u32 %v10045_v29, 16  ;;  %v3083_v37 = vshll.u32 %v10045_v29, 16  ;;  %v13288_v25 = vld [vmem:[%s12515_s13 + $0x80] sm:$0x1]  ;;  %v13295_v50 = vld [vmem:[#allocation2 + $0x238] sm:$0xff]  }
 0x102   : > { %v3049_v6 = vrot.slane %v3048_v10, 4  ;;  %v3071_v13 = vrot.slane %v16753_v15, 4  ;;  %v3077_v59 = vrot.slane %v3075_v57, 5  ;;  %11412 = vmatprep.mubr.bf16.mxu0 %v12091_v16  ;;  %v16750_v52 = vshll.u32 %v13260_v47, 16  ;;  %11533 = vmatpush3.bf16.msra.mxu1 %v12094_v60  ;;  %v12095_v60 = vld [vmem:[%s12515_s13 + $0x84] sm:$0xff]  }
 0x103   : > { %v3063_v2 = vrot.slane %v3062_v51, 4  ;;  %v3082_v54 = vrot.slane %v3080_v12, 4  ;;  %v3085_v45 = vrot.slane %v3083_v37, 5  ;;  %v16751_v19 = vshrl.u32 %v13260_v47, 16  ;;  %11534 = vmatprep.subr.bf16.mxu1 %v12098_v3  ;;  %11489 = vmatpush3.bf16.msra.mxu0 %v12101_v58 }
 0x104   : > { %v3054_v55 = vsel %vm12548_vm2, %v3049_v6, %v3053_v11  ;;  %v3072_v21 = vor.u32 %v3071_v13, %v3067_v22  ;;  %v3091_v29 = vrot.slane %v16750_v52, 5  ;;  %v3099_v20 = vshll.u32 %v10047_v33, 16  ;;  %11490 = vmatprep.subr.bf16.mxu0 %v12105_v40 }
 0x105   : > { %v10075_v16 = vcombine.low %v3044_v8, %v3054_v55  ;;  %v3068_v34 = vsel %vm12548_vm2, %v3063_v2, %v3067_v22  ;;  %v3086_v41 = vor.u32 %v3085_v45, %v3082_v54  ;;  %v3095_v58 = vrot.slane %v16751_v19, 4  ;;  %v12106_v22 = vld [vmem:[#allocation2 + $0x1c0] sm:$0xff]   ;;  %v13299_v37 = vpop.f32.mrf.mxu0 }
 0x106   : > { %v3073_v11 = vrot.slane %v3072_v21, 4  ;;  %v3101_v35 = vrot.slane %v3099_v20, 5  ;;  %v3104_v10 = vshrl.u32 %v10048_v36, 16  ;;  %v3107_v57 = vshll.u32 %v10048_v36, 16  ;;  %11535 = vmatpush3.bf16.msra.mxu1 %v12098_v3  ;;  %v10051_v36 = vld [vmem:[%s12515_s13 + $0x84] sm:$0xf]  ;;  %v13305_v54 = vpop.f32.mrf.mxu1 }
 0x107   : > { %11456 = vmatprep.mubr.bf16.mxu1 %v10075_v16  ;;  %v3087_v51 = vrot.slane %v3086_v41, 4  ;;  %v3096_v33 = vor.u32 %v3095_v58, %v3091_v29  ;;  %v16758_v8 = vshll.u32 %v13281_v0, 16  ;;  %v16749_v12 = vshrl.u32 %v13281_v0, 16  ;;  %11536 = vmatprep.subr.bf16.mxu1 %v12102_v61  ;;  %v10053_v16 = vld [vmem:[%s12515_s13 + $0x8c] sm:$0x1]  ;;  %v13316_v41 = vpop.f32.mrf.mxu0 }
 0x108   : > { %v3078_v6 = vsel %vm12548_vm2, %v3073_v11, %v3077_v59  ;;  %v3106_v13 = vrot.slane %v3104_v10, 4  ;;  %v3109_v2 = vrot.slane %v3107_v57, 5  ;;  %v3123_v3 = vshll.u32 %v13288_v25, 16  ;;  %11491 = vmatpush3.bf16.msra.mxu0 %v12105_v40  ;;  %v13312_v59 = vld [vmem:[%s12515_s13 + $0x88] sm:$0xf] }
 0x109   : > { %v10076_v45 = vcombine.low %v3068_v34, %v3078_v6  ;;  %v3092_v55 = vsel %vm12548_vm2, %v3087_v51, %v3091_v29  ;;  %v3097_v21 = vrot.slane %v3096_v33, 4  ;;  %11413 = vmatmul.mubr.bf16.gmra.mxu0 %v12092_v62  ;;  %v3115_v20 = vrot.slane %v16758_v8, 5  ;;  %16912 = vst [vmem:[#allocation11_spill] sm:$0xff] %v13312_v59  ;;  %11572 = vmatprep.subr.bf16.mxu0 %v13295_v50  ;;  %v10054_v58 = vld [vmem:[%s12515_s13 + $0x90] sm:$0xf]  ;;  %v13321_v29 = vpop.f32.mrf.mxu1  ;;  %v13326_v33 = vld [vmem:[#allocation2 + $0x278] sm:$0xff]   ;;  %v13328_v6 = vpop.f32.mrf.mxu0 }
 0x10a   : > { %v3110_v40 = vor.u32 %v3109_v2, %v3106_v13  ;;  %v3119_v34 = vrot.slane %v16749_v12, 4  ;;  %11416 = vmatprep.mubr.bf16.mxu0 %v12095_v60  ;;  %11537 = vmatpush3.bf16.msra.mxu1 %v12102_v61  ;;  %v3125_v11 = vrot.slane %v3123_v3, 5  ;;  %v3128_v10 = vshrl.u32 %v10051_v36, 16  ;;  %v12096_v51 = vld [vmem:[%s12515_s13 + $0x90] sm:$0xff]  }
 0x10b   : > { %11457 = vmatmul.mubr.bf16.gmra.mxu1 %v10076_v45  ;;  %v3102_v62 = vsel %vm12548_vm2, %v3097_v21, %v3101_v35  ;;  %v3131_v57 = vshll.u32 %v10051_v36, 16  ;;  %11538 = vmatprep.subr.bf16.mxu1 %v12106_v22  ;;  %v16755_v2 = vshll.u32 %v13312_v59, 16  ;;  %v13331_v45 = vpop.f32.mrf.mxu1  ;;  %v16756_v21 = vshrl.u32 %v13312_v59, 16  ;;  %v13335_v12 = vld [vmem:[%s12515_s13 + $0x94] sm:$0xf]  ;;  %v13337_v52 = vpop.f32.mrf.mxu0 }
 0x10c   : > { %v10077_v60 = vcombine.low %v3092_v55, %v3102_v62  ;;  %v3111_v13 = vrot.slane %v3110_v40, 4  ;;  %v3120_v61 = vor.u32 %v3119_v34, %v3115_v20  ;;  %v3130_v35 = vrot.slane %v3128_v10, 4  ;;  %16913 = vst [vmem:[#allocation12_spill] sm:$0xff] %v13335_v12  ;;  %16914 = vst [vmem:[#allocation13_spill] sm:$0xff] %v13337_v52  ;;  %v10056_v62 = vld [vmem:[%s12515_s13 + $0x98] sm:$0x1] }
 0x10d   : > { %v3133_v3 = vrot.slane %v3131_v57, 5  ;;  %v3147_v36 = vshll.u32 %v10053_v16, 16  ;;  %v3139_v34 = vrot.slane %v16755_v2, 5  ;;  %v3152_v10 = vshrl.u32 %v10054_v58, 16  ;;  %v12099_v57 = vld [vmem:[%s12515_s13 + $0x9c] sm:$0xff]   ;;  %v13345_v19 = vpop.f32.mrf.mxu1 }
 0x10e   : > { %11460 = vmatprep.mubr.bf16.mxu1 %v10077_v60  ;;  %v3116_v55 = vsel %vm12548_vm2, %v3111_v13, %v3115_v20  ;;  %v3121_v40 = vrot.slane %v3120_v61, 4  ;;  %11539 = vmatpush3.bf16.msra.mxu1 %v12106_v22  ;;  %16915 = vst [vmem:[#allocation14_spill] sm:$0xff] %v13345_v19  ;;  %v3143_v43 = vrot.slane %v16756_v21, 4  ;;  %v3155_v60 = vshll.u32 %v10054_v58, 16  ;;  %v13351_v20 = vpop.f32.mrf.mxu0 }
 0x10f   : > { %v3134_v16 = vor.u32 %v3133_v3, %v3130_v35  ;;  %v3149_v15 = vrot.slane %v3147_v36, 5  ;;  %11620 = vmatprep.subr.bf16.mxu1 %v13326_v33  ;;  %v3154_v61 = vrot.slane %v3152_v10, 4  ;;  %v16762_v22 = vshll.u32 %v13335_v12, 16  ;;  %v13358_v35 = vld [vmem:[%s12515_s13 + $0xa0] sm:$0xf]  ;;  %v13360_v3 = vpop.f32.mrf.mxu1 }
 0x110   : > { %v3126_v13 = vsel %vm12548_vm2, %v3121_v40, %v3125_v11  ;;  %v16761_v2 = vshrl.u32 %v13335_v12, 16  ;;  %16916 = vst [vmem:[#allocation15_spill] sm:$0xff] %v13358_v35  ;;  %v3144_v21 = vor.u32 %v3143_v43, %v3139_v34  ;;  %v3157_v42 = vrot.slane %v3155_v60, 5  ;;  %v13362_v8 = vpop.f32.mrf.mxu0 }
 0x111   : > { %v10078_v36 = vcombine.low %v3116_v55, %v3126_v13  ;;  %v3135_v58 = vrot.slane %v3134_v16, 4  ;;  %11417 = vmatmul.mubr.bf16.gmra.mxu0 %v12096_v51  ;;  %v3163_v11 = vrot.slane %v16762_v22, 5  ;;  %v3171_v10 = vshll.u32 %v10056_v62, 16  ;;  %v13369_v14 = vpop.f32.mrf.mxu1 }
 0x112   : > { %v3167_v40 = vrot.slane %v16761_v2, 4  ;;  %11420 = vmatprep.mubr.bf16.mxu0 %v12099_v57  ;;  %v3145_v51 = vrot.slane %v3144_v21, 4  ;;  %v3158_v55 = vor.u32 %v3157_v42, %v3154_v61  ;;  %v13373_v16 = vpop.f32.mrf.mxu0  ;;  %v3176_v2 = vshrl.u32 %v10057_v5, 16  ;;  %v12100_v42 = vld [vmem:[%s12515_s13 + $0xa8] sm:$0xff]  }
 0x113   : > { %11461 = vmatmul.mubr.bf16.gmra.mxu1 %v10078_v36  ;;  %v3140_v43 = vsel %vm12548_vm2, %v3135_v58, %v3139_v34  ;;  %v3173_v13 = vrot.slane %v3171_v10, 5  ;;  %v3179_v62 = vshll.u32 %v10057_v5, 16  ;;  %v13375_v57 = vpop.f32.mrf.mxu1  ;;  %v16770_v36 = vshll.u32 %v13358_v35, 16  ;;  %v10060_v34 = vld [vmem:[%s12515_s13 + $0xa8] sm:$0xf] }
 0x114   : > { %v3168_v60 = vor.u32 %v3167_v40, %v3163_v11  ;;  %v3150_v22 = vsel %vm12548_vm2, %v3145_v51, %v3149_v15  ;;  %v3159_v48 = vrot.slane %v3158_v55, 4  ;;  %v16771_v21 = vshrl.u32 %v13358_v35, 16  ;;  %v13383_v61 = vpop.f32.mrf.mxu0 }
 0x115   : > { %16917 = vst [vmem:[#allocation16_spill] sm:$0xff] %v13383_v61  ;;  %v10079_v58 = vcombine.low %v3140_v43, %v3150_v22  ;;  %v3178_v10 = vrot.slane %v3176_v2, 4  ;;  %v3181_v5 = vrot.slane %v3179_v62, 5  ;;  %v13389_v63 = vpop.f32.mrf.mxu1  ;;  %v3187_v51 = vrot.slane %v16770_v36, 5  ;;  %v10062_v43 = vld [vmem:[%s12515_s13 + $0xb0] sm:$0x1] }
 0x116   : > { %v3169_v40 = vrot.slane %v3168_v60, 4  ;;  %16919 = vst [vmem:[#allocation18_spill] sm:$0xff] %v13389_v63  ;;  %v3164_v15 = vsel %vm12548_vm2, %v3159_v48, %v3163_v11  ;;  %v3191_v55 = vrot.slane %v16771_v21, 4  ;;  %v3195_v22 = vshll.u32 %v10059_v56, 16  ;;  %v13405_v56 = vld [vmem:[%s12515_s13 + $0xb8] sm:$0xf] }
 0x117   : > { %11464 = vmatprep.mubr.bf16.mxu1 %v10079_v58  ;;  %v3182_v60 = vor.u32 %v3181_v5, %v3178_v10  ;;  %v3200_v62 = vshrl.u32 %v10060_v34, 16  ;;  %v3203_v9 = vshll.u32 %v10060_v34, 16  ;;  %v13401_v32 = vpop.f32.mrf.mxu1  ;;  %v16775_v21 = vshll.u32 %v13386_v28, 16  ;;  %16920 = vst [vmem:[#allocation19_spill] sm:$0xff] %v13405_v56  ;;  %v13407_v58 = vpop.f32.mrf.mxu0  ;;  %v10065_v34 = vld [vmem:[%s12515_s13 + $0xbc] sm:$0x1] }
 0x118   : > { %v3174_v2 = vsel %vm12548_vm2, %v3169_v40, %v3173_v13  ;;  %v3192_v11 = vor.u32 %v3191_v55, %v3187_v51  ;;  %v3197_v36 = vrot.slane %v3195_v22, 5  ;;  %v16776_v10 = vshrl.u32 %v13386_v28, 16  ;;  %v10066_v22 = vld [vmem:[%s12515_s13 + $0xc0] sm:$0xf] }
 0x119   : > { %v10080_v48 = vcombine.low %v3164_v15, %v3174_v2  ;;  %11421 = vmatmul.mubr.bf16.gmra.mxu0 %v12100_v42  ;;  %v3183_v17 = vrot.slane %v3182_v60, 4  ;;  %v3202_v13 = vrot.slane %v3200_v62, 4  ;;  %v3205_v40 = vrot.slane %v3203_v9, 5  ;;  %v13411_v5 = vpop.f32.mrf.mxu1  ;;  %v13416_v2 = vpop.f32.mrf.mxu0 }
 0x11a   : > { %11424 = vmatprep.mubr.bf16.mxu0 %v12103_v26  ;;  %v3193_v15 = vrot.slane %v3192_v11, 4  ;;  %v3211_v42 = vrot.slane %v16775_v21, 5  ;;  %v3219_v55 = vshll.u32 %v10062_v43, 16  ;;  %v3215_v26 = vrot.slane %v16776_v10, 4  ;;  %v12104_v21 = vld [vmem:[%s12515_s13 + $0xc0] sm:$0xff]  }
 0x11b   : > { %11465 = vmatmul.mubr.bf16.gmra.mxu1 %v10080_v48  ;;  %v3188_v9 = vsel %vm12548_vm2, %v3183_v17, %v3187_v51  ;;  %v3206_v60 = vor.u32 %v3205_v40, %v3202_v13  ;;  %v13422_v62 = vpop.f32.mrf.mxu1  ;;  %v3224_v4 = vshrl.u32 %v10063_v27, 16  ;;  %v3227_v49 = vshll.u32 %v10063_v27, 16  ;;  %v13428_v43 = vld [vmem:[%s12515_s13 + $0xc4] sm:$0xf]  ;;  %v13430_v19 = vpop.f32.mrf.mxu0 }
 0x11c   : > { %v3198_v48 = vsel %vm12548_vm2, %v3193_v15, %v3197_v36  ;;  %v3221_v11 = vrot.slane %v3219_v55, 5  ;;  %16921 = vst [vmem:[#allocation20_spill] sm:$0xff] %v13428_v43  ;;  %v3216_v17 = vor.u32 %v3215_v26, %v3211_v42  ;;  %v16777_v51 = vshll.u32 %v13405_v56, 16 }
 0x11d   : > { %v10081_v52 = vcombine.low %v3188_v9, %v3198_v48  ;;  %v3207_v63 = vrot.slane %v3206_v60, 4  ;;  %v13433_v13 = vpop.f32.mrf.mxu1  ;;  %v3226_v40 = vrot.slane %v3224_v4, 4  ;;  %v3229_v10 = vrot.slane %v3227_v49, 5  ;;  %v13436_v55 = vpop.f32.mrf.mxu0 }
 0x11e   : > { %16922 = vst [vmem:[#allocation21_spill] sm:$0xff] %v13433_v13  ;;  %v16780_v36 = vshrl.u32 %v13405_v56, 16  ;;  %v3243_v15 = vshll.u32 %v10065_v34, 16  ;;  %16923 = vst [vmem:[#allocation22_spill] sm:$0xff] %v13436_v55  ;;  %v3217_v61 = vrot.slane %v3216_v17, 4  ;;  %v3235_v9 = vrot.slane %v16777_v51, 5 }
 0x11f   : > { %11468 = vmatprep.mubr.bf16.mxu1 %v10081_v52  ;;  %v3212_v27 = vsel %vm12548_vm2, %v3207_v63, %v3211_v42  ;;  %v3248_v60 = vshrl.u32 %v10066_v22, 16  ;;  %v13442_v26 = vpop.f32.mrf.mxu1  ;;  %v3230_v48 = vor.u32 %v3229_v10, %v3226_v40  ;;  %v10068_v34 = vld [vmem:[%s12515_s13 + $0xc8] sm:$0x1]  ;;  %v3251_v13 = vshll.u32 %v10066_v22, 16  ;;  %v13447_v52 = vpop.f32.mrf.mxu0 }
 0x120   : > { %v3239_v4 = vrot.slane %v16780_v36, 4  ;;  %v3245_v49 = vrot.slane %v3243_v15, 5  ;;  %v3222_v63 = vsel %vm12548_vm2, %v3217_v61, %v3221_v11  ;;  %v16787_v17 = vshll.u32 %v13428_v43, 16 }
 0x121   : > { %11425 = vmatmul.mubr.bf16.gmra.mxu0 %v12104_v21  ;;  %v3250_v42 = vrot.slane %v3248_v60, 4  ;;  %v16790_v51 = vshrl.u32 %v13428_v43, 16  ;;  %v13453_v55 = vpop.f32.mrf.mxu1  ;;  %v10082_v10 = vcombine.low %v3212_v27, %v3222_v63  ;;  %v3231_v40 = vrot.slane %v3230_v48, 4  ;;  %v10093_v21 = vld [vmem:[%s12515_s13 + $0xc] sm:$0xe]  ;;  %v13456_v15 = vpop.f32.mrf.mxu0 }
 0x122   : > { %v3240_v56 = vor.u32 %v3239_v4, %v3235_v9  ;;  %v3253_v36 = vrot.slane %v3251_v13, 5  ;;  %v3259_v22 = vrot.slane %v16787_v17, 5  ;;  %v3267_v11 = vshll.u32 %v10068_v34, 16  ;;  %v10149_v17 = vld [vmem:[%s12515_s13 + $0x14] sm:$0x3] }
 0x123   : > { %v3263_v61 = vrot.slane %v16790_v51, 4  ;;  %v13462_v60 = vpop.f32.mrf.mxu1  ;;  %11469 = vmatmul.mubr.bf16.gmra.mxu1 %v10082_v10  ;;  %v3236_v27 = vsel %vm12548_vm2, %v3231_v40, %v3235_v9  ;;  %v13466_v13 = vpop.f32.mrf.mxu0  ;;  %v10109_v35 = vrot.slane %v10093_v21, 9  ;;  %v3659_v59 = vrot.slane %v13138_v44, 5 }
 0x124   : > { %v3241_v48 = vrot.slane %v3240_v56, 4  ;;  %v3254_v4 = vor.u32 %v3253_v36, %v3250_v42  ;;  %v3269_v28 = vrot.slane %v3267_v11, 5  ;;  %v3662_v10 = vrot.slane %v13141_v46, 5 }
 0x125   : > { %v3264_v63 = vor.u32 %v3263_v61, %v3259_v22  ;;  %v13470_v12 = vpop.f32.mrf.mxu1  ;;  %v4108_v43 = vshrl.u32 %v10093_v21, 16  ;;  %v13475_v9 = vpop.f32.mrf.mxu0  ;;  %v3660_v42 = vsel %vm12864_vm7, %v10109_v35, %v3659_v59  ;;  %v3661_v40 = vrot.slane %v3659_v59, 4 }
 0x126   : > { %16924 = vst [vmem:[#allocation23_spill] sm:$0xff] %v13470_v12  ;;  %v3246_v34 = vsel %vm12548_vm2, %v3241_v48, %v3245_v49  ;;  %v3255_v51 = vrot.slane %v3254_v4, 4  ;;  %16925 = vst [vmem:[#allocation24_spill] sm:$0xff] %v13475_v9  ;;  %v4111_v49 = vshll.u32 %v10093_v21, 16  ;;  %v16926_v48 = vshrl.u32 %v13138_v44, 16 }
 0x127   : > { %v10083_v56 = vcombine.low %v3236_v27, %v3246_v34  ;;  %v3265_v36 = vrot.slane %v3264_v63, 4  ;;  %v13479_v61 = vpop.f32.mrf.mxu1  ;;  %v4110_v12 = vrot.slane %v4108_v43, 5  ;;  %v3663_v4 = vsel %vm12864_vm7, %v3661_v40, %v3662_v10 }
 0x128   : > { %v3260_v11 = vsel %vm12548_vm2, %v3255_v51, %v3259_v22  ;;  %v4116_v46 = vrot.slane %v16926_v48, 5  ;;  %v16927_v59 = vshll.u32 %v13138_v44, 16  ;;  %v4122_v63 = vshrl.u32 %v10149_v17, 16  ;;  %v13494_v48 = vpop.f32.mrf.mxu0 }
 0x129   : > { %11472 = vmatprep.mubr.bf16.mxu1 %v10083_v56  ;;  %v3270_v27 = vsel %vm12548_vm2, %v3265_v36, %v3269_v28  ;;  %v13491_v34 = vpop.f32.mrf.mxu1  ;;  %v10125_v43 = vcombine.low %v3660_v42, %v3663_v4  ;;  %v4113_v21 = vrot.slane %v4111_v49, 6  ;;  %v4125_v22 = vshll.u32 %v10149_v17, 16  ;;  %v10094_v56 = vld [vmem:[%s12515_s13 + $0x18] sm:$0xe]  ;;  %v12229_v17 = vld [vmem:[%s12515_s13 + $0x20] sm:$0x1] }
 0x12a   : > { %v4117_v35 = vrot.slane %v16927_v59, 6  ;;  %16928 = vst [vmem:[#allocation25_spill] sm:$0xff] %v13491_v34  ;;  %v10084_v51 = vcombine.low %v3260_v11, %v3270_v27  ;;  %v4124_v36 = vrot.slane %v4122_v63, 5  ;;  %v13498_v10 = vadd.f32 %v13305_v54, %v13299_v37  ;;  %v12228_v27 = vld [vmem:[%s12515_s13 + $0x1c] sm:$0xf]  ;;  %v13505_v9 = vpop.f32.mrf.mxu0 }
 0x12b   : > { %v10110_v44 = vrot.slane %v10094_v56, 9  ;;  %v13500_v40 = vpop.f32.mrf.mxu1  ;;  %11492 = vmatprep.mubr.bf16.mxu0 %v10125_v43  ;;  %v4114_v11 = vor.u32 %v4113_v21, %v4110_v12  ;;  %v4127_v42 = vrot.slane %v4125_v22, 6  ;;  %v3666_v49 = vrot.slane %v12228_v27, 5  ;;  %v10150_v59 = vld [vmem:[%s12515_s13 + $0x20] sm:$0x3] }
 0x12c   : > { %v4118_v28 = vor.u32 %v4117_v35, %v4116_v46  ;;  %16929 = vst [vmem:[#allocation26_spill] sm:$0xff] %v13498_v10  ;;  %16930 = vst [vmem:[#allocation27_spill] sm:$0xff] %v13500_v40  ;;  %11473 = vmatmul.mubr.bf16.gmra.mxu1 %v10084_v51  ;;  %v3669_v4 = vrot.slane %v12229_v17, 5  ;;  %v4131_v35 = vshrl.u32 %v10094_v56, 16  ;;  %v4134_v63 = vshll.u32 %v10094_v56, 16  ;;  %v13513_v21 = vpop.f32.mrf.mxu0 }
 0x12d   : > { %v16931_v37 = vshrl.u32 %v13147_v18, 16  ;;  %v13509_v10 = vpop.f32.mrf.mxu1  ;;  %v4115_v39 = vrot.slane %v4114_v11, 4  ;;  %v4128_v51 = vor.u32 %v4127_v42, %v4124_v36  ;;  %v3667_v12 = vsel %vm12864_vm7, %v10110_v44, %v3666_v49  ;;  %v12109_v42 = vld [vmem:[#allocation2 + $0x230] sm:$0xff]  }
 0x12e   : > { %v4120_v46 = vrot.slane %v4118_v28, 4  ;;  %16932 = vst [vmem:[#allocation28_spill] sm:$0xff] %v13509_v10  ;;  %v3668_v43 = vrot.slane %v3666_v49, 4  ;;  %v4133_v22 = vrot.slane %v4131_v35, 5  ;;  %v4136_v27 = vrot.slane %v4134_v63, 6  ;;  %v13525_v49 = vpop.f32.mrf.mxu0 }
 0x12f   : > { %v4139_v54 = vrot.slane %v16931_v37, 5  ;;  %v16933_v17 = vshll.u32 %v13147_v18, 16  ;;  %v4145_v56 = vshrl.u32 %v10150_v59, 16  ;;  %v13517_v34 = vpop.f32.mrf.mxu1  ;;  %v4119_v37 = vsel %vm12886_vm8, %v4115_v39, %v4118_v28  ;;  %v10095_v10 = vld [vmem:[%s12515_s13 + $0x24] sm:$0xe] }
 0x130   : > { %16934 = vst [vmem:[#allocation29_spill] sm:$0xff] %v13517_v34  ;;  %v4129_v36 = vsel %vm12886_vm8, %v4120_v46, %v4128_v51  ;;  %v3670_v44 = vsel %vm12864_vm7, %v3668_v43, %v3669_v4  ;;  %v4148_v11 = vshll.u32 %v10150_v59, 16  ;;  %v4137_v18 = vor.u32 %v4136_v27, %v4133_v22  ;;  %v13538_v59 = vpop.f32.mrf.mxu0  ;;  %v12230_v22 = vld [vmem:[%s12515_s13 + $0x28] sm:$0xf] }
 0x131   : > { %v4140_v40 = vrot.slane %v16933_v17, 6  ;;  %v10165_v35 = vcombine.low %v4119_v37, %v4129_v36  ;;  %v10126_v63 = vcombine.low %v3667_v12, %v3670_v44  ;;  %v13528_v34 = vpop.f32.mrf.mxu1  ;;  %v4147_v39 = vrot.slane %v4145_v56, 5  ;;  %v10151_v56 = vld [vmem:[%s12515_s13 + $0x2c] sm:$0x3] }
 0x132   : > { %v4150_v28 = vrot.slane %v4148_v11, 6  ;;  %v13532_v46 = vadd.f32 %v13321_v29, %v13316_v41  ;;  %v13536_v4 = vadd.f32 %v13331_v45, %v13328_v6  ;;  %v10111_v51 = vrot.slane %v10095_v10, 9  ;;  %v12231_v41 = vld [vmem:[%s12515_s13 + $0x2c] sm:$0x1]  ;;  %v13546_v6 = vpop.f32.mrf.mxu0 }
 0x133   : > { %v4141_v17 = vor.u32 %v4140_v40, %v4139_v54  ;;  %11540 = vmatprep.mubr.bf16.mxu1 %v10165_v35  ;;  %11493 = vmatmul.mubr.bf16.vlgmr.msra.gmra.mxu0 %v10126_v63  ;;  %v4138_v40 = vrot.slane %v4137_v18, 4  ;;  %v13540_v12 = vpop.f32.mrf.mxu1  ;;  %v3673_v27 = vrot.slane %v12230_v22, 5  ;;  %v3676_v29 = vrot.slane %v12231_v41, 5 }
 0x134   : > { %16935 = vst [vmem:[#allocation30_spill] sm:$0xff] %v13532_v46  ;;  %16936 = vst [vmem:[#allocation31_spill] sm:$0xff] %v13536_v4  ;;  %v4151_v43 = vor.u32 %v4150_v28, %v4147_v39  ;;  %11573 = vmatpush3.bf16.msra.mxu0 %v13295_v50  ;;  %v4154_v37 = vshrl.u32 %v10095_v10, 16  ;;  %v4157_v36 = vshll.u32 %v10095_v10, 16  ;;  %v16937_v44 = vshrl.u32 %v13164_v30, 16  ;;  %v12111_v50 = vld [vmem:[#allocation2 + $0x228] sm:$0xff]  }
 0x135   : > { %v4143_v54 = vrot.slane %v4141_v17, 4  ;;  %v4142_v45 = vsel %vm12886_vm8, %v4138_v40, %v4141_v17  ;;  %v16938_v35 = vshll.u32 %v13164_v30, 16  ;;  %11574 = vmatprep.subr.bf16.mxu0 %v12109_v42  ;;  %v13554_v18 = vpop.f32.mrf.mxu1  ;;  %v3674_v28 = vsel %vm12864_vm7, %v10111_v51, %v3673_v27  ;;  %v12110_v10 = vld [vmem:[#allocation2 + $0x270] sm:$0xff]   ;;  %v13560_v40 = vpop.f32.mrf.mxu0 }
 0x136   : > { %v4162_v11 = vrot.slane %v16937_v44, 5  ;;  %16939 = vst [vmem:[#allocation32_spill] sm:$0xff] %v13554_v18  ;;  %v3675_v22 = vrot.slane %v3673_v27, 4  ;;  %v4156_v17 = vrot.slane %v4154_v37, 5  ;;  %v4159_v44 = vrot.slane %v4157_v36, 6 }
 0x137   : > { %v4163_v63 = vrot.slane %v16938_v35, 6  ;;  %v4152_v39 = vsel %vm12886_vm8, %v4143_v54, %v4151_v43  ;;  %v4168_v35 = vshrl.u32 %v10151_v56, 16  ;;  %v10096_v4 = vld [vmem:[%s12515_s13 + $0x30] sm:$0xe]  ;;  %v13563_v46 = vpop.f32.mrf.mxu1  ;;  %v4171_v54 = vshll.u32 %v10151_v56, 16  ;;  %v13571_v27 = vpop.f32.mrf.mxu0 }
 0x138   : > { %v10166_v41 = vcombine.low %v4142_v45, %v4152_v39  ;;  %16940 = vst [vmem:[#allocation33_spill] sm:$0xff] %v13563_v46  ;;  %v3677_v18 = vsel %vm12864_vm7, %v3675_v22, %v3676_v29  ;;  %v13569_v51 = vadd.f32 %v13360_v3, %v13351_v20  ;;  %v10112_v43 = vrot.slane %v10096_v4, 9  ;;  %11575 = vmatpush3.bf16.msra.mxu0 %v12109_v42  ;;  %v12113_v39 = vld [vmem:[#allocation2 + $0x220] sm:$0xff]   ;;  %v12232_v20 = vld [vmem:[%s12515_s13 + $0x34] sm:$0xf] }
 0x139   : > { %v4164_v30 = vor.u32 %v4163_v63, %v4162_v11  ;;  %v10127_v37 = vcombine.low %v3674_v28, %v3677_v18  ;;  %v4160_v45 = vor.u32 %v4159_v44, %v4156_v17  ;;  %v4170_v11 = vrot.slane %v4168_v35, 5  ;;  %v10152_v63 = vld [vmem:[%s12515_s13 + $0x38] sm:$0x3]  ;;  %11576 = vmatprep.subr.bf16.mxu0 %v12111_v50  ;;  %v13574_v29 = vpop.f32.mrf.mxu1  ;;  %v12112_v35 = vld [vmem:[#allocation2 + $0x268] sm:$0xff]  }
 0x13a   : > { %16941 = vst [vmem:[#allocation34_spill] sm:$0xff] %v13569_v51  ;;  %11541 = vmatmul.mubr.bf16.vlgmr.msra.gmra.mxu1 %v10166_v41  ;;  %16942 = vst [vmem:[#allocation35_spill] sm:$0xff] %v13574_v29  ;;  %v4173_v56 = vrot.slane %v4171_v54, 6  ;;  %v3680_v3 = vrot.slane %v12232_v20, 5  ;;  %v12233_v22 = vld [vmem:[%s12515_s13 + $0x38] sm:$0x1] }
 0x13b   : > { %v4166_v36 = vrot.slane %v4164_v30, 4  ;;  %11621 = vmatpush3.bf16.msra.mxu1 %v13326_v33  ;;  %v3683_v51 = vrot.slane %v12233_v22, 5  ;;  %v4177_v42 = vshrl.u32 %v10096_v4, 16  ;;  %11496 = vmatprep.mubr.bf16.mxu0 %v10127_v37  ;;  %v4161_v46 = vrot.slane %v4160_v45, 4  ;;  %v13583_v29 = vpop.f32.mrf.mxu1  ;;  %v13587_v37 = vpop.f32.mrf.mxu0 }
 0x13c   : > { %v4180_v41 = vshll.u32 %v10096_v4, 16  ;;  %v16943_v18 = vshrl.u32 %v13182_v1, 16  ;;  %v16944_v17 = vshll.u32 %v13182_v1, 16  ;;  %11622 = vmatprep.subr.bf16.mxu1 %v12110_v10  ;;  %v4174_v33 = vor.u32 %v4173_v56, %v4170_v11  ;;  %11577 = vmatpush3.bf16.msra.mxu0 %v12111_v50 }
 0x13d   : > { %v3681_v54 = vsel %vm12864_vm7, %v10112_v43, %v3680_v3  ;;  %v3682_v20 = vrot.slane %v3680_v3, 4  ;;  %v4179_v22 = vrot.slane %v4177_v42, 5  ;;  %v4165_v4 = vsel %vm12886_vm8, %v4161_v46, %v4164_v30  ;;  %11578 = vmatprep.subr.bf16.mxu0 %v12113_v39  ;;  %v12115_v46 = vld [vmem:[#allocation2 + $0x218] sm:$0xff]   ;;  %v13601_v30 = vpop.f32.mrf.mxu0 }
 0x13e   : > { %v4185_v28 = vrot.slane %v16943_v18, 5  ;;  %v4186_v44 = vrot.slane %v16944_v17, 6  ;;  %v4182_v45 = vrot.slane %v4180_v41, 6  ;;  %v4191_v18 = vshrl.u32 %v10152_v63, 16  ;;  %v13591_v17 = vpop.f32.mrf.mxu1 }
 0x13f   : > { %16945 = vst [vmem:[#allocation36_spill] sm:$0xff] %v13591_v17  ;;  %v4175_v11 = vsel %vm12886_vm8, %v4166_v36, %v4174_v33  ;;  %v3684_v43 = vsel %vm12864_vm7, %v3682_v20, %v3683_v51  ;;  %v4194_v56 = vshll.u32 %v10152_v63, 16  ;;  %v13599_v50 = vadd.f32 %v13369_v14, %v13362_v8  ;;  %11623 = vmatpush3.bf16.msra.mxu1 %v12110_v10  ;;  %v12114_v36 = vld [vmem:[#allocation2 + $0x260] sm:$0xff]   ;;  %v12117_v20 = vld [vmem:[#allocation2 + $0x210] sm:$0xff]  }
 0x140   : > { %v4187_v1 = vor.u32 %v4186_v44, %v4185_v28  ;;  %v10167_v42 = vcombine.low %v4165_v4, %v4175_v11  ;;  %v10128_v41 = vcombine.low %v3681_v54, %v3684_v43  ;;  %v4183_v28 = vor.u32 %v4182_v45, %v4179_v22  ;;  %v10097_v44 = vld [vmem:[%s12515_s13 + $0x3c] sm:$0xe]  ;;  %11624 = vmatprep.subr.bf16.mxu1 %v12112_v35  ;;  %v13605_v51 = vpop.f32.mrf.mxu1  ;;  %v10153_v33 = vld [vmem:[%s12515_s13 + $0x44] sm:$0x3]  ;;  %v13612_v4 = vpop.f32.mrf.mxu0  ;;  %v12234_v45 = vld [vmem:[%s12515_s13 + $0x40] sm:$0xf] }
 0x141   : > { %16946 = vst [vmem:[#allocation37_spill] sm:$0xff] %v13599_v50  ;;  %16947 = vst [vmem:[#allocation38_spill] sm:$0xff] %v13605_v51  ;;  %v4193_v14 = vrot.slane %v4191_v18, 5  ;;  %v4196_v8 = vrot.slane %v4194_v56, 6  ;;  %v13609_v10 = vadd.f32 %v13375_v57, %v13373_v16  ;;  %11579 = vmatpush3.bf16.msra.mxu0 %v12113_v39  ;;  %v10113_v22 = vrot.slane %v10097_v44, 9 }
 0x142   : > { %v4189_v63 = vrot.slane %v4187_v1, 4  ;;  %11544 = vmatprep.mubr.bf16.mxu1 %v10167_v42  ;;  %11497 = vmatmul.mubr.bf16.gmra.mxu0 %v10128_v41  ;;  %v4184_v54 = vrot.slane %v4183_v28, 4  ;;  %v3687_v11 = vrot.slane %v12234_v45, 5  ;;  %v12235_v43 = vld [vmem:[%s12515_s13 + $0x44] sm:$0x1]  ;;  %v4200_v18 = vshrl.u32 %v10097_v44, 16  ;;  %v13618_v57 = vpop.f32.mrf.mxu0 }
 0x143   : > { %16948 = vst [vmem:[#allocation39_spill] sm:$0xff] %v13609_v10  ;;  %v3690_v3 = vrot.slane %v12235_v43, 5  ;;  %v4197_v50 = vor.u32 %v4196_v8, %v4193_v14  ;;  %v4203_v56 = vshll.u32 %v10097_v44, 16  ;;  %v16949_v51 = vshrl.u32 %v13193_v53, 16  ;;  %11625 = vmatpush3.bf16.msra.mxu1 %v12112_v35  ;;  %11580 = vmatprep.subr.bf16.mxu0 %v12115_v46  ;;  %v12116_v44 = vld [vmem:[#allocation2 + $0x258] sm:$0xff]   ;;  %v13626_v8 = vpop.f32.mrf.mxu1 }
 0x144   : > { %v4188_v39 = vsel %vm12886_vm8, %v4184_v54, %v4187_v1  ;;  %v3688_v42 = vsel %vm12864_vm7, %v10113_v22, %v3687_v11  ;;  %v3689_v41 = vrot.slane %v3687_v11, 4  ;;  %v16950_v28 = vshll.u32 %v13193_v53, 16  ;;  %11626 = vmatprep.subr.bf16.mxu1 %v12114_v36  ;;  %16951 = vst [vmem:[#allocation40_spill] sm:$0xff] %v13626_v8  ;;  %v10098_v10 = vld [vmem:[%s12515_s13 + $0x48] sm:$0xe]  ;;  %v13631_v1 = vpop.f32.mrf.mxu0 }
 0x145   : > { %v4208_v16 = vrot.slane %v16949_v51, 5  ;;  %v4198_v35 = vsel %vm12886_vm8, %v4189_v63, %v4197_v50  ;;  %v4202_v51 = vrot.slane %v4200_v18, 5  ;;  %v4205_v45 = vrot.slane %v4203_v56, 6  ;;  %11581 = vmatpush3.bf16.msra.mxu0 %v12115_v46  ;;  %v10154_v46 = vld [vmem:[%s12515_s13 + $0x50] sm:$0x3] }
 0x146   : > { %v4209_v14 = vrot.slane %v16950_v28, 6  ;;  %v4214_v43 = vshrl.u32 %v10153_v33, 16  ;;  %v10168_v54 = vcombine.low %v4188_v39, %v4198_v35  ;;  %v3691_v53 = vsel %vm12864_vm7, %v3689_v41, %v3690_v3  ;;  %11582 = vmatprep.subr.bf16.mxu0 %v12117_v20  ;;  %v12119_v28 = vld [vmem:[#allocation2 + $0x208] sm:$0xff]   ;;  %v13640_v18 = vld [vmem:[#allocation2 + $0x250] sm:$0xff]   ;;  %v13642_v56 = vpop.f32.mrf.mxu0 }
 0x147   : > { %v4217_v11 = vshll.u32 %v10153_v33, 16  ;;  %v10129_v8 = vcombine.low %v3688_v42, %v3691_v53  ;;  %v4206_v17 = vor.u32 %v4205_v45, %v4202_v51  ;;  %v13637_v63 = vadd.f32 %v13401_v32, %v13407_v58  ;;  %11627 = vmatpush3.bf16.msra.mxu1 %v12114_v36  ;;  %v12236_v39 = vld [vmem:[%s12515_s13 + $0x4c] sm:$0xf]  ;;  %v13645_v42 = vpop.f32.mrf.mxu1  ;;  %v12237_v35 = vld [vmem:[%s12515_s13 + $0x50] sm:$0x1] }
 0x148   : > { %v4210_v22 = vor.u32 %v4209_v14, %v4208_v16  ;;  %v4216_v50 = vrot.slane %v4214_v43, 5  ;;  %11545 = vmatmul.mubr.bf16.gmra.mxu1 %v10168_v54  ;;  %v10114_v33 = vrot.slane %v10098_v10, 9  ;;  %v3694_v41 = vrot.slane %v12236_v39, 5  ;;  %11628 = vmatprep.subr.bf16.mxu1 %v12116_v44  ;;  %v13648_v36 = vpop.f32.mrf.mxu0  ;;  %v12121_v39 = vld [vmem:[#allocation2 + $0x200] sm:$0xff]  }
 0x149   : > { %v4219_v16 = vrot.slane %v4217_v11, 6  ;;  %11500 = vmatprep.mubr.bf16.mxu0 %v10129_v8  ;;  %v4207_v14 = vrot.slane %v4206_v17, 4  ;;  %v3697_v32 = vrot.slane %v12237_v35, 5  ;;  %v4223_v58 = vshrl.u32 %v10098_v10, 16  ;;  %11583 = vmatpush3.bf16.msra.mxu0 %v12117_v20 }
 0x14a   : > { %v4212_v3 = vrot.slane %v4210_v22, 4  ;;  %v4226_v51 = vshll.u32 %v10098_v10, 16  ;;  %v3695_v43 = vsel %vm12864_vm7, %v10114_v33, %v3694_v41  ;;  %v3696_v54 = vrot.slane %v3694_v41, 4  ;;  %11584 = vmatprep.subr.bf16.mxu0 %v12119_v28 }
 0x14b   : > { %v4220_v45 = vor.u32 %v4219_v16, %v4216_v50  ;;  %v16952_v53 = vshrl.u32 %v13215_v24, 16  ;;  %v4211_v17 = vsel %vm12886_vm8, %v4207_v14, %v4210_v22  ;;  %v4225_v8 = vrot.slane %v4223_v58, 5  ;;  %11629 = vmatpush3.bf16.msra.mxu1 %v12116_v44  ;;  %v13658_v50 = vpop.f32.mrf.mxu0  ;;  %v13665_v22 = vpop.f32.mrf.mxu1  ;;  %v10099_v44 = vld [vmem:[%s12515_s13 + $0x54] sm:$0xe] }
 0x14c   : > { %v4228_v35 = vrot.slane %v4226_v51, 6  ;;  %v16953_v10 = vshll.u32 %v13215_v24, 16  ;;  %16954 = vst [vmem:[#allocation41_spill] sm:$0xff] %v13658_v50  ;;  %v3698_v33 = vsel %vm12864_vm7, %v3696_v54, %v3697_v32  ;;  %v4237_v41 = vshrl.u32 %v10154_v46, 16  ;;  %11630 = vmatprep.subr.bf16.mxu1 %v13640_v18  ;;  %v13679_v54 = vld [vmem:[#allocation2 + $0x2b8] sm:$0xff]  }
 0x14d   : > { %v4231_v11 = vrot.slane %v16952_v53, 5  ;;  %v4221_v16 = vsel %vm12886_vm8, %v4212_v3, %v4220_v45  ;;  %v4240_v53 = vshll.u32 %v10154_v46, 16  ;;  %v10130_v58 = vcombine.low %v3695_v43, %v3698_v33  ;;  %11585 = vmatpush3.bf16.msra.mxu0 %v12119_v28  ;;  %v13668_v50 = vpop.f32.mrf.mxu0  ;;  %v10155_v43 = vld [vmem:[%s12515_s13 + $0x5c] sm:$0x3] }
 0x14e   : > { %v4232_v20 = vrot.slane %v16953_v10, 6  ;;  %v10169_v14 = vcombine.low %v4211_v17, %v4221_v16  ;;  %v4229_v24 = vor.u32 %v4228_v35, %v4225_v8  ;;  %v12120_v10 = vld [vmem:[#allocation2 + $0x248] sm:$0xff]   ;;  %16955 = vst [vmem:[#allocation42_spill] sm:$0xff] %v13668_v50  ;;  %v4239_v3 = vrot.slane %v4237_v41, 5  ;;  %11586 = vmatprep.subr.bf16.mxu0 %v12121_v39  ;;  %v13690_v41 = vpop.f32.mrf.mxu1 }
 0x14f   : > { %v4242_v45 = vrot.slane %v4240_v53, 6  ;;  %v13672_v46 = vadd.f32 %v13411_v5, %v13416_v2  ;;  %v13676_v32 = vadd.f32 %v13422_v62, %v13430_v19  ;;  %v16957_v28 = vshll.u32 %v13281_v0, 16  ;;  %11501 = vmatmul.mubr.bf16.gmra.mxu0 %v10130_v58  ;;  %v12238_v2 = vld [vmem:[%s12515_s13 + $0x58] sm:$0xf]  ;;  %v12239_v19 = vld [vmem:[%s12515_s13 + $0x5c] sm:$0x1]  ;;  %11631 = vmatpush3.bf16.msra.mxu1 %v13640_v18 }
 0x150   : > { %v4233_v51 = vor.u32 %v4232_v20, %v4231_v11  ;;  %11548 = vmatprep.mubr.bf16.mxu1 %v10169_v14  ;;  %v4230_v17 = vrot.slane %v4229_v24, 4  ;;  %v10115_v35 = vrot.slane %v10099_v44, 9  ;;  %v13685_v20 = vpop.f32.mrf.mxu0  ;;  %v3701_v16 = vrot.slane %v12238_v2, 5  ;;  %16959 = vst [vmem:[#allocation45_spill] sm:$0xff] %v13690_v41  ;;  %11632 = vmatprep.subr.bf16.mxu1 %v12120_v10 }
 0x151   : > { %16956 = vst [vmem:[#allocation43_spill] sm:$0xff] %v13672_v46  ;;  %v13683_v11 = vrot.slane %v16957_v28, 6  ;;  %16958 = vst [vmem:[#allocation44_spill] sm:$0xff] %v13685_v20  ;;  %v4243_v5 = vor.u32 %v4242_v45, %v4239_v3  ;;  %v3704_v62 = vrot.slane %v12239_v19, 5  ;;  %v4246_v33 = vshrl.u32 %v10099_v44, 16  ;;  %11587 = vmatpush3.bf16.msra.mxu0 %v12121_v39  ;;  %v12122_v45 = vld [vmem:[#allocation2 + $0x240] sm:$0xff]  }
 0x152   : > { %v4235_v8 = vrot.slane %v4233_v51, 4  ;;  %v4234_v53 = vsel %vm12886_vm8, %v4230_v17, %v4233_v51  ;;  %v4249_v14 = vshll.u32 %v10099_v44, 16  ;;  %v16960_v58 = vshrl.u32 %v13235_v23, 16  ;;  %v13698_v2 = vpop.f32.mrf.mxu0  ;;  %11668 = vmatprep.subr.bf16.mxu0 %v13679_v54  ;;  %v13705_v17 = vpop.f32.mrf.mxu1  ;;  %v10100_v46 = vld [vmem:[%s12515_s13 + $0x60] sm:$0xe] }
 0x153   : > { %v16961_v28 = vshll.u32 %v13235_v23, 16  ;;  %16962 = vst [vmem:[#allocation46_spill] sm:$0xff] %v13698_v2  ;;  %v3702_v19 = vsel %vm12864_vm7, %v10115_v35, %v3701_v16  ;;  %v3703_v51 = vrot.slane %v3701_v16, 4  ;;  %v4248_v44 = vrot.slane %v4246_v33, 5  ;;  %16963 = vst [vmem:[#allocation47_spill] sm:$0xff] %v13705_v17  ;;  %11633 = vmatpush3.bf16.msra.mxu1 %v12120_v10 }
 0x154   : > { %v4254_v24 = vrot.slane %v16960_v58, 5  ;;  %v4244_v18 = vsel %vm12886_vm8, %v4235_v8, %v4243_v5  ;;  %v4251_v58 = vrot.slane %v4249_v14, 6  ;;  %v4260_v39 = vshrl.u32 %v10155_v43, 16  ;;  %v13708_v41 = vpop.f32.mrf.mxu0  ;;  %v13716_v33 = vpop.f32.mrf.mxu1  ;;  %11634 = vmatprep.subr.bf16.mxu1 %v12122_v45  ;;  %v12241_v2 = vld [vmem:[%s12515_s13 + $0x68] sm:$0x1] }
 0x155   : > { %v4255_v3 = vrot.slane %v16961_v28, 6  ;;  %v10170_v23 = vcombine.low %v4234_v53, %v4244_v18  ;;  %16964 = vst [vmem:[#allocation48_spill] sm:$0xff] %v13708_v41  ;;  %v3705_v8 = vsel %vm12864_vm7, %v3703_v51, %v3704_v62  ;;  %v4263_v5 = vshll.u32 %v10155_v43, 16  ;;  %16965 = vst [vmem:[#allocation49_spill] sm:$0xff] %v13716_v33  ;;  %v10156_v18 = vld [vmem:[%s12515_s13 + $0x68] sm:$0x3] }
 0x156   : > { %v13714_v35 = vadd.f32 %v13442_v26, %v13447_v52  ;;  %v10116_v16 = vrot.slane %v10100_v46, 9  ;;  %v10131_v53 = vcombine.low %v3702_v19, %v3705_v8  ;;  %v4252_v14 = vor.u32 %v4251_v58, %v4248_v44  ;;  %v13719_v41 = vld [vmem:[#allocation2 + $0x2f8] sm:$0xff]   ;;  %v12240_v43 = vld [vmem:[%s12515_s13 + $0x64] sm:$0xf]  ;;  %v13723_v52 = vpop.f32.mrf.mxu0  ;;  %v13731_v33 = vpop.f32.mrf.mxu1 }
 0x157   : > { %v4256_v28 = vor.u32 %v4255_v3, %v4254_v24  ;;  %11549 = vmatmul.mubr.bf16.gmra.mxu1 %v10170_v23  ;;  %v4262_v3 = vrot.slane %v4260_v39, 5  ;;  %v4265_v62 = vrot.slane %v4263_v5, 6  ;;  %v3708_v51 = vrot.slane %v12240_v43, 5  ;;  %16966 = vst [vmem:[#allocation50_spill] sm:$0xff] %v13723_v52  ;;  %16969 = vst [vmem:[#allocation51_spill] sm:$0xff] %v13731_v33 }
 0x158   : > { %v3711_v17 = vrot.slane %v12241_v2, 5  ;;  %v4269_v26 = vshrl.u32 %v10100_v46, 16  ;;  %11504 = vmatprep.mubr.bf16.mxu0 %v10131_v53  ;;  %v4253_v10 = vrot.slane %v4252_v14, 4  ;;  %v4272_v23 = vshll.u32 %v10100_v46, 16  ;;  %11635 = vmatpush3.bf16.msra.mxu1 %v12122_v45  ;;  %v13733_v53 = vpop.f32.mrf.mxu0 }
 0x159   : > { %v4258_v24 = vrot.slane %v4256_v28, 4  ;;  %v16967_v19 = vshrl.u32 %v13250_v7, 16  ;;  %v16968_v58 = vshll.u32 %v13250_v7, 16  ;;  %v4266_v8 = vor.u32 %v4265_v62, %v4262_v3  ;;  %16970 = vst [vmem:[#allocation52_spill] sm:$0xff] %v13733_v53  ;;  %v10101_v7 = vld [vmem:[%s12515_s13 + $0x6c] sm:$0xe]  ;;  %11716 = vmatprep.subr.bf16.mxu1 %v13719_v41 }
 0x15a   : > { %v3709_v5 = vsel %vm12864_vm7, %v10116_v16, %v3708_v51  ;;  %v3710_v43 = vrot.slane %v3708_v51, 4  ;;  %v4271_v2 = vrot.slane %v4269_v26, 5  ;;  %v4257_v46 = vsel %vm12886_vm8, %v4253_v10, %v4256_v28  ;;  %v13748_v51 = vld [vmem:[%s12515_s13 + $0x98] sm:$0x1]  ;;  %v16993_v53 = vld [vmem:[#allocation29_spill] sm:$0xff] }
 0x15b   : > { %v4277_v44 = vrot.slane %v16967_v19, 5  ;;  %v4278_v39 = vrot.slane %v16968_v58, 6  ;;  %v4274_v14 = vrot.slane %v4272_v23, 6  ;;  %v4283_v52 = vshrl.u32 %v10156_v18, 16 }
 0x15c   : > { %v4267_v16 = vsel %vm12886_vm8, %v4258_v24, %v4266_v8  ;;  %v3712_v45 = vsel %vm12864_vm7, %v3710_v43, %v3711_v17  ;;  %v4286_v3 = vshll.u32 %v10156_v18, 16  ;;  %v13745_v62 = vadd.f32 %v13453_v55, %v13456_v15  ;;  %v10157_v55 = vld [vmem:[%s12515_s13 + $0x74] sm:$0x3]  ;;  %v13758_v15 = vpop.f32.mrf.mxu1  ;;  %v12243_v43 = vld [vmem:[%s12515_s13 + $0x70] sm:$0xf] }
 0x15d   : > { %v4279_v19 = vor.u32 %v4278_v39, %v4277_v44  ;;  %v10171_v26 = vcombine.low %v4257_v46, %v4267_v16  ;;  %v10132_v10 = vcombine.low %v3709_v5, %v3712_v45  ;;  %v4275_v23 = vor.u32 %v4274_v14, %v4271_v2  ;;  %v13751_v44 = vpop.f32.mrf.mxu0  ;;  %16972 = vst [vmem:[#allocation54_spill] sm:$0xff] %v13758_v15  ;;  %v12244_v5 = vld [vmem:[%s12515_s13 + $0x74] sm:$0x1] }
 0x15e   : > { %16971 = vst [vmem:[#allocation53_spill] sm:$0xff] %v13751_v44  ;;  %v4285_v58 = vrot.slane %v4283_v52, 5  ;;  %v4288_v39 = vrot.slane %v4286_v3, 6  ;;  %v13755_v17 = vadd.f32 %v13462_v60, %v13466_v13  ;;  %v10117_v8 = vrot.slane %v10101_v7, 9  ;;  %v13764_v60 = vpop.f32.mrf.mxu1 }
 0x15f   : > { %v4281_v24 = vrot.slane %v4279_v19, 4  ;;  %11552 = vmatprep.mubr.bf16.mxu1 %v10171_v26  ;;  %11505 = vmatmul.mubr.bf16.gmra.mxu0 %v10132_v10  ;;  %v4276_v18 = vrot.slane %v4275_v23, 4  ;;  %v3715_v46 = vrot.slane %v12243_v43, 5  ;;  %v3718_v2 = vrot.slane %v12244_v5, 5  ;;  %16974 = vst [vmem:[#allocation55_spill] sm:$0xff] %v13764_v60 }
 0x160   : > { %v4289_v14 = vor.u32 %v4288_v39, %v4285_v58  ;;  %v4292_v16 = vshrl.u32 %v10101_v7, 16  ;;  %v4295_v45 = vshll.u32 %v10101_v7, 16  ;;  %v16973_v52 = vshrl.u32 %v13260_v47, 16  ;;  %v13772_v58 = vpop.f32.mrf.mxu0  ;;  %v13780_v60 = vpop.f32.mrf.mxu1 }
 0x161   : > { %v4280_v13 = vsel %vm12886_vm8, %v4276_v18, %v4279_v19  ;;  %v3716_v26 = vsel %vm12864_vm7, %v10117_v8, %v3715_v46  ;;  %v3717_v10 = vrot.slane %v3715_v46, 4  ;;  %v16975_v23 = vshll.u32 %v13260_v47, 16  ;;  %16976 = vst [vmem:[#allocation56_spill] sm:$0xff] %v13772_v58  ;;  %v10102_v8 = vld [vmem:[%s12515_s13 + $0x78] sm:$0xe]  ;;  %16977 = vst [vmem:[#allocation57_spill] sm:$0xff] %v13780_v60 }
 0x162   : > { %v4300_v3 = vrot.slane %v16973_v52, 5  ;;  %v4290_v7 = vsel %vm12886_vm8, %v4281_v24, %v4289_v14  ;;  %v4294_v39 = vrot.slane %v4292_v16, 5  ;;  %v4297_v5 = vrot.slane %v4295_v45, 6  ;;  %v10158_v46 = vld [vmem:[%s12515_s13 + $0x80] sm:$0x3] }
 0x163   : > { %v4301_v43 = vrot.slane %v16975_v23, 6  ;;  %v4306_v52 = vshrl.u32 %v10157_v55, 16  ;;  %v10172_v28 = vcombine.low %v4280_v13, %v4290_v7  ;;  %v3719_v19 = vsel %vm12864_vm7, %v3717_v10, %v3718_v2  ;;  %v12245_v13 = vld [vmem:[%s12515_s13 + $0x7c] sm:$0xf]  ;;  %v13787_v2 = vpop.f32.mrf.mxu0 }
 0x164   : > { %v4309_v33 = vshll.u32 %v10157_v55, 16  ;;  %v10133_v47 = vcombine.low %v3716_v26, %v3719_v19  ;;  %v4298_v23 = vor.u32 %v4297_v5, %v4294_v39  ;;  %v13784_v24 = vadd.f32 %v13479_v61, %v13494_v48 }
 0x165   : > { %v4302_v18 = vor.u32 %v4301_v43, %v4300_v3  ;;  %v4308_v58 = vrot.slane %v4306_v52, 5  ;;  %11553 = vmatmul.mubr.bf16.gmra.mxu1 %v10172_v28  ;;  %v10118_v45 = vrot.slane %v10102_v8, 9  ;;  %v3722_v7 = vrot.slane %v12245_v13, 5  ;;  %v13795_v5 = vpop.f32.mrf.mxu0 }
 0x166   : > { %v4311_v16 = vrot.slane %v4309_v33, 6  ;;  %11508 = vmatprep.mubr.bf16.mxu0 %v10133_v47  ;;  %v4299_v55 = vrot.slane %v4298_v23, 4  ;;  %v4315_v3 = vshrl.u32 %v10102_v8, 16  ;;  %v4318_v10 = vshll.u32 %v10102_v8, 16  ;;  %v13793_v33 = vpop.f32.mrf.mxu1  ;;  %16980 = vst [vmem:[#allocation59_spill] sm:$0xff] %v13795_v5 }
 0x167   : > { %v4304_v14 = vrot.slane %v4302_v18, 4  ;;  %v16978_v26 = vshrl.u32 %v13281_v0, 16  ;;  %v3723_v61 = vsel %vm12864_vm7, %v10118_v45, %v3722_v7  ;;  %v3724_v48 = vrot.slane %v3722_v7, 4  ;;  %16979 = vst [vmem:[#allocation58_spill] sm:$0xff] %v13793_v33  ;;  %v13806_v13 = vpop.f32.mrf.mxu0  ;;  %v16982_v7 = vld [vmem:[#allocation12_spill] sm:$0xff] }
 0x168   : > { %v4312_v39 = vor.u32 %v4311_v16, %v4308_v58  ;;  %v4329_v28 = vshrl.u32 %v10158_v46, 16  ;;  %v4303_v52 = vsel %vm12886_vm8, %v4299_v55, %v4302_v18  ;;  %v4317_v19 = vrot.slane %v4315_v3, 5 }
 0x169   : > { %v4323_v43 = vrot.slane %v16978_v26, 5  ;;  %v4320_v47 = vrot.slane %v4318_v10, 6  ;;  %v16981_v58 = vrot.slane %v13288_v25, 5  ;;  %v4332_v45 = vshll.u32 %v10158_v46, 16  ;;  %v16986_v46 = vld [vmem:[#allocation27_spill] sm:$0xff]  ;;  %v13830_v5 = vpop.f32.mrf.mxu0 }
 0x16a   : > { %v4313_v0 = vsel %vm12886_vm8, %v4304_v14, %v4312_v39  ;;  %v4331_v16 = vrot.slane %v4329_v28, 5  ;;  %v16983_v26 = vshll.u32 %v16982_v7, 16  ;;  %v10103_v14 = vld [vmem:[%s12515_s13 + $0x84] sm:$0xe]  ;;  %v13821_v28 = vpop.f32.mrf.mxu1  ;;  %v13848_v15 = vadd.f32 %v16993_v53, %v13538_v59 }
 0x16b   : > { %v4325_v8 = vor.u32 %v13683_v11, %v4323_v43  ;;  %v3726_v23 = vsel %vm12864_vm7, %v3724_v48, %v16981_v58  ;;  %v10173_v55 = vcombine.low %v4303_v52, %v4313_v0  ;;  %v4321_v3 = vor.u32 %v4320_v47, %v4317_v19  ;;  %v16984_v43 = vld [vmem:[#allocation25_spill] sm:$0xff] }
 0x16c   : > { %v13810_v18 = vrot.slane %v16983_v26, 6  ;;  %v10134_v11 = vcombine.low %v3723_v61, %v3726_v23  ;;  %v4334_v25 = vrot.slane %v4332_v45, 6  ;;  %v13815_v39 = vadd.f32 %v16984_v43, %v13505_v9  ;;  %v12246_v61 = vld [vmem:[%s12515_s13 + $0x88] sm:$0xf]  ;;  %v12247_v47 = vld [vmem:[%s12515_s13 + $0x8c] sm:$0x1] }
 0x16d   : > { %v4327_v10 = vrot.slane %v4325_v8, 4  ;;  %v13819_v48 = vadd.f32 %v16986_v46, %v13513_v21  ;;  %11556 = vmatprep.mubr.bf16.mxu1 %v10173_v55  ;;  %v4322_v58 = vrot.slane %v4321_v3, 4  ;;  %v10119_v52 = vrot.slane %v10103_v14, 9  ;;  %v10159_v23 = vld [vmem:[%s12515_s13 + $0x8c] sm:$0x3]  ;;  %v16988_v43 = vld [vmem:[#allocation11_spill] sm:$0xff]  ;;  %v13828_v46 = vpop.f32.mrf.mxu1 }
 0x16e   : > { %16985 = vst [vmem:[#allocation12_spill] sm:$0xff] %v13815_v39  ;;  %11509 = vmatmul.mubr.bf16.gmra.mxu0 %v10134_v11  ;;  %v3729_v19 = vrot.slane %v12246_v61, 5  ;;  %v3732_v0 = vrot.slane %v12247_v47, 5  ;;  %v4335_v45 = vor.u32 %v4334_v25, %v4331_v16  ;;  %v4338_v9 = vshrl.u32 %v10103_v14, 16  ;;  %16990 = vst [vmem:[#allocation27_spill] sm:$0xff] %v13828_v46 }
 0x16f   : > { %16987 = vst [vmem:[#allocation25_spill] sm:$0xff] %v13819_v48  ;;  %v4341_v26 = vshll.u32 %v10103_v14, 16  ;;  %v16989_v33 = vshrl.u32 %v16988_v43, 16  ;;  %16991 = vst [vmem:[#allocation11_spill] sm:$0xff] %v13830_v5  ;;  %v4326_v55 = vsel %vm12886_vm8, %v4322_v58, %v4325_v8  ;;  %v16992_v61 = vshll.u32 %v16988_v43, 16 }
 0x170   : > { %v3730_v11 = vsel %vm12864_vm7, %v10119_v52, %v3729_v19  ;;  %v3731_v3 = vrot.slane %v3729_v19, 4  ;;  %v10104_v16 = vld [vmem:[%s12515_s13 + $0x90] sm:$0xe]  ;;  %v4336_v14 = vsel %vm12886_vm8, %v4327_v10, %v4335_v45  ;;  %v4340_v25 = vrot.slane %v4338_v9, 5  ;;  %v10160_v46 = vld [vmem:[%s12515_s13 + $0x98] sm:$0x3]  ;;  %v13844_v52 = vpop.f32.mrf.mxu1  ;;  %v13850_v10 = vpop.f32.mrf.mxu0 }
 0x171   : > { %v4346_v21 = vrot.slane %v16989_v33, 5  ;;  %v4347_v47 = vrot.slane %v16992_v61, 6  ;;  %v4343_v33 = vrot.slane %v4341_v26, 6  ;;  %v4352_v60 = vshrl.u32 %v10159_v23, 16  ;;  %16994 = vst [vmem:[#allocation29_spill] sm:$0xff] %v13848_v15 }
 0x172   : > { %v10174_v5 = vcombine.low %v4326_v55, %v4336_v14  ;;  %v3733_v8 = vsel %vm12864_vm7, %v3731_v3, %v3732_v0  ;;  %v4355_v44 = vshll.u32 %v10159_v23, 16  ;;  %v10120_v26 = vrot.slane %v10104_v16, 9  ;;  %v12248_v55 = vld [vmem:[%s12515_s13 + $0x94] sm:$0xf]  ;;  %v12252_v48 = vld [vmem:[%s12515_s13 + $0xac] sm:$0xf] }
 0x173   : > { %v4348_v58 = vor.u32 %v4347_v47, %v4346_v21  ;;  %v10135_v19 = vcombine.low %v3730_v11, %v3733_v8  ;;  %v4344_v43 = vor.u32 %v4343_v33, %v4340_v25  ;;  %v4354_v61 = vrot.slane %v4352_v60, 5  ;;  %v13855_v60 = vpop.f32.mrf.mxu0 }
 0x174   : > { %11557 = vmatmul.mubr.bf16.gmra.mxu1 %v10174_v5  ;;  %v4357_v9 = vrot.slane %v4355_v44, 6  ;;  %v3736_v14 = vrot.slane %v12248_v55, 5  ;;  %v4361_v23 = vshrl.u32 %v10104_v16, 16  ;;  %v4364_v21 = vshll.u32 %v10104_v16, 16  ;;  %v13859_v5 = vpop.f32.mrf.mxu1 }
 0x175   : > { %v4350_v45 = vrot.slane %v4348_v58, 4  ;;  %11512 = vmatprep.mubr.bf16.mxu0 %v10135_v19  ;;  %v4345_v0 = vrot.slane %v4344_v43, 4  ;;  %v16995_v11 = vshrl.u32 %v16982_v7, 16  ;;  %v4375_v44 = vshrl.u32 %v10160_v46, 16  ;;  %16996 = vst [vmem:[#allocation60_spill] sm:$0xff] %v13859_v5 }
 0x176   : > { %v4358_v47 = vor.u32 %v4357_v9, %v4354_v61  ;;  %v3737_v59 = vsel %vm12864_vm7, %v10120_v26, %v3736_v14  ;;  %v3738_v53 = vrot.slane %v3736_v14, 4  ;;  %v4363_v16 = vrot.slane %v4361_v23, 5  ;;  %v13870_v26 = vpop.f32.mrf.mxu0  ;;  %v10161_v23 = vld [vmem:[%s12515_s13 + $0xa4] sm:$0x3]  ;;  %v10162_v5 = vld [vmem:[%s12515_s13 + $0xb0] sm:$0x3] }
 0x177   : > { %v4369_v3 = vrot.slane %v16995_v11, 5  ;;  %v4349_v25 = vsel %vm12886_vm8, %v4345_v0, %v4348_v58  ;;  %v4366_v33 = vrot.slane %v4364_v21, 6  ;;  %v16997_v19 = vrot.slane %v13748_v51, 5  ;;  %v10105_v0 = vld [vmem:[%s12515_s13 + $0x9c] sm:$0xe] }
 0x178   : > { %v4359_v8 = vsel %vm12886_vm8, %v4350_v45, %v4358_v47  ;;  %v4377_v61 = vrot.slane %v4375_v44, 5  ;;  %v4378_v9 = vshll.u32 %v10160_v46, 16  ;;  %v13880_v11 = vadd.f32 %v13540_v12, %v13560_v40  ;;  %v13882_v46 = vpop.f32.mrf.mxu1  ;;  %v12251_v44 = vld [vmem:[%s12515_s13 + $0xa4] sm:$0x1]  ;;  %v13890_v40 = vpop.f32.mrf.mxu0 }
 0x179   : > { %v4371_v7 = vor.u32 %v13810_v18, %v4369_v3  ;;  %v3740_v43 = vsel %vm12864_vm7, %v3738_v53, %v16997_v19  ;;  %v10175_v55 = vcombine.low %v4349_v25, %v4359_v8  ;;  %v4367_v58 = vor.u32 %v4366_v33, %v4363_v16  ;;  %v13875_v18 = vld [vmem:[%s12515_s13 + $0xb0] sm:$0x1]  ;;  %v16999_v19 = vld [vmem:[#allocation15_spill] sm:$0xff] }
 0x17a   : > { %v10136_v14 = vcombine.low %v3737_v59, %v3740_v43  ;;  %v4380_v51 = vrot.slane %v4378_v9, 6  ;;  %16998 = vst [vmem:[#allocation61_spill] sm:$0xff] %v13880_v11  ;;  %v10121_v47 = vrot.slane %v10105_v0, 9  ;;  %v12250_v59 = vld [vmem:[%s12515_s13 + $0xa0] sm:$0xf]  ;;  %v3746_v25 = vrot.slane %v12251_v44, 5  ;;  %v13888_v12 = vpop.f32.mrf.mxu1 }
 0x17b   : > { %v4373_v21 = vrot.slane %v4371_v7, 4  ;;  %11560 = vmatprep.mubr.bf16.mxu1 %v10175_v55  ;;  %v4368_v3 = vrot.slane %v4367_v58, 4  ;;  %v3743_v53 = vrot.slane %v12250_v59, 5  ;;  %v4384_v33 = vshrl.u32 %v10105_v0, 16  ;;  %17001 = vst [vmem:[#allocation15_spill] sm:$0xff] %v13890_v40 }
 0x17c   : > { %11513 = vmatmul.mubr.bf16.gmra.mxu0 %v10136_v14  ;;  %v4381_v16 = vor.u32 %v4380_v51, %v4377_v61  ;;  %v4387_v8 = vshll.u32 %v10105_v0, 16  ;;  %v17000_v43 = vshrl.u32 %v16999_v19, 16  ;;  %v17002_v59 = vshll.u32 %v16999_v19, 16  ;;  %v10106_v61 = vld [vmem:[%s12515_s13 + $0xa8] sm:$0xe]  ;;  %v13902_v40 = vpop.f32.mrf.mxu1 }
 0x17d   : > { %v4372_v55 = vsel %vm12886_vm8, %v4368_v3, %v4371_v7  ;;  %v3744_v14 = vsel %vm12864_vm7, %v10121_v47, %v3743_v53  ;;  %v3745_v58 = vrot.slane %v3743_v53, 4  ;;  %v4386_v51 = vrot.slane %v4384_v33, 5  ;;  %v17003_v53 = vld [vmem:[#allocation17_spill] sm:$0xff] }
 0x17e   : > { %v4392_v9 = vrot.slane %v17000_v43, 5  ;;  %v4393_v44 = vrot.slane %v17002_v59, 6  ;;  %v4382_v0 = vsel %vm12886_vm8, %v4373_v21, %v4381_v16  ;;  %v4389_v43 = vrot.slane %v4387_v8, 6  ;;  %v13908_v21 = vpop.f32.mrf.mxu0 }
 0x17f   : > { %v4398_v45 = vshrl.u32 %v10161_v23, 16  ;;  %v10176_v11 = vcombine.low %v4372_v55, %v4382_v0  ;;  %v3747_v7 = vsel %vm12864_vm7, %v3745_v58, %v3746_v25  ;;  %v4401_v47 = vshll.u32 %v10161_v23, 16 }
 0x180   : > { %v4394_v3 = vor.u32 %v4393_v44, %v4392_v9  ;;  %v17004_v19 = vshll.u32 %v17003_v53, 16  ;;  %v10137_v15 = vcombine.low %v3744_v14, %v3747_v7  ;;  %v4390_v20 = vor.u32 %v4389_v43, %v4386_v51  ;;  %v13913_v44 = vpop.f32.mrf.mxu1  ;;  %v13915_v14 = vpop.f32.mrf.mxu0  ;;  %v10107_v43 = vld [vmem:[%s12515_s13 + $0xb4] sm:$0xe] }
 0x181   : > { %v4400_v50 = vrot.slane %v4398_v45, 5  ;;  %11561 = vmatmul.mubr.bf16.gmra.mxu1 %v10176_v11  ;;  %v4403_v33 = vrot.slane %v4401_v47, 6  ;;  %v10122_v8 = vrot.slane %v10106_v61, 9  ;;  %v3750_v39 = vrot.slane %v12252_v48, 5  ;;  %17006 = vst [vmem:[#allocation17_spill] sm:$0xff] %v13913_v44  ;;  %17007 = vst [vmem:[#allocation62_spill] sm:$0xff] %v13915_v14 }
 0x182   : > { %v4416_v59 = vrot.slane %v17004_v19, 6  ;;  %v4396_v16 = vrot.slane %v4394_v3, 4  ;;  %11516 = vmatprep.mubr.bf16.mxu0 %v10137_v15  ;;  %v4391_v55 = vrot.slane %v4390_v20, 4  ;;  %v4407_v25 = vshrl.u32 %v10106_v61, 16  ;;  %v13922_v7 = vpop.f32.mrf.mxu0  ;;  %v10108_v44 = vld [vmem:[%s12515_s13 + $0xc0] sm:$0xe] }
 0x183   : > { %v4410_v9 = vshll.u32 %v10106_v61, 16  ;;  %v17005_v23 = vshrl.u32 %v17003_v53, 16  ;;  %v4404_v45 = vor.u32 %v4403_v33, %v4400_v50  ;;  %v3751_v11 = vsel %vm12864_vm7, %v10122_v8, %v3750_v39  ;;  %17008 = vst [vmem:[#allocation63_spill] sm:$0xff] %v13922_v7 }
 0x184   : > { %v3752_v0 = vrot.slane %v3750_v39, 4  ;;  %v4421_v51 = vshrl.u32 %v10162_v5, 16  ;;  %v4395_v20 = vsel %vm12886_vm8, %v4391_v55, %v4394_v3  ;;  %v4409_v15 = vrot.slane %v4407_v25, 5  ;;  %v10163_v55 = vld [vmem:[%s12515_s13 + $0xbc] sm:$0x3] }
 0x185   : > { %v4415_v58 = vrot.slane %v17005_v23, 5  ;;  %v4412_v48 = vrot.slane %v4410_v9, 6  ;;  %v4405_v47 = vsel %vm12886_vm8, %v4396_v16, %v4404_v45  ;;  %v17009_v50 = vrot.slane %v13875_v18, 5  ;;  %v13934_v25 = vld [vmem:[%s12515_s13 + $0xc8] sm:$0x1] }
 0x186   : > { %v4423_v39 = vrot.slane %v4421_v51, 5  ;;  %v4424_v19 = vshll.u32 %v10162_v5, 16  ;;  %v10177_v33 = vcombine.low %v4395_v20, %v4405_v47  ;;  %v12254_v45 = vld [vmem:[%s12515_s13 + $0xb8] sm:$0xf]  ;;  %v12255_v5 = vld [vmem:[%s12515_s13 + $0xbc] sm:$0x1]  ;;  %v13941_v20 = vpop.f32.mrf.mxu0 }
 0x187   : > { %v4417_v61 = vor.u32 %v4416_v59, %v4415_v58  ;;  %v3754_v53 = vsel %vm12864_vm7, %v3752_v0, %v17009_v50  ;;  %v4413_v8 = vor.u32 %v4412_v48, %v4409_v15  ;;  %v13931_v59 = vpop.f32.mrf.mxu1  ;;  %v10123_v58 = vrot.slane %v10107_v43, 9  ;;  %17012 = vst [vmem:[#allocation66_spill] sm:$0xff] %v13941_v20  ;;  %v17013_v50 = vld [vmem:[#allocation19_spill] sm:$0xff] }
 0x188   : > { %v10138_v3 = vcombine.low %v3751_v11, %v3754_v53  ;;  %17010 = vst [vmem:[#allocation64_spill] sm:$0xff] %v13931_v59  ;;  %v4426_v23 = vrot.slane %v4424_v19, 6  ;;  %11564 = vmatprep.mubr.bf16.mxu1 %v10177_v33  ;;  %v3757_v0 = vrot.slane %v12254_v45, 5  ;;  %v3760_v51 = vrot.slane %v12255_v5, 5 }
 0x189   : > { %v4419_v16 = vrot.slane %v4417_v61, 4  ;;  %v4414_v18 = vrot.slane %v4413_v8, 4  ;;  %v13939_v11 = vpop.f32.mrf.mxu1  ;;  %v4430_v48 = vshrl.u32 %v10107_v43, 16  ;;  %v4433_v47 = vshll.u32 %v10107_v43, 16 }
 0x18a   : > { %11517 = vmatmul.mubr.bf16.gmra.mxu0 %v10138_v3  ;;  %17011 = vst [vmem:[#allocation65_spill] sm:$0xff] %v13939_v11  ;;  %v4427_v15 = vor.u32 %v4426_v23, %v4423_v39  ;;  %v17014_v53 = vshrl.u32 %v17013_v50, 16  ;;  %v3758_v3 = vsel %vm12864_vm7, %v10123_v58, %v3757_v0  ;;  %v3759_v8 = vrot.slane %v3757_v0, 4  ;;  %v10164_v0 = vld [vmem:[%s12515_s13 + $0xc8] sm:$0x3]  ;;  %v13959_v11 = vpop.f32.mrf.mxu0 }
 0x18b   : > { %v4418_v33 = vsel %vm12886_vm8, %v4414_v18, %v4417_v61  ;;  %v17015_v45 = vshll.u32 %v17013_v50, 16  ;;  %v4432_v39 = vrot.slane %v4430_v48, 5  ;;  %v4435_v23 = vrot.slane %v4433_v47, 6  ;;  %v13954_v20 = vpop.f32.mrf.mxu1  ;;  %17017 = vst [vmem:[#allocation67_spill] sm:$0xff] %v13959_v11  ;;  %v17018_v50 = vld [vmem:[#allocation20_spill] sm:$0xff] }
 0x18c   : > { %v4438_v19 = vrot.slane %v17014_v53, 5  ;;  %v4428_v9 = vsel %vm12886_vm8, %v4419_v16, %v4427_v15  ;;  %v4444_v43 = vshrl.u32 %v10163_v55, 16  ;;  %17016 = vst [vmem:[#allocation19_spill] sm:$0xff] %v13954_v20  ;;  %v3761_v61 = vsel %vm12864_vm7, %v3759_v8, %v3760_v51  ;;  %v13975_v11 = vld [vmem:[%s12515_s13 + $0x1c] sm:$0xf] }
 0x18d   : > { %v4439_v5 = vrot.slane %v17015_v45, 6  ;;  %v10178_v53 = vcombine.low %v4418_v33, %v4428_v9  ;;  %v4447_v58 = vshll.u32 %v10163_v55, 16  ;;  %v17019_v45 = vshll.u32 %v17018_v50, 16  ;;  %v12256_v33 = vld [vmem:[%s12515_s13 + $0xc4] sm:$0xf]  ;;  %17023 = vst [vmem:[#allocation69_spill] sm:$0xff] %v13975_v11 }
 0x18e   : > { %v10139_v16 = vcombine.low %v3758_v3, %v3761_v61  ;;  %v4436_v15 = vor.u32 %v4435_v23, %v4432_v39  ;;  %v4446_v48 = vrot.slane %v4444_v43, 5  ;;  %v10124_v9 = vrot.slane %v10108_v44, 9  ;;  %v13968_v39 = vpop.f32.mrf.mxu1 }
 0x18f   : > { %v4440_v18 = vor.u32 %v4439_v5, %v4438_v19  ;;  %v4462_v7 = vrot.slane %v17019_v45, 6  ;;  %11565 = vmatmul.mubr.bf16.gmra.mxu1 %v10178_v53  ;;  %v4449_v14 = vrot.slane %v4447_v58, 6  ;;  %v3764_v51 = vrot.slane %v12256_v33, 5  ;;  %v13964_v19 = vpop.f32.mrf.mxu0  ;;  %17022 = vst [vmem:[#allocation68_spill] sm:$0xff] %v13968_v39  ;;  %v12123_v58 = vld [vmem:[%s12515_s13 + $0x18] sm:$0xff]  }
 0x190   : > { %17020 = vst [vmem:[#allocation20_spill] sm:$0xff] %v13964_v19  ;;  %11520 = vmatprep.mubr.bf16.mxu0 %v10139_v16  ;;  %v4437_v55 = vrot.slane %v4436_v15, 4  ;;  %v4453_v8 = vshrl.u32 %v10108_v44, 16  ;;  %v4456_v5 = vshll.u32 %v10108_v44, 16  ;;  %v17021_v45 = vshrl.u32 %v17018_v50, 16 }
 0x191   : > { %v4442_v47 = vrot.slane %v4440_v18, 4  ;;  %v4450_v23 = vor.u32 %v4449_v14, %v4446_v48  ;;  %v3765_v43 = vsel %vm12864_vm7, %v10124_v9, %v3764_v51  ;;  %v3766_v53 = vrot.slane %v3764_v51, 4  ;;  %v10245_v33 = vld [vmem:[%s12515_s13 + $0x18] sm:$0xf] }
 0x192   : > { %v4461_v3 = vrot.slane %v17021_v45, 5  ;;  %v4467_v61 = vshrl.u32 %v10164_v0, 16  ;;  %v4441_v16 = vsel %vm12886_vm8, %v4437_v55, %v4440_v18  ;;  %v4455_v44 = vrot.slane %v4453_v8, 5  ;;  %v13979_v45 = vpop.f32.mrf.mxu0  ;;  %v10247_v18 = vld [vmem:[%s12515_s13 + $0x20] sm:$0x1]  ;;  %v13988_v55 = vpop.f32.mrf.mxu1 }
 0x193   : > { %v4458_v50 = vrot.slane %v4456_v5, 6  ;;  %v4451_v14 = vsel %vm12886_vm8, %v4442_v47, %v4450_v23  ;;  %v17024_v48 = vrot.slane %v13934_v25, 5  ;;  %v4470_v39 = vshll.u32 %v10164_v0, 16  ;;  %v10248_v5 = vld [vmem:[%s12515_s13 + $0x24] sm:$0xf] }
 0x194   : > { %v4463_v15 = vor.u32 %v4462_v7, %v4461_v3  ;;  %v4469_v51 = vrot.slane %v4467_v61, 5  ;;  %v10179_v19 = vcombine.low %v4441_v16, %v4451_v14  ;;  %v5233_v25 = vshrl.u32 %v10245_v33, 16  ;;  %v13994_v0 = vpop.f32.mrf.mxu0 }
 0x195   : > { %v3768_v9 = vsel %vm12864_vm7, %v3766_v53, %v17024_v48  ;;  %v4459_v59 = vor.u32 %v4458_v50, %v4455_v44  ;;  %v4472_v8 = vrot.slane %v4470_v39, 6  ;;  %v5236_v3 = vshll.u32 %v10245_v33, 16  ;;  %v13992_v53 = vpop.f32.mrf.mxu1  ;;  %17026 = vst [vmem:[#allocation71_spill] sm:$0xff] %v13994_v0  ;;  %v13998_v39 = vld [vmem:[%s12515_s13 + $0x28] sm:$0xf] }
 0x196   : > { %v10140_v20 = vcombine.low %v3765_v43, %v3768_v9  ;;  %v4465_v7 = vrot.slane %v4463_v15, 4  ;;  %11568 = vmatprep.mubr.bf16.mxu1 %v10179_v19  ;;  %v16795_v23 = vshll.u32 %v13975_v11, 16  ;;  %17025 = vst [vmem:[#allocation70_spill] sm:$0xff] %v13992_v53  ;;  %v16796_v61 = vshrl.u32 %v13975_v11, 16  ;;  %17027 = vst [vmem:[#allocation72_spill] sm:$0xff] %v13998_v39  ;;  %v12130_v53 = vld [vmem:[#allocation2 + $0x2f0] sm:$0xff]  }
 0x197   : > { %v4460_v47 = vrot.slane %v4459_v59, 4  ;;  %v4473_v43 = vor.u32 %v4472_v8, %v4469_v51  ;;  %v5252_v16 = vshll.u32 %v10247_v18, 16  ;;  %v5238_v19 = vrot.slane %v5236_v3, 5  ;;  %v10250_v44 = vld [vmem:[%s12515_s13 + $0x2c] sm:$0x1]  ;;  %v14005_v50 = vpop.f32.mrf.mxu1 }
 0x198   : > { %11521 = vmatmul.mubr.bf16.gmra.mxu0 %v10140_v20  ;;  %v5235_v20 = vrot.slane %v5233_v25, 4  ;;  %v5244_v33 = vrot.slane %v16795_v23, 5  ;;  %17028 = vst [vmem:[#allocation73_spill] sm:$0xff] %v14005_v50  ;;  %v5248_v14 = vrot.slane %v16796_v61, 4  ;;  %v5257_v18 = vshrl.u32 %v10248_v5, 16  ;;  %v14013_v25 = vpop.f32.mrf.mxu0 }
 0x199   : > { %11588 = vmatprep.mubr.bf16.mxu0 %v12123_v58  ;;  %v4464_v59 = vsel %vm12886_vm8, %v4460_v47, %v4463_v15  ;;  %v4474_v58 = vsel %vm12886_vm8, %v4465_v7, %v4473_v43  ;;  %v5254_v48 = vrot.slane %v5252_v16, 5  ;;  %v12124_v15 = vld [vmem:[%s12515_s13 + $0x24] sm:$0xff]   ;;  %v5260_v8 = vshll.u32 %v10248_v5, 16  ;;  %v10251_v47 = vld [vmem:[%s12515_s13 + $0x30] sm:$0xf]  ;;  %17029 = vst [vmem:[#allocation74_spill] sm:$0xff] %v14013_v25  ;;  %v14021_v5 = vpop.f32.mrf.mxu1 }
 0x19a   : > { %v10180_v9 = vcombine.low %v4464_v59, %v4474_v58  ;;  %v5239_v51 = vor.u32 %v5238_v19, %v5235_v20  ;;  %v5249_v3 = vor.u32 %v5248_v14, %v5244_v33  ;;  %v16803_v23 = vshll.u32 %v13998_v39, 16  ;;  %v12127_v43 = vld [vmem:[%s12515_s13 + $0x30] sm:$0xff]   ;;  %17031 = vst [vmem:[#allocation76_spill] sm:$0xff] %v14021_v5  ;;  %v14023_v61 = vpop.f32.mrf.mxu0  ;;  %v10253_v11 = vld [vmem:[%s12515_s13 + $0x38] sm:$0x1]  ;;  %v12131_v25 = vld [vmem:[%s12515_s13 + $0x48] sm:$0xff]  }
 0x19b   : > { %v16806_v0 = vshrl.u32 %v13998_v39, 16  ;;  %v5276_v7 = vshll.u32 %v10250_v44, 16  ;;  %v5259_v59 = vrot.slane %v5257_v18, 4  ;;  %v5262_v58 = vrot.slane %v5260_v8, 5  ;;  %v14019_v20 = vld [vmem:[%s12515_s13 + $0x34] sm:$0xf] }
 0x19c   : > { %11569 = vmatmul.mubr.bf16.gmra.mxu1 %v10180_v9  ;;  %v5240_v16 = vrot.slane %v5239_v51, 4  ;;  %17030 = vst [vmem:[#allocation75_spill] sm:$0xff] %v14019_v20  ;;  %v12129_v19 = vld [vmem:[#allocation2 + $0x2b0] sm:$0xff]   ;;  %17032 = vst [vmem:[#allocation77_spill] sm:$0xff] %v14023_v61  ;;  %v5250_v14 = vrot.slane %v5249_v3, 4  ;;  %v5268_v31 = vrot.slane %v16803_v23, 5  ;;  %v14035_v5 = vpop.f32.mrf.mxu0 }
 0x19d   : > { %v5272_v44 = vrot.slane %v16806_v0, 4  ;;  %v5263_v51 = vor.u32 %v5262_v58, %v5259_v59  ;;  %v10254_v18 = vld [vmem:[%s12515_s13 + $0x3c] sm:$0xf]  ;;  %v14033_v8 = vld [vmem:[#allocation2 + $0x2a8] sm:$0xff]   ;;  %17034 = vst [vmem:[#allocation8_spill] sm:$0xff] %v14035_v5  ;;  %v5278_v39 = vrot.slane %v5276_v7, 5  ;;  %v14043_v59 = vpop.f32.mrf.mxu1 }
 0x19e   : > { %v5245_v9 = vsel %vm12548_vm2, %v5240_v16, %v5244_v33  ;;  %v5255_v3 = vsel %vm12548_vm2, %v5250_v14, %v5254_v48  ;;  %v5281_v0 = vshrl.u32 %v10251_v47, 16  ;;  %v14041_v16 = vld [vmem:[%s12515_s13 + $0x40] sm:$0xf]  ;;  %17036 = vst [vmem:[#allocation79_spill] sm:$0xff] %v14043_v59  ;;  %v17038_v5 = vld [vmem:[#allocation18_spill] sm:$0xff]  ;;  %v16807_v7 = vshll.u32 %v14019_v20, 16  ;;  %v14058_v50 = vpop.f32.mrf.mxu0 }
 0x19f   : > { %v5273_v23 = vor.u32 %v5272_v44, %v5268_v31  ;;  %v10293_v61 = vcombine.low %v5245_v9, %v5255_v3  ;;  %v5264_v33 = vrot.slane %v5263_v51, 4  ;;  %17035 = vst [vmem:[#allocation78_spill] sm:$0xff] %v14041_v16  ;;  %v17037_v58 = vld [vmem:[#allocation16_spill] sm:$0xff]  ;;  %v5300_v3 = vshll.u32 %v10253_v11, 16  ;;  %v14056_v59 = vpop.f32.mrf.mxu1  ;;  %17041 = vst [vmem:[#allocation80_spill] sm:$0xff] %v14058_v50 }
 0x1a0   : > { %11589 = vmatmul.mubr.bf16.vlgmr.msra.gmra.mxu0 %v12124_v15  ;;  %v5284_v15 = vshll.u32 %v10251_v47, 16  ;;  %v14047_v48 = vadd.f32 %v17038_v5, %v17037_v58  ;;  %v5283_v44 = vrot.slane %v5281_v0, 4  ;;  %17040 = vst [vmem:[#allocation18_spill] sm:$0xff] %v14056_v59  ;;  %v17042_v5 = vld [vmem:[#allocation22_spill] sm:$0xff]  ;;  %v17048_v50 = vshrl.u32 %v14019_v20, 16 }
 0x1a1   : > { %11669 = vmatpush3.bf16.msra.mxu0 %v13679_v54  ;;  %11592 = vmatprep.mubr.bf16.mxu0 %v12127_v43  ;;  %v5274_v14 = vrot.slane %v5273_v23, 4  ;;  %v12128_v54 = vld [vmem:[%s12515_s13 + $0x3c] sm:$0xff]   ;;  %v10256_v43 = vld [vmem:[%s12515_s13 + $0x44] sm:$0x1]  ;;  %v5269_v9 = vsel %vm12548_vm2, %v5264_v33, %v5268_v31  ;;  %v17043_v23 = vld [vmem:[#allocation21_spill] sm:$0xff]  ;;  %v5305_v31 = vshrl.u32 %v10254_v18, 16 }
 0x1a2   : > { %11670 = vmatprep.subr.bf16.mxu0 %v12129_v19  ;;  %17039 = vst [vmem:[#allocation16_spill] sm:$0xff] %v14047_v48  ;;  %11636 = vmatprep.mubr.bf16.mxu1 %v10293_v61  ;;  %v5286_v47 = vrot.slane %v5284_v15, 5  ;;  %v14062_v0 = vadd.f32 %v17043_v23, %v17042_v5  ;;  %v5292_v61 = vrot.slane %v16807_v7, 5  ;;  %v17045_v33 = vld [vmem:[#allocation24_spill] sm:$0xff]  ;;  %v17046_v15 = vld [vmem:[#allocation23_spill] sm:$0xff]  ;;  %v5296_v59 = vrot.slane %v17048_v50, 4 }
 0x1a3   : > { %v5279_v58 = vsel %vm12548_vm2, %v5274_v14, %v5278_v39  ;;  %v14070_v11 = vadd.f32 %v17046_v15, %v17045_v33  ;;  %v5302_v5 = vrot.slane %v5300_v3, 5  ;;  %v5307_v23 = vrot.slane %v5305_v31, 4  ;;  %v12137_v7 = vld [vmem:[#allocation2 + $0x2a0] sm:$0xff]   ;;  %v12132_v15 = vld [vmem:[%s12515_s13 + $0x54] sm:$0xff]   ;;  %v10262_v20 = vld [vmem:[%s12515_s13 + $0x5c] sm:$0x1] }
 0x1a4   : > { %17044 = vst [vmem:[#allocation22_spill] sm:$0xff] %v14062_v0  ;;  %v10294_v51 = vcombine.low %v5269_v9, %v5279_v58  ;;  %v5287_v48 = vor.u32 %v5286_v47, %v5283_v44  ;;  %v5308_v39 = vshll.u32 %v10254_v18, 16  ;;  %v16808_v14 = vshll.u32 %v14041_v16, 16  ;;  %v14079_v47 = vpop.f32.mrf.mxu0  ;;  %v17049_v18 = vld [vmem:[#allocation28_spill] sm:$0xff] }
 0x1a5   : > { %11671 = vmatpush3.bf16.msra.mxu0 %v12129_v19  ;;  %17047 = vst [vmem:[#allocation21_spill] sm:$0xff] %v14070_v11  ;;  %v14076_v19 = vpop.f32.mrf.mxu1  ;;  %v5297_v9 = vor.u32 %v5296_v59, %v5292_v61  ;;  %v16809_v44 = vshrl.u32 %v14041_v16, 16  ;;  %v5324_v50 = vshll.u32 %v10256_v43, 16  ;;  %v14083_v3 = vadd.f32 %v17049_v18, %v13525_v49  ;;  %v14094_v43 = vld [vmem:[%s12515_s13 + $0x4c] sm:$0xf]  ;;  %v14123_v0 = vld [vmem:[#allocation2 + $0x2e0] sm:$0xff]  }
 0x1a6   : > { %11672 = vmatprep.subr.bf16.mxu0 %v14033_v8  ;;  %11637 = vmatmul.mubr.bf16.vlgmr.msra.gmra.mxu1 %v10294_v51  ;;  %v5288_v33 = vrot.slane %v5287_v48, 4  ;;  %v14087_v58 = vadd.f32 %v13528_v34, %v13546_v6  ;;  %v5310_v48 = vrot.slane %v5308_v39, 5  ;;  %v5316_v59 = vrot.slane %v16808_v14, 5  ;;  %v17051_v51 = vld [vmem:[#allocation32_spill] sm:$0xff]  ;;  %v14107_v39 = vpop.f32.mrf.mxu0  ;;  %v17053_v18 = vld [vmem:[#allocation33_spill] sm:$0xff] }
 0x1a7   : > { %17050 = vst [vmem:[#allocation24_spill] sm:$0xff] %v14083_v3  ;;  %11717 = vmatpush3.bf16.msra.mxu1 %v13719_v41  ;;  %v14098_v31 = vadd.f32 %v17051_v51, %v13571_v27  ;;  %v5298_v34 = vrot.slane %v5297_v9, 4  ;;  %v5320_v6 = vrot.slane %v16809_v44, 4  ;;  %v10259_v41 = vld [vmem:[%s12515_s13 + $0x50] sm:$0x1]  ;;  %v14111_v27 = vadd.f32 %v17053_v18, %v13587_v37  ;;  %v17054_v51 = vld [vmem:[#allocation35_spill] sm:$0xff] }
 0x1a8   : > { %11593 = vmatmul.mubr.bf16.gmra.mxu0 %v12128_v54  ;;  %v10257_v54 = vld [vmem:[%s12515_s13 + $0x48] sm:$0xf]  ;;  %v5293_v49 = vsel %vm12548_vm2, %v5288_v33, %v5292_v61  ;;  %11718 = vmatprep.subr.bf16.mxu1 %v12130_v53  ;;  %v14115_v61 = vadd.f32 %v17054_v51, %v13601_v30  ;;  %v5311_v33 = vor.u32 %v5310_v48, %v5307_v23  ;;  %v5326_v9 = vrot.slane %v5324_v50, 5  ;;  %v10260_v14 = vld [vmem:[%s12515_s13 + $0x54] sm:$0xf]  ;;  %v12141_v44 = vld [vmem:[#allocation2 + $0x298] sm:$0xff]   ;;  %v14125_v30 = vpop.f32.mrf.mxu0 }
 0x1a9   : > { %11596 = vmatprep.mubr.bf16.mxu0 %v12131_v25  ;;  %17052 = vst [vmem:[#allocation23_spill] sm:$0xff] %v14098_v31  ;;  %11673 = vmatpush3.bf16.msra.mxu0 %v14033_v8  ;;  %v12134_v25 = vld [vmem:[#allocation2 + $0x2e8] sm:$0xff]   ;;  %v14118_v31 = vpop.f32.mrf.mxu1  ;;  %v5303_v8 = vsel %vm12548_vm2, %v5298_v34, %v5302_v5  ;;  %v5321_v3 = vor.u32 %v5320_v6, %v5316_v59  ;;  %v5329_v11 = vshrl.u32 %v10257_v54, 16  ;;  %v5332_v37 = vshll.u32 %v10257_v54, 16  ;;  %v12135_v18 = vld [vmem:[%s12515_s13 + $0x60] sm:$0xff]   ;;  %v14135_v5 = vld [vmem:[#allocation2 + $0x290] sm:$0xff]  }
 0x1aa   : > { %11674 = vmatprep.subr.bf16.mxu0 %v12137_v7  ;;  %17055 = vst [vmem:[#allocation28_spill] sm:$0xff] %v14118_v31  ;;  %17056 = vst [vmem:[#allocation32_spill] sm:$0xff] %v14125_v30  ;;  %v14129_v23 = vadd.f32 %v13583_v29, %v13612_v4  ;;  %v10295_v50 = vcombine.low %v5293_v49, %v5303_v8  ;;  %v5312_v48 = vrot.slane %v5311_v33, 4  ;;  %v16814_v51 = vshll.u32 %v14094_v43, 16  ;;  %v14133_v31 = vld [vmem:[%s12515_s13 + $0x58] sm:$0xf]  ;;  %v14139_v30 = vpop.f32.mrf.mxu0 }
 0x1ab   : > { %11719 = vmatpush3.bf16.msra.mxu1 %v12130_v53  ;;  %v5322_v34 = vrot.slane %v5321_v3, 4  ;;  %v5331_v54 = vrot.slane %v5329_v11, 4  ;;  %v5334_v6 = vrot.slane %v5332_v37, 5  ;;  %v16815_v16 = vshrl.u32 %v14094_v43, 16  ;;  %17057 = vst [vmem:[#allocation33_spill] sm:$0xff] %v14139_v30  ;;  %v14147_v3 = vpop.f32.mrf.mxu1  ;;  %v12153_v30 = vld [vmem:[#allocation2 + $0x280] sm:$0xff]  }
 0x1ac   : > { %11720 = vmatprep.subr.bf16.mxu1 %v12134_v25  ;;  %11640 = vmatprep.mubr.bf16.mxu1 %v10295_v50  ;;  %v5317_v29 = vsel %vm12548_vm2, %v5312_v48, %v5316_v59  ;;  %v5340_v4 = vrot.slane %v16814_v51, 5  ;;  %v5348_v53 = vshll.u32 %v10259_v41, 16  ;;  %v1721_v11 = vadd.f32 %v13787_v2, %v13637_v63  ;;  %v14153_v8 = vpop.f32.mrf.mxu0  ;;  %v10263_v2 = vld [vmem:[%s12515_s13 + $0x60] sm:$0xf] }
 0x1ad   : > { %11675 = vmatpush3.bf16.msra.mxu0 %v12137_v7  ;;  %v5327_v7 = vsel %vm12548_vm2, %v5322_v34, %v5326_v9  ;;  %v5335_v49 = vor.u32 %v5334_v6, %v5331_v54  ;;  %v5344_v33 = vrot.slane %v16815_v16, 4  ;;  %v5353_v59 = vshrl.u32 %v10260_v14, 16  ;;  %v14159_v48 = vpop.f32.mrf.mxu1  ;;  %v12142_v6 = vld [vmem:[#allocation2 + $0x2d8] sm:$0xff]   ;;  %v17061_v51 = vld [vmem:[#allocation40_spill] sm:$0xff] }
 0x1ae   : > { %11676 = vmatprep.subr.bf16.mxu0 %v12141_v44  ;;  %v10296_v37 = vcombine.low %v5317_v29, %v5327_v7  ;;  %v5350_v41 = vrot.slane %v5348_v53, 5  ;;  %v14156_v50 = vadd.f32 %v13821_v28, %v1721_v11  ;;  %v5356_v63 = vshll.u32 %v10260_v14, 16  ;;  %v14163_v29 = vpop.f32.mrf.mxu0  ;;  %v17059_v28 = vld [vmem:[#allocation36_spill] sm:$0xff]  ;;  %v12149_v7 = vld [vmem:[#allocation2 + $0x288] sm:$0xff]  }
 0x1af   : > { %11721 = vmatpush3.bf16.msra.mxu1 %v12134_v25  ;;  %v5336_v9 = vrot.slane %v5335_v49, 4  ;;  %v5345_v34 = vor.u32 %v5344_v33, %v5340_v4  ;;  %v5355_v54 = vrot.slane %v5353_v59, 4  ;;  %v14167_v14 = vadd.f32 %v17059_v28, %v13618_v57  ;;  %v14171_v11 = vld [vmem:[%s12515_s13 + $0x64] sm:$0xf] }
 0x1b0   : > { %11597 = vmatmul.mubr.bf16.gmra.mxu0 %v12132_v15  ;;  %17058 = vst [vmem:[#allocation35_spill] sm:$0xff] %v14156_v50  ;;  %v16816_v15 = vshll.u32 %v14133_v31, 16  ;;  %11722 = vmatprep.subr.bf16.mxu1 %v14123_v0  ;;  %v5358_v25 = vrot.slane %v5356_v63, 5  ;;  %v5372_v53 = vshll.u32 %v10262_v20, 16  ;;  %v1722_v59 = vadd.f32 %v13806_v13, %v13676_v32  ;;  %v12136_v20 = vld [vmem:[%s12515_s13 + $0x6c] sm:$0xff]  }
 0x1b1   : > { %11600 = vmatprep.mubr.bf16.mxu0 %v12135_v18  ;;  %11677 = vmatpush3.bf16.msra.mxu0 %v12141_v44  ;;  %v16817_v18 = vshrl.u32 %v14133_v31, 16  ;;  %v14174_v44 = vpop.f32.mrf.mxu1  ;;  %v5341_v49 = vsel %vm12548_vm2, %v5336_v9, %v5340_v4  ;;  %v5346_v33 = vrot.slane %v5345_v34, 4  ;;  %v17060_v63 = vld [vmem:[#allocation38_spill] sm:$0xff]  ;;  %v14191_v16 = vadd.f32 %v17061_v51, %v13642_v56  ;;  %v12139_v34 = vld [vmem:[%s12515_s13 + $0x78] sm:$0xff]   ;;  %v10266_v50 = vld [vmem:[%s12515_s13 + $0x6c] sm:$0xf] }
 0x1b2   : > { %11641 = vmatmul.mubr.bf16.gmra.mxu1 %v10296_v37  ;;  %11678 = vmatprep.subr.bf16.mxu0 %v14135_v5  ;;  %v5364_v57 = vrot.slane %v16816_v15, 5  ;;  %v14183_v37 = vpop.f32.mrf.mxu0  ;;  %v14187_v28 = vadd.f32 %v17060_v63, %v13631_v1  ;;  %v5359_v4 = vor.u32 %v5358_v25, %v5355_v54  ;;  %v5374_v15 = vrot.slane %v5372_v53, 5  ;;  %v10265_v63 = vld [vmem:[%s12515_s13 + $0x68] sm:$0x1] }
 0x1b3   : > { %v5368_v9 = vrot.slane %v16817_v18, 4  ;;  %11723 = vmatpush3.bf16.msra.mxu1 %v14123_v0  ;;  %v14197_v32 = vpop.f32.mrf.mxu1  ;;  %v5351_v13 = vsel %vm12548_vm2, %v5346_v33, %v5350_v41  ;;  %v14202_v1 = vadd.f32 %v13844_v52, %v1722_v59  ;;  %v5377_v56 = vshrl.u32 %v10263_v2, 16 }
 0x1b4   : > { %17062 = vst [vmem:[#allocation36_spill] sm:$0xff] %v14197_v32  ;;  %11724 = vmatprep.subr.bf16.mxu1 %v12142_v6  ;;  %v14206_v51 = vpop.f32.mrf.mxu0  ;;  %v10297_v54 = vcombine.low %v5341_v49, %v5351_v13  ;;  %v5360_v25 = vrot.slane %v5359_v4, 4  ;;  %v5380_v18 = vshll.u32 %v10263_v2, 16  ;;  %v12146_v32 = vld [vmem:[#allocation2 + $0x2d0] sm:$0xff]   ;;  %v14211_v41 = vadd.f32 %v13645_v42, %v13648_v36 }
 0x1b5   : > { %17063 = vst [vmem:[#allocation38_spill] sm:$0xff] %v14202_v1  ;;  %11679 = vmatpush3.bf16.msra.mxu0 %v14135_v5  ;;  %17064 = vst [vmem:[#allocation40_spill] sm:$0xff] %v14206_v51  ;;  %v5369_v0 = vor.u32 %v5368_v9, %v5364_v57  ;;  %v5379_v52 = vrot.slane %v5377_v56, 4  ;;  %v16818_v53 = vshll.u32 %v14171_v11, 16  ;;  %v16819_v5 = vshrl.u32 %v14171_v11, 16  ;;  %v14215_v33 = vpop.f32.mrf.mxu1  ;;  %v12150_v51 = vld [vmem:[#allocation2 + $0x2c8] sm:$0xff]  }
 0x1b6   : > { %11680 = vmatprep.subr.bf16.mxu0 %v12149_v7  ;;  %v14217_v49 = vpop.f32.mrf.mxu0  ;;  %11644 = vmatprep.mubr.bf16.mxu1 %v10297_v54  ;;  %v5365_v2 = vsel %vm12548_vm2, %v5360_v25, %v5364_v57  ;;  %v5382_v4 = vrot.slane %v5380_v18, 5  ;;  %v5396_v42 = vshll.u32 %v10265_v63, 16  ;;  %v14228_v13 = vld [vmem:[%s12515_s13 + $0x70] sm:$0xf]  ;;  %v5401_v56 = vshrl.u32 %v10266_v50, 16 }
 0x1b7   : > { %v5370_v59 = vrot.slane %v5369_v0, 4  ;;  %v5388_v36 = vrot.slane %v16818_v53, 5  ;;  %v5392_v9 = vrot.slane %v16819_v5, 4  ;;  %11725 = vmatpush3.bf16.msra.mxu1 %v12142_v6  ;;  %v14230_v57 = vpop.f32.mrf.mxu1  ;;  %v10268_v25 = vld [vmem:[%s12515_s13 + $0x74] sm:$0x1]  ;;  %v5404_v0 = vshll.u32 %v10266_v50, 16 }
 0x1b8   : > { %11601 = vmatmul.mubr.bf16.gmra.mxu0 %v12136_v20  ;;  %v1725_v20 = vadd.f32 %v13850_v10, %v13714_v35  ;;  %v14232_v18 = vpop.f32.mrf.mxu0  ;;  %v5383_v63 = vor.u32 %v5382_v4, %v5379_v52  ;;  %v5398_v54 = vrot.slane %v5396_v42, 5  ;;  %11726 = vmatprep.subr.bf16.mxu1 %v12146_v32  ;;  %v14237_v35 = vld [vmem:[#allocation2 + $0x338] sm:$0xff]   ;;  %v5403_v53 = vrot.slane %v5401_v56, 4  ;;  %v12140_v5 = vld [vmem:[%s12515_s13 + $0x84] sm:$0xff]  }
 0x1b9   : > { %11604 = vmatprep.mubr.bf16.mxu0 %v12139_v34  ;;  %11681 = vmatpush3.bf16.msra.mxu0 %v12149_v7  ;;  %v5375_v34 = vsel %vm12548_vm2, %v5370_v59, %v5374_v15  ;;  %v5393_v6 = vor.u32 %v5392_v9, %v5388_v36  ;;  %v14243_v1 = vpop.f32.mrf.mxu1  ;;  %v5406_v59 = vrot.slane %v5404_v0, 5  ;;  %v16820_v50 = vshll.u32 %v14228_v13, 16 }
 0x1ba   : > { %11682 = vmatprep.subr.bf16.mxu0 %v12153_v30  ;;  %v10298_v10 = vcombine.low %v5365_v2, %v5375_v34  ;;  %v14240_v7 = vadd.f32 %v13882_v46, %v1725_v20  ;;  %v14245_v15 = vpop.f32.mrf.mxu0  ;;  %v5384_v52 = vrot.slane %v5383_v63, 4  ;;  %v16821_v4 = vshrl.u32 %v14228_v13, 16  ;;  %v12143_v2 = vld [vmem:[%s12515_s13 + $0x90] sm:$0xff]  }
 0x1bb   : > { %v5394_v42 = vrot.slane %v5393_v6, 4  ;;  %v5420_v46 = vshll.u32 %v10268_v25, 16  ;;  %v1723_v9 = vadd.f32 %v13855_v60, %v13745_v62  ;;  %v1726_v20 = vadd.f32 %v13870_v26, %v13755_v17  ;;  %v14254_v56 = vpop.f32.mrf.mxu1  ;;  %v10269_v62 = vld [vmem:[%s12515_s13 + $0x78] sm:$0xf]  ;;  %v14266_v60 = vld [vmem:[%s12515_s13 + $0x7c] sm:$0xf]  ;;  %11727 = vmatpush3.bf16.msra.mxu1 %v12146_v32 }
 0x1bc   : > { %17065 = vst [vmem:[#allocation81_spill] sm:$0xff] %v14240_v7  ;;  %11645 = vmatmul.mubr.bf16.gmra.mxu1 %v10298_v10  ;;  %17066 = vst [vmem:[#allocation82_spill] sm:$0xff] %v14254_v56  ;;  %v14256_v34 = vpop.f32.mrf.mxu0  ;;  %v5389_v63 = vsel %vm12548_vm2, %v5384_v52, %v5388_v36  ;;  %v5407_v0 = vor.u32 %v5406_v59, %v5403_v53  ;;  %v5412_v10 = vrot.slane %v16820_v50, 5  ;;  %v5416_v25 = vrot.slane %v16821_v4, 4  ;;  %v10271_v53 = vld [vmem:[%s12515_s13 + $0x80] sm:$0x1] }
 0x1bd   : > { %11683 = vmatpush3.bf16.msra.mxu0 %v12153_v30  ;;  %v5399_v17 = vsel %vm12548_vm2, %v5394_v42, %v5398_v54  ;;  %v14272_v26 = vadd.f32 %v13888_v12, %v1723_v9  ;;  %v14275_v30 = vadd.f32 %v13902_v40, %v1726_v20  ;;  %11728 = vmatprep.subr.bf16.mxu1 %v12150_v51  ;;  %v12154_v36 = vld [vmem:[#allocation2 + $0x2c0] sm:$0xff]   ;;  %v14278_v6 = vpop.f32.mrf.mxu1  ;;  %v5422_v54 = vrot.slane %v5420_v46, 5  ;;  %v17072_v56 = vld [vmem:[#allocation41_spill] sm:$0xff] }
 0x1be   : > { %11764 = vmatprep.subr.bf16.mxu0 %v14237_v35  ;;  %v14280_v52 = vpop.f32.mrf.mxu0  ;;  %v10299_v32 = vcombine.low %v5389_v63, %v5399_v17  ;;  %v5408_v59 = vrot.slane %v5407_v0, 4  ;;  %v5417_v50 = vor.u32 %v5416_v25, %v5412_v10  ;;  %v5425_v12 = vshrl.u32 %v10269_v62, 16  ;;  %v14296_v25 = vld [vmem:[%s12515_s13 + $0x88] sm:$0xf] }
 0x1bf   : > { %17067 = vst [vmem:[#allocation83_spill] sm:$0xff] %v14272_v26  ;;  %17068 = vst [vmem:[#allocation84_spill] sm:$0xff] %v14275_v30  ;;  %v5428_v42 = vshll.u32 %v10269_v62, 16  ;;  %v16822_v40 = vshll.u32 %v14266_v60, 16  ;;  %v14285_v20 = vpop.f32.mrf.mxu1  ;;  %v14291_v63 = vadd.f32 %v13665_v22, %v17072_v56  ;;  %v5444_v0 = vshll.u32 %v10271_v53, 16  ;;  %11729 = vmatpush3.bf16.msra.mxu1 %v12150_v51  ;;  %v12144_v56 = vld [vmem:[%s12515_s13 + $0x9c] sm:$0xff]  }
 0x1c0   : > { %11605 = vmatmul.mubr.bf16.gmra.mxu0 %v12140_v5  ;;  %17069 = vst [vmem:[#allocation85_spill] sm:$0xff] %v14280_v52  ;;  %v10272_v5 = vld [vmem:[%s12515_s13 + $0x84] sm:$0xf]  ;;  %17070 = vst [vmem:[#allocation86_spill] sm:$0xff] %v14285_v20  ;;  %v14287_v4 = vpop.f32.mrf.mxu0  ;;  %11648 = vmatprep.mubr.bf16.mxu1 %v10299_v32  ;;  %v5418_v46 = vrot.slane %v5417_v50, 4  ;;  %v5427_v62 = vrot.slane %v5425_v12, 4  ;;  %v1729_v51 = vadd.f32 %v13908_v21, %v13784_v24 }
 0x1c1   : > { %11608 = vmatprep.mubr.bf16.mxu0 %v12143_v2  ;;  %17071 = vst [vmem:[#allocation87_spill] sm:$0xff] %v14287_v4  ;;  %v5413_v2 = vsel %vm12548_vm2, %v5408_v59, %v5412_v10  ;;  %17073 = vst [vmem:[#allocation41_spill] sm:$0xff] %v14296_v25  ;;  %v5430_v17 = vrot.slane %v5428_v42, 5  ;;  %v5436_v9 = vrot.slane %v16822_v40, 5  ;;  %v17074_v30 = vshrl.u32 %v14266_v60, 16  ;;  %11730 = vmatprep.subr.bf16.mxu1 %v12154_v36  ;;  %v14303_v32 = vpop.f32.mrf.mxu1  ;;  %v12147_v42 = vld [vmem:[%s12515_s13 + $0xa8] sm:$0xff]  }
 0x1c2   : > { %17075 = vst [vmem:[#allocation88_spill] sm:$0xff] %v14303_v32  ;;  %v14305_v10 = vpop.f32.mrf.mxu0  ;;  %v5423_v50 = vsel %vm12548_vm2, %v5418_v46, %v5422_v54  ;;  %v5446_v53 = vrot.slane %v5444_v0, 5  ;;  %v10274_v59 = vld [vmem:[%s12515_s13 + $0x8c] sm:$0x1]  ;;  %v5449_v12 = vshrl.u32 %v10272_v5, 16  ;;  %v14313_v40 = vld [vmem:[#allocation2 + $0x378] sm:$0xff]  }
 0x1c3   : > { %v5440_v22 = vrot.slane %v17074_v30, 4  ;;  %17076 = vst [vmem:[#allocation89_spill] sm:$0xff] %v14305_v10  ;;  %v10300_v26 = vcombine.low %v5413_v2, %v5423_v50  ;;  %v5431_v30 = vor.u32 %v5430_v17, %v5427_v62  ;;  %v5452_v4 = vshll.u32 %v10272_v5, 16  ;;  %v14315_v52 = vpop.f32.mrf.mxu1  ;;  %v17079_v10 = vld [vmem:[#allocation64_spill] sm:$0xff]  ;;  %11731 = vmatpush3.bf16.msra.mxu1 %v12154_v36  ;;  %v17084_v36 = vld [vmem:[#allocation62_spill] sm:$0xff] }
 0x1c4   : > { %17077 = vst [vmem:[#allocation90_spill] sm:$0xff] %v14315_v52  ;;  %v14317_v32 = vpop.f32.mrf.mxu0  ;;  %v14320_v20 = vadd.f32 %v17079_v10, %v1729_v51  ;;  %v5451_v54 = vrot.slane %v5449_v12, 4  ;;  %v16823_v24 = vshll.u32 %v14296_v25, 16  ;;  %v16824_v21 = vshrl.u32 %v14296_v25, 16  ;;  %v17083_v50 = vld [vmem:[#allocation12_spill] sm:$0xff]  ;;  %v17085_v51 = vld [vmem:[#allocation25_spill] sm:$0xff]  ;;  %11812 = vmatprep.subr.bf16.mxu1 %v14313_v40 }
 0x1c5   : > { %v5441_v7 = vor.u32 %v5440_v22, %v5436_v9  ;;  %17078 = vst [vmem:[#allocation91_spill] sm:$0xff] %v14317_v32  ;;  %11649 = vmatmul.mubr.bf16.gmra.mxu1 %v10300_v26  ;;  %v5432_v46 = vrot.slane %v5431_v30, 4  ;;  %v5454_v0 = vrot.slane %v5452_v4, 5  ;;  %v5468_v5 = vshll.u32 %v10274_v59, 16  ;;  %v14324_v62 = vpop.f32.mrf.mxu1  ;;  %v10275_v12 = vld [vmem:[%s12515_s13 + $0x90] sm:$0xf] }
 0x1c6   : > { %17080 = vst [vmem:[#allocation64_spill] sm:$0xff] %v14320_v20  ;;  %17081 = vst [vmem:[#allocation92_spill] sm:$0xff] %v14324_v62  ;;  %v14326_v17 = vpop.f32.mrf.mxu0  ;;  %v5460_v22 = vrot.slane %v16823_v24, 5  ;;  %v5464_v10 = vrot.slane %v16824_v21, 4  ;;  %v1727_v26 = vadd.f32 %v17084_v36, %v17083_v50  ;;  %v14343_v21 = vld [vmem:[%s12515_s13 + $0x94] sm:$0xf] }
 0x1c7   : > { %v5442_v2 = vrot.slane %v5441_v7, 4  ;;  %17082 = vst [vmem:[#allocation93_spill] sm:$0xff] %v14326_v17  ;;  %v17086_v7 = vld [vmem:[#allocation63_spill] sm:$0xff]  ;;  %v5455_v30 = vor.u32 %v5454_v0, %v5451_v54  ;;  %v5470_v24 = vrot.slane %v5468_v5, 5  ;;  %v14346_v36 = vpop.f32.mrf.mxu1  ;;  %v17089_v20 = vld [vmem:[#allocation65_spill] sm:$0xff]  ;;  %v5473_v5 = vshrl.u32 %v10275_v12, 16 }
 0x1c8   : > { %11609 = vmatmul.mubr.bf16.gmra.mxu0 %v12144_v56  ;;  %v1730_v4 = vadd.f32 %v17086_v7, %v17085_v51  ;;  %v5437_v56 = vsel %vm12548_vm2, %v5432_v46, %v5436_v9  ;;  %v10277_v50 = vld [vmem:[%s12515_s13 + $0x98] sm:$0x1]  ;;  %17087 = vst [vmem:[#allocation12_spill] sm:$0xff] %v14346_v36  ;;  %v14348_v51 = vpop.f32.mrf.mxu0  ;;  %v5465_v7 = vor.u32 %v5464_v10, %v5460_v22  ;;  %v5476_v32 = vshll.u32 %v10275_v12, 16  ;;  %v10278_v62 = vld [vmem:[%s12515_s13 + $0x9c] sm:$0xf] }
 0x1c9   : > { %11612 = vmatprep.mubr.bf16.mxu0 %v12147_v42  ;;  %v5447_v59 = vsel %vm12548_vm2, %v5442_v2, %v5446_v53  ;;  %17088 = vst [vmem:[#allocation62_spill] sm:$0xff] %v14348_v51  ;;  %v14351_v17 = vadd.f32 %v17089_v20, %v1727_v26  ;;  %v17091_v9 = vld [vmem:[#allocation19_spill] sm:$0xff]  ;;  %v17093_v53 = vld [vmem:[#allocation26_spill] sm:$0xff]  ;;  %v5456_v0 = vrot.slane %v5455_v30, 4  ;;  %v14360_v52 = vpop.f32.mrf.mxu1  ;;  %v16827_v20 = vshll.u32 %v14343_v21, 16  ;;  %v17098_v30 = vld [vmem:[#allocation44_spill] sm:$0xff] }
 0x1ca   : > { %v10301_v42 = vcombine.low %v5437_v56, %v5447_v59  ;;  %v14354_v46 = vadd.f32 %v17091_v9, %v1730_v4  ;;  %v17094_v2 = vld [vmem:[#allocation42_spill] sm:$0xff]  ;;  %17095 = vst [vmem:[#allocation65_spill] sm:$0xff] %v14360_v52  ;;  %v14362_v56 = vpop.f32.mrf.mxu0  ;;  %v5466_v10 = vrot.slane %v5465_v7, 4  ;;  %v16828_v26 = vshrl.u32 %v14343_v21, 16  ;;  %v12151_v59 = vld [vmem:[%s12515_s13 + $0xc0] sm:$0xff]  }
 0x1cb   : > { %17090 = vst [vmem:[#allocation25_spill] sm:$0xff] %v14351_v17  ;;  %v1713_v54 = vadd.f32 %v17094_v2, %v17093_v53  ;;  %v12148_v36 = vld [vmem:[%s12515_s13 + $0xb4] sm:$0xff]   ;;  %17096 = vst [vmem:[#allocation19_spill] sm:$0xff] %v14362_v56  ;;  %v5492_v4 = vshll.u32 %v10277_v50, 16  ;;  %v5461_v12 = vsel %vm12548_vm2, %v5456_v0, %v5460_v22  ;;  %v5475_v2 = vrot.slane %v5473_v5, 4  ;;  %v14374_v56 = vpop.f32.mrf.mxu1 }
 0x1cc   : > { %17092 = vst [vmem:[#allocation63_spill] sm:$0xff] %v14354_v46  ;;  %11652 = vmatprep.mubr.bf16.mxu1 %v10301_v42  ;;  %v17097_v9 = vld [vmem:[#allocation30_spill] sm:$0xff]  ;;  %v5478_v46 = vrot.slane %v5476_v32, 5  ;;  %v14372_v17 = vld [vmem:[%s12515_s13 + $0xa0] sm:$0xf]  ;;  %17099 = vst [vmem:[#allocation26_spill] sm:$0xff] %v14374_v56  ;;  %v14376_v42 = vpop.f32.mrf.mxu0  ;;  %v5471_v7 = vsel %vm12548_vm2, %v5466_v10, %v5470_v24 }
 0x1cd   : > { %v1711_v53 = vadd.f32 %v17098_v30, %v17097_v9  ;;  %17100 = vst [vmem:[#allocation42_spill] sm:$0xff] %v14376_v42  ;;  %v5484_v50 = vrot.slane %v16827_v20, 5  ;;  %v5488_v9 = vrot.slane %v16828_v26, 4  ;;  %v5494_v30 = vrot.slane %v5492_v4, 5  ;;  %v10280_v51 = vld [vmem:[%s12515_s13 + $0xa4] sm:$0x1] }
 0x1ce   : > { %v10302_v22 = vcombine.low %v5461_v12, %v5471_v7  ;;  %v5479_v0 = vor.u32 %v5478_v46, %v5475_v2  ;;  %v17101_v32 = vld [vmem:[#allocation29_spill] sm:$0xff]  ;;  %v17102_v5 = vld [vmem:[#allocation67_spill] sm:$0xff]  ;;  %v5497_v25 = vshrl.u32 %v10278_v62, 16  ;;  %v14387_v56 = vpop.f32.mrf.mxu0  ;;  %v5500_v24 = vshll.u32 %v10278_v62, 16  ;;  %v14394_v7 = vpop.f32.mrf.mxu1 }
 0x1cf   : > { %v1733_v52 = vadd.f32 %v17102_v5, %v17101_v32  ;;  %17103 = vst [vmem:[#allocation30_spill] sm:$0xff] %v14387_v56  ;;  %v5489_v42 = vor.u32 %v5488_v9, %v5484_v50  ;;  %v16829_v10 = vshll.u32 %v14372_v17, 16  ;;  %v16830_v20 = vshrl.u32 %v14372_v17, 16 }
 0x1d0   : > { %11613 = vmatmul.mubr.bf16.gmra.mxu0 %v12148_v36  ;;  %11653 = vmatmul.mubr.bf16.gmra.mxu1 %v10302_v22  ;;  %v5480_v4 = vrot.slane %v5479_v0, 4  ;;  %v5499_v12 = vrot.slane %v5497_v25, 4  ;;  %v5516_v2 = vshll.u32 %v10280_v51, 16  ;;  %v14396_v36 = vpop.f32.mrf.mxu0  ;;  %v5502_v62 = vrot.slane %v5500_v24, 5  ;;  %v10281_v22 = vld [vmem:[%s12515_s13 + $0xa8] sm:$0xf]  ;;  %v14413_v26 = vpop.f32.mrf.mxu1 }
 0x1d1   : > { %11616 = vmatprep.mubr.bf16.mxu0 %v12151_v59  ;;  %v14392_v46 = vadd.f32 %v13988_v55, %v1733_v52  ;;  %17105 = vst [vmem:[#allocation29_spill] sm:$0xff] %v14396_v36  ;;  %v5490_v9 = vrot.slane %v5489_v42, 4  ;;  %v5508_v32 = vrot.slane %v16829_v10, 5  ;;  %v5512_v59 = vrot.slane %v16830_v20, 4  ;;  %v17106_v0 = vld [vmem:[#allocation45_spill] sm:$0xff]  ;;  %v17107_v25 = vld [vmem:[#allocation20_spill] sm:$0xff] }
 0x1d2   : > { %v14404_v55 = vadd.f32 %v17106_v0, %v1713_v54  ;;  %v5485_v52 = vsel %vm12548_vm2, %v5480_v4, %v5484_v50  ;;  %v1731_v51 = vadd.f32 %v17107_v25, %v14087_v58  ;;  %v17108_v42 = vld [vmem:[#allocation61_spill] sm:$0xff]  ;;  %17109 = vst [vmem:[#allocation67_spill] sm:$0xff] %v14413_v26  ;;  %v14415_v10 = vpop.f32.mrf.mxu0  ;;  %v5518_v0 = vrot.slane %v5516_v2, 5  ;;  %v10283_v50 = vld [vmem:[%s12515_s13 + $0xb0] sm:$0x1]  ;;  %v14429_v26 = vpop.f32.mrf.mxu1 }
 0x1d3   : > { %17104 = vst [vmem:[#allocation44_spill] sm:$0xff] %v14392_v46  ;;  %v1734_v5 = vadd.f32 %v13979_v45, %v17108_v42  ;;  %v12152_v24 = vld [vmem:[%s12515_s13 + $0xcc] sm:$0xff]   ;;  %17110 = vst [vmem:[#allocation45_spill] sm:$0xff] %v14415_v10  ;;  %v5495_v20 = vsel %vm12548_vm2, %v5490_v9, %v5494_v30  ;;  %v5503_v46 = vor.u32 %v5502_v62, %v5499_v12  ;;  %v5521_v56 = vshrl.u32 %v10281_v22, 16  ;;  %v17116_v30 = vld [vmem:[#allocation47_spill] sm:$0xff] }
 0x1d4   : > { %v5513_v54 = vor.u32 %v5512_v59, %v5508_v32  ;;  %v14420_v36 = vld [vmem:[%s12515_s13 + $0xac] sm:$0xf]  ;;  %v10303_v4 = vcombine.low %v5485_v52, %v5495_v20  ;;  %v17111_v58 = vld [vmem:[#allocation70_spill] sm:$0xff]  ;;  %v14431_v10 = vpop.f32.mrf.mxu0  ;;  %v14434_v12 = vadd.f32 %v17116_v30, %v1711_v53  ;;  %v5524_v62 = vshll.u32 %v10281_v22, 16  ;;  %v10286_v30 = vld [vmem:[%s12515_s13 + $0xbc] sm:$0x1] }
 0x1d5   : > { %v14424_v25 = vadd.f32 %v17111_v58, %v1731_v51  ;;  %v17113_v45 = vld [vmem:[#allocation73_spill] sm:$0xff]  ;;  %17115 = vst [vmem:[#allocation70_spill] sm:$0xff] %v14431_v10  ;;  %v5504_v2 = vrot.slane %v5503_v46, 4  ;;  %v5523_v20 = vrot.slane %v5521_v56, 4  ;;  %v16831_v59 = vshll.u32 %v14420_v36, 16  ;;  %v14439_v58 = vpop.f32.mrf.mxu1  ;;  %v17119_v56 = vld [vmem:[#allocation74_spill] sm:$0xff] }
 0x1d6   : > { %v14427_v42 = vadd.f32 %v17113_v45, %v1734_v5  ;;  %v5514_v9 = vrot.slane %v5513_v54, 4  ;;  %11656 = vmatprep.mubr.bf16.mxu1 %v10303_v4  ;;  %v16832_v52 = vshrl.u32 %v14420_v36, 16  ;;  %v5540_v51 = vshll.u32 %v10283_v50, 16  ;;  %v10284_v5 = vld [vmem:[%s12515_s13 + $0xb4] sm:$0xf]  ;;  %17117 = vst [vmem:[#allocation73_spill] sm:$0xff] %v14439_v58  ;;  %v14441_v45 = vpop.f32.mrf.mxu0 }
 0x1d7   : > { %17112 = vst [vmem:[#allocation20_spill] sm:$0xff] %v14424_v25  ;;  %17118 = vst [vmem:[#allocation47_spill] sm:$0xff] %v14441_v45  ;;  %v5509_v53 = vsel %vm12548_vm2, %v5504_v2, %v5508_v32  ;;  %v5526_v22 = vrot.slane %v5524_v62, 5  ;;  %v1737_v54 = vadd.f32 %v17119_v56, %v14111_v27  ;;  %v14450_v4 = vld [vmem:[%s12515_s13 + $0xb8] sm:$0xf]  ;;  %v14457_v45 = vpop.f32.mrf.mxu1  ;;  %v5545_v27 = vshrl.u32 %v10284_v5, 16 }
 0x1d8   : > { %17114 = vst [vmem:[#allocation61_spill] sm:$0xff] %v14427_v42  ;;  %11617 = vmatmul.mubr.bf16.gmra.mxu0 %v12152_v24  ;;  %v5519_v46 = vsel %vm12548_vm2, %v5514_v9, %v5518_v0  ;;  %v5532_v24 = vrot.slane %v16831_v59, 5  ;;  %v5536_v42 = vrot.slane %v16832_v52, 4  ;;  %v5542_v25 = vrot.slane %v5540_v51, 5  ;;  %17120 = vst [vmem:[#allocation74_spill] sm:$0xff] %v14457_v45  ;;  %v14459_v32 = vpop.f32.mrf.mxu0  ;;  %v17122_v2 = vld [vmem:[#allocation79_spill] sm:$0xff] }
 0x1d9   : > { %v10304_v50 = vcombine.low %v5509_v53, %v5519_v46  ;;  %17121 = vst [vmem:[#allocation94_spill] sm:$0xff] %v14459_v32  ;;  %v5527_v0 = vor.u32 %v5526_v22, %v5523_v20  ;;  %v14462_v9 = vadd.f32 %v17122_v2, %v1737_v54  ;;  %v5548_v62 = vshll.u32 %v10284_v5, 16  ;;  %v14466_v52 = vpop.f32.mrf.mxu1  ;;  %v17126_v22 = vld [vmem:[#allocation77_spill] sm:$0xff]  ;;  %v10287_v5 = vld [vmem:[%s12515_s13 + $0xc0] sm:$0xf] }
 0x1da   : > { %v5537_v53 = vor.u32 %v5536_v42, %v5532_v24  ;;  %v5564_v59 = vshll.u32 %v10286_v30, 16  ;;  %17124 = vst [vmem:[#allocation95_spill] sm:$0xff] %v14466_v52  ;;  %v14468_v51 = vpop.f32.mrf.mxu0  ;;  %v5547_v10 = vrot.slane %v5545_v27, 4  ;;  %v1735_v54 = vadd.f32 %v17126_v22, %v14115_v61  ;;  %v17128_v42 = vld [vmem:[#allocation46_spill] sm:$0xff]  ;;  %v10289_v45 = vld [vmem:[%s12515_s13 + $0xc8] sm:$0x1] }
 0x1db   : > { %17123 = vst [vmem:[#allocation79_spill] sm:$0xff] %v14462_v9  ;;  %11657 = vmatmul.mubr.bf16.gmra.mxu1 %v10304_v50  ;;  %17125 = vst [vmem:[#allocation96_spill] sm:$0xff] %v14468_v51  ;;  %v5528_v32 = vrot.slane %v5527_v0, 4  ;;  %v5550_v20 = vrot.slane %v5548_v62, 5  ;;  %v17127_v50 = vld [vmem:[#allocation31_spill] sm:$0xff]  ;;  %v17129_v56 = vshll.u32 %v14450_v4, 16  ;;  %v14479_v51 = vpop.f32.mrf.mxu1 }
 0x1dc   : > { %v1714_v2 = vadd.f32 %v17128_v42, %v17127_v50  ;;  %v5538_v46 = vrot.slane %v5537_v53, 4  ;;  %v17130_v9 = vshrl.u32 %v14450_v4, 16  ;;  %17131 = vst [vmem:[#allocation77_spill] sm:$0xff] %v14479_v51  ;;  %v14481_v0 = vpop.f32.mrf.mxu0  ;;  %v17133_v62 = vld [vmem:[#allocation18_spill] sm:$0xff]  ;;  %v17135_v53 = vld [vmem:[#allocation8_spill] sm:$0xff]  ;;  %v5566_v51 = vrot.slane %v5564_v59, 5 }
 0x1dd   : > { %v5556_v30 = vrot.slane %v17129_v56, 5  ;;  %17132 = vst [vmem:[#allocation31_spill] sm:$0xff] %v14481_v0  ;;  %v5533_v27 = vsel %vm12548_vm2, %v5528_v32, %v5532_v24  ;;  %v5551_v61 = vor.u32 %v5550_v20, %v5547_v10  ;;  %v14486_v22 = vadd.f32 %v17133_v62, %v1735_v54  ;;  %v14491_v42 = vld [vmem:[%s12515_s13 + $0xc4] sm:$0xf]  ;;  %v14496_v58 = vpop.f32.mrf.mxu1  ;;  %v10290_v54 = vld [vmem:[%s12515_s13 + $0xcc] sm:$0xf] }
 0x1de   : > { %v5560_v52 = vrot.slane %v17130_v9, 4  ;;  %v1738_v50 = vadd.f32 %v17135_v53, %v14129_v23  ;;  %v5543_v9 = vsel %vm12548_vm2, %v5538_v46, %v5542_v25  ;;  %v5569_v0 = vshrl.u32 %v10287_v5, 16  ;;  %17136 = vst [vmem:[#allocation18_spill] sm:$0xff] %v14496_v58  ;;  %v14498_v24 = vpop.f32.mrf.mxu0  ;;  %v17139_v62 = vld [vmem:[#allocation34_spill] sm:$0xff] }
 0x1df   : > { %17134 = vst [vmem:[#allocation46_spill] sm:$0xff] %v14486_v22  ;;  %17137 = vst [vmem:[#allocation8_spill] sm:$0xff] %v14498_v24  ;;  %v10305_v10 = vcombine.low %v5533_v27, %v5543_v9  ;;  %v5552_v32 = vrot.slane %v5551_v61, 4  ;;  %v5572_v23 = vshll.u32 %v10287_v5, 16  ;;  %v17140_v53 = vld [vmem:[#allocation50_spill] sm:$0xff]  ;;  %v16833_v46 = vshll.u32 %v14491_v42, 16  ;;  %v14507_v22 = vpop.f32.mrf.mxu1 }
 0x1e0   : > { %v5561_v56 = vor.u32 %v5560_v52, %v5556_v30  ;;  %v14501_v20 = vadd.f32 %v14076_v19, %v1738_v50  ;;  %v1717_v25 = vadd.f32 %v17140_v53, %v17139_v62  ;;  %v5571_v59 = vrot.slane %v5569_v0, 4  ;;  %v14509_v58 = vpop.f32.mrf.mxu0  ;;  %v14515_v50 = vld [vmem:[%s12515_s13 + $0xd0] sm:$0xf]  ;;  %v10292_v62 = vld [vmem:[%s12515_s13 + $0xd4] sm:$0x1] }
 0x1e1   : > { %17141 = vst [vmem:[#allocation34_spill] sm:$0xff] %v14509_v58  ;;  %11660 = vmatprep.mubr.bf16.mxu1 %v10305_v10  ;;  %v5557_v27 = vsel %vm12548_vm2, %v5552_v32, %v5556_v30  ;;  %v5574_v19 = vrot.slane %v5572_v23, 5  ;;  %v16836_v5 = vshrl.u32 %v14491_v42, 16  ;;  %v5588_v61 = vshll.u32 %v10289_v45, 16  ;;  %v14524_v53 = vpop.f32.mrf.mxu1 }
 0x1e2   : > { %17138 = vst [vmem:[#allocation97_spill] sm:$0xff] %v14501_v20  ;;  %v5562_v52 = vrot.slane %v5561_v56, 4  ;;  %v5580_v0 = vrot.slane %v16833_v46, 5  ;;  %v1741_v56 = vadd.f32 %v14079_v47, %v14187_v28  ;;  %v5593_v10 = vshrl.u32 %v10290_v54, 16  ;;  %v14526_v30 = vpop.f32.mrf.mxu0 }
 0x1e3   : > { %17142 = vst [vmem:[#allocation50_spill] sm:$0xff] %v14526_v30  ;;  %v5575_v23 = vor.u32 %v5574_v19, %v5571_v59  ;;  %v5584_v45 = vrot.slane %v16836_v5, 4  ;;  %v5590_v20 = vrot.slane %v5588_v61, 5  ;;  %v5596_v46 = vshll.u32 %v10290_v54, 16  ;;  %v14534_v47 = vpop.f32.mrf.mxu1  ;;  %v17144_v61 = vld [vmem:[#allocation32_spill] sm:$0xff] }
 0x1e4   : > { %v5567_v9 = vsel %vm12548_vm2, %v5562_v52, %v5566_v51  ;;  %v14531_v51 = vadd.f32 %v14147_v3, %v1741_v56  ;;  %v5595_v52 = vrot.slane %v5593_v10, 4  ;;  %v16834_v58 = vshll.u32 %v14515_v50, 16  ;;  %v17145_v10 = vld [vmem:[#allocation49_spill] sm:$0xff]  ;;  %v10373_v5 = vld [vmem:[%s12515_s13 + $0x20] sm:$0x3] }
 0x1e5   : > { %v10306_v32 = vcombine.low %v5557_v27, %v5567_v9  ;;  %v5576_v28 = vrot.slane %v5575_v23, 4  ;;  %v5585_v24 = vor.u32 %v5584_v45, %v5580_v0  ;;  %v16835_v30 = vshrl.u32 %v14515_v50, 16  ;;  %v14537_v27 = vpop.f32.mrf.mxu0  ;;  %v14545_v56 = vpop.f32.mrf.mxu1 }
 0x1e6   : > { %17143 = vst [vmem:[#allocation98_spill] sm:$0xff] %v14531_v51  ;;  %v5612_v59 = vshll.u32 %v10292_v62, 16  ;;  %v5598_v19 = vrot.slane %v5596_v46, 5  ;;  %v5604_v3 = vrot.slane %v16834_v58, 5  ;;  %v1739_v54 = vadd.f32 %v14107_v39, %v14191_v16 }
 0x1e7   : > { %11661 = vmatmul.mubr.bf16.gmra.mxu1 %v10306_v32  ;;  %v1742_v9 = vadd.f32 %v17144_v61, %v14211_v41  ;;  %v14548_v32 = vadd.f32 %v17145_v10, %v1714_v2  ;;  %v5581_v62 = vsel %vm12548_vm2, %v5576_v28, %v5580_v0  ;;  %v5586_v23 = vrot.slane %v5585_v24, 4  ;;  %v10317_v41 = vld [vmem:[%s12515_s13 + $0x18] sm:$0xe]  ;;  %v12257_v24 = vld [vmem:[%s12515_s13 + $0x1c] sm:$0xf]  ;;  %v14564_v10 = vpop.f32.mrf.mxu0 }
 0x1e8   : > { %v5608_v46 = vrot.slane %v16835_v30, 4  ;;  %v5599_v45 = vor.u32 %v5598_v19, %v5595_v52  ;;  %v5614_v58 = vrot.slane %v5612_v59, 5  ;;  %v14555_v16 = vadd.f32 %v14159_v48, %v1739_v54  ;;  %17148 = vst [vmem:[#allocation99_spill] sm:$0xff] %v14564_v10  ;;  %v17149_v30 = vld [vmem:[#allocation54_spill] sm:$0xff]  ;;  %v12258_v48 = vld [vmem:[%s12515_s13 + $0x20] sm:$0x1] }
 0x1e9   : > { %v14558_v39 = vadd.f32 %v14174_v44, %v1742_v9  ;;  %v5591_v2 = vsel %vm12548_vm2, %v5586_v23, %v5590_v20  ;;  %v10333_v0 = vrot.slane %v10317_v41, 9  ;;  %v6004_v28 = vrot.slane %v12257_v24, 5  ;;  %v14571_v44 = vpop.f32.mrf.mxu1  ;;  %v14587_v10 = vpop.f32.mrf.mxu0 }
 0x1ea   : > { %17146 = vst [vmem:[#allocation32_spill] sm:$0xff] %v14555_v16  ;;  %v5609_v61 = vor.u32 %v5608_v46, %v5604_v3  ;;  %v14567_v52 = vadd.f32 %v17149_v30, %v1717_v25  ;;  %v10307_v59 = vcombine.low %v5581_v62, %v5591_v2  ;;  %v5600_v19 = vrot.slane %v5599_v45, 4  ;;  %v17151_v30 = vld [vmem:[#allocation69_spill] sm:$0xff] }
 0x1eb   : > { %17147 = vst [vmem:[#allocation49_spill] sm:$0xff] %v14558_v39  ;;  %v6007_v54 = vrot.slane %v12258_v48, 5  ;;  %v6005_v20 = vsel %vm12864_vm7, %v10333_v0, %v6004_v28  ;;  %v6006_v23 = vrot.slane %v6004_v28, 4  ;;  %v6453_v46 = vshrl.u32 %v10317_v41, 16  ;;  %v14581_v16 = vpop.f32.mrf.mxu1  ;;  %17155 = vst [vmem:[#allocation69_spill] sm:$0xff] %v14587_v10  ;;  %v14602_v10 = vpop.f32.mrf.mxu0 }
 0x1ec   : > { %v5610_v9 = vrot.slane %v5609_v61, 4  ;;  %11664 = vmatprep.mubr.bf16.mxu1 %v10307_v59  ;;  %v5605_v24 = vsel %vm12548_vm2, %v5600_v19, %v5604_v3  ;;  %v6456_v25 = vshll.u32 %v10317_v41, 16  ;;  %v17152_v62 = vshrl.u32 %v17151_v30, 16  ;;  %17154 = vst [vmem:[#allocation54_spill] sm:$0xff] %v14581_v16  ;;  %17158 = vst [vmem:[#allocation102_spill] sm:$0xff] %v14602_v10 }
 0x1ed   : > { %v17153_v2 = vshll.u32 %v17151_v30, 16  ;;  %v6008_v0 = vsel %vm12864_vm7, %v6006_v23, %v6007_v54  ;;  %v6455_v28 = vrot.slane %v6453_v46, 5  ;;  %v6467_v59 = vshrl.u32 %v10373_v5, 16  ;;  %v10318_v30 = vld [vmem:[%s12515_s13 + $0x24] sm:$0xe] }
 0x1ee   : > { %v6461_v45 = vrot.slane %v17152_v62, 5  ;;  %v5615_v61 = vsel %vm12548_vm2, %v5610_v9, %v5614_v58  ;;  %v10349_v41 = vcombine.low %v6005_v20, %v6008_v0  ;;  %v6458_v19 = vrot.slane %v6456_v25, 6  ;;  %v12259_v46 = vld [vmem:[%s12515_s13 + $0x28] sm:$0xf]  ;;  %v10374_v0 = vld [vmem:[%s12515_s13 + $0x2c] sm:$0x3] }
 0x1ef   : > { %v6462_v48 = vrot.slane %v17153_v2, 6  ;;  %v10308_v3 = vcombine.low %v5605_v24, %v5615_v61  ;;  %v14590_v2 = vpop.f32.mrf.mxu1  ;;  %v6469_v51 = vrot.slane %v6467_v59, 5  ;;  %v6470_v16 = vshll.u32 %v10373_v5, 16  ;;  %v12260_v61 = vld [vmem:[%s12515_s13 + $0x2c] sm:$0x1] }
 0x1f0   : > { %v2809_v58 = vadd.f32 %v14153_v8, %v14404_v55  ;;  %v10334_v54 = vrot.slane %v10318_v30, 9  ;;  %11684 = vmatprep.mubr.bf16.mxu0 %v10349_v41  ;;  %v6459_v9 = vor.u32 %v6458_v19, %v6455_v28  ;;  %v6011_v24 = vrot.slane %v12259_v46, 5 }
 0x1f1   : > { %v6463_v62 = vor.u32 %v6462_v48, %v6461_v45  ;;  %11665 = vmatmul.mubr.bf16.gmra.mxu1 %v10308_v3  ;;  %v6014_v20 = vrot.slane %v12260_v61, 5  ;;  %v14596_v25 = vpop.f32.mrf.mxu1  ;;  %v6472_v45 = vrot.slane %v6470_v16, 6  ;;  %v6476_v5 = vshrl.u32 %v10318_v30, 16  ;;  %v17159_v3 = vld [vmem:[#allocation72_spill] sm:$0xff] }
 0x1f2   : > { %17156 = vst [vmem:[#allocation100_spill] sm:$0xff] %v14596_v25  ;;  %v14599_v48 = vadd.f32 %v14215_v33, %v2809_v58  ;;  %v6479_v59 = vshll.u32 %v10318_v30, 16  ;;  %v6460_v8 = vrot.slane %v6459_v9, 4  ;;  %v6012_v55 = vsel %vm12864_vm7, %v10334_v54, %v6011_v24 }
 0x1f3   : > { %v6465_v23 = vrot.slane %v6463_v62, 4  ;;  %v6013_v28 = vrot.slane %v6011_v24, 4  ;;  %v17160_v41 = vshrl.u32 %v17159_v3, 16  ;;  %v14608_v46 = vpop.f32.mrf.mxu1  ;;  %v6473_v61 = vor.u32 %v6472_v45, %v6469_v51 }
 0x1f4   : > { %17157 = vst [vmem:[#allocation101_spill] sm:$0xff] %v14599_v48  ;;  %v6478_v16 = vrot.slane %v6476_v5, 5  ;;  %v6481_v25 = vrot.slane %v6479_v59, 6  ;;  %v17161_v33 = vshll.u32 %v17159_v3, 16  ;;  %v6464_v30 = vsel %vm12886_vm8, %v6460_v8, %v6463_v62  ;;  %v12157_v59 = vld [vmem:[#allocation2 + $0x330] sm:$0xff]   ;;  %v14620_v3 = vpop.f32.mrf.mxu0 }
 0x1f5   : > { %v6484_v19 = vrot.slane %v17160_v41, 5  ;;  %v6015_v9 = vsel %vm12864_vm7, %v6013_v28, %v6014_v20  ;;  %v6490_v10 = vshrl.u32 %v10374_v0, 16  ;;  %v6493_v54 = vshll.u32 %v10374_v0, 16  ;;  %v14616_v24 = vpop.f32.mrf.mxu1  ;;  %v17164_v0 = vld [vmem:[#allocation37_spill] sm:$0xff]  ;;  %v17165_v28 = vld [vmem:[#allocation52_spill] sm:$0xff] }
 0x1f6   : > { %v6485_v58 = vrot.slane %v17161_v33, 6  ;;  %17163 = vst [vmem:[#allocation72_spill] sm:$0xff] %v14616_v24  ;;  %v6474_v41 = vsel %vm12886_vm8, %v6465_v23, %v6473_v61  ;;  %v10350_v51 = vcombine.low %v6012_v55, %v6015_v9  ;;  %v6482_v45 = vor.u32 %v6481_v25, %v6478_v16  ;;  %v12261_v16 = vld [vmem:[%s12515_s13 + $0x34] sm:$0xf]  ;;  %v17169_v9 = vld [vmem:[#allocation53_spill] sm:$0xff] }
 0x1f7   : > { %v10389_v33 = vcombine.low %v6464_v30, %v6474_v41  ;;  %v6492_v62 = vrot.slane %v6490_v10, 5  ;;  %v6495_v8 = vrot.slane %v6493_v54, 6  ;;  %v2807_v20 = vadd.f32 %v14163_v29, %v14434_v12  ;;  %v14631_v61 = vpop.f32.mrf.mxu1  ;;  %v17168_v30 = vld [vmem:[#allocation39_spill] sm:$0xff] }
 0x1f8   : > { %v6486_v5 = vor.u32 %v6485_v58, %v6484_v19  ;;  %v14626_v24 = vadd.f32 %v17165_v28, %v17164_v0  ;;  %11685 = vmatmul.mubr.bf16.vlgmr.msra.gmra.mxu0 %v10350_v51  ;;  %v6483_v23 = vrot.slane %v6482_v45, 4  ;;  %v2810_v25 = vadd.f32 %v14183_v37, %v14548_v32  ;;  %v10319_v19 = vld [vmem:[%s12515_s13 + $0x30] sm:$0xe]  ;;  %17166 = vst [vmem:[#allocation37_spill] sm:$0xff] %v14631_v61  ;;  %v12262_v41 = vld [vmem:[%s12515_s13 + $0x38] sm:$0x1] }
 0x1f9   : > { %11732 = vmatprep.mubr.bf16.mxu1 %v10389_v33  ;;  %v6496_v10 = vor.u32 %v6495_v8, %v6492_v62  ;;  %11765 = vmatpush3.bf16.msra.mxu0 %v14237_v35  ;;  %v14635_v29 = vadd.f32 %v14230_v57, %v2807_v20  ;;  %v10335_v12 = vrot.slane %v10319_v19, 9  ;;  %v6018_v58 = vrot.slane %v12261_v16, 5  ;;  %v10375_v45 = vld [vmem:[%s12515_s13 + $0x38] sm:$0x3]  ;;  %v12159_v35 = vld [vmem:[#allocation2 + $0x328] sm:$0xff]   ;;  %v14649_v57 = vpop.f32.mrf.mxu0 }
 0x1fa   : > { %v6488_v55 = vrot.slane %v6486_v5, 4  ;;  %v14640_v54 = vadd.f32 %v17169_v9, %v17168_v30  ;;  %v6487_v37 = vsel %vm12886_vm8, %v6483_v23, %v6486_v5  ;;  %v14645_v32 = vadd.f32 %v14243_v1, %v2810_v25  ;;  %11766 = vmatprep.subr.bf16.mxu0 %v12157_v59  ;;  %v17171_v28 = vld [vmem:[#allocation75_spill] sm:$0xff]  ;;  %v12158_v30 = vld [vmem:[#allocation2 + $0x370] sm:$0xff]   ;;  %v14659_v9 = vpop.f32.mrf.mxu1 }
 0x1fb   : > { %17167 = vst [vmem:[#allocation52_spill] sm:$0xff] %v14635_v29  ;;  %v6021_v51 = vrot.slane %v12262_v41, 5  ;;  %v6019_v62 = vsel %vm12864_vm7, %v10335_v12, %v6018_v58  ;;  %v6020_v8 = vrot.slane %v6018_v58, 4  ;;  %v6499_v20 = vshrl.u32 %v10319_v19, 16  ;;  %17174 = vst [vmem:[#allocation53_spill] sm:$0xff] %v14659_v9  ;;  %v14661_v41 = vpop.f32.mrf.mxu0 }
 0x1fc   : > { %17170 = vst [vmem:[#allocation39_spill] sm:$0xff] %v14645_v32  ;;  %v6497_v33 = vsel %vm12886_vm8, %v6488_v55, %v6496_v10  ;;  %v6502_v5 = vshll.u32 %v10319_v19, 16  ;;  %v17172_v1 = vshrl.u32 %v17171_v28, 16  ;;  %v17173_v25 = vshll.u32 %v17171_v28, 16  ;;  %17175 = vst [vmem:[#allocation75_spill] sm:$0xff] %v14661_v41  ;;  %v12163_v41 = vld [vmem:[#allocation2 + $0x318] sm:$0xff]  }
 0x1fd   : > { %v10390_v0 = vcombine.low %v6487_v37, %v6497_v33  ;;  %v6022_v55 = vsel %vm12864_vm7, %v6020_v8, %v6021_v51  ;;  %v6501_v10 = vrot.slane %v6499_v20, 5  ;;  %v6513_v12 = vshrl.u32 %v10375_v45, 16  ;;  %11767 = vmatpush3.bf16.msra.mxu0 %v12157_v59  ;;  %v12263_v32 = vld [vmem:[%s12515_s13 + $0x40] sm:$0xf] }
 0x1fe   : > { %v6507_v23 = vrot.slane %v17172_v1, 5  ;;  %v6508_v16 = vrot.slane %v17173_v25, 6  ;;  %v6516_v58 = vshll.u32 %v10375_v45, 16  ;;  %v10351_v19 = vcombine.low %v6019_v62, %v6022_v55  ;;  %v10320_v1 = vld [vmem:[%s12515_s13 + $0x3c] sm:$0xe]  ;;  %11768 = vmatprep.subr.bf16.mxu0 %v12159_v35  ;;  %v12161_v25 = vld [vmem:[#allocation2 + $0x320] sm:$0xff]   ;;  %v14677_v55 = vpop.f32.mrf.mxu0 }
 0x1ff   : > { %11733 = vmatmul.mubr.bf16.vlgmr.msra.gmra.mxu1 %v10390_v0  ;;  %v6504_v37 = vrot.slane %v6502_v5, 6  ;;  %v2813_v28 = vadd.f32 %v14217_v49, %v14567_v52  ;;  %v6515_v51 = vrot.slane %v6513_v12, 5  ;;  %v10336_v20 = vrot.slane %v10320_v1, 9  ;;  %v12264_v5 = vld [vmem:[%s12515_s13 + $0x44] sm:$0x1]  ;;  %v12160_v52 = vld [vmem:[#allocation2 + $0x368] sm:$0xff]  }
 0x200   : > { %v6509_v33 = vor.u32 %v6508_v16, %v6507_v23  ;;  %11813 = vmatpush3.bf16.msra.mxu1 %v14313_v40  ;;  %v6518_v8 = vrot.slane %v6516_v58, 6  ;;  %v6025_v45 = vrot.slane %v12263_v32, 5  ;;  %11688 = vmatprep.mubr.bf16.mxu0 %v10351_v19  ;;  %v6028_v23 = vrot.slane %v12264_v5, 5  ;;  %v10376_v49 = vld [vmem:[%s12515_s13 + $0x44] sm:$0x3]  ;;  %v14675_v16 = vpop.f32.mrf.mxu1  ;;  %17178 = vst [vmem:[#allocation105_spill] sm:$0xff] %v14677_v55 }
 0x201   : > { %v6505_v59 = vor.u32 %v6504_v37, %v6501_v10  ;;  %v14671_v0 = vadd.f32 %v14278_v6, %v2813_v28  ;;  %11814 = vmatprep.subr.bf16.mxu1 %v12158_v30  ;;  %17177 = vst [vmem:[#allocation104_spill] sm:$0xff] %v14675_v16  ;;  %v6522_v58 = vshrl.u32 %v10320_v1, 16  ;;  %11769 = vmatpush3.bf16.msra.mxu0 %v12159_v35  ;;  %v6525_v19 = vshll.u32 %v10320_v1, 16  ;;  %v17179_v6 = vld [vmem:[#allocation78_spill] sm:$0xff]  ;;  %v17184_v55 = vld [vmem:[#allocation55_spill] sm:$0xff] }
 0x202   : > { %v6511_v62 = vrot.slane %v6509_v33, 4  ;;  %v6519_v40 = vor.u32 %v6518_v8, %v6515_v51  ;;  %v6026_v12 = vsel %vm12864_vm7, %v10336_v20, %v6025_v45  ;;  %v6027_v32 = vrot.slane %v6025_v45, 4  ;;  %11770 = vmatprep.subr.bf16.mxu0 %v12161_v25  ;;  %v14685_v29 = vpop.f32.mrf.mxu1  ;;  %v17199_v16 = vld [vmem:[#allocation15_spill] sm:$0xff] }
 0x203   : > { %17176 = vst [vmem:[#allocation103_spill] sm:$0xff] %v14671_v0  ;;  %v6506_v10 = vrot.slane %v6505_v59, 4  ;;  %v17180_v37 = vshrl.u32 %v17179_v6, 16  ;;  %v17181_v5 = vshll.u32 %v17179_v6, 16  ;;  %17182 = vst [vmem:[#allocation78_spill] sm:$0xff] %v14685_v29  ;;  %v6524_v20 = vrot.slane %v6522_v58, 5 }
 0x204   : > { %v6520_v51 = vsel %vm12886_vm8, %v6511_v62, %v6519_v40  ;;  %v6029_v8 = vsel %vm12864_vm7, %v6027_v32, %v6028_v23  ;;  %v6536_v35 = vshrl.u32 %v10376_v49, 16  ;;  %11815 = vmatpush3.bf16.msra.mxu1 %v12158_v30  ;;  %v6527_v59 = vrot.slane %v6525_v19, 6  ;;  %v17185_v30 = vld [vmem:[#allocation57_spill] sm:$0xff]  ;;  %v17187_v58 = vld [vmem:[#allocation56_spill] sm:$0xff] }
 0x205   : > { %v6530_v28 = vrot.slane %v17180_v37, 5  ;;  %v6531_v0 = vrot.slane %v17181_v5, 6  ;;  %v6510_v1 = vsel %vm12886_vm8, %v6506_v10, %v6509_v33  ;;  %v10352_v45 = vcombine.low %v6026_v12, %v6029_v8  ;;  %11816 = vmatprep.subr.bf16.mxu1 %v12160_v52  ;;  %v12162_v37 = vld [vmem:[#allocation2 + $0x360] sm:$0xff]   ;;  %v14693_v5 = vpop.f32.mrf.mxu0  ;;  %11771 = vmatpush3.bf16.msra.mxu0 %v12161_v25  ;;  %v10321_v19 = vld [vmem:[%s12515_s13 + $0x48] sm:$0xe]  ;;  %v17189_v8 = vld [vmem:[#allocation43_spill] sm:$0xff] }
 0x206   : > { %17183 = vst [vmem:[#allocation106_spill] sm:$0xff] %v14693_v5  ;;  %v14697_v62 = vadd.f32 %v17184_v55, %v14626_v24  ;;  %v10391_v40 = vcombine.low %v6510_v1, %v6520_v51  ;;  %v6538_v23 = vrot.slane %v6536_v35, 5  ;;  %v6539_v32 = vshll.u32 %v10376_v49, 16  ;;  %v17186_v12 = vld [vmem:[#allocation16_spill] sm:$0xff]  ;;  %11772 = vmatprep.subr.bf16.mxu0 %v12163_v41  ;;  %v12165_v24 = vld [vmem:[#allocation2 + $0x310] sm:$0xff]   ;;  %v14708_v55 = vpop.f32.mrf.mxu1  ;;  %v17190_v35 = vld [vmem:[#allocation59_spill] sm:$0xff] }
 0x207   : > { %v6532_v6 = vor.u32 %v6531_v0, %v6530_v28  ;;  %v14701_v33 = vadd.f32 %v17185_v30, %v14640_v54  ;;  %v14705_v0 = vadd.f32 %v17187_v58, %v17186_v12  ;;  %11689 = vmatmul.mubr.bf16.gmra.mxu0 %v10352_v45  ;;  %v6528_v10 = vor.u32 %v6527_v59, %v6524_v20  ;;  %v12265_v51 = vld [vmem:[%s12515_s13 + $0x4c] sm:$0xf]  ;;  %v17191_v45 = vld [vmem:[#allocation22_spill] sm:$0xff]  ;;  %v17192_v30 = vld [vmem:[#allocation11_spill] sm:$0xff] }
 0x208   : > { %17188 = vst [vmem:[#allocation55_spill] sm:$0xff] %v14708_v55  ;;  %11736 = vmatprep.mubr.bf16.mxu1 %v10391_v40  ;;  %v6541_v25 = vrot.slane %v6539_v32, 6  ;;  %v10337_v28 = vrot.slane %v10321_v19, 9  ;;  %v6032_v54 = vrot.slane %v12265_v51, 5  ;;  %11817 = vmatpush3.bf16.msra.mxu1 %v12160_v52  ;;  %v14713_v1 = vadd.f32 %v17190_v35, %v17189_v8  ;;  %v12266_v12 = vld [vmem:[%s12515_s13 + $0x50] sm:$0x1]  ;;  %v14721_v55 = vpop.f32.mrf.mxu0 }
 0x209   : > { %v6534_v49 = vrot.slane %v6532_v6, 4  ;;  %v14717_v20 = vadd.f32 %v17192_v30, %v17191_v45  ;;  %v6529_v59 = vrot.slane %v6528_v10, 4  ;;  %v6035_v58 = vrot.slane %v12266_v12, 5  ;;  %v10377_v5 = vld [vmem:[%s12515_s13 + $0x50] sm:$0x3]  ;;  %11818 = vmatprep.subr.bf16.mxu1 %v12162_v37  ;;  %v12164_v40 = vld [vmem:[#allocation2 + $0x358] sm:$0xff]   ;;  %11773 = vmatpush3.bf16.msra.mxu0 %v12163_v41 }
 0x20a   : > { %17193 = vst [vmem:[#allocation57_spill] sm:$0xff] %v14721_v55  ;;  %v6542_v32 = vor.u32 %v6541_v25, %v6538_v23  ;;  %v6033_v52 = vsel %vm12864_vm7, %v10337_v28, %v6032_v54  ;;  %v6034_v51 = vrot.slane %v6032_v54, 4  ;;  %v6545_v29 = vshrl.u32 %v10321_v19, 16  ;;  %11774 = vmatprep.subr.bf16.mxu0 %v12165_v24  ;;  %v14731_v55 = vpop.f32.mrf.mxu1  ;;  %v14733_v23 = vpop.f32.mrf.mxu0  ;;  %v12167_v28 = vld [vmem:[#allocation2 + $0x308] sm:$0xff]  }
 0x20b   : > { %v6533_v8 = vsel %vm12886_vm8, %v6529_v59, %v6532_v6  ;;  %v6548_v35 = vshll.u32 %v10321_v19, 16  ;;  %v17194_v10 = vshrl.u32 %v14094_v43, 16  ;;  %v17195_v30 = vshll.u32 %v14094_v43, 16  ;;  %17196 = vst [vmem:[#allocation16_spill] sm:$0xff] %v14731_v55  ;;  %17197 = vst [vmem:[#allocation56_spill] sm:$0xff] %v14733_v23  ;;  %v12166_v55 = vld [vmem:[#allocation2 + $0x350] sm:$0xff]  }
 0x20c   : > { %v6543_v25 = vsel %vm12886_vm8, %v6534_v49, %v6542_v32  ;;  %v6036_v41 = vsel %vm12864_vm7, %v6034_v51, %v6035_v58  ;;  %v6547_v6 = vrot.slane %v6545_v29, 5  ;;  %v6559_v19 = vshrl.u32 %v10377_v5, 16  ;;  %11819 = vmatpush3.bf16.msra.mxu1 %v12162_v37  ;;  %v17198_v23 = vld [vmem:[#allocation21_spill] sm:$0xff]  ;;  %v14742_v29 = vpop.f32.mrf.mxu0  ;;  %v17201_v37 = vld [vmem:[#allocation24_spill] sm:$0xff]  ;;  %v17202_v51 = vld [vmem:[#allocation66_spill] sm:$0xff]  ;;  %v14748_v61 = vpop.f32.mrf.mxu1 }
 0x20d   : > { %v6553_v45 = vrot.slane %v17194_v10, 5  ;;  %v6554_v12 = vrot.slane %v17195_v30, 6  ;;  %v10392_v54 = vcombine.low %v6533_v8, %v6543_v25  ;;  %v10353_v59 = vcombine.low %v6033_v52, %v6036_v41  ;;  %v10322_v30 = vld [vmem:[%s12515_s13 + $0x54] sm:$0xe]  ;;  %11820 = vmatprep.subr.bf16.mxu1 %v12164_v40  ;;  %11775 = vmatpush3.bf16.msra.mxu0 %v12165_v24  ;;  %17200 = vst [vmem:[#allocation43_spill] sm:$0xff] %v14742_v29  ;;  %v12169_v41 = vld [vmem:[#allocation2 + $0x300] sm:$0xff]  }
 0x20e   : > { %v6550_v43 = vrot.slane %v6548_v35, 6  ;;  %v1724_v9 = vadd.f32 %v17199_v16, %v17198_v23  ;;  %v6561_v49 = vrot.slane %v6559_v19, 5  ;;  %v6562_v32 = vshll.u32 %v10377_v5, 16  ;;  %v12267_v35 = vld [vmem:[%s12515_s13 + $0x58] sm:$0xf]  ;;  %17203 = vst [vmem:[#allocation59_spill] sm:$0xff] %v14748_v61  ;;  %11776 = vmatprep.subr.bf16.mxu0 %v12167_v28 }
 0x20f   : > { %v6555_v10 = vor.u32 %v6554_v12, %v6553_v45  ;;  %v10338_v58 = vrot.slane %v10322_v30, 9  ;;  %v1728_v52 = vadd.f32 %v17202_v51, %v17201_v37  ;;  %11737 = vmatmul.mubr.bf16.gmra.mxu1 %v10392_v54  ;;  %11692 = vmatprep.mubr.bf16.mxu0 %v10353_v59  ;;  %v6039_v45 = vrot.slane %v12267_v35, 5  ;;  %v12268_v12 = vld [vmem:[%s12515_s13 + $0x5c] sm:$0x1]  ;;  %v12168_v37 = vld [vmem:[#allocation2 + $0x348] sm:$0xff]   ;;  %v14755_v51 = vpop.f32.mrf.mxu1 }
 0x210   : > { %v6551_v8 = vor.u32 %v6550_v43, %v6547_v6  ;;  %v6042_v25 = vrot.slane %v12268_v12, 5  ;;  %v6564_v5 = vrot.slane %v6562_v32, 6  ;;  %v10378_v23 = vld [vmem:[%s12515_s13 + $0x5c] sm:$0x3]  ;;  %v6568_v19 = vshrl.u32 %v10322_v30, 16  ;;  %11821 = vmatpush3.bf16.msra.mxu1 %v12164_v40  ;;  %v14759_v40 = vpop.f32.mrf.mxu0 }
 0x211   : > { %v6557_v16 = vrot.slane %v6555_v10, 4  ;;  %v6571_v24 = vshll.u32 %v10322_v30, 16  ;;  %v6040_v54 = vsel %vm12864_vm7, %v10338_v58, %v6039_v45  ;;  %v6041_v59 = vrot.slane %v6039_v45, 4  ;;  %11822 = vmatprep.subr.bf16.mxu1 %v12166_v55  ;;  %11777 = vmatpush3.bf16.msra.mxu0 %v12167_v28  ;;  %17206 = vst [vmem:[#allocation22_spill] sm:$0xff] %v14759_v40  ;;  %v14769_v28 = vpop.f32.mrf.mxu1 }
 0x212   : > { %v6552_v29 = vrot.slane %v6551_v8, 4  ;;  %v17204_v6 = vshrl.u32 %v14133_v31, 16  ;;  %v6565_v35 = vor.u32 %v6564_v5, %v6561_v49  ;;  %v6570_v12 = vrot.slane %v6568_v19, 5  ;;  %11778 = vmatprep.subr.bf16.mxu0 %v12169_v41 }
 0x213   : > { %v6573_v32 = vrot.slane %v6571_v24, 6  ;;  %v17205_v61 = vshll.u32 %v14133_v31, 16  ;;  %v6043_v8 = vsel %vm12864_vm7, %v6041_v59, %v6042_v25  ;;  %v6582_v45 = vshrl.u32 %v10378_v23, 16  ;;  %v12170_v59 = vld [vmem:[#allocation2 + $0x340] sm:$0xff]  }
 0x214   : > { %v6576_v43 = vrot.slane %v17204_v6, 5  ;;  %v6556_v58 = vsel %vm12886_vm8, %v6552_v29, %v6555_v10  ;;  %v6585_v6 = vshll.u32 %v10378_v23, 16  ;;  %v6566_v49 = vsel %vm12886_vm8, %v6557_v16, %v6565_v35  ;;  %11823 = vmatpush3.bf16.msra.mxu1 %v12166_v55  ;;  %v17207_v10 = vld [vmem:[#allocation58_spill] sm:$0xff]  ;;  %v17208_v16 = vld [vmem:[#allocation27_spill] sm:$0xff]  ;;  %v17209_v55 = vld [vmem:[#allocation60_spill] sm:$0xff] }
 0x215   : > { %v6577_v30 = vrot.slane %v17205_v61, 6  ;;  %v10354_v5 = vcombine.low %v6040_v54, %v6043_v8  ;;  %v6574_v19 = vor.u32 %v6573_v32, %v6570_v12  ;;  %v14767_v61 = vld [vmem:[#allocation2 + $0x3b8] sm:$0xff]   ;;  %v14773_v29 = vadd.f32 %v17207_v10, %v14705_v0  ;;  %11824 = vmatprep.subr.bf16.mxu1 %v12168_v37  ;;  %v10323_v12 = vld [vmem:[%s12515_s13 + $0x60] sm:$0xe]  ;;  %v14784_v32 = vpop.f32.mrf.mxu0  ;;  %11779 = vmatpush3.bf16.msra.mxu0 %v12169_v41 }
 0x216   : > { %v10393_v25 = vcombine.low %v6556_v58, %v6566_v49  ;;  %v6584_v23 = vrot.slane %v6582_v45, 5  ;;  %v6587_v24 = vrot.slane %v6585_v6, 6  ;;  %v14777_v54 = vadd.f32 %v17208_v16, %v14713_v1  ;;  %17210 = vst [vmem:[#allocation11_spill] sm:$0xff] %v14784_v32  ;;  %v12269_v1 = vld [vmem:[%s12515_s13 + $0x64] sm:$0xf]  ;;  %v17213_v10 = vld [vmem:[#allocation23_spill] sm:$0xff]  ;;  %11860 = vmatprep.subr.bf16.mxu0 %v14767_v61 }
 0x217   : > { %v6578_v31 = vor.u32 %v6577_v30, %v6576_v43  ;;  %v14781_v43 = vadd.f32 %v17209_v55, %v14717_v20  ;;  %11693 = vmatmul.mubr.bf16.gmra.mxu0 %v10354_v5  ;;  %v6575_v35 = vrot.slane %v6574_v19, 4  ;;  %v17211_v30 = vld [vmem:[#allocation17_spill] sm:$0xff]  ;;  %v10339_v45 = vrot.slane %v10323_v12, 9  ;;  %v17212_v49 = vld [vmem:[#allocation68_spill] sm:$0xff]  ;;  %v17214_v5 = vld [vmem:[#allocation71_spill] sm:$0xff] }
 0x218   : > { %v14787_v58 = vadd.f32 %v17211_v30, %v1724_v9  ;;  %11740 = vmatprep.mubr.bf16.mxu1 %v10393_v25  ;;  %v6588_v8 = vor.u32 %v6587_v24, %v6584_v23  ;;  %v6046_v6 = vrot.slane %v12269_v1, 5  ;;  %v14791_v20 = vadd.f32 %v17212_v49, %v1728_v52  ;;  %v12270_v55 = vld [vmem:[%s12515_s13 + $0x68] sm:$0x1]  ;;  %11825 = vmatpush3.bf16.msra.mxu1 %v12168_v37  ;;  %v14802_v25 = vpop.f32.mrf.mxu1  ;;  %v14804_v23 = vpop.f32.mrf.mxu0 }
 0x219   : > { %v6580_v0 = vrot.slane %v6578_v31, 4  ;;  %v14795_v19 = vadd.f32 %v17214_v5, %v17213_v10  ;;  %v6579_v16 = vsel %vm12886_vm8, %v6575_v35, %v6578_v31  ;;  %v6049_v32 = vrot.slane %v12270_v55, 5  ;;  %v10379_v9 = vld [vmem:[%s12515_s13 + $0x68] sm:$0x3]  ;;  %17215 = vst [vmem:[#allocation21_spill] sm:$0xff] %v14802_v25  ;;  %17216 = vst [vmem:[#allocation15_spill] sm:$0xff] %v14804_v23  ;;  %11826 = vmatprep.subr.bf16.mxu1 %v12170_v59 }
 0x21a   : > { %v6047_v41 = vsel %vm12864_vm7, %v10339_v45, %v6046_v6  ;;  %v6048_v24 = vrot.slane %v6046_v6, 4  ;;  %v6591_v30 = vshrl.u32 %v10323_v12, 16  ;;  %v6594_v35 = vshll.u32 %v10323_v12, 16  ;;  %v14814_v5 = vld [vmem:[#allocation2 + $0x3f8] sm:$0xff]   ;;  %v17219_v55 = vld [vmem:[#allocation80_spill] sm:$0xff] }
 0x21b   : > { %v6589_v52 = vsel %vm12886_vm8, %v6580_v0, %v6588_v8  ;;  %v17217_v37 = vshrl.u32 %v14171_v11, 16  ;;  %v17218_v49 = vshll.u32 %v14171_v11, 16  ;;  %v6605_v45 = vshrl.u32 %v10379_v9, 16  ;;  %v10324_v11 = vld [vmem:[%s12515_s13 + $0x6c] sm:$0xe] }
 0x21c   : > { %v10394_v31 = vcombine.low %v6579_v16, %v6589_v52  ;;  %v6050_v0 = vsel %vm12864_vm7, %v6048_v24, %v6049_v32  ;;  %v6593_v8 = vrot.slane %v6591_v30, 5  ;;  %v6608_v6 = vshll.u32 %v10379_v9, 16  ;;  %v12271_v24 = vld [vmem:[%s12515_s13 + $0x70] sm:$0xf]  ;;  %11827 = vmatpush3.bf16.msra.mxu1 %v12170_v59  ;;  %v17222_v9 = vld [vmem:[#allocation33_spill] sm:$0xff] }
 0x21d   : > { %v6599_v1 = vrot.slane %v17217_v37, 5  ;;  %v6600_v10 = vrot.slane %v17218_v49, 6  ;;  %v1736_v25 = vadd.f32 %v17219_v55, %v14167_v14  ;;  %v10355_v12 = vcombine.low %v6047_v41, %v6050_v0  ;;  %v14821_v37 = vpop.f32.mrf.mxu1  ;;  %v14823_v49 = vpop.f32.mrf.mxu0  ;;  %11908 = vmatprep.subr.bf16.mxu1 %v14814_v5 }
 0x21e   : > { %11741 = vmatmul.mubr.bf16.gmra.mxu1 %v10394_v31  ;;  %v6596_v16 = vrot.slane %v6594_v35, 6  ;;  %17220 = vst [vmem:[#allocation24_spill] sm:$0xff] %v14821_v37  ;;  %17221 = vst [vmem:[#allocation66_spill] sm:$0xff] %v14823_v49  ;;  %v6607_v23 = vrot.slane %v6605_v45, 5  ;;  %v6610_v40 = vrot.slane %v6608_v6, 6  ;;  %v10340_v32 = vrot.slane %v10324_v11, 9 }
 0x21f   : > { %v6601_v52 = vor.u32 %v6600_v10, %v6599_v1  ;;  %v6053_v30 = vrot.slane %v12271_v24, 5  ;;  %v1740_v14 = vadd.f32 %v17222_v9, %v14291_v63  ;;  %11696 = vmatprep.mubr.bf16.mxu0 %v10355_v12  ;;  %v12272_v35 = vld [vmem:[%s12515_s13 + $0x74] sm:$0x1]  ;;  %v14831_v0 = vpop.f32.mrf.mxu1  ;;  %v6614_v24 = vshrl.u32 %v10324_v11, 16  ;;  %v14839_v9 = vpop.f32.mrf.mxu0 }
 0x220   : > { %v6597_v41 = vor.u32 %v6596_v16, %v6593_v8  ;;  %v6056_v1 = vrot.slane %v12272_v35, 5  ;;  %v10380_v10 = vld [vmem:[%s12515_s13 + $0x74] sm:$0x3]  ;;  %17223 = vst [vmem:[#allocation58_spill] sm:$0xff] %v14831_v0  ;;  %v6611_v55 = vor.u32 %v6610_v40, %v6607_v23  ;;  %v6617_v37 = vshll.u32 %v10324_v11, 16  ;;  %17226 = vst [vmem:[#allocation27_spill] sm:$0xff] %v14839_v9 }
 0x221   : > { %v6603_v31 = vrot.slane %v6601_v52, 4  ;;  %v6054_v45 = vsel %vm12864_vm7, %v10340_v32, %v6053_v30  ;;  %v6055_v6 = vrot.slane %v6053_v30, 4  ;;  %v17224_v63 = vshrl.u32 %v14228_v13, 16  ;;  %v14847_v0 = vpop.f32.mrf.mxu1 }
 0x222   : > { %v6598_v59 = vrot.slane %v6597_v41, 4  ;;  %v17225_v8 = vshll.u32 %v14228_v13, 16  ;;  %v6616_v23 = vrot.slane %v6614_v24, 5  ;;  %v6628_v32 = vshrl.u32 %v10380_v10, 16  ;;  %v17227_v13 = vld [vmem:[#allocation76_spill] sm:$0xff] }
 0x223   : > { %v6622_v12 = vrot.slane %v17224_v63, 5  ;;  %v6612_v35 = vsel %vm12886_vm8, %v6603_v31, %v6611_v55  ;;  %v6057_v40 = vsel %vm12864_vm7, %v6055_v6, %v6056_v1  ;;  %v6619_v41 = vrot.slane %v6617_v37, 6  ;;  %v17228_v1 = vld [vmem:[#allocation28_spill] sm:$0xff] }
 0x224   : > { %v6623_v16 = vrot.slane %v17225_v8, 6  ;;  %v6602_v11 = vsel %vm12886_vm8, %v6598_v59, %v6601_v52  ;;  %v10356_v30 = vcombine.low %v6054_v45, %v6057_v40  ;;  %v14851_v8 = vadd.f32 %v17227_v13, %v14795_v19  ;;  %v17229_v24 = vld [vmem:[#allocation36_spill] sm:$0xff]  ;;  %v10325_v45 = vld [vmem:[%s12515_s13 + $0x78] sm:$0xe]  ;;  %v14862_v59 = vpop.f32.mrf.mxu0 }
 0x225   : > { %v10395_v31 = vcombine.low %v6602_v11, %v6612_v35  ;;  %v6630_v55 = vrot.slane %v6628_v32, 5  ;;  %v6631_v9 = vshll.u32 %v10380_v10, 16  ;;  %v14854_v6 = vadd.f32 %v17228_v1, %v1736_v25  ;;  %v14875_v32 = vpop.f32.mrf.mxu1 }
 0x226   : > { %v6624_v63 = vor.u32 %v6623_v16, %v6622_v12  ;;  %v14857_v49 = vadd.f32 %v17229_v24, %v1740_v14  ;;  %v2811_v52 = vadd.f32 %v14232_v18, %v14697_v62  ;;  %11697 = vmatmul.mubr.bf16.gmra.mxu0 %v10356_v30  ;;  %v6620_v37 = vor.u32 %v6619_v41, %v6616_v23  ;;  %v12273_v16 = vld [vmem:[%s12515_s13 + $0x7c] sm:$0xf]  ;;  %v12274_v62 = vld [vmem:[%s12515_s13 + $0x80] sm:$0x1]  ;;  %v14877_v11 = vpop.f32.mrf.mxu0 }
 0x227   : > { %11744 = vmatprep.mubr.bf16.mxu1 %v10395_v31  ;;  %v6633_v12 = vrot.slane %v6631_v9, 6  ;;  %v10341_v10 = vrot.slane %v10325_v45, 9  ;;  %v6060_v25 = vrot.slane %v12273_v16, 5  ;;  %v14867_v35 = vadd.f32 %v14245_v15, %v14701_v33  ;;  %v10381_v23 = vld [vmem:[%s12515_s13 + $0x80] sm:$0x3]  ;;  %17230 = vst [vmem:[#allocation60_spill] sm:$0xff] %v14875_v32 }
 0x228   : > { %v6626_v19 = vrot.slane %v6624_v63, 4  ;;  %v14871_v14 = vadd.f32 %v14256_v34, %v14773_v29  ;;  %v6621_v18 = vrot.slane %v6620_v37, 4  ;;  %v6063_v40 = vrot.slane %v12274_v62, 5  ;;  %17231 = vst [vmem:[#allocation17_spill] sm:$0xff] %v14877_v11  ;;  %v14894_v62 = vpop.f32.mrf.mxu1 }
 0x229   : > { %v6634_v9 = vor.u32 %v6633_v12, %v6630_v55  ;;  %v6061_v30 = vsel %vm12864_vm7, %v10341_v10, %v6060_v25  ;;  %v6062_v41 = vrot.slane %v6060_v25, 4  ;;  %v6637_v15 = vshrl.u32 %v10325_v45, 16  ;;  %v14891_v10 = vpop.f32.mrf.mxu0  ;;  %17235 = vst [vmem:[#allocation23_spill] sm:$0xff] %v14894_v62 }
 0x22a   : > { %v6625_v33 = vsel %vm12886_vm8, %v6621_v18, %v6624_v63  ;;  %v6640_v34 = vshll.u32 %v10325_v45, 16  ;;  %v17232_v29 = vshrl.u32 %v14266_v60, 16  ;;  %v17233_v31 = vshll.u32 %v14266_v60, 16  ;;  %17234 = vst [vmem:[#allocation68_spill] sm:$0xff] %v14891_v10  ;;  %v10326_v18 = vld [vmem:[%s12515_s13 + $0x84] sm:$0xe] }
 0x22b   : > { %v6635_v24 = vsel %vm12886_vm8, %v6626_v19, %v6634_v9  ;;  %v6064_v55 = vsel %vm12864_vm7, %v6062_v41, %v6063_v40  ;;  %v6639_v37 = vrot.slane %v6637_v15, 5  ;;  %v6651_v12 = vshrl.u32 %v10381_v23, 16  ;;  %v17236_v60 = vld [vmem:[#allocation86_spill] sm:$0xff]  ;;  %v17237_v41 = vld [vmem:[#allocation35_spill] sm:$0xff]  ;;  %v17238_v15 = vld [vmem:[#allocation85_spill] sm:$0xff] }
 0x22c   : > { %v6645_v13 = vrot.slane %v17232_v29, 5  ;;  %v6646_v1 = vrot.slane %v17233_v31, 6  ;;  %v10396_v16 = vcombine.low %v6625_v33, %v6635_v24  ;;  %v10357_v63 = vcombine.low %v6061_v30, %v6064_v55  ;;  %v12275_v24 = vld [vmem:[%s12515_s13 + $0x88] sm:$0xf]  ;;  %v10382_v10 = vld [vmem:[%s12515_s13 + $0x8c] sm:$0x3] }
 0x22d   : > { %v6642_v45 = vrot.slane %v6640_v34, 6  ;;  %v14897_v29 = vadd.f32 %v17236_v60, %v2811_v52  ;;  %v6653_v19 = vrot.slane %v6651_v12, 5  ;;  %v6654_v9 = vshll.u32 %v10381_v23, 16  ;;  %v12276_v34 = vld [vmem:[%s12515_s13 + $0x8c] sm:$0x1]  ;;  %v14906_v12 = vpop.f32.mrf.mxu0 }
 0x22e   : > { %v6647_v25 = vor.u32 %v6646_v1, %v6645_v13  ;;  %v10342_v40 = vrot.slane %v10326_v18, 9  ;;  %v2817_v31 = vadd.f32 %v17238_v15, %v17237_v41  ;;  %11745 = vmatmul.mubr.bf16.gmra.mxu1 %v10396_v16  ;;  %11700 = vmatprep.mubr.bf16.mxu0 %v10357_v63  ;;  %v6067_v30 = vrot.slane %v12275_v24, 5  ;;  %v14903_v1 = vpop.f32.mrf.mxu1  ;;  %17240 = vst [vmem:[#allocation80_spill] sm:$0xff] %v14906_v12  ;;  %v17241_v63 = vld [vmem:[#allocation41_spill] sm:$0xff] }
 0x22f   : > { %v6643_v33 = vor.u32 %v6642_v45, %v6639_v37  ;;  %v6070_v13 = vrot.slane %v12276_v34, 5  ;;  %17239 = vst [vmem:[#allocation71_spill] sm:$0xff] %v14903_v1  ;;  %v6656_v62 = vrot.slane %v6654_v9, 6  ;;  %v6660_v52 = vshrl.u32 %v10326_v18, 16 }
 0x230   : > { %v6649_v55 = vrot.slane %v6647_v25, 4  ;;  %v6663_v60 = vshll.u32 %v10326_v18, 16  ;;  %v6068_v41 = vsel %vm12864_vm7, %v10342_v40, %v6067_v30  ;;  %v6069_v16 = vrot.slane %v6067_v30, 4  ;;  %v14914_v9 = vpop.f32.mrf.mxu1 }
 0x231   : > { %v6644_v23 = vrot.slane %v6643_v33, 4  ;;  %v17242_v37 = vshrl.u32 %v17241_v63, 16  ;;  %v6657_v15 = vor.u32 %v6656_v62, %v6653_v19  ;;  %v6662_v24 = vrot.slane %v6660_v52, 5  ;;  %17244 = vst [vmem:[#allocation33_spill] sm:$0xff] %v14914_v9 }
 0x232   : > { %v6665_v34 = vrot.slane %v6663_v60, 6  ;;  %v17243_v1 = vshll.u32 %v17241_v63, 16  ;;  %v6071_v33 = vsel %vm12864_vm7, %v6069_v16, %v6070_v13  ;;  %v6674_v12 = vshrl.u32 %v10382_v10, 16  ;;  %v14922_v60 = vpop.f32.mrf.mxu0  ;;  %v17247_v13 = vld [vmem:[#allocation90_spill] sm:$0xff] }
 0x233   : > { %v6668_v45 = vrot.slane %v17242_v37, 5  ;;  %v6648_v18 = vsel %vm12886_vm8, %v6644_v23, %v6647_v25  ;;  %v6677_v40 = vshll.u32 %v10382_v10, 16  ;;  %v6658_v30 = vsel %vm12886_vm8, %v6649_v55, %v6657_v15  ;;  %17245 = vst [vmem:[#allocation76_spill] sm:$0xff] %v14922_v60  ;;  %v17248_v10 = vld [vmem:[#allocation92_spill] sm:$0xff] }
 0x234   : > { %v6669_v32 = vrot.slane %v17243_v1, 6  ;;  %v10358_v62 = vcombine.low %v6068_v41, %v6071_v33  ;;  %v6666_v19 = vor.u32 %v6665_v34, %v6662_v24  ;;  %v17246_v1 = vld [vmem:[#allocation88_spill] sm:$0xff]  ;;  %v10397_v25 = vcombine.low %v6648_v18, %v6658_v30  ;;  %v10327_v41 = vld [vmem:[%s12515_s13 + $0x90] sm:$0xe]  ;;  %v12277_v34 = vld [vmem:[%s12515_s13 + $0x94] sm:$0xf] }
 0x235   : > { %v14926_v63 = vadd.f32 %v17246_v1, %v14867_v35  ;;  %v6676_v23 = vrot.slane %v6674_v12, 5  ;;  %v6679_v37 = vrot.slane %v6677_v40, 6  ;;  %v14930_v16 = vadd.f32 %v17247_v13, %v14871_v14  ;;  %v14938_v35 = vpop.f32.mrf.mxu0  ;;  %v17251_v12 = vld [vmem:[#allocation87_spill] sm:$0xff]  ;;  %v17253_v33 = vld [vmem:[#allocation89_spill] sm:$0xff] }
 0x236   : > { %v6670_v52 = vor.u32 %v6669_v32, %v6668_v45  ;;  %v14933_v9 = vadd.f32 %v17248_v10, %v2817_v31  ;;  %11701 = vmatmul.mubr.bf16.gmra.mxu0 %v10358_v62  ;;  %v6667_v32 = vrot.slane %v6666_v19, 4  ;;  %v14936_v45 = vpop.f32.mrf.mxu1  ;;  %17250 = vst [vmem:[#allocation36_spill] sm:$0xff] %v14938_v35  ;;  %v2815_v15 = vadd.f32 %v17251_v12, %v14777_v54  ;;  %v17252_v31 = vld [vmem:[#allocation38_spill] sm:$0xff]  ;;  %v17254_v30 = vld [vmem:[#allocation91_spill] sm:$0xff]  ;;  %v12279_v35 = vld [vmem:[%s12515_s13 + $0xa0] sm:$0xf] }
 0x237   : > { %17249 = vst [vmem:[#allocation28_spill] sm:$0xff] %v14936_v45  ;;  %11748 = vmatprep.mubr.bf16.mxu1 %v10397_v25  ;;  %v6680_v24 = vor.u32 %v6679_v37, %v6676_v23  ;;  %v10343_v14 = vrot.slane %v10327_v41, 9  ;;  %v6074_v18 = vrot.slane %v12277_v34, 5  ;;  %v2818_v40 = vadd.f32 %v17253_v33, %v17252_v31  ;;  %v12278_v1 = vld [vmem:[%s12515_s13 + $0x98] sm:$0x1]  ;;  %v14957_v12 = vpop.f32.mrf.mxu0 }
 0x238   : > { %v6672_v55 = vrot.slane %v6670_v52, 4  ;;  %v14947_v62 = vadd.f32 %v17254_v30, %v14781_v43  ;;  %v6671_v19 = vsel %vm12886_vm8, %v6667_v32, %v6670_v52  ;;  %v6077_v13 = vrot.slane %v12278_v1, 5  ;;  %v10383_v10 = vld [vmem:[%s12515_s13 + $0x98] sm:$0x3]  ;;  %17255 = vst [vmem:[#allocation86_spill] sm:$0xff] %v14957_v12  ;;  %v14963_v30 = vpop.f32.mrf.mxu1  ;;  %v17259_v1 = vld [vmem:[#allocation12_spill] sm:$0xff] }
 0x239   : > { %v6075_v25 = vsel %vm12864_vm7, %v10343_v14, %v6074_v18  ;;  %v6076_v23 = vrot.slane %v6074_v18, 4  ;;  %v6683_v37 = vshrl.u32 %v10327_v41, 16  ;;  %v6686_v43 = vshll.u32 %v10327_v41, 16  ;;  %17258 = vst [vmem:[#allocation35_spill] sm:$0xff] %v14963_v30 }
 0x23a   : > { %v6681_v54 = vsel %vm12886_vm8, %v6672_v55, %v6680_v24  ;;  %v17256_v31 = vshrl.u32 %v14343_v21, 16  ;;  %v17257_v52 = vshll.u32 %v14343_v21, 16  ;;  %v6697_v14 = vshrl.u32 %v10383_v10, 16  ;;  %v10328_v21 = vld [vmem:[%s12515_s13 + $0x9c] sm:$0xe] }
 0x23b   : > { %v10398_v34 = vcombine.low %v6671_v19, %v6681_v54  ;;  %v6078_v55 = vsel %vm12864_vm7, %v6076_v23, %v6077_v13  ;;  %v6685_v24 = vrot.slane %v6683_v37, 5  ;;  %v6700_v18 = vshll.u32 %v10383_v10, 16  ;;  %v14974_v23 = vpop.f32.mrf.mxu0  ;;  %v17262_v10 = vld [vmem:[#allocation81_spill] sm:$0xff] }
 0x23c   : > { %v6691_v33 = vrot.slane %v17256_v31, 5  ;;  %v6692_v32 = vrot.slane %v17257_v52, 6  ;;  %v14968_v45 = vadd.f32 %v17259_v1, %v2815_v15  ;;  %v10359_v41 = vcombine.low %v6075_v25, %v6078_v55  ;;  %v14971_v31 = vpop.f32.mrf.mxu1  ;;  %17261 = vst [vmem:[#allocation41_spill] sm:$0xff] %v14974_v23  ;;  %v17263_v37 = vld [vmem:[#allocation93_spill] sm:$0xff]  ;;  %v12280_v25 = vld [vmem:[%s12515_s13 + $0xa4] sm:$0x1] }
 0x23d   : > { %11749 = vmatmul.mubr.bf16.gmra.mxu1 %v10398_v34  ;;  %v6688_v19 = vrot.slane %v6686_v43, 6  ;;  %17260 = vst [vmem:[#allocation85_spill] sm:$0xff] %v14971_v31  ;;  %v6699_v52 = vrot.slane %v6697_v14, 5  ;;  %v6702_v12 = vrot.slane %v6700_v18, 6  ;;  %v10344_v30 = vrot.slane %v10328_v21, 9 }
 0x23e   : > { %v6693_v54 = vor.u32 %v6692_v32, %v6691_v33  ;;  %v6081_v13 = vrot.slane %v12279_v35, 5  ;;  %v2821_v15 = vadd.f32 %v17263_v37, %v17262_v10  ;;  %11704 = vmatprep.mubr.bf16.mxu0 %v10359_v41  ;;  %v6084_v43 = vrot.slane %v12280_v25, 5  ;;  %v10384_v55 = vld [vmem:[%s12515_s13 + $0xa4] sm:$0x3]  ;;  %v14982_v31 = vpop.f32.mrf.mxu1 }
 0x23f   : > { %v6689_v34 = vor.u32 %v6688_v19, %v6685_v24  ;;  %v6703_v33 = vor.u32 %v6702_v12, %v6699_v52  ;;  %v6706_v18 = vshrl.u32 %v10328_v21, 16  ;;  %17264 = vst [vmem:[#allocation88_spill] sm:$0xff] %v14982_v31  ;;  %v6709_v60 = vshll.u32 %v10328_v21, 16 }
 0x240   : > { %v6695_v1 = vrot.slane %v6693_v54, 4  ;;  %v6082_v32 = vsel %vm12864_vm7, %v10344_v30, %v6081_v13  ;;  %v6083_v14 = vrot.slane %v6081_v13, 4  ;;  %v17265_v23 = vshrl.u32 %v14372_v17, 16  ;;  %v14992_v13 = vpop.f32.mrf.mxu0 }
 0x241   : > { %v6690_v35 = vrot.slane %v6689_v34, 4  ;;  %v17266_v41 = vshll.u32 %v14372_v17, 16  ;;  %v6708_v52 = vrot.slane %v6706_v18, 5  ;;  %v6720_v30 = vshrl.u32 %v10384_v55, 16  ;;  %17267 = vst [vmem:[#allocation90_spill] sm:$0xff] %v14992_v13  ;;  %v17268_v34 = vld [vmem:[#allocation65_spill] sm:$0xff] }
 0x242   : > { %v6714_v11 = vrot.slane %v17265_v23, 5  ;;  %v6704_v19 = vsel %vm12886_vm8, %v6695_v1, %v6703_v33  ;;  %v6085_v12 = vsel %vm12864_vm7, %v6083_v14, %v6084_v43  ;;  %v6711_v37 = vrot.slane %v6709_v60, 6  ;;  %v15001_v43 = vpop.f32.mrf.mxu0  ;;  %v17271_v14 = vld [vmem:[#allocation26_spill] sm:$0xff] }
 0x243   : > { %v6715_v24 = vrot.slane %v17266_v41, 6  ;;  %v6694_v21 = vsel %vm12886_vm8, %v6690_v35, %v6693_v54  ;;  %v10360_v10 = vcombine.low %v6082_v32, %v6085_v12  ;;  %v14997_v17 = vadd.f32 %v17268_v34, %v2818_v40  ;;  %v14999_v41 = vpop.f32.mrf.mxu1  ;;  %17270 = vst [vmem:[#allocation87_spill] sm:$0xff] %v15001_v43  ;;  %v17273_v60 = vld [vmem:[#allocation62_spill] sm:$0xff]  ;;  %v10329_v35 = vld [vmem:[%s12515_s13 + $0xa8] sm:$0xe]  ;;  %v17275_v34 = vld [vmem:[#allocation19_spill] sm:$0xff] }
 0x244   : > { %v10399_v25 = vcombine.low %v6694_v21, %v6704_v19  ;;  %v6722_v1 = vrot.slane %v6720_v30, 5  ;;  %v6723_v33 = vshll.u32 %v10384_v55, 16  ;;  %17269 = vst [vmem:[#allocation92_spill] sm:$0xff] %v14999_v41  ;;  %v15005_v18 = vadd.f32 %v17271_v14, %v14947_v62  ;;  %v12281_v12 = vld [vmem:[%s12515_s13 + $0xac] sm:$0xf]  ;;  %v17274_v21 = vld [vmem:[#allocation84_spill] sm:$0xff] }
 0x245   : > { %v6716_v23 = vor.u32 %v6715_v24, %v6714_v11  ;;  %v15008_v54 = vadd.f32 %v14394_v7, %v2821_v15  ;;  %v17272_v11 = vld [vmem:[#allocation83_spill] sm:$0xff]  ;;  %11705 = vmatmul.mubr.bf16.gmra.mxu0 %v10360_v10  ;;  %v6712_v32 = vor.u32 %v6711_v37, %v6708_v52  ;;  %v10345_v19 = vrot.slane %v10329_v35, 9  ;;  %v17276_v7 = vld [vmem:[#allocation42_spill] sm:$0xff]  ;;  %v15024_v52 = vpop.f32.mrf.mxu0 }
 0x246   : > { %v2819_v40 = vadd.f32 %v17273_v60, %v17272_v11  ;;  %11752 = vmatprep.mubr.bf16.mxu1 %v10399_v25  ;;  %v6725_v24 = vrot.slane %v6723_v33, 6  ;;  %v6088_v30 = vrot.slane %v12281_v12, 5  ;;  %v15016_v62 = vadd.f32 %v17275_v34, %v17274_v21  ;;  %v12282_v41 = vld [vmem:[%s12515_s13 + $0xb0] sm:$0x1]  ;;  %17277 = vst [vmem:[#allocation38_spill] sm:$0xff] %v15024_v52  ;;  %v15028_v12 = vpop.f32.mrf.mxu1 }
 0x247   : > { %v6718_v55 = vrot.slane %v6716_v23, 4  ;;  %v15020_v15 = vadd.f32 %v17276_v7, %v14787_v58  ;;  %v6713_v14 = vrot.slane %v6712_v32, 4  ;;  %v6091_v11 = vrot.slane %v12282_v41, 5  ;;  %v10385_v10 = vld [vmem:[%s12515_s13 + $0xb0] sm:$0x3]  ;;  %17278 = vst [vmem:[#allocation89_spill] sm:$0xff] %v15028_v12  ;;  %v15043_v52 = vpop.f32.mrf.mxu0 }
 0x248   : > { %v6726_v37 = vor.u32 %v6725_v24, %v6722_v1  ;;  %v6089_v25 = vsel %vm12864_vm7, %v10345_v19, %v6088_v30  ;;  %v6090_v33 = vrot.slane %v6088_v30, 4  ;;  %v6729_v60 = vshrl.u32 %v10329_v35, 16  ;;  %v15040_v12 = vpop.f32.mrf.mxu1  ;;  %17282 = vst [vmem:[#allocation12_spill] sm:$0xff] %v15043_v52 }
 0x249   : > { %v6717_v21 = vsel %vm12886_vm8, %v6713_v14, %v6716_v23  ;;  %v6732_v58 = vshll.u32 %v10329_v35, 16  ;;  %v17279_v32 = vshrl.u32 %v14420_v36, 16  ;;  %v17280_v41 = vshll.u32 %v14420_v36, 16  ;;  %17281 = vst [vmem:[#allocation91_spill] sm:$0xff] %v15040_v12  ;;  %v17283_v36 = vld [vmem:[#allocation67_spill] sm:$0xff] }
 0x24a   : > { %v6727_v1 = vsel %vm12886_vm8, %v6718_v55, %v6726_v37  ;;  %v6092_v24 = vsel %vm12864_vm7, %v6090_v33, %v6091_v11  ;;  %v6731_v19 = vrot.slane %v6729_v60, 5  ;;  %v6743_v30 = vshrl.u32 %v10385_v10, 16  ;;  %v17284_v33 = vld [vmem:[#allocation64_spill] sm:$0xff]  ;;  %v17285_v60 = vld [vmem:[#allocation30_spill] sm:$0xff]  ;;  %v10386_v12 = vld [vmem:[%s12515_s13 + $0xbc] sm:$0x3] }
 0x24b   : > { %v6737_v34 = vrot.slane %v17279_v32, 5  ;;  %v6738_v7 = vrot.slane %v17280_v41, 6  ;;  %v10400_v31 = vcombine.low %v6717_v21, %v6727_v1  ;;  %v10361_v23 = vcombine.low %v6089_v25, %v6092_v24  ;;  %v10330_v32 = vld [vmem:[%s12515_s13 + $0xb4] sm:$0xe]  ;;  %v12283_v1 = vld [vmem:[%s12515_s13 + $0xb8] sm:$0xf] }
 0x24c   : > { %v6734_v35 = vrot.slane %v6732_v58, 6  ;;  %v15046_v41 = vadd.f32 %v17283_v36, %v2819_v40  ;;  %v6745_v55 = vrot.slane %v6743_v30, 5  ;;  %v6746_v37 = vshll.u32 %v10385_v10, 16  ;;  %v12284_v58 = vld [vmem:[%s12515_s13 + $0xbc] sm:$0x1] }
 0x24d   : > { %v6739_v14 = vor.u32 %v6738_v7, %v6737_v34  ;;  %v10346_v11 = vrot.slane %v10330_v32, 9  ;;  %v2825_v43 = vadd.f32 %v17285_v60, %v17284_v33  ;;  %11753 = vmatmul.mubr.bf16.gmra.mxu1 %v10400_v31  ;;  %11708 = vmatprep.mubr.bf16.mxu0 %v10361_v23  ;;  %v6095_v25 = vrot.slane %v12283_v1, 5  ;;  %v15052_v7 = vpop.f32.mrf.mxu1 }
 0x24e   : > { %v6735_v21 = vor.u32 %v6734_v35, %v6731_v19  ;;  %v6098_v34 = vrot.slane %v12284_v58, 5  ;;  %17286 = vst [vmem:[#allocation81_spill] sm:$0xff] %v15052_v7  ;;  %v6748_v52 = vrot.slane %v6746_v37, 6  ;;  %v6752_v40 = vshrl.u32 %v10330_v32, 16  ;;  %v15059_v19 = vpop.f32.mrf.mxu0 }
 0x24f   : > { %v6741_v24 = vrot.slane %v6739_v14, 4  ;;  %v6755_v36 = vshll.u32 %v10330_v32, 16  ;;  %v6096_v10 = vsel %vm12864_vm7, %v10346_v11, %v6095_v25  ;;  %v6097_v13 = vrot.slane %v6095_v25, 4  ;;  %17288 = vst [vmem:[#allocation93_spill] sm:$0xff] %v15059_v19  ;;  %v15067_v25 = vpop.f32.mrf.mxu1  ;;  %v12288_v19 = vld [vmem:[%s12515_s13 + $0xd4] sm:$0x1] }
 0x250   : > { %v6736_v30 = vrot.slane %v6735_v21, 4  ;;  %v17287_v31 = vshrl.u32 %v14450_v4, 16  ;;  %v6749_v35 = vor.u32 %v6748_v52, %v6745_v55  ;;  %v6754_v33 = vrot.slane %v6752_v40, 5  ;;  %17290 = vst [vmem:[#allocation65_spill] sm:$0xff] %v15067_v25 }
 0x251   : > { %v6757_v60 = vrot.slane %v6755_v36, 6  ;;  %v17289_v1 = vshll.u32 %v14450_v4, 16  ;;  %v6099_v32 = vsel %vm12864_vm7, %v6097_v13, %v6098_v34  ;;  %v6766_v21 = vshrl.u32 %v10386_v12, 16 }
 0x252   : > { %v6760_v23 = vrot.slane %v17287_v31, 5  ;;  %v6740_v37 = vsel %vm12886_vm8, %v6736_v30, %v6739_v14  ;;  %v6769_v11 = vshll.u32 %v10386_v12, 16  ;;  %v15069_v31 = vpop.f32.mrf.mxu0  ;;  %v6750_v52 = vsel %vm12886_vm8, %v6741_v24, %v6749_v35  ;;  %v17292_v12 = vld [vmem:[#allocation73_spill] sm:$0xff] }
 0x253   : > { %v6761_v58 = vrot.slane %v17289_v1, 6  ;;  %17291 = vst [vmem:[#allocation26_spill] sm:$0xff] %v15069_v31  ;;  %v10362_v55 = vcombine.low %v6096_v10, %v6099_v32  ;;  %v6758_v40 = vor.u32 %v6757_v60, %v6754_v33  ;;  %v15075_v14 = vadd.f32 %v14429_v26, %v15016_v62  ;;  %v17293_v1 = vld [vmem:[#allocation74_spill] sm:$0xff]  ;;  %v17295_v26 = vld [vmem:[#allocation25_spill] sm:$0xff]  ;;  %v15090_v32 = vpop.f32.mrf.mxu1 }
 0x254   : > { %v10401_v36 = vcombine.low %v6740_v37, %v6750_v52  ;;  %v6768_v13 = vrot.slane %v6766_v21, 5  ;;  %v6771_v34 = vrot.slane %v6769_v11, 6  ;;  %v15079_v30 = vadd.f32 %v17292_v12, %v15020_v15  ;;  %v15085_v35 = vpop.f32.mrf.mxu0  ;;  %v17296_v62 = vld [vmem:[#allocation29_spill] sm:$0xff]  ;;  %v12285_v37 = vld [vmem:[%s12515_s13 + $0xc4] sm:$0xf]  ;;  %17297 = vst [vmem:[#allocation62_spill] sm:$0xff] %v15090_v32 }
 0x255   : > { %v6762_v4 = vor.u32 %v6761_v58, %v6760_v23  ;;  %v15082_v25 = vadd.f32 %v17293_v1, %v2825_v43  ;;  %11709 = vmatmul.mubr.bf16.gmra.mxu0 %v10362_v55  ;;  %v6759_v24 = vrot.slane %v6758_v40, 4  ;;  %v10331_v23 = vld [vmem:[%s12515_s13 + $0xc0] sm:$0xe]  ;;  %17294 = vst [vmem:[#allocation83_spill] sm:$0xff] %v15085_v35  ;;  %v2823_v33 = vadd.f32 %v17296_v62, %v17295_v26  ;;  %v17298_v43 = vld [vmem:[#allocation63_spill] sm:$0xff]  ;;  %v17299_v21 = vld [vmem:[#allocation45_spill] sm:$0xff] }
 0x256   : > { %11756 = vmatprep.mubr.bf16.mxu1 %v10401_v36  ;;  %v6772_v60 = vor.u32 %v6771_v34, %v6768_v13  ;;  %v10347_v58 = vrot.slane %v10331_v23, 9  ;;  %v6102_v15 = vrot.slane %v12285_v37, 5  ;;  %v2826_v11 = vadd.f32 %v17299_v21, %v17298_v43  ;;  %v17300_v52 = vld [vmem:[#allocation70_spill] sm:$0xff]  ;;  %v12286_v12 = vld [vmem:[%s12515_s13 + $0xc8] sm:$0x1]  ;;  %v15106_v37 = vpop.f32.mrf.mxu1  ;;  %v17305_v35 = vld [vmem:[#allocation95_spill] sm:$0xff] }
 0x257   : > { %v6764_v10 = vrot.slane %v6762_v4, 4  ;;  %v15096_v55 = vadd.f32 %v17300_v52, %v14791_v20  ;;  %v6763_v40 = vsel %vm12886_vm8, %v6759_v24, %v6762_v4  ;;  %v6105_v1 = vrot.slane %v12286_v12, 5  ;;  %v10387_v26 = vld [vmem:[%s12515_s13 + $0xc8] sm:$0x3]  ;;  %17301 = vst [vmem:[#allocation84_spill] sm:$0xff] %v15106_v37  ;;  %v15112_v12 = vpop.f32.mrf.mxu0 }
 0x258   : > { %v6103_v13 = vsel %vm12864_vm7, %v10347_v58, %v6102_v15  ;;  %v6104_v34 = vrot.slane %v6102_v15, 4  ;;  %v6775_v62 = vshrl.u32 %v10331_v23, 16  ;;  %v6778_v20 = vshll.u32 %v10331_v23, 16  ;;  %17304 = vst [vmem:[#allocation19_spill] sm:$0xff] %v15112_v12  ;;  %v12287_v31 = vld [vmem:[%s12515_s13 + $0xd0] sm:$0xf] }
 0x259   : > { %v6773_v36 = vsel %vm12886_vm8, %v6764_v10, %v6772_v60  ;;  %v17302_v21 = vshrl.u32 %v14491_v42, 16  ;;  %v17303_v4 = vshll.u32 %v14491_v42, 16  ;;  %v6789_v58 = vshrl.u32 %v10387_v26, 16  ;;  %v10332_v42 = vld [vmem:[%s12515_s13 + $0xcc] sm:$0xe] }
 0x25a   : > { %v10402_v43 = vcombine.low %v6763_v40, %v6773_v36  ;;  %v6106_v10 = vsel %vm12864_vm7, %v6104_v34, %v6105_v1  ;;  %v6777_v60 = vrot.slane %v6775_v62, 5  ;;  %v6792_v15 = vshll.u32 %v10387_v26, 16  ;;  %v17307_v34 = vld [vmem:[#allocation44_spill] sm:$0xff]  ;;  %v17308_v62 = vld [vmem:[#allocation47_spill] sm:$0xff] }
 0x25b   : > { %v6783_v52 = vrot.slane %v17302_v21, 5  ;;  %v6784_v24 = vrot.slane %v17303_v4, 6  ;;  %v15117_v32 = vadd.f32 %v17305_v35, %v2823_v33  ;;  %v10363_v23 = vcombine.low %v6103_v13, %v6106_v10  ;;  %v15120_v21 = vpop.f32.mrf.mxu1  ;;  %v10388_v13 = vld [vmem:[%s12515_s13 + $0xd4] sm:$0x3] }
 0x25c   : > { %11757 = vmatmul.mubr.bf16.gmra.mxu1 %v10402_v43  ;;  %v6780_v40 = vrot.slane %v6778_v20, 6  ;;  %17306 = vst [vmem:[#allocation42_spill] sm:$0xff] %v15120_v21  ;;  %v6791_v4 = vrot.slane %v6789_v58, 5  ;;  %v6794_v12 = vrot.slane %v6792_v15, 6  ;;  %v10348_v37 = vrot.slane %v10332_v42, 9  ;;  %v15127_v20 = vpop.f32.mrf.mxu0 }
 0x25d   : > { %v6785_v36 = vor.u32 %v6784_v24, %v6783_v52  ;;  %v6109_v1 = vrot.slane %v12287_v31, 5  ;;  %v2829_v26 = vadd.f32 %v17308_v62, %v17307_v34  ;;  %11712 = vmatprep.mubr.bf16.mxu0 %v10363_v23  ;;  %v6112_v43 = vrot.slane %v12288_v19, 5  ;;  %17309 = vst [vmem:[#allocation67_spill] sm:$0xff] %v15127_v20  ;;  %v15135_v19 = vpop.f32.mrf.mxu1  ;;  %v10469_v21 = vld [vmem:[%s12515_s13 + $0x24] sm:$0xf] }
 0x25e   : > { %v6781_v35 = vor.u32 %v6780_v40, %v6777_v60  ;;  %v6795_v52 = vor.u32 %v6794_v12, %v6791_v4  ;;  %v6798_v58 = vshrl.u32 %v10332_v42, 16  ;;  %v6801_v15 = vshll.u32 %v10332_v42, 16  ;;  %17312 = vst [vmem:[#allocation64_spill] sm:$0xff] %v15135_v19  ;;  %v15137_v62 = vpop.f32.mrf.mxu0  ;;  %v12171_v42 = vld [vmem:[%s12515_s13 + $0x24] sm:$0xff]  }
 0x25f   : > { %v6787_v33 = vrot.slane %v6785_v36, 4  ;;  %v6110_v24 = vsel %vm12864_vm7, %v10348_v37, %v6109_v1  ;;  %v6111_v10 = vrot.slane %v6109_v1, 4  ;;  %v17310_v34 = vshrl.u32 %v14515_v50, 16  ;;  %17313 = vst [vmem:[#allocation30_spill] sm:$0xff] %v15137_v62  ;;  %v17315_v62 = vld [vmem:[#allocation77_spill] sm:$0xff] }
 0x260   : > { %v6782_v31 = vrot.slane %v6781_v35, 4  ;;  %v17311_v60 = vshll.u32 %v14515_v50, 16  ;;  %v6800_v4 = vrot.slane %v6798_v58, 5  ;;  %v6812_v1 = vshrl.u32 %v10388_v13, 16  ;;  %v15147_v19 = vpop.f32.mrf.mxu0 }
 0x261   : > { %v6806_v23 = vrot.slane %v17310_v34, 5  ;;  %v6796_v12 = vsel %vm12886_vm8, %v6787_v33, %v6795_v52  ;;  %v6113_v37 = vsel %vm12864_vm7, %v6111_v10, %v6112_v43  ;;  %v6803_v50 = vrot.slane %v6801_v15, 6  ;;  %17314 = vst [vmem:[#allocation73_spill] sm:$0xff] %v15147_v19  ;;  %v15153_v43 = vld [vmem:[%s12515_s13 + $0x28] sm:$0xf]  ;;  %v17316_v10 = vld [vmem:[#allocation18_spill] sm:$0xff] }
 0x262   : > { %v6807_v40 = vrot.slane %v17311_v60, 6  ;;  %v6786_v35 = vsel %vm12886_vm8, %v6782_v31, %v6785_v36  ;;  %v10364_v34 = vcombine.low %v6110_v24, %v6113_v37  ;;  %v15150_v20 = vadd.f32 %v17315_v62, %v2826_v11  ;;  %v17317_v24 = vld [vmem:[#allocation20_spill] sm:$0xff]  ;;  %v17318_v31 = vld [vmem:[#allocation94_spill] sm:$0xff] }
 0x263   : > { %v10403_v33 = vcombine.low %v6786_v35, %v6796_v12  ;;  %v6814_v52 = vrot.slane %v6812_v1, 5  ;;  %v6815_v39 = vshll.u32 %v10388_v13, 16  ;;  %v15157_v58 = vadd.f32 %v17316_v10, %v15096_v55  ;;  %v10471_v12 = vld [vmem:[%s12515_s13 + $0x2c] sm:$0x1]  ;;  %v17323_v35 = vld [vmem:[#allocation31_spill] sm:$0xff] }
 0x264   : > { %v6808_v60 = vor.u32 %v6807_v40, %v6806_v23  ;;  %v15160_v36 = vadd.f32 %v14507_v22, %v2829_v26  ;;  %v2827_v15 = vadd.f32 %v17318_v31, %v17317_v24  ;;  %11713 = vmatmul.mubr.bf16.gmra.mxu0 %v10364_v34  ;;  %v6804_v11 = vor.u32 %v6803_v50, %v6800_v4  ;;  %v15164_v23 = vpop.f32.mrf.mxu1  ;;  %v15166_v40 = vpop.f32.mrf.mxu0  ;;  %v17321_v1 = vld [vmem:[#allocation61_spill] sm:$0xff]  ;;  %v17322_v22 = vld [vmem:[#allocation96_spill] sm:$0xff]  ;;  %v10472_v10 = vld [vmem:[%s12515_s13 + $0x30] sm:$0xf] }
 0x265   : > { %17319 = vst [vmem:[#allocation74_spill] sm:$0xff] %v15164_v23  ;;  %17320 = vst [vmem:[#allocation25_spill] sm:$0xff] %v15166_v40  ;;  %11760 = vmatprep.mubr.bf16.mxu1 %v10403_v33  ;;  %v6817_v62 = vrot.slane %v6815_v39, 6  ;;  %11780 = vmatprep.mubr.bf16.mxu0 %v12171_v42  ;;  %v7578_v55 = vshrl.u32 %v10469_v21, 16  ;;  %v7581_v37 = vshll.u32 %v10469_v21, 16  ;;  %v2830_v26 = vadd.f32 %v17322_v22, %v17321_v1 }
 0x266   : > { %v6810_v13 = vrot.slane %v6808_v60, 4  ;;  %v2828_v34 = vadd.f32 %v17323_v35, %v14851_v8  ;;  %v6805_v4 = vrot.slane %v6804_v11, 4  ;;  %v16838_v50 = vshll.u32 %v15153_v43, 16  ;;  %v15175_v24 = vpop.f32.mrf.mxu1  ;;  %v15177_v33 = vpop.f32.mrf.mxu0  ;;  %v12172_v35 = vld [vmem:[%s12515_s13 + $0x30] sm:$0xff]  }
 0x267   : > { %17324 = vst [vmem:[#allocation29_spill] sm:$0xff] %v15175_v24  ;;  %17325 = vst [vmem:[#allocation63_spill] sm:$0xff] %v15177_v33  ;;  %v6818_v39 = vor.u32 %v6817_v62, %v6814_v52  ;;  %v7580_v42 = vrot.slane %v7578_v55, 4  ;;  %v7583_v21 = vrot.slane %v7581_v37, 5  ;;  %v16839_v31 = vshrl.u32 %v15153_v43, 16  ;;  %v12175_v37 = vld [vmem:[%s12515_s13 + $0x3c] sm:$0xff]  }
 0x268   : > { %v15181_v1 = vadd.f32 %v14524_v53, %v2827_v15  ;;  %v6809_v8 = vsel %vm12886_vm8, %v6805_v4, %v6808_v60  ;;  %v7589_v11 = vrot.slane %v16838_v50, 5  ;;  %v7597_v22 = vshll.u32 %v10471_v12, 16  ;;  %v15189_v40 = vld [vmem:[%s12515_s13 + $0x34] sm:$0xf]  ;;  %v15191_v33 = vpop.f32.mrf.mxu1  ;;  %v15193_v52 = vpop.f32.mrf.mxu0  ;;  %v10474_v15 = vld [vmem:[%s12515_s13 + $0x38] sm:$0x1] }
 0x269   : > { %17326 = vst [vmem:[#allocation45_spill] sm:$0xff] %v15189_v40  ;;  %17327 = vst [vmem:[#allocation70_spill] sm:$0xff] %v15191_v33  ;;  %v6819_v62 = vsel %vm12886_vm8, %v6810_v13, %v6818_v39  ;;  %v7584_v55 = vor.u32 %v7583_v21, %v7580_v42  ;;  %v7593_v53 = vrot.slane %v16839_v31, 4  ;;  %v7602_v60 = vshrl.u32 %v10472_v10, 16  ;;  %v17329_v4 = vld [vmem:[#allocation79_spill] sm:$0xff]  ;;  %v17330_v50 = vld [vmem:[#allocation8_spill] sm:$0xff] }
 0x26a   : > { %17328 = vst [vmem:[#allocation95_spill] sm:$0xff] %v15193_v52  ;;  %v2833_v12 = vadd.f32 %v17330_v50, %v17329_v4  ;;  %v10404_v24 = vcombine.low %v6809_v8, %v6819_v62  ;;  %v7599_v23 = vrot.slane %v7597_v22, 5  ;;  %v7605_v19 = vshll.u32 %v10472_v10, 16  ;;  %v12177_v33 = vld [vmem:[#allocation2 + $0x3b0] sm:$0xff]   ;;  %v15203_v7 = vpop.f32.mrf.mxu1  ;;  %v15205_v52 = vpop.f32.mrf.mxu0  ;;  %v10475_v22 = vld [vmem:[%s12515_s13 + $0x3c] sm:$0xf] }
 0x26b   : > { %17331 = vst [vmem:[#allocation44_spill] sm:$0xff] %v15203_v7  ;;  %17332 = vst [vmem:[#allocation47_spill] sm:$0xff] %v15205_v52  ;;  %v7585_v13 = vrot.slane %v7584_v55, 4  ;;  %v7594_v39 = vor.u32 %v7593_v53, %v7589_v11  ;;  %v7604_v42 = vrot.slane %v7602_v60, 4  ;;  %v16840_v21 = vshll.u32 %v15189_v40, 16 }
 0x26c   : > { %v15209_v31 = vadd.f32 %v14534_v47, %v2830_v26  ;;  %11761 = vmatmul.mubr.bf16.gmra.mxu1 %v10404_v24  ;;  %11781 = vmatmul.mubr.bf16.vlgmr.msra.gmra.mxu0 %v12172_v35  ;;  %v7607_v50 = vrot.slane %v7605_v19, 5  ;;  %v16841_v8 = vshrl.u32 %v15189_v40, 16  ;;  %v7621_v10 = vshll.u32 %v10474_v15, 16  ;;  %v15213_v62 = vpop.f32.mrf.mxu0  ;;  %v17334_v26 = vld [vmem:[#allocation46_spill] sm:$0xff]  ;;  %v15233_v60 = vpop.f32.mrf.mxu1  ;;  %v10478_v52 = vld [vmem:[%s12515_s13 + $0x48] sm:$0xf] }
 0x26d   : > { %17333 = vst [vmem:[#allocation77_spill] sm:$0xff] %v15213_v62  ;;  %v15216_v4 = vadd.f32 %v14545_v56, %v2828_v34  ;;  %v7590_v55 = vsel %vm12548_vm2, %v7585_v13, %v7589_v11  ;;  %v7595_v53 = vrot.slane %v7594_v39, 4  ;;  %v7613_v47 = vrot.slane %v16840_v21, 5  ;;  %11861 = vmatpush3.bf16.msra.mxu0 %v14767_v61  ;;  %11784 = vmatprep.mubr.bf16.mxu0 %v12175_v37  ;;  %v17335_v24 = vld [vmem:[#allocation34_spill] sm:$0xff]  ;;  %v15231_v34 = vld [vmem:[%s12515_s13 + $0x40] sm:$0xf] }
 0x26e   : > { %v15224_v19 = vadd.f32 %v14571_v44, %v2833_v12  ;;  %v2831_v35 = vadd.f32 %v17335_v24, %v17334_v26  ;;  %v7608_v15 = vor.u32 %v7607_v50, %v7604_v42  ;;  %v7617_v56 = vrot.slane %v16841_v8, 4  ;;  %17336 = vst [vmem:[#allocation18_spill] sm:$0xff] %v15231_v34  ;;  %11862 = vmatprep.subr.bf16.mxu0 %v12177_v33  ;;  %v12181_v11 = vld [vmem:[#allocation2 + $0x3a8] sm:$0xff]   ;;  %v15235_v61 = vpop.f32.mrf.mxu0  ;;  %v17340_v44 = vld [vmem:[#allocation50_spill] sm:$0xff]  ;;  %v10477_v42 = vld [vmem:[%s12515_s13 + $0x44] sm:$0x1]  ;;  %v15244_v7 = vpop.f32.mrf.mxu1 }
 0x26f   : > { %17337 = vst [vmem:[#allocation20_spill] sm:$0xff] %v15233_v60  ;;  %17338 = vst [vmem:[#allocation94_spill] sm:$0xff] %v15235_v61  ;;  %v17339_v37 = vld [vmem:[#allocation97_spill] sm:$0xff]  ;;  %v7600_v13 = vsel %vm12548_vm2, %v7595_v53, %v7599_v23  ;;  %v7623_v39 = vrot.slane %v7621_v10, 5  ;;  %v7626_v50 = vshrl.u32 %v10475_v22, 16  ;;  %v7629_v8 = vshll.u32 %v10475_v22, 16 }
 0x270   : > { %v2834_v12 = vadd.f32 %v17340_v44, %v17339_v37  ;;  %v10517_v26 = vcombine.low %v7590_v55, %v7600_v13  ;;  %v7609_v24 = vrot.slane %v7608_v15, 4  ;;  %v7618_v21 = vor.u32 %v7617_v56, %v7613_v47  ;;  %v12176_v62 = vld [vmem:[%s12515_s13 + $0x48] sm:$0xff]   ;;  %17341 = vst [vmem:[#allocation61_spill] sm:$0xff] %v15244_v7  ;;  %v15246_v60 = vpop.f32.mrf.mxu0  ;;  %v12179_v55 = vld [vmem:[%s12515_s13 + $0x54] sm:$0xff]   ;;  %v12185_v13 = vld [vmem:[#allocation2 + $0x3a0] sm:$0xff]  }
 0x271   : > { %17342 = vst [vmem:[#allocation96_spill] sm:$0xff] %v15246_v60  ;;  %v2832_v37 = vadd.f32 %v14537_v27, %v14854_v6  ;;  %v7628_v44 = vrot.slane %v7626_v50, 4  ;;  %v16842_v23 = vshll.u32 %v15231_v34, 16  ;;  %v16847_v10 = vshrl.u32 %v15231_v34, 16  ;;  %11863 = vmatpush3.bf16.msra.mxu0 %v12177_v33  ;;  %v15255_v60 = vpop.f32.mrf.mxu1  ;;  %v17345_v6 = vld [vmem:[#allocation54_spill] sm:$0xff] }
 0x272   : > { %11828 = vmatprep.mubr.bf16.mxu1 %v10517_v26  ;;  %v7614_v22 = vsel %vm12548_vm2, %v7609_v24, %v7613_v47  ;;  %v7619_v53 = vrot.slane %v7618_v21, 4  ;;  %v7631_v15 = vrot.slane %v7629_v8, 5  ;;  %v7645_v56 = vshll.u32 %v10477_v42, 16  ;;  %11864 = vmatprep.subr.bf16.mxu0 %v12181_v11  ;;  %17343 = vst [vmem:[#allocation31_spill] sm:$0xff] %v15255_v60  ;;  %v15257_v27 = vpop.f32.mrf.mxu0  ;;  %v15267_v47 = vld [vmem:[%s12515_s13 + $0x4c] sm:$0xf] }
 0x273   : > { %17344 = vst [vmem:[#allocation79_spill] sm:$0xff] %v15257_v27  ;;  %v15260_v50 = vadd.f32 %v17345_v6, %v2831_v35  ;;  %v7637_v33 = vrot.slane %v16842_v23, 5  ;;  %v7641_v26 = vrot.slane %v16847_v10, 4  ;;  %v7650_v21 = vshrl.u32 %v10478_v52, 16  ;;  %v17347_v8 = vld [vmem:[#allocation98_spill] sm:$0xff]  ;;  %v17348_v42 = vld [vmem:[#allocation99_spill] sm:$0xff]  ;;  %v15276_v48 = vpop.f32.mrf.mxu1 }
 0x274   : > { %v2837_v24 = vadd.f32 %v17348_v42, %v17347_v8  ;;  %v7624_v60 = vsel %vm12548_vm2, %v7619_v53, %v7623_v39  ;;  %v7632_v61 = vor.u32 %v7631_v15, %v7628_v44  ;;  %11785 = vmatmul.mubr.bf16.gmra.mxu0 %v12176_v62  ;;  %v10480_v27 = vld [vmem:[%s12515_s13 + $0x50] sm:$0x1]  ;;  %v7653_v35 = vshll.u32 %v10478_v52, 16  ;;  %v15274_v6 = vpop.f32.mrf.mxu0  ;;  %17350 = vst [vmem:[#allocation34_spill] sm:$0xff] %v15276_v48  ;;  %v12189_v52 = vld [vmem:[#allocation2 + $0x398] sm:$0xff]  }
 0x275   : > { %17346 = vst [vmem:[#allocation8_spill] sm:$0xff] %v15260_v50  ;;  %17349 = vst [vmem:[#allocation46_spill] sm:$0xff] %v15274_v6  ;;  %v10518_v7 = vcombine.low %v7614_v22, %v7624_v60  ;;  %v7642_v23 = vor.u32 %v7641_v26, %v7637_v33  ;;  %v7647_v40 = vrot.slane %v7645_v56, 5  ;;  %v7652_v34 = vrot.slane %v7650_v21, 4  ;;  %v12178_v10 = vld [vmem:[#allocation2 + $0x3f0] sm:$0xff]   ;;  %11788 = vmatprep.mubr.bf16.mxu0 %v12179_v55  ;;  %v17352_v22 = vld [vmem:[#allocation100_spill] sm:$0xff]  ;;  %v15312_v42 = vpop.f32.mrf.mxu1 }
 0x276   : > { %11865 = vmatpush3.bf16.msra.mxu0 %v12181_v11  ;;  %v7633_v50 = vrot.slane %v7632_v61, 4  ;;  %v7655_v8 = vrot.slane %v7653_v35, 5  ;;  %v16849_v39 = vshll.u32 %v15267_v47, 16  ;;  %v16850_v62 = vshrl.u32 %v15267_v47, 16  ;;  %v15280_v44 = vpop.f32.mrf.mxu0  ;;  %v12180_v26 = vld [vmem:[%s12515_s13 + $0x60] sm:$0xff]   ;;  %v12182_v21 = vld [vmem:[#allocation2 + $0x3e8] sm:$0xff]  }
 0x277   : > { %11866 = vmatprep.subr.bf16.mxu0 %v12185_v13  ;;  %17351 = vst [vmem:[#allocation97_spill] sm:$0xff] %v15280_v44  ;;  %v15283_v60 = vadd.f32 %v14590_v2, %v2834_v12  ;;  %v15286_v55 = vadd.f32 %v17352_v22, %v2832_v37  ;;  %11829 = vmatmul.mubr.bf16.vlgmr.msra.gmra.mxu1 %v10518_v7  ;;  %v7643_v11 = vrot.slane %v7642_v23, 4  ;;  %v7669_v61 = vshll.u32 %v10480_v27, 16  ;;  %v10481_v12 = vld [vmem:[%s12515_s13 + $0x54] sm:$0xf]  ;;  %v17355_v27 = vld [vmem:[#allocation69_spill] sm:$0xff] }
 0x278   : > { %11909 = vmatpush3.bf16.msra.mxu1 %v14814_v5  ;;  %v7638_v53 = vsel %vm12548_vm2, %v7633_v50, %v7637_v33  ;;  %v7656_v15 = vor.u32 %v7655_v8, %v7652_v34  ;;  %v7661_v56 = vrot.slane %v16849_v39, 5  ;;  %v7665_v2 = vrot.slane %v16850_v62, 4  ;;  %v15297_v37 = vld [vmem:[%s12515_s13 + $0x58] sm:$0xf]  ;;  %v15299_v7 = vpop.f32.mrf.mxu0  ;;  %v17354_v5 = vld [vmem:[#allocation32_spill] sm:$0xff]  ;;  %17356 = vst [vmem:[#allocation54_spill] sm:$0xff] %v15312_v42 }
 0x279   : > { %17353 = vst [vmem:[#allocation50_spill] sm:$0xff] %v15299_v7  ;;  %v15302_v23 = vadd.f32 %v14608_v46, %v2837_v24  ;;  %v15306_v50 = vadd.f32 %v17355_v27, %v17354_v5  ;;  %v7648_v34 = vsel %vm12548_vm2, %v7643_v11, %v7647_v40  ;;  %11910 = vmatprep.subr.bf16.mxu1 %v12178_v10  ;;  %v10483_v33 = vld [vmem:[%s12515_s13 + $0x5c] sm:$0x1]  ;;  %v7671_v39 = vrot.slane %v7669_v61, 5  ;;  %v10484_v46 = vld [vmem:[%s12515_s13 + $0x60] sm:$0xf] }
 0x27a   : > { %11867 = vmatpush3.bf16.msra.mxu0 %v12185_v13  ;;  %v10519_v35 = vcombine.low %v7638_v53, %v7648_v34  ;;  %v7657_v8 = vrot.slane %v7656_v15, 4  ;;  %v7666_v22 = vor.u32 %v7665_v2, %v7661_v56  ;;  %v12183_v24 = vld [vmem:[%s12515_s13 + $0x6c] sm:$0xff]   ;;  %v15316_v5 = vpop.f32.mrf.mxu0  ;;  %v7674_v27 = vshrl.u32 %v10481_v12, 16  ;;  %v15320_v13 = vpop.f32.mrf.mxu1 }
 0x27b   : > { %11868 = vmatprep.subr.bf16.mxu0 %v12189_v52  ;;  %17357 = vst [vmem:[#allocation98_spill] sm:$0xff] %v15316_v5  ;;  %v7677_v62 = vshll.u32 %v10481_v12, 16  ;;  %v12193_v48 = vld [vmem:[#allocation2 + $0x390] sm:$0xff]   ;;  %17358 = vst [vmem:[#allocation99_spill] sm:$0xff] %v15320_v13  ;;  %v17359_v7 = vld [vmem:[#allocation49_spill] sm:$0xff]  ;;  %v7693_v34 = vshll.u32 %v10483_v33, 16 }
 0x27c   : > { %v17360_v53 = vld [vmem:[#allocation102_spill] sm:$0xff]  ;;  %11832 = vmatprep.mubr.bf16.mxu1 %v10519_v35  ;;  %v7662_v61 = vsel %vm12548_vm2, %v7657_v8, %v7661_v56  ;;  %v7667_v2 = vrot.slane %v7666_v22, 4  ;;  %11911 = vmatpush3.bf16.msra.mxu1 %v12178_v10  ;;  %v15327_v5 = vld [vmem:[%s12515_s13 + $0x64] sm:$0xf]  ;;  %v15329_v12 = vpop.f32.mrf.mxu0  ;;  %v7676_v40 = vrot.slane %v7674_v27, 4  ;;  %v17363_v42 = vshll.u32 %v15297_v37, 16  ;;  %v15335_v56 = vpop.f32.mrf.mxu1 }
 0x27d   : > { %v2838_v15 = vadd.f32 %v17360_v53, %v17359_v7  ;;  %17361 = vst [vmem:[#allocation100_spill] sm:$0xff] %v15327_v5  ;;  %17362 = vst [vmem:[#allocation32_spill] sm:$0xff] %v15329_v12  ;;  %v7679_v11 = vrot.slane %v7677_v62, 5  ;;  %v17364_v44 = vshrl.u32 %v15297_v37, 16  ;;  %11789 = vmatmul.mubr.bf16.gmra.mxu0 %v12180_v26  ;;  %11912 = vmatprep.subr.bf16.mxu1 %v12182_v21  ;;  %v12186_v35 = vld [vmem:[#allocation2 + $0x3e0] sm:$0xff]   ;;  %v7695_v8 = vrot.slane %v7693_v34, 5 }
 0x27e   : > { %v7685_v13 = vrot.slane %v17363_v42, 5  ;;  %17365 = vst [vmem:[#allocation69_spill] sm:$0xff] %v15335_v56  ;;  %v2836_v10 = vadd.f32 %v14620_v3, %v14857_v49  ;;  %v7672_v33 = vsel %vm12548_vm2, %v7667_v2, %v7671_v39  ;;  %v10486_v22 = vld [vmem:[%s12515_s13 + $0x68] sm:$0x1]  ;;  %v7698_v62 = vshrl.u32 %v10484_v46, 16  ;;  %11792 = vmatprep.mubr.bf16.mxu0 %v12183_v24  ;;  %11869 = vmatpush3.bf16.msra.mxu0 %v12189_v52  ;;  %v15342_v42 = vpop.f32.mrf.mxu0  ;;  %v15348_v52 = vpop.f32.mrf.mxu1  ;;  %v12184_v34 = vld [vmem:[%s12515_s13 + $0x78] sm:$0xff]  }
 0x27f   : > { %v7689_v7 = vrot.slane %v17364_v44, 4  ;;  %17366 = vst [vmem:[#allocation49_spill] sm:$0xff] %v15342_v42  ;;  %v10520_v27 = vcombine.low %v7662_v61, %v7672_v33  ;;  %v7680_v44 = vor.u32 %v7679_v11, %v7676_v40  ;;  %v7701_v53 = vshll.u32 %v10484_v46, 16  ;;  %11870 = vmatprep.subr.bf16.mxu0 %v12193_v48  ;;  %v12197_v12 = vld [vmem:[#allocation2 + $0x388] sm:$0xff]   ;;  %17368 = vst [vmem:[#allocation102_spill] sm:$0xff] %v15348_v52 }
 0x280   : > { %v17367_v56 = vld [vmem:[#allocation101_spill] sm:$0xff]  ;;  %v7700_v49 = vrot.slane %v7698_v62, 4  ;;  %v16851_v39 = vshll.u32 %v15327_v5, 16  ;;  %v16852_v2 = vshrl.u32 %v15327_v5, 16  ;;  %11913 = vmatpush3.bf16.msra.mxu1 %v12182_v21  ;;  %v15350_v24 = vpop.f32.mrf.mxu0  ;;  %v7717_v61 = vshll.u32 %v10486_v22, 16 }
 0x281   : > { %v7690_v26 = vor.u32 %v7689_v7, %v7685_v13  ;;  %v4061_v3 = vadd.f32 %v14649_v57, %v17367_v56  ;;  %17369 = vst [vmem:[#allocation101_spill] sm:$0xff] %v15350_v24  ;;  %11833 = vmatmul.mubr.bf16.gmra.mxu1 %v10520_v27  ;;  %v7681_v40 = vrot.slane %v7680_v44, 4  ;;  %v7703_v11 = vrot.slane %v7701_v53, 5  ;;  %11914 = vmatprep.subr.bf16.mxu1 %v12186_v35  ;;  %v12190_v57 = vld [vmem:[#allocation2 + $0x3d8] sm:$0xff]   ;;  %v17370_v7 = vld [vmem:[#allocation72_spill] sm:$0xff]  ;;  %v17371_v21 = vld [vmem:[#allocation37_spill] sm:$0xff] }
 0x282   : > { %v15355_v56 = vadd.f32 %v17370_v7, %v15306_v50  ;;  %v15358_v33 = vadd.f32 %v17371_v21, %v2838_v15  ;;  %v7709_v62 = vrot.slane %v16851_v39, 5  ;;  %v7713_v27 = vrot.slane %v16852_v2, 4  ;;  %v10487_v44 = vld [vmem:[%s12515_s13 + $0x6c] sm:$0xf]  ;;  %v12187_v22 = vld [vmem:[%s12515_s13 + $0x84] sm:$0xff]   ;;  %11871 = vmatpush3.bf16.msra.mxu0 %v12193_v48 }
 0x283   : > { %v7691_v46 = vrot.slane %v7690_v26, 4  ;;  %v15366_v26 = vpop.f32.mrf.mxu0  ;;  %v17373_v53 = vld [vmem:[#allocation53_spill] sm:$0xff]  ;;  %v7686_v50 = vsel %vm12548_vm2, %v7681_v40, %v7685_v13  ;;  %v7704_v7 = vor.u32 %v7703_v11, %v7700_v49  ;;  %v15376_v21 = vld [vmem:[%s12515_s13 + $0x70] sm:$0xf]  ;;  %v10489_v39 = vld [vmem:[%s12515_s13 + $0x74] sm:$0x1]  ;;  %11872 = vmatprep.subr.bf16.mxu0 %v12197_v12 }
 0x284   : > { %17372 = vst [vmem:[#allocation72_spill] sm:$0xff] %v15366_v26  ;;  %v15369_v24 = vadd.f32 %v17373_v53, %v2836_v10  ;;  %17374 = vst [vmem:[#allocation37_spill] sm:$0xff] %v15376_v21  ;;  %v17375_v2 = vld [vmem:[#allocation104_spill] sm:$0xff]  ;;  %v7714_v52 = vor.u32 %v7713_v27, %v7709_v62  ;;  %v7719_v26 = vrot.slane %v7717_v61, 5  ;;  %11915 = vmatpush3.bf16.msra.mxu1 %v12186_v35  ;;  %v15382_v53 = vpop.f32.mrf.mxu1  ;;  %v7722_v11 = vshrl.u32 %v10487_v44, 16 }
 0x285   : > { %v7696_v15 = vsel %vm12548_vm2, %v7691_v46, %v7695_v8  ;;  %v15380_v42 = vadd.f32 %v17375_v2, %v4061_v3  ;;  %v12201_v10 = vld [vmem:[#allocation2 + $0x380] sm:$0xff]   ;;  %17376 = vst [vmem:[#allocation53_spill] sm:$0xff] %v15382_v53  ;;  %v15384_v13 = vpop.f32.mrf.mxu0  ;;  %v17379_v8 = vld [vmem:[#allocation75_spill] sm:$0xff]  ;;  %v7705_v46 = vrot.slane %v7704_v7, 4  ;;  %v7725_v6 = vshll.u32 %v10487_v44, 16  ;;  %11793 = vmatmul.mubr.bf16.gmra.mxu0 %v12184_v34  ;;  %11916 = vmatprep.subr.bf16.mxu1 %v12190_v57  ;;  %v12194_v3 = vld [vmem:[#allocation2 + $0x3d0] sm:$0xff]  }
 0x286   : > { %v10521_v48 = vcombine.low %v7686_v50, %v7696_v15  ;;  %17377 = vst [vmem:[#allocation104_spill] sm:$0xff] %v15384_v13  ;;  %v17378_v40 = vld [vmem:[#allocation52_spill] sm:$0xff]  ;;  %v7715_v2 = vrot.slane %v7714_v52, 4  ;;  %v7741_v27 = vshll.u32 %v10489_v39, 16  ;;  %v10490_v50 = vld [vmem:[%s12515_s13 + $0x78] sm:$0xf]  ;;  %11796 = vmatprep.mubr.bf16.mxu0 %v12187_v22  ;;  %v15391_v15 = vpop.f32.mrf.mxu1  ;;  %11873 = vmatpush3.bf16.msra.mxu0 %v12197_v12 }
 0x287   : > { %v4059_v49 = vadd.f32 %v17379_v8, %v17378_v40  ;;  %17380 = vst [vmem:[#allocation52_spill] sm:$0xff] %v15391_v15  ;;  %v15393_v40 = vpop.f32.mrf.mxu0  ;;  %v17382_v7 = vld [vmem:[#allocation103_spill] sm:$0xff]  ;;  %v17383_v44 = vld [vmem:[#allocation57_spill] sm:$0xff]  ;;  %v7710_v8 = vsel %vm12548_vm2, %v7705_v46, %v7709_v62  ;;  %v7727_v52 = vrot.slane %v7725_v6, 5  ;;  %v17384_v39 = vld [vmem:[#allocation56_spill] sm:$0xff]  ;;  %11874 = vmatprep.subr.bf16.mxu0 %v12201_v10 }
 0x288   : > { %11836 = vmatprep.mubr.bf16.mxu1 %v10521_v48  ;;  %17381 = vst [vmem:[#allocation75_spill] sm:$0xff] %v15393_v40  ;;  %v4065_v34 = vadd.f32 %v17383_v44, %v17382_v7  ;;  %v7724_v48 = vrot.slane %v7722_v11, 4  ;;  %v15400_v35 = vld [vmem:[%s12515_s13 + $0x7c] sm:$0xf]  ;;  %v4063_v61 = vadd.f32 %v17384_v39, %v14897_v29  ;;  %v7720_v22 = vsel %vm12548_vm2, %v7715_v2, %v7719_v26  ;;  %v10492_v15 = vld [vmem:[%s12515_s13 + $0x80] sm:$0x1]  ;;  %v15411_v6 = vpop.f32.mrf.mxu1 }
 0x289   : > { %v17385_v40 = vshll.u32 %v15376_v21, 16  ;;  %v17386_v7 = vshrl.u32 %v15376_v21, 16  ;;  %11917 = vmatpush3.bf16.msra.mxu1 %v12190_v57  ;;  %17387 = vst [vmem:[#allocation103_spill] sm:$0xff] %v15411_v6  ;;  %v15413_v62 = vpop.f32.mrf.mxu0  ;;  %v10522_v12 = vcombine.low %v7710_v8, %v7720_v22  ;;  %v7743_v29 = vrot.slane %v7741_v27, 5  ;;  %v12188_v39 = vld [vmem:[%s12515_s13 + $0x90] sm:$0xff]   ;;  %v12198_v26 = vld [vmem:[#allocation2 + $0x3c8] sm:$0xff]  }
 0x28a   : > { %17388 = vst [vmem:[#allocation57_spill] sm:$0xff] %v15413_v62  ;;  %v7728_v46 = vor.u32 %v7727_v52, %v7724_v48  ;;  %v7746_v11 = vshrl.u32 %v10490_v50, 16  ;;  %11918 = vmatprep.subr.bf16.mxu1 %v12194_v3  ;;  %v16858_v53 = vshrl.u32 %v15400_v35, 16  ;;  %v12191_v57 = vld [vmem:[%s12515_s13 + $0x9c] sm:$0xff]   ;;  %v15419_v21 = vpop.f32.mrf.mxu1  ;;  %v7765_v48 = vshll.u32 %v10492_v15, 16  ;;  %11875 = vmatpush3.bf16.msra.mxu0 %v12201_v10 }
 0x28b   : > { %v7733_v13 = vrot.slane %v17385_v40, 5  ;;  %v7737_v44 = vrot.slane %v17386_v7, 4  ;;  %v7749_v40 = vshll.u32 %v10490_v50, 16  ;;  %v16857_v7 = vshll.u32 %v15400_v35, 16  ;;  %17389 = vst [vmem:[#allocation56_spill] sm:$0xff] %v15419_v21  ;;  %v17390_v6 = vld [vmem:[#allocation43_spill] sm:$0xff]  ;;  %11837 = vmatmul.mubr.bf16.gmra.mxu1 %v10522_v12  ;;  %v15423_v52 = vpop.f32.mrf.mxu0 }
 0x28c   : > { %v4066_v62 = vadd.f32 %v17390_v6, %v14926_v63  ;;  %v7729_v8 = vrot.slane %v7728_v46, 4  ;;  %v7748_v27 = vrot.slane %v7746_v11, 4  ;;  %17391 = vst [vmem:[#allocation43_spill] sm:$0xff] %v15423_v52  ;;  %v7761_v21 = vrot.slane %v16858_v53, 4  ;;  %v10493_v5 = vld [vmem:[%s12515_s13 + $0x84] sm:$0xf] }
 0x28d   : > { %v7738_v2 = vor.u32 %v7737_v44, %v7733_v13  ;;  %v7751_v50 = vrot.slane %v7749_v40, 5  ;;  %v7757_v44 = vrot.slane %v16857_v7, 5  ;;  %11919 = vmatpush3.bf16.msra.mxu1 %v12194_v3  ;;  %v17392_v63 = vld [vmem:[#allocation78_spill] sm:$0xff]  ;;  %v17393_v12 = vld [vmem:[#allocation59_spill] sm:$0xff]  ;;  %11797 = vmatmul.mubr.bf16.gmra.mxu0 %v12188_v39  ;;  %v12202_v46 = vld [vmem:[#allocation2 + $0x3c0] sm:$0xff]   ;;  %v7767_v7 = vrot.slane %v7765_v48, 5 }
 0x28e   : > { %v15431_v6 = vadd.f32 %v17392_v63, %v4059_v49  ;;  %v15434_v15 = vadd.f32 %v17393_v12, %v4065_v34  ;;  %v7734_v10 = vsel %vm12548_vm2, %v7729_v8, %v7733_v13  ;;  %11920 = vmatprep.subr.bf16.mxu1 %v12198_v26  ;;  %v15441_v3 = vld [vmem:[%s12515_s13 + $0x88] sm:$0xf]  ;;  %v10495_v49 = vld [vmem:[%s12515_s13 + $0x8c] sm:$0x1]  ;;  %11800 = vmatprep.mubr.bf16.mxu0 %v12191_v57  ;;  %v15444_v63 = vpop.f32.mrf.mxu1  ;;  %v7770_v8 = vshrl.u32 %v10493_v5, 16 }
 0x28f   : > { %v7739_v22 = vrot.slane %v7738_v2, 4  ;;  %v7752_v2 = vor.u32 %v7751_v50, %v7748_v27  ;;  %v7762_v40 = vor.u32 %v7761_v21, %v7757_v44  ;;  %v15447_v34 = vadd.f32 %v14755_v51, %v4063_v61  ;;  %v17395_v21 = vld [vmem:[#allocation22_spill] sm:$0xff] }
 0x290   : > { %v15450_v13 = vadd.f32 %v14769_v28, %v4066_v62  ;;  %v4064_v27 = vadd.f32 %v17395_v21, %v14930_v16  ;;  %v7773_v57 = vshll.u32 %v10493_v5, 16  ;;  %v10496_v50 = vld [vmem:[%s12515_s13 + $0x90] sm:$0xf]  ;;  %v15457_v51 = vpop.f32.mrf.mxu1  ;;  %v7772_v28 = vrot.slane %v7770_v8, 4  ;;  %v17396_v16 = vld [vmem:[#allocation11_spill] sm:$0xff] }
 0x291   : > { %v7744_v11 = vsel %vm12548_vm2, %v7739_v22, %v7743_v29  ;;  %v15452_v29 = vpop.f32.mrf.mxu0  ;;  %v7753_v48 = vrot.slane %v7752_v2, 4  ;;  %v7763_v22 = vrot.slane %v7762_v40, 4  ;;  %11921 = vmatpush3.bf16.msra.mxu1 %v12198_v26  ;;  %v16859_v61 = vshll.u32 %v15441_v3, 16  ;;  %v15469_v40 = vld [vmem:[%s12515_s13 + $0x94] sm:$0xf] }
 0x292   : > { %v10523_v39 = vcombine.low %v7734_v10, %v7744_v11  ;;  %17394 = vst [vmem:[#allocation78_spill] sm:$0xff] %v15452_v29  ;;  %v7789_v12 = vshll.u32 %v10495_v49, 16  ;;  %v12192_v10 = vld [vmem:[%s12515_s13 + $0xa8] sm:$0xff]   ;;  %11922 = vmatprep.subr.bf16.mxu1 %v12202_v46  ;;  %v4069_v11 = vadd.f32 %v17396_v16, %v14933_v9  ;;  %v7775_v2 = vrot.slane %v7773_v57, 5  ;;  %v12195_v8 = vld [vmem:[%s12515_s13 + $0xb4] sm:$0xff]   ;;  %v15473_v21 = vpop.f32.mrf.mxu1 }
 0x293   : > { %v7758_v5 = vsel %vm12548_vm2, %v7753_v48, %v7757_v44  ;;  %v7768_v26 = vsel %vm12548_vm2, %v7763_v22, %v7767_v7  ;;  %17397 = vst [vmem:[#allocation59_spill] sm:$0xff] %v15473_v21  ;;  %v17398_v49 = vld [vmem:[#allocation15_spill] sm:$0xff]  ;;  %v7781_v9 = vrot.slane %v16859_v61, 5  ;;  %v17399_v16 = vshrl.u32 %v15441_v3, 16  ;;  %v15481_v48 = vpop.f32.mrf.mxu0 }
 0x294   : > { %11840 = vmatprep.mubr.bf16.mxu1 %v10523_v39  ;;  %v10498_v39 = vld [vmem:[%s12515_s13 + $0x98] sm:$0x1]  ;;  %v4067_v53 = vadd.f32 %v17398_v49, %v14968_v45  ;;  %v10524_v62 = vcombine.low %v7758_v5, %v7768_v26  ;;  %17400 = vst [vmem:[#allocation22_spill] sm:$0xff] %v15481_v48  ;;  %v7776_v7 = vor.u32 %v7775_v2, %v7772_v28  ;;  %v7791_v22 = vrot.slane %v7789_v12, 5  ;;  %v15483_v52 = vpop.f32.mrf.mxu1  ;;  %v17402_v49 = vld [vmem:[#allocation66_spill] sm:$0xff] }
 0x295   : > { %v7785_v44 = vrot.slane %v17399_v16, 4  ;;  %v7794_v57 = vshrl.u32 %v10496_v50, 16  ;;  %v7797_v29 = vshll.u32 %v10496_v50, 16  ;;  %11923 = vmatpush3.bf16.msra.mxu1 %v12202_v46  ;;  %17401 = vst [vmem:[#allocation11_spill] sm:$0xff] %v15483_v52  ;;  %v16860_v45 = vshll.u32 %v15469_v40, 16  ;;  %11801 = vmatmul.mubr.bf16.gmra.mxu0 %v12192_v10  ;;  %v17403_v46 = vld [vmem:[#allocation21_spill] sm:$0xff] }
 0x296   : > { %11841 = vmatmul.mubr.bf16.gmra.mxu1 %v10524_v62  ;;  %v16861_v5 = vshrl.u32 %v15469_v40, 16  ;;  %v7813_v26 = vshll.u32 %v10498_v39, 16  ;;  %v4070_v16 = vadd.f32 %v17402_v49, %v14997_v17  ;;  %v7777_v28 = vrot.slane %v7776_v7, 4  ;;  %v10499_v61 = vld [vmem:[%s12515_s13 + $0x9c] sm:$0xf]  ;;  %11804 = vmatprep.mubr.bf16.mxu0 %v12195_v8  ;;  %v15497_v39 = vpop.f32.mrf.mxu0  ;;  %v17405_v17 = vld [vmem:[#allocation24_spill] sm:$0xff]  ;;  %v15510_v49 = vpop.f32.mrf.mxu1 }
 0x297   : > { %v7786_v21 = vor.u32 %v7785_v44, %v7781_v9  ;;  %v7796_v2 = vrot.slane %v7794_v57, 4  ;;  %v7799_v12 = vrot.slane %v7797_v29, 5  ;;  %v15491_v50 = vadd.f32 %v17403_v46, %v4064_v27  ;;  %17404 = vst [vmem:[#allocation15_spill] sm:$0xff] %v15497_v39  ;;  %v17406_v29 = vld [vmem:[#allocation58_spill] sm:$0xff]  ;;  %17407 = vst [vmem:[#allocation66_spill] sm:$0xff] %v15510_v49  ;;  %v12196_v39 = vld [vmem:[%s12515_s13 + $0xc0] sm:$0xff]  }
 0x298   : > { %v7805_v44 = vrot.slane %v16860_v45, 5  ;;  %v7809_v10 = vrot.slane %v16861_v5, 4  ;;  %v15500_v7 = vadd.f32 %v17405_v17, %v4069_v11  ;;  %v15503_v57 = vadd.f32 %v17406_v29, %v4067_v53  ;;  %v10501_v11 = vld [vmem:[%s12515_s13 + $0xa4] sm:$0x1]  ;;  %v15516_v53 = vpop.f32.mrf.mxu0  ;;  %v12199_v48 = vld [vmem:[%s12515_s13 + $0xcc] sm:$0xff]   ;;  %v15523_v49 = vpop.f32.mrf.mxu1 }
 0x299   : > { %v7787_v62 = vrot.slane %v7786_v21, 4  ;;  %v7782_v27 = vsel %vm12548_vm2, %v7777_v28, %v7781_v9  ;;  %v7800_v8 = vor.u32 %v7799_v12, %v7796_v2  ;;  %v15508_v21 = vld [vmem:[%s12515_s13 + $0xa0] sm:$0xf]  ;;  %v7815_v5 = vrot.slane %v7813_v26, 5  ;;  %17408 = vst [vmem:[#allocation21_spill] sm:$0xff] %v15516_v53  ;;  %17409 = vst [vmem:[#allocation24_spill] sm:$0xff] %v15523_v49 }
 0x29a   : > { %v7810_v45 = vor.u32 %v7809_v10, %v7805_v44  ;;  %v7818_v17 = vshrl.u32 %v10499_v61, 16  ;;  %v15519_v29 = vadd.f32 %v14847_v0, %v4070_v16  ;;  %v7821_v2 = vshll.u32 %v10499_v61, 16  ;;  %v10502_v12 = vld [vmem:[%s12515_s13 + $0xa8] sm:$0xf]  ;;  %v15536_v53 = vpop.f32.mrf.mxu0 }
 0x29b   : > { %v7792_v46 = vsel %vm12548_vm2, %v7787_v62, %v7791_v22  ;;  %v7801_v28 = vrot.slane %v7800_v8, 4  ;;  %v17410_v22 = vld [vmem:[#allocation27_spill] sm:$0xff]  ;;  %v16862_v52 = vshll.u32 %v15508_v21, 16  ;;  %v7837_v61 = vshll.u32 %v10501_v11, 16  ;;  %v15532_v8 = vld [vmem:[%s12515_s13 + $0xac] sm:$0xf] }
 0x29c   : > { %v10525_v9 = vcombine.low %v7782_v27, %v7792_v46  ;;  %v4068_v26 = vadd.f32 %v17410_v22, %v15005_v18  ;;  %v7811_v62 = vrot.slane %v7810_v45, 4  ;;  %v7820_v10 = vrot.slane %v7818_v17, 4  ;;  %17411 = vst [vmem:[#allocation58_spill] sm:$0xff] %v15532_v8  ;;  %v15534_v46 = vpop.f32.mrf.mxu1  ;;  %17413 = vst [vmem:[#allocation107_spill] sm:$0xff] %v15536_v53  ;;  %v17414_v11 = vld [vmem:[#allocation17_spill] sm:$0xff] }
 0x29d   : > { %v7806_v0 = vsel %vm12548_vm2, %v7801_v28, %v7805_v44  ;;  %v7823_v16 = vrot.slane %v7821_v2, 5  ;;  %v16863_v27 = vshrl.u32 %v15508_v21, 16  ;;  %17412 = vst [vmem:[#allocation27_spill] sm:$0xff] %v15534_v46  ;;  %v4073_v18 = vadd.f32 %v14862_v59, %v15008_v54  ;;  %v10504_v44 = vld [vmem:[%s12515_s13 + $0xb0] sm:$0x1]  ;;  %11805 = vmatmul.mubr.bf16.gmra.mxu0 %v12196_v39 }
 0x29e   : > { %11844 = vmatprep.mubr.bf16.mxu1 %v10525_v9  ;;  %v7816_v45 = vsel %vm12548_vm2, %v7811_v62, %v7815_v5  ;;  %v7829_v17 = vrot.slane %v16862_v52, 5  ;;  %v7842_v9 = vshrl.u32 %v10502_v12, 16  ;;  %v4071_v28 = vadd.f32 %v17414_v11, %v15046_v41  ;;  %11808 = vmatprep.mubr.bf16.mxu0 %v12199_v48  ;;  %v15549_v59 = vpop.f32.mrf.mxu1 }
 0x29f   : > { %v10526_v2 = vcombine.low %v7806_v0, %v7816_v45  ;;  %v7824_v22 = vor.u32 %v7823_v16, %v7820_v10  ;;  %v7833_v53 = vrot.slane %v16863_v27, 4  ;;  %17415 = vst [vmem:[#allocation17_spill] sm:$0xff] %v15549_v59  ;;  %v7839_v54 = vrot.slane %v7837_v61, 5  ;;  %v15553_v0 = vpop.f32.mrf.mxu0  ;;  %v17417_v16 = vld [vmem:[#allocation60_spill] sm:$0xff] }
 0x2a0   : > { %v7844_v5 = vrot.slane %v7842_v9, 4  ;;  %v7845_v62 = vshll.u32 %v10502_v12, 16  ;;  %v16864_v52 = vshll.u32 %v15532_v8, 16  ;;  %v16865_v41 = vshrl.u32 %v15532_v8, 16  ;;  %17416 = vst [vmem:[#allocation108_spill] sm:$0xff] %v15553_v0  ;;  %v17419_v45 = vld [vmem:[#allocation68_spill] sm:$0xff] }
 0x2a1   : > { %11845 = vmatmul.mubr.bf16.gmra.mxu1 %v10526_v2  ;;  %v7825_v39 = vrot.slane %v7824_v22, 4  ;;  %v7834_v46 = vor.u32 %v7833_v53, %v7829_v17  ;;  %v7861_v10 = vshll.u32 %v10504_v44, 16  ;;  %v15556_v48 = vadd.f32 %v17417_v16, %v4068_v26  ;;  %v10505_v9 = vld [vmem:[%s12515_s13 + $0xb4] sm:$0xf]  ;;  %v12200_v2 = vld [vmem:[%s12515_s13 + $0xd8] sm:$0xff]   ;;  %v15586_v49 = vpop.f32.mrf.mxu0 }
 0x2a2   : > { %v4074_v11 = vadd.f32 %v17419_v45, %v15075_v14  ;;  %v7847_v61 = vrot.slane %v7845_v62, 5  ;;  %v7853_v12 = vrot.slane %v16864_v52, 5  ;;  %v17420_v22 = vld [vmem:[#allocation23_spill] sm:$0xff]  ;;  %v7857_v26 = vrot.slane %v16865_v41, 4  ;;  %v15574_v14 = vpop.f32.mrf.mxu1  ;;  %v17424_v52 = vld [vmem:[#allocation80_spill] sm:$0xff] }
 0x2a3   : > { %17418 = vst [vmem:[#allocation60_spill] sm:$0xff] %v15556_v48  ;;  %v15565_v53 = vadd.f32 %v17420_v22, %v4073_v18  ;;  %v7830_v44 = vsel %vm12548_vm2, %v7825_v39, %v7829_v17  ;;  %v7835_v27 = vrot.slane %v7834_v46, 4  ;;  %v15572_v16 = vld [vmem:[%s12515_s13 + $0xb8] sm:$0xf]  ;;  %17422 = vst [vmem:[#allocation23_spill] sm:$0xff] %v15574_v14  ;;  %v4072_v48 = vadd.f32 %v17424_v52, %v15079_v30  ;;  %v17427_v14 = vld [vmem:[#allocation33_spill] sm:$0xff] }
 0x2a4   : > { %17421 = vst [vmem:[#allocation68_spill] sm:$0xff] %v15572_v16  ;;  %v17423_v62 = vld [vmem:[#allocation71_spill] sm:$0xff]  ;;  %v7848_v18 = vor.u32 %v7847_v61, %v7844_v5  ;;  %v7863_v22 = vrot.slane %v7861_v10, 5  ;;  %v7858_v46 = vor.u32 %v7857_v26, %v7853_v12  ;;  %v7866_v0 = vshrl.u32 %v10505_v9, 16  ;;  %v15584_v59 = vpop.f32.mrf.mxu1  ;;  %17426 = vst [vmem:[#allocation80_spill] sm:$0xff] %v15586_v49 }
 0x2a5   : > { %v15577_v45 = vadd.f32 %v17423_v62, %v4071_v28  ;;  %v7840_v17 = vsel %vm12548_vm2, %v7835_v27, %v7839_v54  ;;  %v10507_v39 = vld [vmem:[%s12515_s13 + $0xbc] sm:$0x1]  ;;  %v7869_v41 = vshll.u32 %v10505_v9, 16  ;;  %17425 = vst [vmem:[#allocation71_spill] sm:$0xff] %v15584_v59  ;;  %v15589_v8 = vadd.f32 %v17427_v14, %v4074_v11  ;;  %v10508_v52 = vld [vmem:[%s12515_s13 + $0xc0] sm:$0xf]  ;;  %11809 = vmatmul.mubr.bf16.gmra.mxu0 %v12200_v2 }
 0x2a6   : > { %v10527_v28 = vcombine.low %v7830_v44, %v7840_v17  ;;  %v7849_v62 = vrot.slane %v7848_v18, 4  ;;  %v16868_v30 = vshll.u32 %v15572_v16, 16  ;;  %v7859_v27 = vrot.slane %v7858_v46, 4  ;;  %v15594_v61 = vpop.f32.mrf.mxu1  ;;  %v17429_v9 = vld [vmem:[#allocation76_spill] sm:$0xff]  ;;  %v10510_v17 = vld [vmem:[%s12515_s13 + $0xc8] sm:$0x1] }
 0x2a7   : > { %v7868_v54 = vrot.slane %v7866_v0, 4  ;;  %v7871_v5 = vrot.slane %v7869_v41, 5  ;;  %v16869_v10 = vshrl.u32 %v15572_v16, 16  ;;  %17428 = vst [vmem:[#allocation33_spill] sm:$0xff] %v15594_v61  ;;  %v4077_v26 = vadd.f32 %v17429_v9, %v15082_v25  ;;  %v15603_v18 = vld [vmem:[%s12515_s13 + $0xc4] sm:$0xf]  ;;  %v15610_v25 = vpop.f32.mrf.mxu0 }
 0x2a8   : > { %11848 = vmatprep.mubr.bf16.mxu1 %v10527_v28  ;;  %v7854_v11 = vsel %vm12548_vm2, %v7849_v62, %v7853_v12  ;;  %v7877_v44 = vrot.slane %v16868_v30, 5  ;;  %v7885_v14 = vshll.u32 %v10507_v39, 16  ;;  %17430 = vst [vmem:[#allocation76_spill] sm:$0xff] %v15603_v18  ;;  %v7864_v41 = vsel %vm12548_vm2, %v7859_v27, %v7863_v22  ;;  %17431 = vst [vmem:[#allocation109_spill] sm:$0xff] %v15610_v25  ;;  %v17432_v12 = vld [vmem:[#allocation36_spill] sm:$0xff]  ;;  %v15614_v30 = vpop.f32.mrf.mxu1 }
 0x2a9   : > { %v7872_v0 = vor.u32 %v7871_v5, %v7868_v54  ;;  %v7881_v2 = vrot.slane %v16869_v10, 4  ;;  %v7890_v46 = vshrl.u32 %v10508_v52, 16  ;;  %v4075_v28 = vadd.f32 %v17432_v12, %v15117_v32  ;;  %17433 = vst [vmem:[#allocation36_spill] sm:$0xff] %v15614_v30  ;;  %v17434_v54 = vld [vmem:[#allocation28_spill] sm:$0xff]  ;;  %v10511_v32 = vld [vmem:[%s12515_s13 + $0xcc] sm:$0xf] }
 0x2aa   : > { %v10528_v62 = vcombine.low %v7854_v11, %v7864_v41  ;;  %v7887_v9 = vrot.slane %v7885_v14, 5  ;;  %v7893_v39 = vshll.u32 %v10508_v52, 16  ;;  %v16870_v27 = vshll.u32 %v15603_v18, 16  ;;  %v17435_v11 = vld [vmem:[#allocation35_spill] sm:$0xff] }
 0x2ab   : > { %v7873_v49 = vrot.slane %v7872_v0, 4  ;;  %v7882_v61 = vor.u32 %v7881_v2, %v7877_v44  ;;  %v7892_v22 = vrot.slane %v7890_v46, 4  ;;  %v15618_v5 = vadd.f32 %v17434_v54, %v4072_v48  ;;  %v15629_v2 = vpop.f32.mrf.mxu0  ;;  %v17437_v48 = vld [vmem:[#allocation85_spill] sm:$0xff] }
 0x2ac   : > { %11849 = vmatmul.mubr.bf16.gmra.mxu1 %v10528_v62  ;;  %v7895_v10 = vrot.slane %v7893_v39, 5  ;;  %v16871_v25 = vshrl.u32 %v15603_v18, 16  ;;  %v7909_v59 = vshll.u32 %v10510_v17, 16  ;;  %v15623_v52 = vadd.f32 %v17435_v11, %v4077_v26  ;;  %17436 = vst [vmem:[#allocation28_spill] sm:$0xff] %v15629_v2  ;;  %v17438_v17 = vld [vmem:[#allocation86_spill] sm:$0xff] }
 0x2ad   : > { %v7878_v14 = vsel %vm12548_vm2, %v7873_v49, %v7877_v44  ;;  %v7883_v41 = vrot.slane %v7882_v61, 4  ;;  %v7901_v0 = vrot.slane %v16870_v27, 5  ;;  %v15632_v46 = vadd.f32 %v17437_v48, %v4075_v28  ;;  %v15639_v39 = vld [vmem:[%s12515_s13 + $0xd0] sm:$0xf]  ;;  %v15641_v49 = vpop.f32.mrf.mxu1  ;;  %v17441_v61 = vld [vmem:[#allocation41_spill] sm:$0xff] }
 0x2ae   : > { %v4078_v12 = vadd.f32 %v17438_v17, %v15150_v20  ;;  %v7896_v62 = vor.u32 %v7895_v10, %v7892_v22  ;;  %v7905_v26 = vrot.slane %v16871_v25, 4  ;;  %17439 = vst [vmem:[#allocation35_spill] sm:$0xff] %v15639_v39  ;;  %17440 = vst [vmem:[#allocation85_spill] sm:$0xff] %v15641_v49  ;;  %v4076_v44 = vadd.f32 %v17441_v61, %v15157_v58  ;;  %v10513_v28 = vld [vmem:[%s12515_s13 + $0xd4] sm:$0x1] }
 0x2af   : > { %v7888_v54 = vsel %vm12548_vm2, %v7883_v41, %v7887_v9  ;;  %v7911_v11 = vrot.slane %v7909_v59, 5  ;;  %v7914_v48 = vshrl.u32 %v10511_v32, 16  ;;  %v7917_v10 = vshll.u32 %v10511_v32, 16  ;;  %v10514_v22 = vld [vmem:[%s12515_s13 + $0xd8] sm:$0xf]  ;;  %v15649_v17 = vpop.f32.mrf.mxu1  ;;  %v17443_v25 = vld [vmem:[#allocation90_spill] sm:$0xff]  ;;  %v15655_v59 = vpop.f32.mrf.mxu0 }
 0x2b0   : > { %v10529_v27 = vcombine.low %v7878_v14, %v7888_v54  ;;  %v7897_v2 = vrot.slane %v7896_v62, 4  ;;  %v7906_v20 = vor.u32 %v7905_v26, %v7901_v0  ;;  %17442 = vst [vmem:[#allocation86_spill] sm:$0xff] %v15649_v17  ;;  %v4081_v49 = vadd.f32 %v17443_v25, %v15160_v36  ;;  %17444 = vst [vmem:[#allocation41_spill] sm:$0xff] %v15655_v59  ;;  %v17446_v26 = vld [vmem:[#allocation87_spill] sm:$0xff]  ;;  %v17448_v17 = vld [vmem:[#allocation38_spill] sm:$0xff] }
 0x2b1   : > { %v7916_v30 = vrot.slane %v7914_v48, 4  ;;  %v16872_v58 = vshll.u32 %v15639_v39, 16  ;;  %v16873_v61 = vshrl.u32 %v15639_v39, 16  ;;  %v7919_v14 = vrot.slane %v7917_v10, 5  ;;  %v15659_v62 = vpop.f32.mrf.mxu1  ;;  %v15668_v48 = vld [vmem:[%s12515_s13 + $0xdc] sm:$0xf] }
 0x2b2   : > { %11852 = vmatprep.mubr.bf16.mxu1 %v10529_v27  ;;  %v7902_v9 = vsel %vm12548_vm2, %v7897_v2, %v7901_v0  ;;  %v7907_v32 = vrot.slane %v7906_v20, 4  ;;  %v7933_v41 = vshll.u32 %v10513_v28, 16  ;;  %17445 = vst [vmem:[#allocation90_spill] sm:$0xff] %v15659_v62  ;;  %v4079_v36 = vadd.f32 %v17446_v26, %v15181_v1  ;;  %17447 = vst [vmem:[#allocation87_spill] sm:$0xff] %v15668_v48  ;;  %v10516_v20 = vld [vmem:[%s12515_s13 + $0xe0] sm:$0x1] }
 0x2b3   : > { %v7925_v25 = vrot.slane %v16872_v58, 5  ;;  %v7929_v54 = vrot.slane %v16873_v61, 4  ;;  %v7938_v27 = vshrl.u32 %v10514_v22, 16  ;;  %v4082_v0 = vadd.f32 %v17448_v17, %v15209_v31  ;;  %v15675_v58 = vpop.f32.mrf.mxu1  ;;  %v15677_v61 = vpop.f32.mrf.mxu0  ;;  %v17451_v17 = vld [vmem:[#allocation88_spill] sm:$0xff] }
 0x2b4   : > { %v7912_v2 = vsel %vm12548_vm2, %v7907_v32, %v7911_v11  ;;  %v7920_v28 = vor.u32 %v7919_v14, %v7916_v30  ;;  %v7941_v10 = vshll.u32 %v10514_v22, 16  ;;  %v7935_v26 = vrot.slane %v7933_v41, 5  ;;  %17449 = vst [vmem:[#allocation38_spill] sm:$0xff] %v15675_v58  ;;  %17450 = vst [vmem:[#allocation110_spill] sm:$0xff] %v15677_v61  ;;  %v17452_v30 = vld [vmem:[#allocation92_spill] sm:$0xff] }
 0x2b5   : > { %v10530_v62 = vcombine.low %v7902_v9, %v7912_v2  ;;  %v7930_v1 = vor.u32 %v7929_v54, %v7925_v25  ;;  %v7940_v59 = vrot.slane %v7938_v27, 4  ;;  %v16880_v16 = vshll.u32 %v15668_v48, 16  ;;  %v15694_v2 = vpop.f32.mrf.mxu0 }
 0x2b6   : > { %v7921_v39 = vrot.slane %v7920_v28, 4  ;;  %v7943_v18 = vrot.slane %v7941_v10, 5  ;;  %v16881_v31 = vshrl.u32 %v15668_v48, 16  ;;  %v15682_v11 = vadd.f32 %v17451_v17, %v4078_v12  ;;  %v10541_v12 = vld [vmem:[%s12515_s13 + $0x24] sm:$0xe]  ;;  %17453 = vst [vmem:[#allocation88_spill] sm:$0xff] %v15694_v2 }
 0x2b7   : > { %v15685_v22 = vadd.f32 %v17452_v30, %v4076_v44  ;;  %11853 = vmatmul.mubr.bf16.gmra.mxu1 %v10530_v62  ;;  %v7931_v9 = vrot.slane %v7930_v1, 4  ;;  %v7957_v32 = vshll.u32 %v10516_v20, 16  ;;  %v7949_v54 = vrot.slane %v16880_v16, 5  ;;  %v17454_v44 = vld [vmem:[#allocation89_spill] sm:$0xff]  ;;  %v17455_v28 = vld [vmem:[#allocation91_spill] sm:$0xff] }
 0x2b8   : > { %v7926_v14 = vsel %vm12548_vm2, %v7921_v39, %v7925_v25  ;;  %v7944_v41 = vor.u32 %v7943_v18, %v7940_v59  ;;  %v7953_v27 = vrot.slane %v16881_v31, 4  ;;  %v15697_v62 = vadd.f32 %v17454_v44, %v4081_v49  ;;  %v17456_v39 = vld [vmem:[#allocation81_spill] sm:$0xff]  ;;  %v15707_v59 = vpop.f32.mrf.mxu1 }
 0x2b9   : > { %v15700_v20 = vadd.f32 %v17455_v28, %v4079_v36  ;;  %v15703_v25 = vadd.f32 %v17456_v39, %v4082_v0  ;;  %v7936_v18 = vsel %vm12548_vm2, %v7931_v9, %v7935_v26  ;;  %17457 = vst [vmem:[#allocation92_spill] sm:$0xff] %v15707_v59  ;;  %v7959_v30 = vrot.slane %v7957_v32, 5  ;;  %v12289_v31 = vld [vmem:[%s12515_s13 + $0x28] sm:$0xf]  ;;  %v12290_v49 = vld [vmem:[%s12515_s13 + $0x2c] sm:$0x1]  ;;  %v15718_v32 = vpop.f32.mrf.mxu0 }
 0x2ba   : > { %v10531_v10 = vcombine.low %v7926_v14, %v7936_v18  ;;  %v7945_v1 = vrot.slane %v7944_v41, 4  ;;  %v7954_v17 = vor.u32 %v7953_v27, %v7949_v54  ;;  %v10557_v16 = vrot.slane %v10541_v12, 9  ;;  %v10597_v2 = vld [vmem:[%s12515_s13 + $0x2c] sm:$0x3]  ;;  %v15712_v28 = vpop.f32.mrf.mxu1  ;;  %v17459_v0 = vld [vmem:[#allocation12_spill] sm:$0xff]  ;;  %17460 = vst [vmem:[#allocation91_spill] sm:$0xff] %v15718_v32 }
 0x2bb   : > { %v8349_v58 = vrot.slane %v12289_v31, 5  ;;  %v8352_v44 = vrot.slane %v12290_v49, 5  ;;  %v8798_v36 = vshrl.u32 %v10541_v12, 16  ;;  %17458 = vst [vmem:[#allocation89_spill] sm:$0xff] %v15712_v28  ;;  %v4080_v39 = vadd.f32 %v17459_v0, %v15216_v4  ;;  %v17468_v32 = vld [vmem:[#allocation26_spill] sm:$0xff] }
 0x2bc   : > { %11856 = vmatprep.mubr.bf16.mxu1 %v10531_v10  ;;  %v7950_v26 = vsel %vm12548_vm2, %v7945_v1, %v7949_v54  ;;  %v7955_v9 = vrot.slane %v7954_v17, 4  ;;  %v8801_v14 = vshll.u32 %v10541_v12, 16  ;;  %v17462_v49 = vshrl.u32 %v15153_v43, 16  ;;  %v15728_v12 = vpop.f32.mrf.mxu1  ;;  %v17465_v17 = vld [vmem:[#allocation93_spill] sm:$0xff] }
 0x2bd   : > { %v8350_v31 = vsel %vm12864_vm7, %v10557_v16, %v8349_v58  ;;  %v8351_v27 = vrot.slane %v8349_v58, 4  ;;  %v8800_v18 = vrot.slane %v8798_v36, 5  ;;  %v17463_v0 = vshll.u32 %v15153_v43, 16  ;;  %17464 = vst [vmem:[#allocation81_spill] sm:$0xff] %v15728_v12 }
 0x2be   : > { %v8806_v28 = vrot.slane %v17462_v49, 5  ;;  %v7960_v4 = vsel %vm12548_vm2, %v7955_v9, %v7959_v30  ;;  %v8803_v10 = vrot.slane %v8801_v14, 6  ;;  %v8812_v1 = vshrl.u32 %v10597_v2, 16  ;;  %v10542_v49 = vld [vmem:[%s12515_s13 + $0x30] sm:$0xe]  ;;  %v15735_v14 = vpop.f32.mrf.mxu0 }
 0x2bf   : > { %v8807_v54 = vrot.slane %v17463_v0, 6  ;;  %v4085_v59 = vadd.f32 %v17465_v17, %v15224_v19  ;;  %v10532_v16 = vcombine.low %v7950_v26, %v7960_v4  ;;  %v8353_v58 = vsel %vm12864_vm7, %v8351_v27, %v8352_v44  ;;  %17466 = vst [vmem:[#allocation12_spill] sm:$0xff] %v15735_v14  ;;  %v17467_v0 = vld [vmem:[#allocation8_spill] sm:$0xff]  ;;  %v12291_v26 = vld [vmem:[%s12515_s13 + $0x34] sm:$0xf] }
 0x2c0   : > { %v8815_v36 = vshll.u32 %v10597_v2, 16  ;;  %v10573_v38 = vcombine.low %v8350_v31, %v8353_v58  ;;  %v8804_v30 = vor.u32 %v8803_v10, %v8800_v18  ;;  %v8814_v43 = vrot.slane %v8812_v1, 5  ;;  %v12292_v27 = vld [vmem:[%s12515_s13 + $0x38] sm:$0x1]  ;;  %v15742_v18 = vpop.f32.mrf.mxu1 }
 0x2c1   : > { %v8808_v9 = vor.u32 %v8807_v54, %v8806_v28  ;;  %v4083_v12 = vadd.f32 %v17468_v32, %v17467_v0  ;;  %11857 = vmatmul.mubr.bf16.gmra.mxu1 %v10532_v16  ;;  %v10558_v19 = vrot.slane %v10542_v49, 9  ;;  %v8356_v4 = vrot.slane %v12291_v26, 5  ;;  %v10598_v31 = vld [vmem:[%s12515_s13 + $0x38] sm:$0x3]  ;;  %17469 = vst [vmem:[#allocation9_spill] sm:$0xff] %v15742_v18  ;;  %v15744_v28 = vpop.f32.mrf.mxu0 }
 0x2c2   : > { %v8817_v61 = vrot.slane %v8815_v36, 6  ;;  %11876 = vmatprep.mubr.bf16.mxu0 %v10573_v38  ;;  %v8805_v44 = vrot.slane %v8804_v30, 4  ;;  %v8359_v17 = vrot.slane %v12292_v27, 5  ;;  %v8821_v58 = vshrl.u32 %v10542_v49, 16  ;;  %17470 = vst [vmem:[#allocation93_spill] sm:$0xff] %v15744_v28  ;;  %v17472_v30 = vld [vmem:[#allocation45_spill] sm:$0xff] }
 0x2c3   : > { %v8810_v2 = vrot.slane %v8808_v9, 4  ;;  %v8357_v32 = vsel %vm12864_vm7, %v10558_v19, %v8356_v4  ;;  %v8358_v54 = vrot.slane %v8356_v4, 4  ;;  %v8824_v1 = vshll.u32 %v10542_v49, 16 }
 0x2c4   : > { %v8818_v10 = vor.u32 %v8817_v61, %v8814_v43  ;;  %v8809_v36 = vsel %vm12886_vm8, %v8805_v44, %v8808_v9  ;;  %v8823_v38 = vrot.slane %v8821_v58, 5  ;;  %v17473_v0 = vshrl.u32 %v17472_v30, 16  ;;  %v15758_v44 = vpop.f32.mrf.mxu1  ;;  %v15760_v58 = vpop.f32.mrf.mxu0 }
 0x2c5   : > { %v17474_v27 = vshll.u32 %v17472_v30, 16  ;;  %v8360_v61 = vsel %vm12864_vm7, %v8358_v54, %v8359_v17  ;;  %v8826_v43 = vrot.slane %v8824_v1, 6  ;;  %v8835_v19 = vshrl.u32 %v10598_v31, 16  ;;  %17475 = vst [vmem:[#allocation8_spill] sm:$0xff] %v15758_v44  ;;  %17476 = vst [vmem:[#allocation26_spill] sm:$0xff] %v15760_v58  ;;  %v17477_v30 = vld [vmem:[#allocation65_spill] sm:$0xff] }
 0x2c6   : > { %v8829_v26 = vrot.slane %v17473_v0, 5  ;;  %v8819_v18 = vsel %vm12886_vm8, %v8810_v2, %v8818_v10  ;;  %v10574_v4 = vcombine.low %v8357_v32, %v8360_v61  ;;  %v8838_v9 = vshll.u32 %v10598_v31, 16  ;;  %v10543_v10 = vld [vmem:[%s12515_s13 + $0x3c] sm:$0xe]  ;;  %v17480_v1 = vld [vmem:[#allocation84_spill] sm:$0xff] }
 0x2c7   : > { %v8830_v14 = vrot.slane %v17474_v27, 6  ;;  %v10613_v49 = vcombine.low %v8809_v36, %v8819_v18  ;;  %v15763_v0 = vadd.f32 %v17477_v30, %v4080_v39  ;;  %v17478_v27 = vld [vmem:[#allocation62_spill] sm:$0xff]  ;;  %v8827_v2 = vor.u32 %v8826_v43, %v8823_v38  ;;  %v17479_v18 = vld [vmem:[#allocation83_spill] sm:$0xff]  ;;  %v10599_v30 = vld [vmem:[%s12515_s13 + $0x44] sm:$0x3] }
 0x2c8   : > { %v15766_v48 = vadd.f32 %v17478_v27, %v4085_v59  ;;  %v8837_v17 = vrot.slane %v8835_v19, 5  ;;  %11877 = vmatmul.mubr.bf16.vlgmr.msra.gmra.mxu0 %v10574_v4  ;;  %v8840_v32 = vrot.slane %v8838_v9, 6  ;;  %v10559_v54 = vrot.slane %v10543_v10, 9  ;;  %v17481_v59 = vld [vmem:[#allocation19_spill] sm:$0xff]  ;;  %v15787_v27 = vpop.f32.mrf.mxu1 }
 0x2c9   : > { %v8831_v28 = vor.u32 %v8830_v14, %v8829_v26  ;;  %v15771_v14 = vadd.f32 %v17479_v18, %v15283_v60  ;;  %11924 = vmatprep.mubr.bf16.mxu1 %v10613_v49  ;;  %v15774_v39 = vadd.f32 %v17480_v1, %v4083_v12  ;;  %v15778_v36 = vadd.f32 %v17481_v59, %v15286_v55  ;;  %v12293_v26 = vld [vmem:[%s12515_s13 + $0x40] sm:$0xf]  ;;  %v17482_v43 = vld [vmem:[#allocation67_spill] sm:$0xff]  ;;  %v12294_v49 = vld [vmem:[%s12515_s13 + $0x44] sm:$0x1]  ;;  %v15789_v12 = vpop.f32.mrf.mxu0 }
 0x2ca   : > { %v8828_v38 = vrot.slane %v8827_v2, 4  ;;  %v8363_v61 = vrot.slane %v12293_v26, 5  ;;  %v15783_v19 = vadd.f32 %v17482_v43, %v15302_v23  ;;  %v8841_v60 = vor.u32 %v8840_v32, %v8837_v17  ;;  %17483 = vst [vmem:[#allocation10_spill] sm:$0xff] %v15787_v27  ;;  %17484 = vst [vmem:[#allocation45_spill] sm:$0xff] %v15789_v12  ;;  %v17485_v32 = vld [vmem:[#allocation18_spill] sm:$0xff] }
 0x2cb   : > { %v8833_v31 = vrot.slane %v8831_v28, 4  ;;  %v8366_v4 = vrot.slane %v12294_v49, 5  ;;  %v8844_v9 = vshrl.u32 %v10543_v10, 16  ;;  %v8847_v1 = vshll.u32 %v10543_v10, 16 }
 0x2cc   : > { %v8832_v55 = vsel %vm12886_vm8, %v8828_v38, %v8831_v28  ;;  %v8364_v2 = vsel %vm12864_vm7, %v10559_v54, %v8363_v61  ;;  %v8365_v18 = vrot.slane %v8363_v61, 4  ;;  %v17486_v59 = vshrl.u32 %v17485_v32, 16  ;;  %v17488_v54 = vld [vmem:[#allocation30_spill] sm:$0xff] }
 0x2cd   : > { %v8842_v23 = vsel %vm12886_vm8, %v8833_v31, %v8841_v60  ;;  %v8846_v17 = vrot.slane %v8844_v9, 5  ;;  %v17487_v43 = vshll.u32 %v17485_v32, 16  ;;  %v8849_v38 = vrot.slane %v8847_v1, 6  ;;  %v10544_v9 = vld [vmem:[%s12515_s13 + $0x48] sm:$0xe]  ;;  %v15808_v32 = vpop.f32.mrf.mxu0 }
 0x2ce   : > { %v8852_v26 = vrot.slane %v17486_v59, 5  ;;  %v10614_v12 = vcombine.low %v8832_v55, %v8842_v23  ;;  %v8367_v28 = vsel %vm12864_vm7, %v8365_v18, %v8366_v4  ;;  %v8858_v58 = vshrl.u32 %v10599_v30, 16  ;;  %v15806_v59 = vpop.f32.mrf.mxu1  ;;  %v12295_v4 = vld [vmem:[%s12515_s13 + $0x4c] sm:$0xf] }
 0x2cf   : > { %v8853_v49 = vrot.slane %v17487_v43, 6  ;;  %v4087_v10 = vadd.f32 %v17488_v54, %v15355_v56  ;;  %v10575_v61 = vcombine.low %v8364_v2, %v8367_v28  ;;  %v8861_v60 = vshll.u32 %v10599_v30, 16  ;;  %17489 = vst [vmem:[#allocation65_spill] sm:$0xff] %v15806_v59  ;;  %v17490_v1 = vld [vmem:[#allocation73_spill] sm:$0xff] }
 0x2d0   : > { %11925 = vmatmul.mubr.bf16.vlgmr.msra.gmra.mxu1 %v10614_v12  ;;  %v8850_v55 = vor.u32 %v8849_v38, %v8846_v17  ;;  %v8860_v23 = vrot.slane %v8858_v58, 5  ;;  %v10560_v43 = vrot.slane %v10544_v9, 9  ;;  %v8370_v18 = vrot.slane %v12295_v4, 5  ;;  %v15817_v17 = vpop.f32.mrf.mxu0 }
 0x2d1   : > { %v8854_v31 = vor.u32 %v8853_v49, %v8852_v26  ;;  %v4090_v27 = vadd.f32 %v17490_v1, %v15358_v33  ;;  %11880 = vmatprep.mubr.bf16.mxu0 %v10575_v61  ;;  %v8863_v2 = vrot.slane %v8861_v60, 6  ;;  %v12296_v26 = vld [vmem:[%s12515_s13 + $0x50] sm:$0x1]  ;;  %v8867_v12 = vshrl.u32 %v10544_v9, 16  ;;  %v15823_v60 = vpop.f32.mrf.mxu1 }
 0x2d2   : > { %v8373_v30 = vrot.slane %v12296_v26, 5  ;;  %v10600_v49 = vld [vmem:[%s12515_s13 + $0x50] sm:$0x3]  ;;  %v8851_v28 = vrot.slane %v8850_v55, 4  ;;  %v8371_v54 = vsel %vm12864_vm7, %v10560_v43, %v8370_v18  ;;  %v8372_v59 = vrot.slane %v8370_v18, 4  ;;  %17493 = vst [vmem:[#allocation62_spill] sm:$0xff] %v15823_v60 }
 0x2d3   : > { %v8856_v56 = vrot.slane %v8854_v31, 4  ;;  %v8864_v58 = vor.u32 %v8863_v2, %v8860_v23  ;;  %v8870_v38 = vshll.u32 %v10544_v9, 16  ;;  %v17491_v4 = vshrl.u32 %v15267_v47, 16 }
 0x2d4   : > { %v17492_v33 = vshll.u32 %v15267_v47, 16  ;;  %v8855_v55 = vsel %vm12886_vm8, %v8851_v28, %v8854_v31  ;;  %v8374_v43 = vsel %vm12864_vm7, %v8372_v59, %v8373_v30  ;;  %v8869_v18 = vrot.slane %v8867_v12, 5  ;;  %v17494_v47 = vld [vmem:[#allocation42_spill] sm:$0xff]  ;;  %v15835_v28 = vpop.f32.mrf.mxu0  ;;  %v17496_v59 = vld [vmem:[#allocation64_spill] sm:$0xff] }
 0x2d5   : > { %v8875_v44 = vrot.slane %v17491_v4, 5  ;;  %v8881_v1 = vshrl.u32 %v10600_v49, 16  ;;  %v8865_v9 = vsel %vm12886_vm8, %v8856_v56, %v8864_v58  ;;  %v10576_v23 = vcombine.low %v8371_v54, %v8374_v43  ;;  %17495 = vst [vmem:[#allocation83_spill] sm:$0xff] %v15835_v28  ;;  %v17497_v12 = vld [vmem:[#allocation74_spill] sm:$0xff] }
 0x2d6   : > { %v8876_v61 = vrot.slane %v17492_v33, 6  ;;  %v8872_v2 = vrot.slane %v8870_v38, 6  ;;  %v15833_v4 = vadd.f32 %v17494_v47, %v15771_v14  ;;  %v10615_v33 = vcombine.low %v8855_v55, %v8865_v9  ;;  %v10545_v58 = vld [vmem:[%s12515_s13 + $0x54] sm:$0xe]  ;;  %v15849_v38 = vpop.f32.mrf.mxu1 }
 0x2d7   : > { %v8883_v60 = vrot.slane %v8881_v1, 5  ;;  %v8884_v31 = vshll.u32 %v10600_v49, 16  ;;  %v15839_v30 = vadd.f32 %v17496_v59, %v15778_v36  ;;  %v15843_v56 = vadd.f32 %v17497_v12, %v15783_v19  ;;  %11881 = vmatmul.mubr.bf16.gmra.mxu0 %v10576_v23  ;;  %17499 = vst [vmem:[#allocation84_spill] sm:$0xff] %v15849_v38  ;;  %v12297_v36 = vld [vmem:[%s12515_s13 + $0x58] sm:$0xf]  ;;  %v17500_v1 = vld [vmem:[#allocation70_spill] sm:$0xff] }
 0x2d8   : > { %v8877_v26 = vor.u32 %v8876_v61, %v8875_v44  ;;  %v17498_v44 = vld [vmem:[#allocation29_spill] sm:$0xff]  ;;  %v8873_v14 = vor.u32 %v8872_v2, %v8869_v18  ;;  %11928 = vmatprep.mubr.bf16.mxu1 %v10615_v33  ;;  %v10561_v55 = vrot.slane %v10545_v58, 9  ;;  %v8377_v43 = vrot.slane %v12297_v36, 5  ;;  %v12298_v59 = vld [vmem:[%s12515_s13 + $0x5c] sm:$0x1]  ;;  %v15861_v2 = vpop.f32.mrf.mxu1  ;;  %v15865_v36 = vpop.f32.mrf.mxu0 }
 0x2d9   : > { %v15846_v54 = vadd.f32 %v17498_v44, %v4087_v10  ;;  %v8886_v61 = vrot.slane %v8884_v31, 6  ;;  %v15853_v9 = vadd.f32 %v17500_v1, %v4090_v27  ;;  %v17501_v19 = vld [vmem:[#allocation25_spill] sm:$0xff]  ;;  %v8380_v23 = vrot.slane %v12298_v59, 5  ;;  %v10601_v18 = vld [vmem:[%s12515_s13 + $0x5c] sm:$0x3]  ;;  %17502 = vst [vmem:[#allocation19_spill] sm:$0xff] %v15861_v2 }
 0x2da   : > { %v8879_v49 = vrot.slane %v8877_v26, 4  ;;  %v15857_v47 = vadd.f32 %v17501_v19, %v15369_v24  ;;  %v8874_v10 = vrot.slane %v8873_v14, 4  ;;  %v8378_v33 = vsel %vm12864_vm7, %v10561_v55, %v8377_v43  ;;  %17503 = vst [vmem:[#allocation67_spill] sm:$0xff] %v15865_v36  ;;  %v15877_v36 = vpop.f32.mrf.mxu1  ;;  %v15882_v28 = vpop.f32.mrf.mxu0 }
 0x2db   : > { %v8887_v12 = vor.u32 %v8886_v61, %v8883_v60  ;;  %v8379_v31 = vrot.slane %v8377_v43, 4  ;;  %v8890_v44 = vshrl.u32 %v10545_v58, 16  ;;  %v8893_v24 = vshll.u32 %v10545_v58, 16  ;;  %17506 = vst [vmem:[#allocation18_spill] sm:$0xff] %v15877_v36  ;;  %17508 = vst [vmem:[#allocation30_spill] sm:$0xff] %v15882_v28 }
 0x2dc   : > { %v8878_v27 = vsel %vm12886_vm8, %v8874_v10, %v8877_v26  ;;  %v17504_v14 = vshrl.u32 %v15297_v37, 16  ;;  %v17505_v19 = vshll.u32 %v15297_v37, 16  ;;  %v8904_v43 = vshrl.u32 %v10601_v18, 16  ;;  %v17507_v37 = vld [vmem:[#allocation63_spill] sm:$0xff] }
 0x2dd   : > { %v8888_v60 = vsel %vm12886_vm8, %v8879_v49, %v8887_v12  ;;  %v8381_v61 = vsel %vm12864_vm7, %v8379_v31, %v8380_v23  ;;  %v8892_v55 = vrot.slane %v8890_v44, 5  ;;  %v8895_v58 = vrot.slane %v8893_v24, 6  ;;  %v17509_v23 = vld [vmem:[#allocation95_spill] sm:$0xff]  ;;  %v12300_v24 = vld [vmem:[%s12515_s13 + $0x68] sm:$0x1] }
 0x2de   : > { %v8898_v1 = vrot.slane %v17504_v14, 5  ;;  %v8899_v59 = vrot.slane %v17505_v19, 6  ;;  %v10616_v2 = vcombine.low %v8878_v27, %v8888_v60  ;;  %v10577_v26 = vcombine.low %v8378_v33, %v8381_v61  ;;  %v10546_v14 = vld [vmem:[%s12515_s13 + $0x60] sm:$0xe]  ;;  %v12299_v27 = vld [vmem:[%s12515_s13 + $0x64] sm:$0xf] }
 0x2df   : > { %v5154_v19 = vadd.f32 %v17507_v37, %v15380_v42  ;;  %v8906_v38 = vrot.slane %v8904_v43, 5  ;;  %v8907_v49 = vshll.u32 %v10601_v18, 16  ;;  %v10562_v12 = vrot.slane %v10546_v14, 9  ;;  %v10602_v61 = vld [vmem:[%s12515_s13 + $0x68] sm:$0x3]  ;;  %v15889_v43 = vpop.f32.mrf.mxu1  ;;  %v15891_v18 = vpop.f32.mrf.mxu0 }
 0x2e0   : > { %v8900_v10 = vor.u32 %v8899_v59, %v8898_v1  ;;  %v5152_v31 = vadd.f32 %v17509_v23, %v15431_v6  ;;  %11929 = vmatmul.mubr.bf16.gmra.mxu1 %v10616_v2  ;;  %11884 = vmatprep.mubr.bf16.mxu0 %v10577_v26  ;;  %v8896_v44 = vor.u32 %v8895_v58, %v8892_v55  ;;  %v8384_v33 = vrot.slane %v12299_v27, 5  ;;  %v17512_v26 = vld [vmem:[#allocation100_spill] sm:$0xff] }
 0x2e1   : > { %v8387_v1 = vrot.slane %v12300_v24, 5  ;;  %v8909_v60 = vrot.slane %v8907_v49, 6  ;;  %v8913_v36 = vshrl.u32 %v10546_v14, 16  ;;  %v8916_v42 = vshll.u32 %v10546_v14, 16  ;;  %17510 = vst [vmem:[#allocation73_spill] sm:$0xff] %v15889_v43  ;;  %17511 = vst [vmem:[#allocation42_spill] sm:$0xff] %v15891_v18 }
 0x2e2   : > { %v8902_v59 = vrot.slane %v8900_v10, 4  ;;  %v8897_v37 = vrot.slane %v8896_v44, 4  ;;  %v8385_v6 = vsel %vm12864_vm7, %v10562_v12, %v8384_v33  ;;  %v8386_v2 = vrot.slane %v8384_v33, 4 }
 0x2e3   : > { %v17513_v55 = vshrl.u32 %v17512_v26, 16  ;;  %v8910_v23 = vor.u32 %v8909_v60, %v8906_v38  ;;  %v8915_v27 = vrot.slane %v8913_v36, 5  ;;  %v8918_v24 = vrot.slane %v8916_v42, 6  ;;  %v15905_v36 = vpop.f32.mrf.mxu1  ;;  %v15907_v60 = vpop.f32.mrf.mxu0  ;;  %v17517_v42 = vld [vmem:[#allocation44_spill] sm:$0xff] }
 0x2e4   : > { %v17514_v49 = vshll.u32 %v17512_v26, 16  ;;  %v8901_v14 = vsel %vm12886_vm8, %v8897_v37, %v8900_v10  ;;  %v8388_v43 = vsel %vm12864_vm7, %v8386_v2, %v8387_v1  ;;  %v8927_v44 = vshrl.u32 %v10602_v61, 16  ;;  %17515 = vst [vmem:[#allocation64_spill] sm:$0xff] %v15905_v36  ;;  %17516 = vst [vmem:[#allocation74_spill] sm:$0xff] %v15907_v60 }
 0x2e5   : > { %v8921_v58 = vrot.slane %v17513_v55, 5  ;;  %v8930_v18 = vshll.u32 %v10602_v61, 16  ;;  %v8911_v12 = vsel %vm12886_vm8, %v8902_v59, %v8910_v23  ;;  %v10578_v33 = vcombine.low %v8385_v6, %v8388_v43  ;;  %v17518_v61 = vld [vmem:[#allocation20_spill] sm:$0xff]  ;;  %v17519_v59 = vld [vmem:[#allocation61_spill] sm:$0xff]  ;;  %v17520_v23 = vld [vmem:[#allocation94_spill] sm:$0xff] }
 0x2e6   : > { %v8922_v28 = vrot.slane %v17514_v49, 6  ;;  %v8919_v55 = vor.u32 %v8918_v24, %v8915_v27  ;;  %v15911_v10 = vadd.f32 %v17517_v42, %v15857_v47  ;;  %v10617_v37 = vcombine.low %v8901_v14, %v8911_v12  ;;  %v15937_v42 = vpop.f32.mrf.mxu1 }
 0x2e7   : > { %v8929_v1 = vrot.slane %v8927_v44, 5  ;;  %v8932_v2 = vrot.slane %v8930_v18, 6  ;;  %v15914_v26 = vadd.f32 %v17518_v61, %v5154_v19  ;;  %v15917_v43 = vadd.f32 %v17519_v59, %v5152_v31  ;;  %11885 = vmatmul.mubr.bf16.gmra.mxu0 %v10578_v33  ;;  %v12301_v18 = vld [vmem:[%s12515_s13 + $0x70] sm:$0xf]  ;;  %v17521_v19 = vld [vmem:[#allocation96_spill] sm:$0xff]  ;;  %v17522_v31 = vld [vmem:[#allocation79_spill] sm:$0xff] }
 0x2e8   : > { %v8923_v38 = vor.u32 %v8922_v28, %v8921_v58  ;;  %v8920_v28 = vrot.slane %v8919_v55, 4  ;;  %v10547_v58 = vld [vmem:[%s12515_s13 + $0x6c] sm:$0xe]  ;;  %v15922_v27 = vadd.f32 %v17520_v23, %v15434_v15  ;;  %11932 = vmatprep.mubr.bf16.mxu1 %v10617_v37  ;;  %v8391_v49 = vrot.slane %v12301_v18, 5  ;;  %v12302_v33 = vld [vmem:[%s12515_s13 + $0x74] sm:$0x1]  ;;  %v15939_v37 = vpop.f32.mrf.mxu0 }
 0x2e9   : > { %v8933_v47 = vor.u32 %v8932_v2, %v8929_v1  ;;  %v10563_v24 = vrot.slane %v10547_v58, 9  ;;  %v15927_v14 = vadd.f32 %v17521_v19, %v15447_v34  ;;  %v15931_v44 = vadd.f32 %v17522_v31, %v15450_v13  ;;  %v10603_v15 = vld [vmem:[%s12515_s13 + $0x74] sm:$0x3]  ;;  %17523 = vst [vmem:[#allocation29_spill] sm:$0xff] %v15937_v42  ;;  %17524 = vst [vmem:[#allocation70_spill] sm:$0xff] %v15939_v37  ;;  %v17525_v23 = vld [vmem:[#allocation37_spill] sm:$0xff] }
 0x2ea   : > { %v8925_v6 = vrot.slane %v8923_v38, 4  ;;  %v8924_v12 = vsel %vm12886_vm8, %v8920_v28, %v8923_v38  ;;  %v8394_v55 = vrot.slane %v12302_v33, 5  ;;  %v8393_v2 = vrot.slane %v8391_v49, 4 }
 0x2eb   : > { %v8392_v34 = vsel %vm12864_vm7, %v10563_v24, %v8391_v49  ;;  %v8936_v13 = vshrl.u32 %v10547_v58, 16  ;;  %v8939_v59 = vshll.u32 %v10547_v58, 16  ;;  %v17526_v38 = vshrl.u32 %v17525_v23, 16  ;;  %v17528_v24 = vld [vmem:[#allocation46_spill] sm:$0xff] }
 0x2ec   : > { %v8934_v1 = vsel %vm12886_vm8, %v8925_v6, %v8933_v47  ;;  %v17527_v18 = vshll.u32 %v17525_v23, 16  ;;  %v8395_v31 = vsel %vm12864_vm7, %v8393_v2, %v8394_v55  ;;  %v8950_v6 = vshrl.u32 %v10603_v15, 16  ;;  %v15956_v23 = vpop.f32.mrf.mxu0  ;;  %v12303_v2 = vld [vmem:[%s12515_s13 + $0x7c] sm:$0xf] }
 0x2ed   : > { %v10618_v61 = vcombine.low %v8924_v12, %v8934_v1  ;;  %v8944_v28 = vrot.slane %v17526_v38, 5  ;;  %v8938_v33 = vrot.slane %v8936_v13, 5  ;;  %v8953_v47 = vshll.u32 %v10603_v15, 16  ;;  %v10548_v1 = vld [vmem:[%s12515_s13 + $0x78] sm:$0xe]  ;;  %v15954_v38 = vpop.f32.mrf.mxu1  ;;  %17530 = vst [vmem:[#allocation63_spill] sm:$0xff] %v15956_v23 }
 0x2ee   : > { %v8945_v19 = vrot.slane %v17527_v18, 6  ;;  %v5157_v37 = vadd.f32 %v17528_v24, %v15491_v50  ;;  %v10579_v49 = vcombine.low %v8392_v34, %v8395_v31  ;;  %v8941_v58 = vrot.slane %v8939_v59, 6  ;;  %17529 = vst [vmem:[#allocation25_spill] sm:$0xff] %v15954_v38  ;;  %v17531_v15 = vld [vmem:[#allocation97_spill] sm:$0xff]  ;;  %v12304_v34 = vld [vmem:[%s12515_s13 + $0x80] sm:$0x1] }
 0x2ef   : > { %11933 = vmatmul.mubr.bf16.gmra.mxu1 %v10618_v61  ;;  %v8952_v18 = vrot.slane %v8950_v6, 5  ;;  %v8955_v42 = vrot.slane %v8953_v47, 6  ;;  %v10564_v55 = vrot.slane %v10548_v1, 9  ;;  %v8398_v13 = vrot.slane %v12303_v2, 5  ;;  %v10604_v31 = vld [vmem:[%s12515_s13 + $0x80] sm:$0x3]  ;;  %v15965_v6 = vpop.f32.mrf.mxu0 }
 0x2f0   : > { %v8946_v12 = vor.u32 %v8945_v19, %v8944_v28  ;;  %v5162_v60 = vadd.f32 %v17531_v15, %v15500_v7  ;;  %11888 = vmatprep.mubr.bf16.mxu0 %v10579_v49  ;;  %v8942_v50 = vor.u32 %v8941_v58, %v8938_v33  ;;  %v8401_v59 = vrot.slane %v12304_v34, 5  ;;  %v15971_v49 = vpop.f32.mrf.mxu1 }
 0x2f1   : > { %v8956_v28 = vor.u32 %v8955_v42, %v8952_v18  ;;  %v8399_v19 = vsel %vm12864_vm7, %v10564_v55, %v8398_v13  ;;  %v8400_v24 = vrot.slane %v8398_v13, 4  ;;  %v8959_v38 = vshrl.u32 %v10548_v1, 16  ;;  %17534 = vst [vmem:[#allocation95_spill] sm:$0xff] %v15971_v49 }
 0x2f2   : > { %v8948_v61 = vrot.slane %v8946_v12, 4  ;;  %v8943_v47 = vrot.slane %v8942_v50, 4  ;;  %v8962_v23 = vshll.u32 %v10548_v1, 16  ;;  %v17532_v2 = vshrl.u32 %v15400_v35, 16 }
 0x2f3   : > { %v17533_v7 = vshll.u32 %v15400_v35, 16  ;;  %v8402_v58 = vsel %vm12864_vm7, %v8400_v24, %v8401_v59  ;;  %v8961_v18 = vrot.slane %v8959_v38, 5  ;;  %v8973_v55 = vshrl.u32 %v10604_v31, 16  ;;  %v17535_v35 = vld [vmem:[#allocation54_spill] sm:$0xff]  ;;  %v17536_v38 = vld [vmem:[#allocation99_spill] sm:$0xff]  ;;  %v17537_v24 = vld [vmem:[#allocation69_spill] sm:$0xff] }
 0x2f4   : > { %v8967_v36 = vrot.slane %v17532_v2, 5  ;;  %v8957_v42 = vsel %vm12886_vm8, %v8948_v61, %v8956_v28  ;;  %v8947_v1 = vsel %vm12886_vm8, %v8943_v47, %v8946_v12  ;;  %v10580_v13 = vcombine.low %v8399_v19, %v8402_v58  ;;  %v15983_v28 = vpop.f32.mrf.mxu0  ;;  %v10549_v19 = vld [vmem:[%s12515_s13 + $0x84] sm:$0xe]  ;;  %v15997_v47 = vpop.f32.mrf.mxu1 }
 0x2f5   : > { %v8968_v33 = vrot.slane %v17533_v7, 6  ;;  %v8964_v15 = vrot.slane %v8962_v23, 6  ;;  %v15981_v34 = vadd.f32 %v17535_v35, %v15922_v27  ;;  %v10619_v2 = vcombine.low %v8947_v1, %v8957_v42  ;;  %17539 = vst [vmem:[#allocation100_spill] sm:$0xff] %v15997_v47 }
 0x2f6   : > { %v8975_v7 = vrot.slane %v8973_v55, 5  ;;  %v8976_v61 = vshll.u32 %v10604_v31, 16  ;;  %v15987_v59 = vadd.f32 %v17536_v38, %v15927_v14  ;;  %v15991_v12 = vadd.f32 %v17537_v24, %v15931_v44  ;;  %11889 = vmatmul.mubr.bf16.gmra.mxu0 %v10580_v13  ;;  %v12305_v14 = vld [vmem:[%s12515_s13 + $0x88] sm:$0xf]  ;;  %v17541_v44 = vld [vmem:[#allocation50_spill] sm:$0xff] }
 0x2f7   : > { %v8969_v50 = vor.u32 %v8968_v33, %v8967_v36  ;;  %v17538_v36 = vld [vmem:[#allocation102_spill] sm:$0xff]  ;;  %v8965_v27 = vor.u32 %v8964_v15, %v8961_v18  ;;  %11936 = vmatprep.mubr.bf16.mxu1 %v10619_v2  ;;  %v10565_v42 = vrot.slane %v10549_v19, 9  ;;  %v8405_v58 = vrot.slane %v12305_v14, 5  ;;  %v17540_v55 = vld [vmem:[#allocation53_spill] sm:$0xff]  ;;  %v16009_v15 = vpop.f32.mrf.mxu1  ;;  %v16013_v14 = vpop.f32.mrf.mxu0 }
 0x2f8   : > { %v15994_v23 = vadd.f32 %v17538_v36, %v5157_v37  ;;  %v8978_v33 = vrot.slane %v8976_v61, 6  ;;  %v16001_v1 = vadd.f32 %v17540_v55, %v5162_v60  ;;  %v16005_v35 = vadd.f32 %v17541_v44, %v15503_v57  ;;  %v12306_v38 = vld [vmem:[%s12515_s13 + $0x8c] sm:$0x1]  ;;  %17542 = vst [vmem:[#allocation44_spill] sm:$0xff] %v16009_v15  ;;  %17543 = vst [vmem:[#allocation20_spill] sm:$0xff] %v16013_v14 }
 0x2f9   : > { %v8971_v31 = vrot.slane %v8969_v50, 4  ;;  %v8966_v37 = vrot.slane %v8965_v27, 4  ;;  %v8408_v13 = vrot.slane %v12306_v38, 5  ;;  %v10605_v18 = vld [vmem:[%s12515_s13 + $0x8c] sm:$0x3]  ;;  %v8406_v2 = vsel %vm12864_vm7, %v10565_v42, %v8405_v58  ;;  %v16025_v49 = vpop.f32.mrf.mxu1  ;;  %v16030_v14 = vpop.f32.mrf.mxu0 }
 0x2fa   : > { %v8979_v24 = vor.u32 %v8978_v33, %v8975_v7  ;;  %v8407_v61 = vrot.slane %v8405_v58, 4  ;;  %v8982_v36 = vshrl.u32 %v10549_v19, 16  ;;  %v8985_v57 = vshll.u32 %v10549_v19, 16  ;;  %17546 = vst [vmem:[#allocation61_spill] sm:$0xff] %v16025_v49 }
 0x2fb   : > { %v8970_v60 = vsel %vm12886_vm8, %v8966_v37, %v8969_v50  ;;  %v17544_v27 = vshrl.u32 %v15441_v3, 16  ;;  %v17545_v44 = vshll.u32 %v15441_v3, 16  ;;  %v8996_v58 = vshrl.u32 %v10605_v18, 16  ;;  %v17547_v3 = vld [vmem:[#allocation98_spill] sm:$0xff] }
 0x2fc   : > { %v8980_v7 = vsel %vm12886_vm8, %v8971_v31, %v8979_v24  ;;  %v8409_v33 = vsel %vm12864_vm7, %v8407_v61, %v8408_v13  ;;  %v8984_v42 = vrot.slane %v8982_v36, 5  ;;  %v8987_v19 = vrot.slane %v8985_v57, 6  ;;  %v17548_v13 = vld [vmem:[#allocation49_spill] sm:$0xff]  ;;  %v12308_v57 = vld [vmem:[%s12515_s13 + $0x98] sm:$0x1] }
 0x2fd   : > { %v8990_v55 = vrot.slane %v17544_v27, 5  ;;  %v8991_v38 = vrot.slane %v17545_v44, 6  ;;  %v10620_v47 = vcombine.low %v8970_v60, %v8980_v7  ;;  %v10581_v50 = vcombine.low %v8406_v2, %v8409_v33  ;;  %v10550_v27 = vld [vmem:[%s12515_s13 + $0x90] sm:$0xe]  ;;  %v12307_v60 = vld [vmem:[%s12515_s13 + $0x94] sm:$0xf] }
 0x2fe   : > { %v5163_v44 = vadd.f32 %v17547_v3, %v15519_v29  ;;  %v8998_v15 = vrot.slane %v8996_v58, 5  ;;  %v8999_v31 = vshll.u32 %v10605_v18, 16  ;;  %v10566_v24 = vrot.slane %v10550_v27, 9  ;;  %v10606_v33 = vld [vmem:[%s12515_s13 + $0x98] sm:$0x3]  ;;  %v16037_v58 = vpop.f32.mrf.mxu1  ;;  %v16039_v18 = vpop.f32.mrf.mxu0 }
 0x2ff   : > { %v8992_v37 = vor.u32 %v8991_v38, %v8990_v55  ;;  %v5166_v61 = vadd.f32 %v17548_v13, %v15565_v53  ;;  %11937 = vmatmul.mubr.bf16.gmra.mxu1 %v10620_v47  ;;  %11892 = vmatprep.mubr.bf16.mxu0 %v10581_v50  ;;  %v8988_v36 = vor.u32 %v8987_v19, %v8984_v42  ;;  %v8412_v2 = vrot.slane %v12307_v60, 5 }
 0x300   : > { %v8415_v55 = vrot.slane %v12308_v57, 5  ;;  %v9001_v7 = vrot.slane %v8999_v31, 6  ;;  %v9005_v49 = vshrl.u32 %v10550_v27, 16  ;;  %v9008_v29 = vshll.u32 %v10550_v27, 16  ;;  %17549 = vst [vmem:[#allocation94_spill] sm:$0xff] %v16037_v58  ;;  %17550 = vst [vmem:[#allocation96_spill] sm:$0xff] %v16039_v18 }
 0x301   : > { %v8994_v38 = vrot.slane %v8992_v37, 4  ;;  %v8989_v3 = vrot.slane %v8988_v36, 4  ;;  %v8413_v53 = vsel %vm12864_vm7, %v10566_v24, %v8412_v2  ;;  %v8414_v47 = vrot.slane %v8412_v2, 4 }
 0x302   : > { %v17551_v42 = vshrl.u32 %v15469_v40, 16  ;;  %v9002_v19 = vor.u32 %v9001_v7, %v8998_v15  ;;  %v9007_v13 = vrot.slane %v9005_v49, 5  ;;  %v9010_v60 = vrot.slane %v9008_v29, 6  ;;  %v16053_v49 = vpop.f32.mrf.mxu1  ;;  %v17553_v7 = vld [vmem:[#allocation52_spill] sm:$0xff] }
 0x303   : > { %v17552_v31 = vshll.u32 %v15469_v40, 16  ;;  %v8993_v27 = vsel %vm12886_vm8, %v8989_v3, %v8992_v37  ;;  %v8416_v18 = vsel %vm12864_vm7, %v8414_v47, %v8415_v55  ;;  %v9019_v36 = vshrl.u32 %v10606_v33, 16  ;;  %v16055_v40 = vpop.f32.mrf.mxu0 }
 0x304   : > { %v9013_v50 = vrot.slane %v17551_v42, 5  ;;  %v9022_v58 = vshll.u32 %v10606_v33, 16  ;;  %v9003_v24 = vsel %vm12886_vm8, %v8994_v38, %v9002_v19  ;;  %v10582_v2 = vcombine.low %v8413_v53, %v8416_v18  ;;  %v17554_v33 = vld [vmem:[#allocation103_spill] sm:$0xff]  ;;  %v17556_v19 = vld [vmem:[#allocation101_spill] sm:$0xff] }
 0x305   : > { %v9014_v57 = vrot.slane %v17552_v31, 6  ;;  %v9011_v42 = vor.u32 %v9010_v60, %v9007_v13  ;;  %v16059_v37 = vadd.f32 %v17553_v7, %v16005_v35  ;;  %v10621_v29 = vcombine.low %v8993_v27, %v9003_v24  ;;  %v12309_v31 = vld [vmem:[%s12515_s13 + $0xa0] sm:$0xf] }
 0x306   : > { %v9021_v55 = vrot.slane %v9019_v36, 5  ;;  %v9024_v3 = vrot.slane %v9022_v58, 6  ;;  %v16062_v47 = vadd.f32 %v17554_v33, %v5163_v44  ;;  %v16065_v38 = vadd.f32 %v15444_v63, %v5166_v61  ;;  %11893 = vmatmul.mubr.bf16.gmra.mxu0 %v10582_v2  ;;  %v17558_v27 = vld [vmem:[#allocation104_spill] sm:$0xff] }
 0x307   : > { %v9015_v15 = vor.u32 %v9014_v57, %v9013_v50  ;;  %v9012_v18 = vrot.slane %v9011_v42, 4  ;;  %v10551_v50 = vld [vmem:[%s12515_s13 + $0x9c] sm:$0xe]  ;;  %v5164_v13 = vadd.f32 %v17556_v19, %v15577_v45  ;;  %11940 = vmatprep.mubr.bf16.mxu1 %v10621_v29  ;;  %v8419_v58 = vrot.slane %v12309_v31, 5  ;;  %v17557_v57 = vld [vmem:[#allocation72_spill] sm:$0xff]  ;;  %v16079_v42 = vpop.f32.mrf.mxu1  ;;  %v16081_v45 = vpop.f32.mrf.mxu0 }
 0x308   : > { %17555 = vst [vmem:[#allocation79_spill] sm:$0xff] %v16065_v38  ;;  %v9025_v35 = vor.u32 %v9024_v3, %v9021_v55  ;;  %v10567_v60 = vrot.slane %v10551_v50, 9  ;;  %v5167_v44 = vadd.f32 %v17557_v57, %v15589_v8  ;;  %v5165_v63 = vadd.f32 %v17558_v27, %v15618_v5  ;;  %v12310_v36 = vld [vmem:[%s12515_s13 + $0xa4] sm:$0x1]  ;;  %17559 = vst [vmem:[#allocation37_spill] sm:$0xff] %v16079_v42 }
 0x309   : > { %v9017_v53 = vrot.slane %v9015_v15, 4  ;;  %v9016_v61 = vsel %vm12886_vm8, %v9012_v18, %v9015_v15  ;;  %v8422_v24 = vrot.slane %v12310_v36, 5  ;;  %v10607_v2 = vld [vmem:[%s12515_s13 + $0xa4] sm:$0x3]  ;;  %v8421_v8 = vrot.slane %v8419_v58, 4  ;;  %v16097_v36 = vpop.f32.mrf.mxu1 }
 0x30a   : > { %v8420_v29 = vsel %vm12864_vm7, %v10567_v60, %v8419_v58  ;;  %v9028_v55 = vshrl.u32 %v10551_v50, 16  ;;  %v9031_v3 = vshll.u32 %v10551_v50, 16  ;;  %v17560_v15 = vshrl.u32 %v15508_v21, 16  ;;  %17562 = vst [vmem:[#allocation46_spill] sm:$0xff] %v16097_v36 }
 0x30b   : > { %v9026_v7 = vsel %vm12886_vm8, %v9017_v53, %v9025_v35  ;;  %v17561_v18 = vshll.u32 %v15508_v21, 16  ;;  %v8423_v31 = vsel %vm12864_vm7, %v8421_v8, %v8422_v24  ;;  %v9042_v53 = vshrl.u32 %v10607_v2, 16  ;;  %v16099_v21 = vpop.f32.mrf.mxu0  ;;  %v12311_v8 = vld [vmem:[%s12515_s13 + $0xac] sm:$0xf] }
 0x30c   : > { %v10622_v5 = vcombine.low %v9016_v61, %v9026_v7  ;;  %v9036_v33 = vrot.slane %v17560_v15, 5  ;;  %v9030_v57 = vrot.slane %v9028_v55, 5  ;;  %v9045_v35 = vshll.u32 %v10607_v2, 16  ;;  %v10552_v61 = vld [vmem:[%s12515_s13 + $0xa8] sm:$0xe]  ;;  %17563 = vst [vmem:[#allocation97_spill] sm:$0xff] %v16099_v21 }
 0x30d   : > { %v9037_v19 = vrot.slane %v17561_v18, 6  ;;  %v16094_v60 = vadd.f32 %v15457_v51, %v5164_v13  ;;  %v10583_v58 = vcombine.low %v8420_v29, %v8423_v31  ;;  %v9033_v50 = vrot.slane %v9031_v3, 6  ;;  %v17564_v2 = vld [vmem:[#allocation75_spill] sm:$0xff]  ;;  %v12312_v29 = vld [vmem:[%s12515_s13 + $0xb0] sm:$0x1] }
 0x30e   : > { %11941 = vmatmul.mubr.bf16.gmra.mxu1 %v10622_v5  ;;  %v9044_v7 = vrot.slane %v9042_v53, 5  ;;  %v9047_v15 = vrot.slane %v9045_v35, 6  ;;  %v10568_v24 = vrot.slane %v10552_v61, 9  ;;  %v8426_v55 = vrot.slane %v12311_v8, 5  ;;  %v10608_v18 = vld [vmem:[%s12515_s13 + $0xb0] sm:$0x3]  ;;  %v16108_v53 = vpop.f32.mrf.mxu0 }
 0x30f   : > { %v9038_v27 = vor.u32 %v9037_v19, %v9036_v33  ;;  %v5170_v51 = vadd.f32 %v17564_v2, %v15623_v52  ;;  %11896 = vmatprep.mubr.bf16.mxu0 %v10583_v58  ;;  %v9034_v13 = vor.u32 %v9033_v50, %v9030_v57  ;;  %v8429_v3 = vrot.slane %v12312_v29, 5  ;;  %17565 = vst [vmem:[#allocation54_spill] sm:$0xff] %v16108_v53  ;;  %v17566_v8 = vld [vmem:[#allocation58_spill] sm:$0xff]  ;;  %v16114_v58 = vpop.f32.mrf.mxu1 }
 0x310   : > { %v9048_v33 = vor.u32 %v9047_v15, %v9044_v7  ;;  %v8427_v19 = vsel %vm12864_vm7, %v10568_v24, %v8426_v55  ;;  %v8428_v31 = vrot.slane %v8426_v55, 4  ;;  %v9051_v38 = vshrl.u32 %v10552_v61, 16  ;;  %17569 = vst [vmem:[#allocation99_spill] sm:$0xff] %v16114_v58 }
 0x311   : > { %v9040_v5 = vrot.slane %v9038_v27, 4  ;;  %v9035_v35 = vrot.slane %v9034_v13, 4  ;;  %v9054_v36 = vshll.u32 %v10552_v61, 16  ;;  %v17567_v42 = vshrl.u32 %v17566_v8, 16  ;;  %v17570_v13 = vld [vmem:[#allocation59_spill] sm:$0xff] }
 0x312   : > { %v17568_v52 = vshll.u32 %v17566_v8, 16  ;;  %v8430_v7 = vsel %vm12864_vm7, %v8428_v31, %v8429_v3  ;;  %v9053_v15 = vrot.slane %v9051_v38, 5  ;;  %v9065_v24 = vshrl.u32 %v10608_v18, 16  ;;  %v17573_v38 = vld [vmem:[#allocation66_spill] sm:$0xff] }
 0x313   : > { %v9059_v21 = vrot.slane %v17567_v42, 5  ;;  %v9049_v50 = vsel %vm12886_vm8, %v9040_v5, %v9048_v33  ;;  %v9039_v61 = vsel %vm12886_vm8, %v9035_v35, %v9038_v27  ;;  %v10584_v55 = vcombine.low %v8427_v19, %v8430_v7  ;;  %v16125_v5 = vpop.f32.mrf.mxu0  ;;  %v17572_v33 = vld [vmem:[#allocation11_spill] sm:$0xff]  ;;  %v17574_v27 = vld [vmem:[#allocation57_spill] sm:$0xff]  ;;  %v16136_v19 = vpop.f32.mrf.mxu1 }
 0x314   : > { %v9060_v57 = vrot.slane %v17568_v52, 6  ;;  %v9056_v2 = vrot.slane %v9054_v36, 6  ;;  %v16123_v29 = vadd.f32 %v17570_v13, %v5167_v44  ;;  %v10623_v8 = vcombine.low %v9039_v61, %v9049_v50  ;;  %17571 = vst [vmem:[#allocation69_spill] sm:$0xff] %v16125_v5  ;;  %17575 = vst [vmem:[#allocation102_spill] sm:$0xff] %v16136_v19  ;;  %v12313_v50 = vld [vmem:[%s12515_s13 + $0xb8] sm:$0xf] }
 0x315   : > { %v9067_v52 = vrot.slane %v9065_v24, 5  ;;  %v9068_v58 = vshll.u32 %v10608_v18, 16  ;;  %v16128_v3 = vadd.f32 %v17572_v33, %v5165_v63  ;;  %v16131_v31 = vadd.f32 %v17573_v38, %v5170_v51  ;;  %11897 = vmatmul.mubr.bf16.gmra.mxu0 %v10584_v55  ;;  %v17576_v7 = vld [vmem:[#allocation43_spill] sm:$0xff]  ;;  %v17577_v51 = vld [vmem:[#allocation78_spill] sm:$0xff]  ;;  %v16149_v13 = vpop.f32.mrf.mxu1 }
 0x316   : > { %v9061_v42 = vor.u32 %v9060_v57, %v9059_v21  ;;  %v5168_v36 = vadd.f32 %v17574_v27, %v15632_v46  ;;  %v9057_v44 = vor.u32 %v9056_v2, %v9053_v15  ;;  %v10553_v21 = vld [vmem:[%s12515_s13 + $0xb4] sm:$0xe]  ;;  %11944 = vmatprep.mubr.bf16.mxu1 %v10623_v8  ;;  %v8433_v63 = vrot.slane %v12313_v50, 5  ;;  %v12314_v55 = vld [vmem:[%s12515_s13 + $0xbc] sm:$0x1]  ;;  %17578 = vst [vmem:[#allocation53_spill] sm:$0xff] %v16149_v13  ;;  %v16153_v27 = vpop.f32.mrf.mxu0 }
 0x317   : > { %v9070_v35 = vrot.slane %v9068_v58, 6  ;;  %v10569_v57 = vrot.slane %v10553_v21, 9  ;;  %v16141_v24 = vadd.f32 %v17576_v7, %v15682_v11  ;;  %v16145_v61 = vadd.f32 %v17577_v51, %v15685_v22  ;;  %v10609_v2 = vld [vmem:[%s12515_s13 + $0xbc] sm:$0x3]  ;;  %17579 = vst [vmem:[#allocation50_spill] sm:$0xff] %v16153_v27  ;;  %v17580_v50 = vld [vmem:[#allocation68_spill] sm:$0xff]  ;;  %v16165_v13 = vpop.f32.mrf.mxu1 }
 0x318   : > { %v9063_v18 = vrot.slane %v9061_v42, 4  ;;  %v9058_v46 = vrot.slane %v9057_v44, 4  ;;  %v8436_v15 = vrot.slane %v12314_v55, 5  ;;  %v8435_v33 = vrot.slane %v8433_v63, 4  ;;  %17583 = vst [vmem:[#allocation98_spill] sm:$0xff] %v16165_v13  ;;  %v17584_v27 = vld [vmem:[#allocation24_spill] sm:$0xff]  ;;  %v16171_v5 = vpop.f32.mrf.mxu0 }
 0x319   : > { %v9071_v8 = vor.u32 %v9070_v35, %v9067_v52  ;;  %v8434_v58 = vsel %vm12864_vm7, %v10569_v57, %v8433_v63  ;;  %v9074_v38 = vshrl.u32 %v10553_v21, 16  ;;  %v9077_v22 = vshll.u32 %v10553_v21, 16  ;;  %17585 = vst [vmem:[#allocation49_spill] sm:$0xff] %v16171_v5 }
 0x31a   : > { %v9062_v11 = vsel %vm12886_vm8, %v9058_v46, %v9061_v42  ;;  %v17581_v44 = vshrl.u32 %v17580_v50, 16  ;;  %v17582_v51 = vshll.u32 %v17580_v50, 16  ;;  %v8437_v35 = vsel %vm12864_vm7, %v8435_v33, %v8436_v15  ;;  %v17586_v15 = vld [vmem:[#allocation22_spill] sm:$0xff] }
 0x31b   : > { %v9072_v52 = vsel %vm12886_vm8, %v9063_v18, %v9071_v8  ;;  %v9076_v57 = vrot.slane %v9074_v38, 5  ;;  %v9088_v63 = vshrl.u32 %v10609_v2, 16  ;;  %v10585_v42 = vcombine.low %v8434_v58, %v8437_v35  ;;  %v10610_v35 = vld [vmem:[%s12515_s13 + $0xc8] sm:$0x3] }
 0x31c   : > { %v9082_v7 = vrot.slane %v17581_v44, 5  ;;  %v9083_v55 = vrot.slane %v17582_v51, 6  ;;  %v10624_v19 = vcombine.low %v9062_v11, %v9072_v52  ;;  %v9079_v21 = vrot.slane %v9077_v22, 6  ;;  %v10554_v44 = vld [vmem:[%s12515_s13 + $0xc0] sm:$0xe] }
 0x31d   : > { %v16169_v50 = vadd.f32 %v17584_v27, %v5168_v36  ;;  %v9090_v51 = vrot.slane %v9088_v63, 5  ;;  %v9091_v18 = vshll.u32 %v10609_v2, 16  ;;  %v10570_v8 = vrot.slane %v10554_v44, 9  ;;  %11900 = vmatprep.mubr.bf16.mxu0 %v10585_v42  ;;  %v12315_v11 = vld [vmem:[%s12515_s13 + $0xc4] sm:$0xf]  ;;  %v16178_v63 = vpop.f32.mrf.mxu1  ;;  %v16180_v2 = vpop.f32.mrf.mxu0 }
 0x31e   : > { %v9084_v46 = vor.u32 %v9083_v55, %v9082_v7  ;;  %v5174_v33 = vadd.f32 %v17586_v15, %v15697_v62  ;;  %11945 = vmatmul.mubr.bf16.gmra.mxu1 %v10624_v19  ;;  %v9080_v38 = vor.u32 %v9079_v21, %v9076_v57  ;;  %v8440_v58 = vrot.slane %v12315_v11, 5  ;;  %v12316_v22 = vld [vmem:[%s12515_s13 + $0xc8] sm:$0x1]  ;;  %17587 = vst [vmem:[#allocation52_spill] sm:$0xff] %v16178_v63  ;;  %v17589_v42 = vld [vmem:[#allocation76_spill] sm:$0xff] }
 0x31f   : > { %v8443_v7 = vrot.slane %v12316_v22, 5  ;;  %v9093_v52 = vrot.slane %v9091_v18, 6  ;;  %v9097_v36 = vshrl.u32 %v10554_v44, 16  ;;  %v9100_v27 = vshll.u32 %v10554_v44, 16  ;;  %17588 = vst [vmem:[#allocation103_spill] sm:$0xff] %v16180_v2 }
 0x320   : > { %v9086_v55 = vrot.slane %v9084_v46, 4  ;;  %v9081_v13 = vrot.slane %v9080_v38, 4  ;;  %v8441_v62 = vsel %vm12864_vm7, %v10570_v8, %v8440_v58  ;;  %v8442_v19 = vrot.slane %v8440_v58, 4 }
 0x321   : > { %v17590_v57 = vshrl.u32 %v17589_v42, 16  ;;  %v9094_v15 = vor.u32 %v9093_v52, %v9090_v51  ;;  %v9099_v11 = vrot.slane %v9097_v36, 5  ;;  %v9102_v22 = vrot.slane %v9100_v27, 6  ;;  %v16194_v52 = vpop.f32.mrf.mxu1  ;;  %v16196_v36 = vpop.f32.mrf.mxu0  ;;  %v17594_v27 = vld [vmem:[#allocation27_spill] sm:$0xff] }
 0x322   : > { %v17591_v18 = vshll.u32 %v17589_v42, 16  ;;  %v9085_v44 = vsel %vm12886_vm8, %v9081_v13, %v9084_v46  ;;  %v8444_v2 = vsel %vm12864_vm7, %v8442_v19, %v8443_v7  ;;  %v9111_v38 = vshrl.u32 %v10610_v35, 16  ;;  %17592 = vst [vmem:[#allocation101_spill] sm:$0xff] %v16194_v52  ;;  %17593 = vst [vmem:[#allocation72_spill] sm:$0xff] %v16196_v36 }
 0x323   : > { %v9105_v21 = vrot.slane %v17590_v57, 5  ;;  %v9114_v63 = vshll.u32 %v10610_v35, 16  ;;  %v9095_v8 = vsel %vm12886_vm8, %v9086_v55, %v9094_v15  ;;  %v10586_v58 = vcombine.low %v8441_v62, %v8444_v2  ;;  %v17595_v35 = vld [vmem:[#allocation17_spill] sm:$0xff]  ;;  %v17596_v55 = vld [vmem:[#allocation23_spill] sm:$0xff] }
 0x324   : > { %v9106_v5 = vrot.slane %v17591_v18, 6  ;;  %v9103_v57 = vor.u32 %v9102_v22, %v9099_v11  ;;  %v16200_v13 = vadd.f32 %v17594_v27, %v16141_v24  ;;  %v10625_v46 = vcombine.low %v9085_v44, %v9095_v8  ;;  %v17597_v15 = vld [vmem:[#allocation15_spill] sm:$0xff]  ;;  %v17598_v44 = vld [vmem:[#allocation21_spill] sm:$0xff]  ;;  %v10611_v27 = vld [vmem:[%s12515_s13 + $0xd4] sm:$0x3] }
 0x325   : > { %v9113_v7 = vrot.slane %v9111_v38, 5  ;;  %v9116_v19 = vrot.slane %v9114_v63, 6  ;;  %v16204_v42 = vadd.f32 %v17595_v35, %v16145_v61  ;;  %v16207_v2 = vadd.f32 %v17596_v55, %v5174_v33  ;;  %11901 = vmatmul.mubr.bf16.gmra.mxu0 %v10586_v58  ;;  %v12317_v63 = vld [vmem:[%s12515_s13 + $0xd0] sm:$0xf]  ;;  %v17599_v38 = vld [vmem:[#allocation107_spill] sm:$0xff]  ;;  %v16223_v35 = vpop.f32.mrf.mxu1 }
 0x326   : > { %v9107_v51 = vor.u32 %v9106_v5, %v9105_v21  ;;  %v9104_v5 = vrot.slane %v9103_v57, 4  ;;  %v10555_v21 = vld [vmem:[%s12515_s13 + $0xcc] sm:$0xe]  ;;  %v5172_v24 = vadd.f32 %v17597_v15, %v15700_v20  ;;  %11948 = vmatprep.mubr.bf16.mxu1 %v10625_v46  ;;  %v8447_v18 = vrot.slane %v12317_v63, 5  ;;  %v12318_v58 = vld [vmem:[%s12515_s13 + $0xd4] sm:$0x1]  ;;  %v16225_v20 = vpop.f32.mrf.mxu0 }
 0x327   : > { %v9117_v11 = vor.u32 %v9116_v19, %v9113_v7  ;;  %v10571_v22 = vrot.slane %v10555_v21, 9  ;;  %v5175_v61 = vadd.f32 %v17598_v44, %v15703_v25  ;;  %v16217_v33 = vadd.f32 %v17599_v38, %v15763_v0  ;;  %17600 = vst [vmem:[#allocation104_spill] sm:$0xff] %v16223_v35  ;;  %17601 = vst [vmem:[#allocation75_spill] sm:$0xff] %v16225_v20  ;;  %v17602_v15 = vld [vmem:[#allocation35_spill] sm:$0xff] }
 0x328   : > { %v9109_v62 = vrot.slane %v9107_v51, 4  ;;  %v9108_v8 = vsel %vm12886_vm8, %v9104_v5, %v9107_v51  ;;  %v8450_v57 = vrot.slane %v12318_v58, 5  ;;  %v8449_v7 = vrot.slane %v8447_v18, 4  ;;  %v17605_v35 = vld [vmem:[#allocation71_spill] sm:$0xff] }
 0x329   : > { %v8448_v25 = vsel %vm12864_vm7, %v10571_v22, %v8447_v18  ;;  %v9120_v0 = vshrl.u32 %v10555_v21, 16  ;;  %v9123_v55 = vshll.u32 %v10555_v21, 16  ;;  %v17603_v51 = vshrl.u32 %v17602_v15, 16 }
 0x32a   : > { %v9118_v46 = vsel %vm12886_vm8, %v9109_v62, %v9117_v11  ;;  %v17604_v63 = vshll.u32 %v17602_v15, 16  ;;  %v8451_v38 = vsel %vm12864_vm7, %v8449_v7, %v8450_v57  ;;  %v9134_v62 = vshrl.u32 %v10611_v27, 16  ;;  %v16243_v15 = vpop.f32.mrf.mxu0  ;;  %v12319_v7 = vld [vmem:[%s12515_s13 + $0xdc] sm:$0xf] }
 0x32b   : > { %v10626_v19 = vcombine.low %v9108_v8, %v9118_v46  ;;  %v9128_v5 = vrot.slane %v17603_v51, 5  ;;  %v9122_v58 = vrot.slane %v9120_v0, 5  ;;  %v9137_v11 = vshll.u32 %v10611_v27, 16  ;;  %v10556_v46 = vld [vmem:[%s12515_s13 + $0xd8] sm:$0xe]  ;;  %v16241_v51 = vpop.f32.mrf.mxu1  ;;  %17607 = vst [vmem:[#allocation59_spill] sm:$0xff] %v16243_v15 }
 0x32c   : > { %v9129_v44 = vrot.slane %v17604_v63, 6  ;;  %v16238_v22 = vadd.f32 %v17605_v35, %v5172_v24  ;;  %v10587_v18 = vcombine.low %v8448_v25, %v8451_v38  ;;  %v9125_v21 = vrot.slane %v9123_v55, 6  ;;  %17606 = vst [vmem:[#allocation58_spill] sm:$0xff] %v16241_v51  ;;  %v17608_v27 = vld [vmem:[#allocation108_spill] sm:$0xff] }
 0x32d   : > { %11949 = vmatmul.mubr.bf16.gmra.mxu1 %v10626_v19  ;;  %v9136_v63 = vrot.slane %v9134_v62, 5  ;;  %v9139_v20 = vrot.slane %v9137_v11, 6  ;;  %v10572_v57 = vrot.slane %v10556_v46, 9  ;;  %v8454_v0 = vrot.slane %v12319_v7, 5  ;;  %v12320_v25 = vld [vmem:[%s12515_s13 + $0xe0] sm:$0x1] }
 0x32e   : > { %v9130_v8 = vor.u32 %v9129_v44, %v9128_v5  ;;  %v5178_v24 = vadd.f32 %v17608_v27, %v15766_v48  ;;  %11904 = vmatprep.mubr.bf16.mxu0 %v10587_v18  ;;  %v9126_v35 = vor.u32 %v9125_v21, %v9122_v58  ;;  %v8457_v55 = vrot.slane %v12320_v25, 5  ;;  %v10612_v38 = vld [vmem:[%s12515_s13 + $0xe0] sm:$0x3]  ;;  %v16250_v5 = vpop.f32.mrf.mxu0  ;;  %v17610_v7 = vld [vmem:[#allocation87_spill] sm:$0xff]  ;;  %v16258_v18 = vpop.f32.mrf.mxu1 }
 0x32f   : > { %17609 = vst [vmem:[#allocation11_spill] sm:$0xff] %v16250_v5  ;;  %v9140_v44 = vor.u32 %v9139_v20, %v9136_v63  ;;  %v8455_v51 = vsel %vm12864_vm7, %v10572_v57, %v8454_v0  ;;  %v8456_v62 = vrot.slane %v8454_v0, 4  ;;  %v9143_v11 = vshrl.u32 %v10556_v46, 16  ;;  %17613 = vst [vmem:[#allocation66_spill] sm:$0xff] %v16258_v18 }
 0x330   : > { %v9132_v19 = vrot.slane %v9130_v8, 4  ;;  %v9127_v15 = vrot.slane %v9126_v35, 4  ;;  %v9146_v52 = vshll.u32 %v10556_v46, 16  ;;  %v17611_v36 = vshrl.u32 %v17610_v7, 16  ;;  %v16260_v21 = vpop.f32.mrf.mxu0 }
 0x331   : > { %v17612_v48 = vshll.u32 %v17610_v7, 16  ;;  %17614 = vst [vmem:[#allocation57_spill] sm:$0xff] %v16260_v21  ;;  %v8458_v63 = vsel %vm12864_vm7, %v8456_v62, %v8457_v55  ;;  %v9145_v57 = vrot.slane %v9143_v11, 5  ;;  %v9157_v0 = vshrl.u32 %v10612_v38, 16  ;;  %v17615_v7 = vld [vmem:[#allocation33_spill] sm:$0xff] }
 0x332   : > { %v9151_v53 = vrot.slane %v17611_v36, 5  ;;  %v9141_v20 = vsel %vm12886_vm8, %v9132_v19, %v9140_v44  ;;  %v9131_v46 = vsel %vm12886_vm8, %v9127_v15, %v9130_v8  ;;  %v10588_v27 = vcombine.low %v8455_v51, %v8458_v63  ;;  %v16268_v25 = vpop.f32.mrf.mxu0  ;;  %v17616_v19 = vld [vmem:[#allocation36_spill] sm:$0xff]  ;;  %v17617_v55 = vld [vmem:[#allocation85_spill] sm:$0xff] }
 0x333   : > { %v9152_v58 = vrot.slane %v17612_v48, 6  ;;  %v9148_v36 = vrot.slane %v9146_v52, 6  ;;  %v16271_v48 = vadd.f32 %v17615_v7, %v5175_v61  ;;  %v10627_v18 = vcombine.low %v9131_v46, %v9141_v20  ;;  %v17618_v8 = vld [vmem:[#allocation80_spill] sm:$0xff]  ;;  %v16282_v52 = vpop.f32.mrf.mxu1  ;;  %v17619_v61 = vld [vmem:[#allocation109_spill] sm:$0xff] }
 0x334   : > { %v9159_v21 = vrot.slane %v9157_v0, 5  ;;  %v9160_v5 = vshll.u32 %v10612_v38, 16  ;;  %v16275_v41 = vadd.f32 %v17616_v19, %v16217_v33  ;;  %v16278_v44 = vadd.f32 %v17617_v55, %v5178_v24  ;;  %11905 = vmatmul.mubr.bf16.gmra.mxu0 %v10588_v27  ;;  %v16284_v15 = vpop.f32.mrf.mxu0  ;;  %v17620_v38 = vld [vmem:[#allocation28_spill] sm:$0xff]  ;;  %v17621_v24 = vld [vmem:[#allocation41_spill] sm:$0xff]  ;;  %v17627_v55 = vld [vmem:[#allocation86_spill] sm:$0xff] }
 0x335   : > { %v9153_v35 = vor.u32 %v9152_v58, %v9151_v53  ;;  %v5176_v51 = vadd.f32 %v17618_v8, %v15774_v39  ;;  %v9149_v53 = vor.u32 %v9148_v36, %v9145_v57  ;;  %v5179_v62 = vadd.f32 %v17619_v61, %v15833_v4  ;;  %11952 = vmatprep.mubr.bf16.mxu1 %v10627_v18  ;;  %v17622_v39 = vld [vmem:[#allocation110_spill] sm:$0xff]  ;;  %v17623_v0 = vld [vmem:[#allocation88_spill] sm:$0xff]  ;;  %v16296_v27 = vpop.f32.mrf.mxu1 }
 0x336   : > { %v5177_v11 = vadd.f32 %v17620_v38, %v15839_v30  ;;  %v9162_v58 = vrot.slane %v9160_v5, 6  ;;  %v5182_v20 = vadd.f32 %v17621_v24, %v15843_v56  ;;  %v5180_v57 = vadd.f32 %v17622_v39, %v15846_v54  ;;  %v16298_v36 = vpop.f32.mrf.mxu0  ;;  %v17624_v30 = vld [vmem:[#allocation91_spill] sm:$0xff]  ;;  %v17625_v5 = vld [vmem:[#allocation12_spill] sm:$0xff]  ;;  %v17626_v56 = vld [vmem:[#allocation93_spill] sm:$0xff] }
 0x337   : > { %v9155_v33 = vrot.slane %v9153_v35, 4  ;;  %v9150_v63 = vrot.slane %v9149_v53, 4  ;;  %v5183_v46 = vadd.f32 %v17623_v0, %v15853_v9  ;;  %v5181_v18 = vadd.f32 %v17624_v30, %v15911_v10  ;;  %v16313_v53 = vpop.f32.mrf.mxu1  ;;  %v17628_v61 = vld [vmem:[#allocation90_spill] sm:$0xff]  ;;  %v17631_v24 = vld [vmem:[#allocation92_spill] sm:$0xff]  ;;  %v17634_v30 = vld [vmem:[#allocation81_spill] sm:$0xff] }
 0x338   : > { %v9163_v4 = vor.u32 %v9162_v58, %v9159_v21  ;;  %v6406_v7 = vadd.f32 %v17625_v5, %v15914_v26  ;;  %v6404_v19 = vadd.f32 %v17626_v56, %v15917_v43  ;;  %v5930_v8 = vadd.f32 %v17627_v55, %v5176_v51  ;;  %v16315_v10 = vpop.f32.mrf.mxu0  ;;  %v17629_v38 = vld [vmem:[#allocation38_spill] sm:$0xff]  ;;  %v17630_v51 = vld [vmem:[#allocation83_spill] sm:$0xff]  ;;  %v17635_v5 = vld [vmem:[#allocation9_spill] sm:$0xff] }
 0x339   : > { %v9154_v54 = vsel %vm12886_vm8, %v9150_v63, %v9153_v35  ;;  %v6410_v9 = vadd.f32 %v15808_v32, %v15981_v34  ;;  %v6408_v21 = vadd.f32 %v15817_v17, %v15987_v59  ;;  %v5933_v26 = vadd.f32 %v17628_v61, %v5179_v62  ;;  %v17632_v34 = vld [vmem:[#allocation89_spill] sm:$0xff]  ;;  %v17633_v17 = vld [vmem:[#allocation30_spill] sm:$0xff]  ;;  %v17636_v56 = vld [vmem:[#allocation8_spill] sm:$0xff]  ;;  %v7098_v55 = vpop.f32.mrf.mxu1 }
 0x33a   : > { %v5931_v58 = vadd.f32 %v17629_v38, %v5177_v11  ;;  %v9164_v43 = vsel %vm12886_vm8, %v9155_v33, %v9163_v4  ;;  %v6411_v35 = vadd.f32 %v17630_v51, %v15991_v12  ;;  %v5936_v63 = vadd.f32 %v17631_v24, %v5182_v20  ;;  %v16327_v0 = vpop.f32.mrf.mxu0  ;;  %v17637_v33 = vld [vmem:[#allocation10_spill] sm:$0xff]  ;;  %v17638_v12 = vld [vmem:[#allocation84_spill] sm:$0xff] }
 0x33b   : > { %v10628_v32 = vcombine.low %v9154_v54, %v9164_v43  ;;  %v5934_v39 = vadd.f32 %v17632_v34, %v5180_v57  ;;  %v6414_v59 = vadd.f32 %v17633_v17, %v16001_v1  ;;  %v5937_v62 = vadd.f32 %v17634_v30, %v5183_v46  ;;  %v17639_v54 = vld [vmem:[#allocation19_spill] sm:$0xff]  ;;  %v17641_v43 = vld [vmem:[#allocation18_spill] sm:$0xff]  ;;  %v17646_v17 = vld [vmem:[#allocation44_spill] sm:$0xff] }
 0x33c   : > { %v5935_v11 = vadd.f32 %v17635_v5, %v5181_v18  ;;  %v7112_v16 = vadd.f32 %v17636_v56, %v6406_v7  ;;  %v7110_v4 = vadd.f32 %v17637_v33, %v6404_v19  ;;  %v7116_v20 = vadd.f32 %v17638_v12, %v6410_v9  ;;  %v17640_v57 = vld [vmem:[#allocation67_spill] sm:$0xff]  ;;  %v11786_v46 = vpop.f32.mrf.mxu0  ;;  %v17642_v7 = vld [vmem:[#allocation42_spill] sm:$0xff]  ;;  %v17643_v9 = vld [vmem:[#allocation20_spill] sm:$0xff] }
 0x33d   : > { %11953 = vmatmul.mubr.bf16.gmra.mxu1 %v10628_v32  ;;  %v7114_v61 = vadd.f32 %v17639_v54, %v6408_v21  ;;  %v16337_v38 = vadd.f32 %v17640_v57, %v15994_v23  ;;  %v6416_v1 = vadd.f32 %v15965_v6, %v16094_v60  ;;  %v7117_v18 = vadd.f32 %v17641_v43, %v6411_v35  ;;  %v17644_v21 = vld [vmem:[#allocation64_spill] sm:$0xff]  ;;  %v17645_v23 = vld [vmem:[#allocation74_spill] sm:$0xff]  ;;  %v17647_v35 = vld [vmem:[#allocation61_spill] sm:$0xff] }
 0x33e   : > { %v6412_v51 = vadd.f32 %v17642_v7, %v16059_v37  ;;  %v6419_v19 = vadd.f32 %v15983_v28, %v16123_v29  ;;  %v6417_v24 = vadd.f32 %v17643_v9, %v16128_v3  ;;  %v7120_v32 = vadd.f32 %v17644_v21, %v6414_v59  ;;  %v7386_v60 = vpop.f32.mrf.mxu0  ;;  %v17648_v5 = vld [vmem:[#allocation94_spill] sm:$0xff]  ;;  %v17649_v29 = vld [vmem:[#allocation96_spill] sm:$0xff] }
 0x33f   : > { %v6415_v34 = vadd.f32 %v17645_v23, %v16062_v47  ;;  %v16352_v30 = vadd.f32 %v17646_v17, %v6416_v1  ;;  %v6422_v6 = vadd.f32 %v16030_v14, %v16131_v31  ;;  %v6420_v3 = vadd.f32 %v17649_v29, %v16169_v50  ;;  %v11830_v47 = vpop.f32.mrf.mxu1  ;;  %v17650_v31 = vld [vmem:[#allocation97_spill] sm:$0xff]  ;;  %v17651_v12 = vld [vmem:[#allocation54_spill] sm:$0xff] }
 0x340   : > { %v16357_v37 = vadd.f32 %v17647_v35, %v6419_v19  ;;  %v16360_v28 = vadd.f32 %v17648_v5, %v6417_v24  ;;  %v6423_v59 = vadd.f32 %v16055_v40, %v16200_v13  ;;  %v6421_v14 = vadd.f32 %v16081_v45, %v16204_v42  ;;  %v11787_v57 = vpop.f32.mrf.mxu0  ;;  %v17652_v1 = vld [vmem:[#allocation37_spill] sm:$0xff]  ;;  %v17653_v50 = vld [vmem:[#allocation46_spill] sm:$0xff]  ;;  %v17656_v42 = vld [vmem:[#allocation99_spill] sm:$0xff] }
 0x341   : > { %v16367_v56 = vadd.f32 %v16053_v49, %v6422_v6  ;;  %v6426_v33 = vadd.f32 %v17650_v31, %v16207_v2  ;;  %v6424_v54 = vadd.f32 %v17651_v12, %v16238_v22  ;;  %v16376_v43 = vadd.f32 %v17652_v1, %v6420_v3  ;;  %v17654_v40 = vld [vmem:[#allocation69_spill] sm:$0xff]  ;;  %v17655_v13 = vld [vmem:[#allocation50_spill] sm:$0xff]  ;;  %v8124_v45 = vpop.f32.mrf.mxu1 }
 0x342   : > { %v16379_v7 = vadd.f32 %v17653_v50, %v6423_v59  ;;  %v6427_v49 = vadd.f32 %v17654_v40, %v16271_v48  ;;  %v6425_v19 = vadd.f32 %v17655_v13, %v16275_v41  ;;  %v16386_v9 = vadd.f32 %v17656_v42, %v6421_v14  ;;  %v17657_v2 = vld [vmem:[#allocation102_spill] sm:$0xff]  ;;  %v17658_v22 = vld [vmem:[#allocation53_spill] sm:$0xff]  ;;  %v7389_v6 = vpop.f32.mrf.mxu0  ;;  %v17661_v48 = vld [vmem:[#allocation52_spill] sm:$0xff] }
 0x343   : > { %v16389_v24 = vadd.f32 %v17657_v2, %v6426_v33  ;;  %v16392_v21 = vadd.f32 %v17658_v22, %v6424_v54  ;;  %v17659_v23 = vld [vmem:[#allocation49_spill] sm:$0xff]  ;;  %v17660_v35 = vld [vmem:[#allocation98_spill] sm:$0xff]  ;;  %v17662_v41 = vld [vmem:[#allocation103_spill] sm:$0xff]  ;;  %v16404_v31 = vpop.f32.mrf.mxu1 }
 0x344   : > { %v6430_v17 = vadd.f32 %v17659_v23, %v16278_v44  ;;  %v16397_v5 = vadd.f32 %v17660_v35, %v6427_v49  ;;  %v16400_v29 = vadd.f32 %v17661_v48, %v6425_v19  ;;  %v6428_v3 = vadd.f32 %v17662_v41, %v5930_v8  ;;  %v17663_v59 = vld [vmem:[#allocation72_spill] sm:$0xff]  ;;  %v17664_v33 = vld [vmem:[#allocation101_spill] sm:$0xff]  ;;  %v17665_v54 = vld [vmem:[#allocation75_spill] sm:$0xff] }
 0x345   : > { %v6431_v14 = vadd.f32 %v17663_v59, %v5933_v26  ;;  %v6429_v1 = vadd.f32 %v17665_v54, %v5931_v58  ;;  %v17666_v50 = vld [vmem:[#allocation59_spill] sm:$0xff]  ;;  %v17668_v49 = vld [vmem:[#allocation104_spill] sm:$0xff]  ;;  %v17669_v19 = vld [vmem:[#allocation58_spill] sm:$0xff]  ;;  %v6433_v26 = vadd.f32 %v16268_v25, %v5935_v11  ;;  %v16420_v23 = vpop.f32.mrf.mxu1  ;;  %v7497_v11 = vadd.f32 %v16298_v36, %v7110_v4 }
 0x346   : > { %v16407_v12 = vadd.f32 %v17664_v33, %v6430_v17  ;;  %v6434_v44 = vadd.f32 %v17666_v50, %v5936_v63  ;;  %v17667_v40 = vld [vmem:[#allocation11_spill] sm:$0xff]  ;;  %v16413_v42 = vadd.f32 %v17668_v49, %v6428_v3  ;;  %v17670_v8 = vld [vmem:[#allocation57_spill] sm:$0xff]  ;;  %v11790_v17 = vpop.f32.mrf.mxu0  ;;  %v17671_v35 = vld [vmem:[#allocation66_spill] sm:$0xff]  ;;  %v7504_v49 = vadd.f32 %v11787_v57, %v7117_v18 }
 0x347   : > { %v6432_v13 = vadd.f32 %v17667_v40, %v5934_v39  ;;  %v16416_v2 = vadd.f32 %v17669_v19, %v6431_v14  ;;  %v6435_v22 = vadd.f32 %v17670_v8, %v5937_v62  ;;  %v16423_v48 = vadd.f32 %v17671_v35, %v6429_v1  ;;  %v17672_v41 = vld [vmem:[#allocation79_spill] sm:$0xff]  ;;  %v17674_v33 = vld [vmem:[#allocation29_spill] sm:$0xff]  ;;  %v17675_v50 = vld [vmem:[#allocation60_spill] sm:$0xff] }
 0x348   : > { %v16426_v58 = vadd.f32 %v16282_v52, %v6434_v44  ;;  %v7499_v39 = vadd.f32 %v16284_v15, %v7112_v16  ;;  %v17673_v3 = vld [vmem:[#allocation63_spill] sm:$0xff]  ;;  %v16437_v25 = vadd.f32 %v7098_v55, %v6433_v26  ;;  %v7402_v14 = vpop.f32.mrf.mxu0  ;;  %v7118_v54 = vadd.f32 %v17674_v33, %v6412_v51  ;;  %v17676_v44 = vld [vmem:[#allocation32_spill] sm:$0xff]  ;;  %v17677_v16 = vld [vmem:[#allocation25_spill] sm:$0xff] }
 0x349   : > { %v16429_v63 = vadd.f32 %v16296_v27, %v6432_v13  ;;  %v6418_v59 = vadd.f32 %v17673_v3, %v17672_v41  ;;  %v16435_v62 = vadd.f32 %v16313_v53, %v6435_v22  ;;  %v7503_v1 = vadd.f32 %v11786_v46, %v7116_v20  ;;  %v11834_v53 = vpop.f32.mrf.mxu1  ;;  %v17678_v19 = vld [vmem:[#allocation73_spill] sm:$0xff]  ;;  %v17679_v46 = vld [vmem:[#allocation100_spill] sm:$0xff]  ;;  %v17681_v3 = vld [vmem:[#allocation70_spill] sm:$0xff] }
 0x34a   : > { %v16441_v52 = vadd.f32 %v11830_v47, %v7499_v39  ;;  %v7501_v27 = vadd.f32 %v7386_v60, %v7114_v61  ;;  %v5161_v15 = vadd.f32 %v17676_v44, %v17675_v50  ;;  %v7121_v40 = vadd.f32 %v17677_v16, %v6415_v34  ;;  %v11791_v55 = vpop.f32.mrf.mxu0  ;;  %v17680_v35 = vld [vmem:[#allocation56_spill] sm:$0xff] }
 0x34b   : > { %v16446_v13 = vadd.f32 %v8124_v45, %v7497_v11  ;;  %v7115_v36 = vadd.f32 %v17678_v19, %v16337_v38  ;;  %v16450_v4 = vadd.f32 %v11834_v53, %v7503_v1  ;;  %v7507_v51 = vadd.f32 %v11790_v17, %v7120_v32  ;;  %v8140_v8 = vpop.f32.mrf.mxu1 }
 0x34c   : > { %v7505_v47 = vadd.f32 %v7402_v14, %v7118_v54  ;;  %v7508_v20 = vadd.f32 %v11791_v55, %v7121_v40  ;;  %v7405_v61 = vpop.f32.mrf.mxu0  ;;  %v7124_v60 = vadd.f32 %v17679_v46, %v6418_v59  ;;  %v16453_v22 = vadd.f32 %v8140_v8, %v7501_v27  ;;  %v17682_v54 = vld [vmem:[#allocation95_spill] sm:$0xff] }
 0x34d   : > { %v7502_v34 = vadd.f32 %v7389_v6, %v7115_v36  ;;  %v11835_v45 = vpop.f32.mrf.mxu1  ;;  %v5915_v18 = vadd.f32 %v17680_v35, %v5161_v15 }
 0x34e   : > { %v11794_v26 = vpop.f32.mrf.mxu0  ;;  %v16456_v57 = vadd.f32 %v11835_v45, %v7504_v49 }
 0x34f   : > { %v7511_v39 = vadd.f32 %v11794_v26, %v7124_v60  ;;  %v8143_v38 = vpop.f32.mrf.mxu1  ;;  %v6413_v32 = vadd.f32 %v17681_v3, %v5915_v18 }
 0x350   : > { %v7418_v41 = vpop.f32.mrf.mxu0  ;;  %v16459_v17 = vadd.f32 %v8143_v38, %v7502_v34 }
 0x351   : > { %v7509_v11 = vadd.f32 %v7418_v41, %v16352_v30  ;;  %v11838_v33 = vpop.f32.mrf.mxu1  ;;  %v7119_v1 = vadd.f32 %v17682_v54, %v6413_v32 }
 0x352   : > { %v11795_v14 = vpop.f32.mrf.mxu0  ;;  %v16464_v27 = vadd.f32 %v11838_v33, %v7507_v51 }
 0x353   : > { %v7512_v59 = vadd.f32 %v11795_v14, %v16357_v37  ;;  %v8156_v44 = vpop.f32.mrf.mxu1  ;;  %v7506_v40 = vadd.f32 %v7405_v61, %v7119_v1 }
 0x354   : > { %v7421_v6 = vpop.f32.mrf.mxu0  ;;  %v16467_v16 = vadd.f32 %v8156_v44, %v7505_v47 }
 0x355   : > { %v7510_v50 = vadd.f32 %v7421_v6, %v16360_v28  ;;  %v11839_v49 = vpop.f32.mrf.mxu1 }
 0x356   : > { %v11798_v15 = vpop.f32.mrf.mxu0  ;;  %v16470_v55 = vadd.f32 %v11839_v49, %v7508_v20 }
 0x357   : > { %v7515_v53 = vadd.f32 %v11798_v15, %v16367_v56  ;;  %v8159_v19 = vpop.f32.mrf.mxu1 }
 0x358   : > { %v7434_v30 = vpop.f32.mrf.mxu0  ;;  %v16473_v8 = vadd.f32 %v8159_v19, %v7506_v40 }
 0x359   : > { %v7513_v37 = vadd.f32 %v7434_v30, %v16376_v43  ;;  %v11842_v47 = vpop.f32.mrf.mxu1  ;;  %v17683_v30 = vld [vmem:[#allocation13_spill] sm:$0xff] }
 0x35a   : > { %v11799_v36 = vpop.f32.mrf.mxu0  ;;  %v16477_v61 = vadd.f32 %v11842_v47, %v7511_v39  ;;  %v17685_v47 = vld [vmem:[#allocation48_spill] sm:$0xff] }
 0x35b   : > { %v7516_v51 = vadd.f32 %v11799_v36, %v16379_v7  ;;  %v8172_v34 = vpop.f32.mrf.mxu1 }
 0x35c   : > { %v7437_v28 = vpop.f32.mrf.mxu0  ;;  %v16480_v45 = vadd.f32 %v8172_v34, %v7509_v11 }
 0x35d   : > { %v7514_v46 = vadd.f32 %v7437_v28, %v16386_v9  ;;  %v11843_v26 = vpop.f32.mrf.mxu1 }
 0x35e   : > { %v11802_v60 = vpop.f32.mrf.mxu0  ;;  %v16483_v18 = vadd.f32 %v11843_v26, %v7512_v59 }
 0x35f   : > { %v7519_v56 = vadd.f32 %v11802_v60, %v16389_v24  ;;  %v8175_v38 = vpop.f32.mrf.mxu1 }
 0x360   : > { %v7450_v20 = vpop.f32.mrf.mxu0  ;;  %v16486_v41 = vadd.f32 %v8175_v38, %v7510_v50  ;;  %v17687_v38 = vld [vmem:[#allocation40_spill] sm:$0xff] }
 0x361   : > { %v7517_v43 = vadd.f32 %v7450_v20, %v16392_v21  ;;  %v11846_v11 = vpop.f32.mrf.mxu1 }
 0x362   : > { %v11803_v35 = vpop.f32.mrf.mxu0  ;;  %v16491_v21 = vadd.f32 %v11846_v11, %v7515_v53  ;;  %v17689_v11 = vld [vmem:[#allocation39_spill] sm:$0xff] }
 0x363   : > { %v7520_v7 = vadd.f32 %v11803_v35, %v16397_v5  ;;  %v8188_v59 = vpop.f32.mrf.mxu1 }
 0x364   : > { %v7453_v9 = vpop.f32.mrf.mxu0  ;;  %v16494_v5 = vadd.f32 %v8188_v59, %v7513_v37  ;;  %v17684_v37 = vld [vmem:[#allocation14_spill] sm:$0xff] }
 0x365   : > { %v7518_v39 = vadd.f32 %v7453_v9, %v16400_v29  ;;  %v11847_v1 = vpop.f32.mrf.mxu1  ;;  %v1135_v19 = vadd.f32 %v17684_v37, %v17683_v30  ;;  %v17693_v30 = vld [vmem:[#allocation16_spill] sm:$0xff] }
 0x366   : > { %v11806_v3 = vpop.f32.mrf.mxu0  ;;  %v16497_v29 = vadd.f32 %v11847_v1, %v7516_v51 }
 0x367   : > { %v7523_v24 = vadd.f32 %v11806_v3, %v16407_v12  ;;  %v8191_v12 = vpop.f32.mrf.mxu1  ;;  %v1712_v60 = vadd.f32 %v17685_v47, %v1135_v19  ;;  %v17694_v19 = vld [vmem:[#allocation47_spill] sm:$0xff]  ;;  %v17695_v47 = vld [vmem:[#allocation77_spill] sm:$0xff] }
 0x368   : > { %v7466_v32 = vpop.f32.mrf.mxu0  ;;  %v16500_v40 = vadd.f32 %v8191_v12, %v7514_v46  ;;  %v17692_v12 = vld [vmem:[#allocation55_spill] sm:$0xff] }
 0x369   : > { %v7521_v14 = vadd.f32 %v7466_v32, %v16413_v42 }
 0x36a   : > { %v11807_v33 = vpop.f32.mrf.mxu0 }
 0x36b   : > { %v7524_v6 = vadd.f32 %v11807_v33, %v16416_v2 }
 0x36c   : > { %v7469_v54 = vpop.f32.mrf.mxu0  ;;  %v11850_v36 = vpop.f32.mrf.mxu1 }
 0x36d   : > { %v7522_v50 = vadd.f32 %v7469_v54, %v16423_v48  ;;  %v16506_v48 = vadd.f32 %v11850_v36, %v7519_v56  ;;  %v17688_v56 = vld [vmem:[#allocation82_spill] sm:$0xff] }
 0x36e   : > { %v11810_v44 = vpop.f32.mrf.mxu0  ;;  %v17691_v54 = vld [vmem:[#allocation106_spill] sm:$0xff] }
 0x36f   : > { %v7527_v15 = vadd.f32 %v11810_v44, %v16426_v58  ;;  %v8204_v58 = vpop.f32.mrf.mxu1 }
 0x370   : > { %v7482_v42 = vpop.f32.mrf.mxu0  ;;  %v16510_v46 = vadd.f32 %v8204_v58, %v7517_v43  ;;  %v17696_v58 = vld [vmem:[#allocation31_spill] sm:$0xff] }
 0x371   : > { %v7525_v53 = vadd.f32 %v7482_v42, %v16429_v63  ;;  %v11851_v34 = vpop.f32.mrf.mxu1  ;;  %v17686_v63 = vld [vmem:[#allocation51_spill] sm:$0xff] }
 0x372   : > { %v11811_v49 = vpop.f32.mrf.mxu0  ;;  %v16512_v20 = vadd.f32 %v11851_v34, %v7520_v7  ;;  %v2421_v26 = vadd.f32 %v17686_v63, %v1712_v60 }
 0x373   : > { %v7528_v2 = vadd.f32 %v11811_v49, %v16435_v62  ;;  %v8207_v62 = vpop.f32.mrf.mxu1 }
 0x374   : > { %v7485_v28 = vpop.f32.mrf.mxu0  ;;  %v16515_v35 = vadd.f32 %v8207_v62, %v7518_v39  ;;  %v2808_v9 = vadd.f32 %v17687_v38, %v2421_v26  ;;  %v17697_v26 = vld [vmem:[#allocation34_spill] sm:$0xff] }
 0x375   : > { %v7526_v51 = vadd.f32 %v7485_v28, %v16437_v25  ;;  %v17690_v25 = vld [vmem:[#allocation105_spill] sm:$0xff]  ;;  %v17698_v38 = vld [vmem:[#allocation26_spill] sm:$0xff] }
 0x376   : > { %v3562_v32 = vadd.f32 %v17688_v56, %v2808_v9  ;;  %v4062_v33 = vadd.f32 %v17690_v25, %v17689_v11  ;;  %v17699_v56 = vld [vmem:[#allocation45_spill] sm:$0xff] }
 0x377   : > { %v11854_v3 = vpop.f32.mrf.mxu1  ;;  %v17700_v25 = vld [vmem:[#allocation65_spill] sm:$0xff] }
 0x378   : > { %v16521_v59 = vadd.f32 %v11854_v3, %v7523_v24  ;;  %v4060_v1 = vadd.f32 %v17691_v54, %v3562_v32  ;;  %v4768_v42 = vadd.f32 %v17692_v12, %v4062_v33 }
 0x379   : > { %v8220_v43 = vpop.f32.mrf.mxu1 }
 0x37a   : > { %v16524_v7 = vadd.f32 %v8220_v43, %v7521_v14  ;;  %v4766_v37 = vadd.f32 %v17693_v30, %v4060_v1  ;;  %v5155_v36 = vadd.f32 %v17694_v19, %v4768_v42 }
 0x37b   : > { %v11855_v44 = vpop.f32.mrf.mxu1 }
 0x37c   : > { %v16527_v39 = vadd.f32 %v11855_v44, %v7524_v6  ;;  %v5153_v24 = vadd.f32 %v17695_v47, %v4766_v37  ;;  %v5909_v34 = vadd.f32 %v17696_v58, %v5155_v36 }
 0x37d   : > { %v8223_v49 = vpop.f32.mrf.mxu1 }
 0x37e   : > { %v16531_v28 = vadd.f32 %v8223_v49, %v7522_v50  ;;  %v5907_v62 = vadd.f32 %v17697_v26, %v5153_v24  ;;  %v6407_v6 = vadd.f32 %v17698_v38, %v5909_v34 }
 0x380   : > { %v6405_v32 = vadd.f32 %v17699_v56, %v5907_v62  ;;  %v7113_v33 = vadd.f32 %v17700_v25, %v6407_v6 }
 0x381   : > { %v11858_v60 = vpop.f32.mrf.mxu1 }
 0x382   : > { %v16535_v63 = vadd.f32 %v11858_v60, %v7527_v15  ;;  %v17701_v15 = vld [vmem:[#allocation62_spill] sm:$0xff]  ;;  %v7500_v44 = vadd.f32 %v16315_v10, %v7113_v33 }
 0x383   : > { %v8236_v14 = vpop.f32.mrf.mxu1  ;;  %v7111_v1 = vadd.f32 %v17701_v15, %v6405_v32 }
 0x384   : > { %v16539_v9 = vadd.f32 %v8236_v14, %v7525_v53  ;;  %v8254_v30 = vadd.f32 %v16404_v31, %v7500_v44 }
 0x385   : > { %v11859_v3 = vpop.f32.mrf.mxu1  ;;  %v7498_v42 = vadd.f32 %v16327_v0, %v7111_v1 }
 0x386   : > { %v16542_v11 = vadd.f32 %v11859_v3, %v7528_v2 }
 0x387   : > { %v8239_v50 = vpop.f32.mrf.mxu1  ;;  %v8252_v10 = vadd.f32 %v16420_v23, %v7498_v42 }
 0x388   : > { %v16545_v43 = vadd.f32 %v8239_v50, %v7526_v51  ;;  %v11878_v54 = vpop.f32.mrf.mxu0  ;;  %v16556_v51 = vld [vmem:[%s16730_s2] ss:$0 sm:$0xff] }
 0x389   : > { %v8751_v53 = vadd.f32 %v11878_v54, %v16441_v52 }
 0x38a   : > { %v8622_v12 = vpop.f32.mrf.mxu0 }
 0x38b   : > { %v8749_v2 = vadd.f32 %v8622_v12, %v16446_v13  ;;  %v16563_v13 = vld [vmem:[%s16731_s3] ss:$0 sm:$0xff] }
 0x38c   : > { %v11879_v49 = vpop.f32.mrf.mxu0 }
 0x38d   : > { %v8752_v47 = vadd.f32 %v11879_v49, %v8254_v30 }
 0x38e   : > { %v8625_v19 = vpop.f32.mrf.mxu0 }
 0x38f   : > { %v8750_v31 = vadd.f32 %v8625_v19, %v8252_v10 }
 0x390   : > { %v11926_v37 = vpop.f32.mrf.mxu1 }
 0x391   : > { %v9457_v36 = vadd.f32 %v11926_v37, %v8751_v53 }
 0x392   : > { %v9328_v0 = vpop.f32.mrf.mxu1 }
 0x393   : > { %v9496_v52 = vmul.f32 %v16556_v51, %v9457_v36  ;;  %v9455_v24 = vadd.f32 %v9328_v0, %v8749_v2 }
 0x394   : > { %v11927_v60 = vpop.f32.mrf.mxu1 }
 0x395   : > { %v9494_v58 = vmul.f32 %v16556_v51, %v9455_v24  ;;  %v9458_v34 = vadd.f32 %v11927_v60, %v8752_v47  ;;  %v9535_v23 = vadd.f32 %v16563_v13, %v9496_v52 }
 0x396   : > { %v9331_v14 = vpop.f32.mrf.mxu1 }
 0x397   : > { %v9497_v26 = vmul.f32 %v16556_v51, %v9458_v34  ;;  %v9456_v62 = vadd.f32 %v9331_v14, %v8750_v31  ;;  %v11882_v38 = vpop.f32.mrf.mxu0  ;;  %v9533_v6 = vadd.f32 %v16563_v13, %v9494_v58  ;;  %v9567_v50 = vmax.f32 %v9535_v23, 0.0 }
 0x398   : > { %v8755_v15 = vadd.f32 %v11882_v38, %v16450_v4 }
 0x399   : > { %v9536_v3 = vadd.f32 %v16563_v13, %v9497_v26  ;;  %v9495_v56 = vmul.f32 %v16556_v51, %v9456_v62  ;;  %v8638_v32 = vpop.f32.mrf.mxu0  ;;  %v9565_v1 = vmax.f32 %v9533_v6, 0.0 }
 0x39a   : > { %v8753_v42 = vadd.f32 %v8638_v32, %v16453_v22 }
 0x39b   : > { %v9568_v25 = vmax.f32 %v9536_v3, 0.0  ;;  %v9534_v33 = vadd.f32 %v16563_v13, %v9495_v56  ;;  %v11883_v54 = vpop.f32.mrf.mxu0 }
 0x39c   : > { %v8756_v37 = vadd.f32 %v11883_v54, %v16456_v57 }
 0x39d   : > { %v10717_v44 = vpack.c.bf16 %v9568_v25, %v9567_v50  ;;  %v9566_v12 = vmax.f32 %v9534_v33, 0.0  ;;  %v8641_v30 = vpop.f32.mrf.mxu0 }
 0x39e   : > { %v8754_v36 = vadd.f32 %v8641_v30, %v16459_v17 }
 0x39f   : > { %10789 = vst [vmem:[%s16577_s29 + $0x8] sm:$0xff] %v10717_v44   ;;  %v10712_v53 = vpack.c.bf16 %v9566_v12, %v9565_v1 }
 0x3a0   : > { %v11930_v49 = vpop.f32.mrf.mxu1 }
 0x3a1   : > { %v9461_v2 = vadd.f32 %v11930_v49, %v8755_v15  ;;  %10713 = vst [vmem:[%s16577_s29] sm:$0xff] %v10712_v53  }
 0x3a2   : > { %v9344_v19 = vpop.f32.mrf.mxu1 }
 0x3a3   : > { %v9500_v4 = vmul.f32 %v16556_v51, %v9461_v2  ;;  %v9459_v10 = vadd.f32 %v9344_v19, %v8753_v42 }
 0x3a4   : > { %v11931_v47 = vpop.f32.mrf.mxu1 }
 0x3a5   : > { %v9498_v22 = vmul.f32 %v16556_v51, %v9459_v10  ;;  %v9462_v0 = vadd.f32 %v11931_v47, %v8756_v37  ;;  %v9539_v24 = vadd.f32 %v16563_v13, %v9500_v4 }
 0x3a6   : > { %v9347_v52 = vpop.f32.mrf.mxu1 }
 0x3a7   : > { %v9501_v31 = vmul.f32 %v16556_v51, %v9462_v0  ;;  %v9460_v60 = vadd.f32 %v9347_v52, %v8754_v36  ;;  %v11886_v58 = vpop.f32.mrf.mxu0  ;;  %v9537_v57 = vadd.f32 %v16563_v13, %v9498_v22  ;;  %v9571_v26 = vmax.f32 %v9539_v24, 0.0 }
 0x3a8   : > { %v8759_v17 = vadd.f32 %v11886_v58, %v16464_v27 }
 0x3a9   : > { %v9540_v34 = vadd.f32 %v16563_v13, %v9501_v31  ;;  %v9499_v14 = vmul.f32 %v16556_v51, %v9460_v60  ;;  %v8654_v23 = vpop.f32.mrf.mxu0  ;;  %v9569_v56 = vmax.f32 %v9537_v57, 0.0 }
 0x3aa   : > { %v8757_v3 = vadd.f32 %v8654_v23, %v16467_v16 }
 0x3ab   : > { %v9572_v62 = vmax.f32 %v9540_v34, 0.0  ;;  %v9538_v38 = vadd.f32 %v16563_v13, %v9499_v14  ;;  %v11887_v6 = vpop.f32.mrf.mxu0 }
 0x3ac   : > { %v8760_v15 = vadd.f32 %v11887_v6, %v16470_v55 }
 0x3ad   : > { %v10727_v32 = vpack.c.bf16 %v9572_v62, %v9571_v26  ;;  %v9570_v50 = vmax.f32 %v9538_v38, 0.0  ;;  %v8657_v33 = vpop.f32.mrf.mxu0 }
 0x3ae   : > { %v8758_v42 = vadd.f32 %v8657_v33, %v16473_v8 }
 0x3af   : > { %v11934_v25 = vpop.f32.mrf.mxu1  ;;  %10791 = vst [vmem:[%s16577_s29 + $0x18] sm:$0xff] %v10727_v32   ;;  %v10722_v1 = vpack.c.bf16 %v9570_v50, %v9569_v56 }
 0x3b0   : > { %v9465_v54 = vadd.f32 %v11934_v25, %v8759_v17 }
 0x3b1   : > { %v9360_v44 = vpop.f32.mrf.mxu1  ;;  %10790 = vst [vmem:[%s16577_s29 + $0x10] sm:$0xff] %v10722_v1  }
 0x3b2   : > { %v9504_v27 = vmul.f32 %v16556_v51, %v9465_v54  ;;  %v9463_v12 = vadd.f32 %v9360_v44, %v8757_v3 }
 0x3b3   : > { %v11935_v53 = vpop.f32.mrf.mxu1 }
 0x3b4   : > { %v9502_v16 = vmul.f32 %v16556_v51, %v9463_v12  ;;  %v9466_v49 = vadd.f32 %v11935_v53, %v8760_v15  ;;  %v9543_v2 = vadd.f32 %v16563_v13, %v9504_v27 }
 0x3b5   : > { %v9363_v30 = vpop.f32.mrf.mxu1 }
 0x3b6   : > { %v9505_v37 = vmul.f32 %v16556_v51, %v9466_v49  ;;  %v9464_v55 = vadd.f32 %v9363_v30, %v8758_v42  ;;  %v11890_v19 = vpop.f32.mrf.mxu0  ;;  %v9541_v4 = vadd.f32 %v16563_v13, %v9502_v16  ;;  %v9575_v47 = vmax.f32 %v9543_v2, 0.0 }
 0x3b7   : > { %v8763_v58 = vadd.f32 %v11890_v19, %v16477_v61 }
 0x3b8   : > { %v9544_v10 = vadd.f32 %v16563_v13, %v9505_v37  ;;  %v9503_v8 = vmul.f32 %v16556_v51, %v9464_v55  ;;  %v8670_v36 = vpop.f32.mrf.mxu0  ;;  %v9573_v24 = vmax.f32 %v9541_v4, 0.0 }
 0x3b9   : > { %v8761_v34 = vadd.f32 %v8670_v36, %v16480_v45 }
 0x3ba   : > { %v9576_v22 = vmax.f32 %v9544_v10, 0.0  ;;  %v9542_v0 = vadd.f32 %v16563_v13, %v9503_v8  ;;  %v11891_v52 = vpop.f32.mrf.mxu0 }
 0x3bb   : > { %v8764_v26 = vadd.f32 %v11891_v52, %v16483_v18 }
 0x3bc   : > { %v10737_v31 = vpack.c.bf16 %v9576_v22, %v9575_v47  ;;  %v9574_v60 = vmax.f32 %v9542_v0, 0.0  ;;  %v8673_v23 = vpop.f32.mrf.mxu0 }
 0x3bd   : > { %v8762_v3 = vadd.f32 %v8673_v23, %v16486_v41 }
 0x3be   : > { %10793 = vst [vmem:[%s16577_s29 + $0x28] sm:$0xff] %v10737_v31   ;;  %v10732_v57 = vpack.c.bf16 %v9574_v60, %v9573_v24 }
 0x3bf   : > { %v11938_v14 = vpop.f32.mrf.mxu1 }
 0x3c0   : > { %10792 = vst [vmem:[%s16577_s29 + $0x20] sm:$0xff] %v10732_v57   ;;  %v9469_v17 = vadd.f32 %v11938_v14, %v8763_v58 }
 0x3c1   : > { %v9376_v62 = vpop.f32.mrf.mxu1 }
 0x3c2   : > { %v9508_v38 = vmul.f32 %v16556_v51, %v9469_v17  ;;  %v9467_v6 = vadd.f32 %v9376_v62, %v8761_v34 }
 0x3c3   : > { %v11939_v56 = vpop.f32.mrf.mxu1 }
 0x3c4   : > { %v9506_v32 = vmul.f32 %v16556_v51, %v9467_v6  ;;  %v9470_v61 = vadd.f32 %v11939_v56, %v8764_v26  ;;  %v9547_v25 = vadd.f32 %v16563_v13, %v9508_v38 }
 0x3c5   : > { %v9379_v50 = vpop.f32.mrf.mxu1 }
 0x3c6   : > { %v9509_v45 = vmul.f32 %v16556_v51, %v9470_v61  ;;  %v9468_v33 = vadd.f32 %v9379_v50, %v8762_v3  ;;  %v11894_v54 = vpop.f32.mrf.mxu0  ;;  %v9545_v15 = vadd.f32 %v16563_v13, %v9506_v32  ;;  %v9579_v27 = vmax.f32 %v9547_v25, 0.0 }
 0x3c7   : > { %v8767_v41 = vadd.f32 %v11894_v54, %v16491_v21 }
 0x3c8   : > { %v9548_v18 = vadd.f32 %v16563_v13, %v9509_v45  ;;  %v9507_v1 = vmul.f32 %v16556_v51, %v9468_v33  ;;  %v8686_v44 = vpop.f32.mrf.mxu0  ;;  %v9577_v49 = vmax.f32 %v9545_v15, 0.0 }
 0x3c9   : > { %v8765_v16 = vadd.f32 %v8686_v44, %v16494_v5 }
 0x3ca   : > { %v9580_v12 = vmax.f32 %v9548_v18, 0.0  ;;  %v9546_v42 = vadd.f32 %v16563_v13, %v9507_v1  ;;  %v11895_v53 = vpop.f32.mrf.mxu0 }
 0x3cb   : > { %v8768_v4 = vadd.f32 %v11895_v53, %v16497_v29 }
 0x3cc   : > { %v10747_v30 = vpack.c.bf16 %v9580_v12, %v9579_v27  ;;  %v9578_v2 = vmax.f32 %v9546_v42, 0.0  ;;  %v8689_v55 = vpop.f32.mrf.mxu0 }
 0x3cd   : > { %v8766_v47 = vadd.f32 %v8689_v55, %v16500_v40 }
 0x3ce   : > { %v11942_v37 = vpop.f32.mrf.mxu1  ;;  %10795 = vst [vmem:[%s16577_s29 + $0x38] sm:$0xff] %v10747_v30   ;;  %v10742_v10 = vpack.c.bf16 %v9578_v2, %v9577_v49 }
 0x3cf   : > { %v9473_v19 = vadd.f32 %v11942_v37, %v8767_v41 }
 0x3d0   : > { %v9392_v8 = vpop.f32.mrf.mxu1  ;;  %10794 = vst [vmem:[%s16577_s29 + $0x30] sm:$0xff] %v10742_v10  }
 0x3d1   : > { %v9512_v21 = vmul.f32 %v16556_v51, %v9473_v19  ;;  %v9471_v36 = vadd.f32 %v9392_v8, %v8765_v16 }
 0x3d2   : > { %v11943_v22 = vpop.f32.mrf.mxu1 }
 0x3d3   : > { %v9510_v5 = vmul.f32 %v16556_v51, %v9471_v36  ;;  %v9474_v0 = vadd.f32 %v11943_v22, %v8768_v4  ;;  %v9551_v24 = vadd.f32 %v16563_v13, %v9512_v21 }
 0x3d4   : > { %v9395_v52 = vpop.f32.mrf.mxu1 }
 0x3d5   : > { %v9513_v31 = vmul.f32 %v16556_v51, %v9474_v0  ;;  %v9472_v29 = vadd.f32 %v9395_v52, %v8766_v47  ;;  %v11898_v60 = vpop.f32.mrf.mxu0  ;;  %v9549_v58 = vadd.f32 %v16563_v13, %v9510_v5  ;;  %v9583_v14 = vmax.f32 %v9551_v24, 0.0 }
 0x3d6   : > { %v8771_v3 = vadd.f32 %v11898_v60, %v16506_v48 }
 0x3d7   : > { %v9552_v57 = vadd.f32 %v16563_v13, %v9513_v31  ;;  %v9511_v40 = vmul.f32 %v16556_v51, %v9472_v29  ;;  %v8702_v34 = vpop.f32.mrf.mxu0  ;;  %v9581_v62 = vmax.f32 %v9549_v58, 0.0 }
 0x3d8   : > { %v8769_v32 = vadd.f32 %v8702_v34, %v16510_v46 }
 0x3d9   : > { %v9584_v23 = vmax.f32 %v9552_v57, 0.0  ;;  %v9550_v17 = vadd.f32 %v16563_v13, %v9511_v40  ;;  %v11899_v26 = vpop.f32.mrf.mxu0 }
 0x3da   : > { %v8772_v45 = vadd.f32 %v11899_v26, %v16512_v20 }
 0x3db   : > { %v10757_v38 = vpack.c.bf16 %v9584_v23, %v9583_v14  ;;  %v9582_v6 = vmax.f32 %v9550_v17, 0.0  ;;  %v8705_v50 = vpop.f32.mrf.mxu0 }
 0x3dc   : > { %v8770_v18 = vadd.f32 %v8705_v50, %v16515_v35 }
 0x3dd   : > { %10797 = vst [vmem:[%s16577_s29 + $0x48] sm:$0xff] %v10757_v38   ;;  %v10752_v56 = vpack.c.bf16 %v9582_v6, %v9581_v62 }
 0x3de   : > { %v11946_v61 = vpop.f32.mrf.mxu1 }
 0x3df   : > { %10796 = vst [vmem:[%s16577_s29 + $0x40] sm:$0xff] %v10752_v56   ;;  %v9477_v25 = vadd.f32 %v11946_v61, %v8771_v3 }
 0x3e0   : > { %v9408_v33 = vpop.f32.mrf.mxu1 }
 0x3e1   : > { %v9516_v54 = vmul.f32 %v16556_v51, %v9477_v25  ;;  %v9475_v15 = vadd.f32 %v9408_v33, %v8769_v32 }
 0x3e2   : > { %v11947_v1 = vpop.f32.mrf.mxu1 }
 0x3e3   : > { %v9514_v44 = vmul.f32 %v16556_v51, %v9475_v15  ;;  %v9478_v48 = vadd.f32 %v11947_v1, %v8772_v45  ;;  %v9555_v27 = vadd.f32 %v16563_v13, %v9516_v54 }
 0x3e4   : > { %v9411_v41 = vpop.f32.mrf.mxu1 }
 0x3e5   : > { %v9517_v46 = vmul.f32 %v16556_v51, %v9478_v48  ;;  %v9476_v12 = vadd.f32 %v9411_v41, %v8770_v18  ;;  %v11902_v42 = vpop.f32.mrf.mxu0  ;;  %v9553_v53 = vadd.f32 %v16563_v13, %v9514_v44  ;;  %v9587_v30 = vmax.f32 %v9555_v27, 0.0 }
 0x3e6   : > { %v8775_v35 = vadd.f32 %v11902_v42, %v16521_v59 }
 0x3e7   : > { %v9556_v20 = vadd.f32 %v16563_v13, %v9517_v46  ;;  %v9515_v16 = vmul.f32 %v16556_v51, %v9476_v12  ;;  %v8718_v49 = vpop.f32.mrf.mxu0  ;;  %v9585_v4 = vmax.f32 %v9553_v53, 0.0 }
 0x3e8   : > { %v8773_v19 = vadd.f32 %v8718_v49, %v16524_v7 }
 0x3e9   : > { %v9588_v2 = vmax.f32 %v9556_v20, 0.0  ;;  %v9554_v37 = vadd.f32 %v16563_v13, %v9515_v16  ;;  %v11903_v55 = vpop.f32.mrf.mxu0 }
 0x3ea   : > { %v8776_v22 = vadd.f32 %v11903_v55, %v16527_v39 }
 0x3eb   : > { %v10767_v10 = vpack.c.bf16 %v9588_v2, %v9587_v30  ;;  %v9586_v8 = vmax.f32 %v9554_v37, 0.0  ;;  %v8721_v36 = vpop.f32.mrf.mxu0 }
 0x3ec   : > { %v8774_v24 = vadd.f32 %v8721_v36, %v16531_v28 }
 0x3ed   : > { %v11950_v21 = vpop.f32.mrf.mxu1  ;;  %10799 = vst [vmem:[%s16577_s29 + $0x58] sm:$0xff] %v10767_v10   ;;  %v10762_v5 = vpack.c.bf16 %v9586_v8, %v9585_v4 }
 0x3ee   : > { %v9481_v47 = vadd.f32 %v11950_v21, %v8775_v35 }
 0x3ef   : > { %v9424_v0 = vpop.f32.mrf.mxu1  ;;  %10798 = vst [vmem:[%s16577_s29 + $0x50] sm:$0xff] %v10762_v5  }
 0x3f0   : > { %v9520_v59 = vmul.f32 %v16556_v51, %v9481_v47  ;;  %v9479_v52 = vadd.f32 %v9424_v0, %v8773_v19 }
 0x3f1   : > { %v11951_v31 = vpop.f32.mrf.mxu1 }
 0x3f2   : > { %v9518_v7 = vmul.f32 %v16556_v51, %v9479_v52  ;;  %v9482_v29 = vadd.f32 %v11951_v31, %v8776_v22  ;;  %v9559_v58 = vadd.f32 %v16563_v13, %v9520_v59 }
 0x3f3   : > { %v9427_v60 = vpop.f32.mrf.mxu1 }
 0x3f4   : > { %v9521_v57 = vmul.f32 %v16556_v51, %v9482_v29  ;;  %v9480_v39 = vadd.f32 %v9427_v60, %v8774_v24  ;;  %v11906_v40 = vpop.f32.mrf.mxu0  ;;  %v9557_v34 = vadd.f32 %v16563_v13, %v9518_v7  ;;  %v9591_v17 = vmax.f32 %v9559_v58, 0.0 }
 0x3f5   : > { %v8779_v32 = vadd.f32 %v11906_v40, %v16535_v63 }
 0x3f6   : > { %v9560_v14 = vadd.f32 %v16563_v13, %v9521_v57  ;;  %v9519_v28 = vmul.f32 %v16556_v51, %v9480_v39  ;;  %v8734_v23 = vpop.f32.mrf.mxu0  ;;  %v9589_v6 = vmax.f32 %v9557_v34, 0.0 }
 0x3f7   : > { %v8777_v50 = vadd.f32 %v8734_v23, %v16539_v9 }
 0x3f8   : > { %v9592_v26 = vmax.f32 %v9560_v14, 0.0  ;;  %v9558_v62 = vadd.f32 %v16563_v13, %v9519_v28  ;;  %v11907_v38 = vpop.f32.mrf.mxu0 }
 0x3f9   : > { %v8780_v54 = vadd.f32 %v11907_v38, %v16542_v11 }
 0x3fa   : > { %v10777_v3 = vpack.c.bf16 %v9592_v26, %v9591_v17  ;;  %v9590_v56 = vmax.f32 %v9558_v62, 0.0  ;;  %v8737_v45 = vpop.f32.mrf.mxu0 }
 0x3fb   : > { %v8778_v44 = vadd.f32 %v8737_v45, %v16545_v43 }
 0x3fc   : > { %10801 = vst [vmem:[%s16577_s29 + $0x68] sm:$0xff] %v10777_v3   ;;  %v10772_v61 = vpack.c.bf16 %v9590_v56, %v9589_v6 }
 0x3fd   : > { %v11954_v25 = vpop.f32.mrf.mxu1 }
 0x3fe   : > { %10800 = vst [vmem:[%s16577_s29 + $0x60] sm:$0xff] %v10772_v61   ;;  %v9485_v33 = vadd.f32 %v11954_v25, %v8779_v32 }
 0x3ff   : > { %v9440_v15 = vpop.f32.mrf.mxu1 }
 0x400   : > { %v9524_v18 = vmul.f32 %v16556_v51, %v9485_v33  ;;  %v9483_v1 = vadd.f32 %v9440_v15, %v8777_v50 }
 0x401   : > { %v11955_v48 = vpop.f32.mrf.mxu1 }
 0x402   : > { %v9522_v63 = vmul.f32 %v16556_v51, %v9483_v1  ;;  %v9486_v41 = vadd.f32 %v11955_v48, %v8780_v54  ;;  %v9563_v9 = vadd.f32 %v16563_v13, %v9524_v18 }
 0x403   : > { %v9443_v27 = vpop.f32.mrf.mxu1 }
 0x404   : > { %v9525_v46 = vmul.f32 %v16556_v51, %v9486_v41  ;;  %v9484_v12 = vadd.f32 %v9443_v27, %v8778_v44  ;;  %v9561_v11 = vadd.f32 %v16563_v13, %v9522_v63  ;;  %v9595_v43 = vmax.f32 %v9563_v9, 0.0 }
 0x406   : > { %v9564_v42 = vadd.f32 %v16563_v13, %v9525_v46  ;;  %v9523_v53 = vmul.f32 %v16556_v51, %v9484_v12  ;;  %v9593_v49 = vmax.f32 %v9561_v11, 0.0 }
 0x408   : > { %v9596_v20 = vmax.f32 %v9564_v42, 0.0  ;;  %v9562_v16 = vadd.f32 %v16563_v13, %v9523_v53 }
 0x40a   : > { %v10787_v35 = vpack.c.bf16 %v9596_v20, %v9595_v43  ;;  %v9594_v30 = vmax.f32 %v9562_v16, 0.0 }
 0x40c   : > { %10803 = vst [vmem:[%s16577_s29 + $0x78] sm:$0xff] %v10787_v35   ;;  %v10782_v51 = vpack.c.bf16 %v9594_v30, %v9593_v49 }
 0x40e   : > { %10802 = vst [vmem:[%s16577_s29 + $0x70] sm:$0xff] %v10782_v51  }
 0x40f   : > { %12360 = shalt.err (!%p12357_p0)
}
 0x410   : > { %s12361_s13 = scalar_lea.hbm %s16680_s8, 2048  ;;  %s12365_s22 = scalar_lea.hbm %s16732_s4, 4096 }
 0x411   : > { %p12362_p1 = scmp.ne.s32.totalorder %s16680_s8, %s12361_s13  ;;  %p12366_p4 = scmp.lt.s32.totalorder %s16680_s8, %s16732_s4 }
 0x412   : > { %p12367_p7 = scmp.lt.s32.totalorder %s12365_s22, %s12361_s13 }
 0x413   : > { %p12363_p2 = pnand %p12362_p1, %p12482_p5 }
 0x414   : > { %p12368_p6 = por %p12367_p7, %p12366_p4 }
 0x415   : > { %p12364_p3 = pneg %p12363_p2 }
 0x417   : > { %p12369_p8 = pnand %p12368_p6, %p12364_p3 }
 0x419   : > { %12372 = shalt.err (!%p12369_p8)
}
 0x41a   : > { %s12417_s28 = smov 64   ;;  %s12418_s29 = smov 4  }
 0x41b   : > { %11961 = dma.vmem_to_hbm [thread:$0]  (%p12482_p5), %s16682_s5, 2048, %s16680_s8, %s16688_s9, %s12417_s28, %s12417_s28, %s12418_s29  }
 0x41c PF: > { %p11973_p9 = scmp.ge.s32.totalorder %s12411_s18, 2  ;;  %s9786_s30 = sand.u32 1, %s12399_s15  }
 0x41d   : > { %p17702_p10 = scmp.ne.s32.totalorder %s16885_s26, 0  ;;  %s9787_s6 = scalar_lea.sflag [#allocation4], %s9786_s30 }
 0x41f   : > { %p11968_p11 = pnand %p11973_p9, %p17702_p10 }
 0x421   : > { %p11969_p12 = pneg %p11968_p11 }
 0x423   : > { %12394 = dma.done.wait (%p11969_p12), %s9787_s6, 2048  }
 0x424   : > { %12396 = vsyncadd (%p11969_p12), %s9787_s6, 4294965248  ;;  %p15_p13 = scmp.ge.s32.totalorder %s12469_s21, 4   ;;  %s17703_s15 = smov %s12403_s16 }
 0x425   : > { %s17704_s16 = smov %s12407_s17  ;;  %s17705_s17 = smov %s12480_s24 }
 0x426   : > { %s17706_s18 = smov %s12469_s21  ;;  %17 = sbr.rel (!%p15_p13) target bundleno = 4 (0x4), region = 94 }
 0x42b   :  { %9792 = vsyncpa [#allocation3], 1 }
 0x42c   :  { %9794 = vsyncpa [#allocation3 + $0x1], 1 }
 0x42d   :  { %9795 = vsyncpa [#allocation4], 1 }
 0x42e   :  { %9797 = vsyncpa [#allocation4 + $0x1], 1 }

</bundles_post_ra>
